<compile_context>
chip_gen: v7x
topology: tpu7x:2x2x1
jax: 0.10.0
libtpu: 0.0.40
codegen_flags: <defaults>
</compile_context>

<pallas_src>
import functools
import numpy as np

import jax
import jax.numpy as jnp
from jax import lax
from jax.experimental import pallas as pl
from jax.experimental.pallas import tpu as pltpu


# ----------------------------- Pallas kernel ------------------------------ #

def _dit_block_kernel(
        # inputs
        x_ref, mod_ref,
        ln1_w_ref, ln1_b_ref,
        w_q_ref, b_q_ref, w_k_ref, b_k_ref, w_v_ref, b_v_ref,
        w_out_ref, b_out_ref,
        ln2_w_ref, ln2_b_ref,
        w_mlp1_ref, b_mlp1_ref, w_mlp2_ref, b_mlp2_ref,
        # outputs
        o_ref,
        # scratch (persists across grid steps; refilled at qi == 0)
        q_scr, k_scr, v_scr,
        *, heads, dim, n_tokens, block_q, n_mlp_chunks):
    head_dim = dim // heads
    scale = float(head_dim) ** -0.5
    eps = 1e-5

    qi = pl.program_id(1)

    mod = mod_ref[0]                               # (6, D) f32
    shift_msa, scale_msa, gate_msa = mod[0:1, :], mod[1:2, :], mod[2:3, :]
    shift_mlp, scale_mlp, gate_mlp = mod[3:4, :], mod[4:5, :], mod[5:6, :]

    def layer_norm(v, w, b):
        mu = jnp.mean(v, axis=-1, keepdims=True)
        var = jnp.mean((v - mu) ** 2, axis=-1, keepdims=True)
        return (v - mu) * lax.rsqrt(var + eps) * w + b

    # ---- qi == 0: modulated LN1 + Q/K/V projection for the WHOLE sequence ----
    # Runs once per batch b; qi > 0 reuses the VMEM caches.
    @pl.when(qi == 0)
    def _fill_qkv_cache():
        x_full = x_ref[0].astype(jnp.float32)                         # (N, D)
        xn = layer_norm(x_full, ln1_w_ref[...], ln1_b_ref[...])
        xn = (xn * (1.0 + scale_msa) + shift_msa).astype(jnp.bfloat16)

        q = jnp.dot(xn, w_q_ref[...],
                    preferred_element_type=jnp.float32) + b_q_ref[...]
        k = jnp.dot(xn, w_k_ref[...],
                    preferred_element_type=jnp.float32) + b_k_ref[...]
        v = jnp.dot(xn, w_v_ref[...],
                    preferred_element_type=jnp.float32) + b_v_ref[...]

        # Q cached pre-scaled, (H, N, hd).
        q_scr[...] = (q * scale).reshape(n_tokens, heads, head_dim) \
                                .transpose(1, 0, 2).astype(jnp.bfloat16)
        # K cached pre-transposed as (H, hd, N): lane-dense N becomes the MXU
        # rhs lane dim of the scores matmul.  (D, N) -> (H, hd, N) only splits
        # the major dim (head_dim % 8 == 0), so no lane relayout.
        k_scr[...] = k.T.reshape(heads, head_dim, n_tokens).astype(jnp.bfloat16)
        # V cached as (H, N, hd).
        v_scr[...] = v.reshape(n_tokens, heads, head_dim) \
                      .transpose(1, 0, 2).astype(jnp.bfloat16)

    # ---- every qi: full-sequence attention for this Q tile -------------------
    q_start = pl.multiple_of(qi * block_q, block_q)
    q3 = q_scr[:, pl.ds(q_start, block_q), :]                         # (H, TQ, hd)

    # heads as a batch dim of single batched matmuls; rhs lane dim is N (dense).
    s = jnp.einsum("hqd,hdn->hqn", q3, k_scr[...],
                   preferred_element_type=jnp.float32)                # (H, TQ, N)
    m = jnp.max(s, axis=-1, keepdims=True)
    p = jnp.exp(s - m)                                                # f32
    l = jnp.sum(p, axis=-1, keepdims=True)
    pv = jnp.einsum("hqn,hnd->hqd", p.astype(jnp.bfloat16), v_scr[...],
                    preferred_element_type=jnp.float32)               # (H, TQ, hd)
    attn = pv * pl.reciprocal(l, approx=False)                        # exact recip
    attn2d = attn.transpose(1, 0, 2).reshape(block_q, dim)            # (TQ, D)

    y = jnp.dot(attn2d.astype(jnp.bfloat16), w_out_ref[...],
                preferred_element_type=jnp.float32) + b_out_ref[...]

    x_tile = x_ref[0, pl.ds(q_start, block_q), :].astype(jnp.float32)
    x1 = x_tile + gate_msa * y

    # ---- modulated LN2 + hidden-chunked MLP (Linear -> SiLU -> Linear) ------
    xn2 = layer_norm(x1, ln2_w_ref[...], ln2_b_ref[...])
    xn2 = (xn2 * (1.0 + scale_mlp) + shift_mlp).astype(jnp.bfloat16)

    def mlp_chunk_body(j, acc):
        h = jnp.dot(xn2, w_mlp1_ref[j],
                    preferred_element_type=jnp.float32) + b_mlp1_ref[j]
        h = (h * jax.nn.sigmoid(h)).astype(jnp.bfloat16)              # SiLU (f32)
        return acc + jnp.dot(h, w_mlp2_ref[j],
                             preferred_element_type=jnp.float32)

    mlp_out = lax.fori_loop(0, n_mlp_chunks, mlp_chunk_body,
                            jnp.zeros((block_q, dim), jnp.float32),
                            unroll=True)
    mlp_out = mlp_out + b_mlp2_ref[...]

    out = x1 + gate_mlp * mlp_out
    o_ref[0] = out.astype(o_ref.dtype)


# ------------------------------- wrapper ---------------------------------- #

def dit_block3d_pallas(x, t, c, params, *, heads, block_q=None, mlp_chunk=None):
    B, N, D = x.shape
    assert D % heads == 0
    head_dim = D // heads
    assert D % 128 == 0, "channel dim must be lane-aligned (multiple of 128)"
    assert head_dim % 8 == 0, "head_dim must be a multiple of 8 (sublane tile)"
    hidden = params["w_mlp1"].shape[1]

    if block_q is None:
        block_q = next((cand for cand in (256, 128) if N % cand == 0), N)
    assert N % block_q == 0 and block_q % 8 == 0
    n_q = N // block_q

    if mlp_chunk is None:
        mlp_chunk = next((cand for cand in (1024, 512, 256) if hidden % cand == 0),
                         hidden)
    assert hidden % mlp_chunk == 0 and mlp_chunk % 128 == 0
    n_mlp_chunks = hidden // mlp_chunk

    # adaLN modulation hoisted out of the kernel: one well-shaped GEMM in XLA.
    cond = jnp.concatenate([t, c], axis=1)                            # (B, D)
    mod = jax.nn.silu(cond) @ params["w_ada"] + params["b_ada"]
    mod = mod.reshape(B, 6, D).astype(jnp.float32)

    # Split the fused qkv weight in the wrapper so the kernel never slices the
    # 3D-wide lane axis.
    w_qkv, b_qkv = params["w_qkv"], params["b_qkv"]
    w_q, w_k, w_v = w_qkv[:, :D], w_qkv[:, D:2 * D], w_qkv[:, 2 * D:]
    b_q, b_k, b_v = b_qkv[:, :D], b_qkv[:, D:2 * D], b_qkv[:, 2 * D:]

    # Pre-chunk the MLP weights over the hidden dim so the kernel streams them
    # chunk-by-chunk (leading-dim dynamic index inside the fori_loop).
    w1 = params["w_mlp1"].reshape(D, n_mlp_chunks, mlp_chunk).transpose(1, 0, 2)
    b1 = params["b_mlp1"].reshape(1, n_mlp_chunks, mlp_chunk).transpose(1, 0, 2)
    w2 = params["w_mlp2"].reshape(n_mlp_chunks, mlp_chunk, D)

    bf16 = lambda a: a.astype(jnp.bfloat16)
    f32 = lambda a: a.astype(jnp.float32)

    weights = (
        f32(params["ln1_w"]), f32(params["ln1_b"]),
        bf16(w_q), f32(b_q), bf16(w_k), f32(b_k), bf16(w_v), f32(b_v),
        bf16(params["w_out"]), f32(params["b_out"]),
        f32(params["ln2_w"]), f32(params["ln2_b"]),
        bf16(w1), f32(b1), bf16(w2), f32(params["b_mlp2"]),
    )

    grid = (B, n_q)

    # Whole-array, non-pipelined VMEM residents (no double-buffering).
    # TODO(synk): for very large DiT variants (D >= 1152, hidden >= 4608) the MLP
    # weights should be streamed from HBM per hidden chunk instead of being
    # residents (v7x only has 64 MiB physical VMEM).
    resident = pl.BlockSpec(memory_space=pltpu.MemorySpace.VMEM)

    kernel = functools.partial(_dit_block_kernel, heads=heads, dim=D,
                               n_tokens=N, block_q=block_q,
                               n_mlp_chunks=n_mlp_chunks)

    # ---- VMEM budget derived from actual sizes (clamped under v7x physical) --
    weight_bytes = sum(int(w.size) * w.dtype.itemsize for w in weights)
    buf_bytes = 2 * (N * D * 4 + 6 * D * 4 + block_q * D * 4)   # double-buffered IO
    scratch_bytes = 3 * N * D * 2                               # Q/K/V bf16 caches
    temp_bytes = (heads * block_q * N * 6                       # scores f32 + p bf16
                  + 6 * N * D * 4                               # qi==0 projection temps
                  + 8 * block_q * D * 4                         # per-qi f32 temps
                  + 2 * block_q * mlp_chunk * 4)                # MLP hidden chunk
    vmem_needed = weight_bytes + buf_bytes + scratch_bytes + temp_bytes + (4 << 20)
    vmem_limit = int(min(max(vmem_needed, 32 << 20), 56 << 20))

    # Advisory cost estimate (K/V projected once per batch; x read once per b).
    flops = B * (8 * N * D * D + 4 * N * N * D + 4 * N * D * hidden)
    transcendentals = B * (heads * N * N + N * hidden)
    bytes_accessed = B * (2 * N * D * 4 + 6 * D * 4) + weight_bytes

    return pl.pallas_call(
        kernel,
        out_shape=jax.ShapeDtypeStruct((B, N, D), x.dtype),
        grid=grid,
        in_specs=[
            # whole sequence of batch b; block index is qi-invariant, so it is
            # DMA'd from HBM exactly once per batch.
            pl.BlockSpec((1, N, D), lambda b, qi: (b, 0, 0)),          # x
            pl.BlockSpec((1, 6, D), lambda b, qi: (b, 0, 0)),          # adaLN vecs
        ] + [resident] * len(weights),
        out_specs=pl.BlockSpec((1, block_q, D), lambda b, qi: (b, qi, 0)),
        scratch_shapes=[
            pltpu.VMEM((heads, N, head_dim), jnp.bfloat16),   # Q cache (pre-scaled)
            pltpu.VMEM((heads, head_dim, N), jnp.bfloat16),   # K^T cache (lane-dense N)
            pltpu.VMEM((heads, N, head_dim), jnp.bfloat16),   # V cache
        ],
        compiler_params=pltpu.CompilerParams(
            # b: parallel (megacore-shardable on v7x).  qi: arbitrary -- must run
            # in order so the qi==0 cache fill precedes qi>0 of the same batch.
            dimension_semantics=("parallel", "arbitrary"),
            vmem_limit_bytes=vmem_limit),
        cost_estimate=pl.CostEstimate(flops=int(flops),
                                      transcendentals=int(transcendentals),
                                      bytes_accessed=int(bytes_accessed)),
    )(x, mod, *weights)


# --------------------------- pure-JAX reference ---------------------------- #

def dit_block3d_ref(x, t, c, params, *, heads):
    D = x.shape[-1]
    hd = D // heads
    scale = float(hd) ** (-0.5)
    eps = 1e-5

    def silu(v):
        return v * jax.nn.sigmoid(v)

    def ln(v, w, b):
        mu = jnp.mean(v, axis=-1, keepdims=True)
        var = jnp.mean((v - mu) ** 2, axis=-1, keepdims=True)
        return (v - mu) / jnp.sqrt(var + eps) * w + b

    cond = jnp.concatenate([t, c], axis=1)
    mod = silu(cond) @ params["w_ada"] + params["b_ada"]
    (shift_msa, scale_msa, gate_msa,
     shift_mlp, scale_mlp, gate_mlp) = jnp.split(mod, 6, axis=1)
    expand = lambda a: a[:, None, :]

    xn = ln(x, params["ln1_w"], params["ln1_b"])
    xn = xn * (1 + expand(scale_msa)) + expand(shift_msa)

    qkv = xn @ params["w_qkv"] + params["b_qkv"]
    q, k, v = jnp.split(qkv, 3, axis=-1)
    B, N, _ = q.shape
    reshape_h = lambda a: a.reshape(B, N, heads, hd).transpose(0, 2, 1, 3)
    q, k, v = map(reshape_h, (q, k, v))
    dots = jnp.einsum("bhnd,bhmd->bhnm", q, k) * scale
    attn = jax.nn.softmax(dots, axis=-1)
    out = jnp.einsum("bhnm,bhmd->bhnd", attn, v)
    out = out.transpose(0, 2, 1, 3).reshape(B, N, D)
    out = out @ params["w_out"] + params["b_out"]
    x = x + expand(gate_msa) * out

    xn = ln(x, params["ln2_w"], params["ln2_b"])
    xn = xn * (1 + expand(scale_mlp)) + expand(shift_mlp)
    h = silu(xn @ params["w_mlp1"] + params["b_mlp1"])
    mlp_out = h @ params["w_mlp2"] + params["b_mlp2"]
    x = x + expand(gate_mlp) * mlp_out
    return x


# --------------------------------- main ------------------------------------ #

if __name__ == "__main__":
    # Small, lane-aligned demo config (real DiT3D: dim=768, heads=12, N=512,
    # where the defaults give block_q=256 and mlp_chunk=1024).  The demo forces
    # block_q=64 and mlp_chunk=256 so the qi>0 cache-reuse path and the chunked
    # MLP loop are both exercised.
    B, N, D = 2, 128, 128
    HEADS = 8
    MLP_HIDDEN = int(D * 4.0)
    BLOCK_Q = 64
    MLP_CHUNK = 256

    key = jax.random.PRNGKey(0)
    keys = jax.random.split(key, 16)

    def nrm(k, shape, s=0.02):
        return jax.random.normal(k, shape, dtype=jnp.float32) * s

    params = {
        # adaLN_modulation: SiLU -> Linear(D, 6D)
        "w_ada": nrm(keys[0], (D, 6 * D)),
        "b_ada": nrm(keys[1], (1, 6 * D)),
        # norm1 (PyTorch default init: weight=1, bias=0)
        "ln1_w": jnp.ones((1, D), jnp.float32),
        "ln1_b": jnp.zeros((1, D), jnp.float32),
        # attention projections
        "w_qkv": nrm(keys[2], (D, 3 * D)),
        "b_qkv": nrm(keys[3], (1, 3 * D)),
        "w_out": nrm(keys[4], (D, D)),
        "b_out": nrm(keys[5], (1, D)),
        # norm2
        "ln2_w": jnp.ones((1, D), jnp.float32),
        "ln2_b": jnp.zeros((1, D), jnp.float32),
        # MLP (Linear -> SiLU -> Linear)
        "w_mlp1": nrm(keys[6], (D, MLP_HIDDEN)),
        "b_mlp1": nrm(keys[7], (1, MLP_HIDDEN)),
        "w_mlp2": nrm(keys[8], (MLP_HIDDEN, D)),
        "b_mlp2": nrm(keys[9], (1, D)),
    }

    x = jax.random.normal(keys[10], (B, N, D), dtype=jnp.float32)
    t = jax.random.normal(keys[11], (B, D // 2), dtype=jnp.float32)
    c = jax.random.normal(keys[12], (B, D // 2), dtype=jnp.float32)

    out = dit_block3d_pallas(x, t, c, params, heads=HEADS,
                             block_q=BLOCK_Q, mlp_chunk=MLP_CHUNK)
    out = jax.block_until_ready(out)

    ref = dit_block3d_ref(x, t, c, params, heads=HEADS)
    ref = jax.block_until_ready(ref)

    # bf16 MXU inputs (Q/K/V/p/weight casts) vs. the all-f32 reference ->
    # slightly relaxed tolerance; softmax itself uses exact reciprocal.
    np.testing.assert_allclose(np.asarray(out), np.asarray(ref),
                               rtol=1e-2, atol=1e-2)
    print("KERNEL_OK")
</pallas_src>

<mosaic_0001>
module attributes {stable_mosaic.version = 11 : i64} {
  func.func @_dit_block_kernel(%arg0: i32, %arg1: i32, %arg2: memref<1x128x128xf32, #tpu.memory_space<vmem>>, %arg3: memref<1x6x128xf32, #tpu.memory_space<vmem>>, %arg4: memref<1x128xf32, #tpu.memory_space<vmem>>, %arg5: memref<1x128xf32, #tpu.memory_space<vmem>>, %arg6: memref<128x128xbf16, #tpu.memory_space<vmem>>, %arg7: memref<1x128xf32, #tpu.memory_space<vmem>>, %arg8: memref<128x128xbf16, #tpu.memory_space<vmem>>, %arg9: memref<1x128xf32, #tpu.memory_space<vmem>>, %arg10: memref<128x128xbf16, #tpu.memory_space<vmem>>, %arg11: memref<1x128xf32, #tpu.memory_space<vmem>>, %arg12: memref<128x128xbf16, #tpu.memory_space<vmem>>, %arg13: memref<1x128xf32, #tpu.memory_space<vmem>>, %arg14: memref<1x128xf32, #tpu.memory_space<vmem>>, %arg15: memref<1x128xf32, #tpu.memory_space<vmem>>, %arg16: memref<2x128x256xbf16, #tpu.memory_space<vmem>>, %arg17: memref<2x1x256xf32, #tpu.memory_space<vmem>>, %arg18: memref<2x256x128xbf16, #tpu.memory_space<vmem>>, %arg19: memref<1x128xf32, #tpu.memory_space<vmem>>, %arg20: memref<1x64x128xf32, #tpu.memory_space<vmem>>, %arg21: memref<8x128x16xbf16, #tpu.memory_space<vmem>>, %arg22: memref<8x16x128xbf16, #tpu.memory_space<vmem>>, %arg23: memref<8x128x16xbf16, #tpu.memory_space<vmem>>) attributes {dimension_semantics = [#tpu.dimension_semantics<parallel>, #tpu.dimension_semantics<arbitrary>], iteration_bounds = array<i64: 2, 2>, scalar_prefetch = 0 : i64, scratch_operands = 3 : i64, tpu.core_type = #tpu.core_type<tc>, window_params = [{transform_indices = @transform_0, window_bounds = array<i64: 1, 128, 128>}, {transform_indices = @transform_1, window_bounds = array<i64: 1, 6, 128>}, {pipeline_mode = #tpu.pipeline_mode<synchronous>, transform_indices = @transform_2, window_bounds = array<i64: 1, 128>}, {pipeline_mode = #tpu.pipeline_mode<synchronous>, transform_indices = @transform_3, window_bounds = array<i64: 1, 128>}, {pipeline_mode = #tpu.pipeline_mode<synchronous>, transform_indices = @transform_4, window_bounds = array<i64: 128, 128>}, {pipeline_mode = #tpu.pipeline_mode<synchronous>, transform_indices = @transform_5, window_bounds = array<i64: 1, 128>}, {pipeline_mode = #tpu.pipeline_mode<synchronous>, transform_indices = @transform_6, window_bounds = array<i64: 128, 128>}, {pipeline_mode = #tpu.pipeline_mode<synchronous>, transform_indices = @transform_7, window_bounds = array<i64: 1, 128>}, {pipeline_mode = #tpu.pipeline_mode<synchronous>, transform_indices = @transform_8, window_bounds = array<i64: 128, 128>}, {pipeline_mode = #tpu.pipeline_mode<synchronous>, transform_indices = @transform_9, window_bounds = array<i64: 1, 128>}, {pipeline_mode = #tpu.pipeline_mode<synchronous>, transform_indices = @transform_10, window_bounds = array<i64: 128, 128>}, {pipeline_mode = #tpu.pipeline_mode<synchronous>, transform_indices = @transform_11, window_bounds = array<i64: 1, 128>}, {pipeline_mode = #tpu.pipeline_mode<synchronous>, transform_indices = @transform_12, window_bounds = array<i64: 1, 128>}, {pipeline_mode = #tpu.pipeline_mode<synchronous>, transform_indices = @transform_13, window_bounds = array<i64: 1, 128>}, {pipeline_mode = #tpu.pipeline_mode<synchronous>, transform_indices = @transform_14, window_bounds = array<i64: 2, 128, 256>}, {pipeline_mode = #tpu.pipeline_mode<synchronous>, transform_indices = @transform_15, window_bounds = array<i64: 2, 1, 256>}, {pipeline_mode = #tpu.pipeline_mode<synchronous>, transform_indices = @transform_16, window_bounds = array<i64: 2, 256, 128>}, {pipeline_mode = #tpu.pipeline_mode<synchronous>, transform_indices = @transform_17, window_bounds = array<i64: 1, 128>}, {transform_indices = @transform_18, window_bounds = array<i64: 1, 64, 128>}]} {
    %c0 = arith.constant 0 : index
    %c0_0 = arith.constant 0 : index
    %c0_1 = arith.constant 0 : index
    %0 = vector.load %arg3[%c0, %c0_0, %c0_1] : memref<1x6x128xf32, #tpu.memory_space<vmem>>, vector<1x6x128xf32>
    %1 = vector.shape_cast %0 : vector<1x6x128xf32> to vector<6x128xf32>
    %2 = vector.extract_strided_slice %1 {offsets = [0, 0], sizes = [1, 128], strides = [1, 1]} : vector<6x128xf32> to vector<1x128xf32>
    %3 = vector.extract_strided_slice %1 {offsets = [1, 0], sizes = [1, 128], strides = [1, 1]} : vector<6x128xf32> to vector<1x128xf32>
    %4 = vector.extract_strided_slice %1 {offsets = [2, 0], sizes = [1, 128], strides = [1, 1]} : vector<6x128xf32> to vector<1x128xf32>
    %5 = vector.extract_strided_slice %1 {offsets = [3, 0], sizes = [1, 128], strides = [1, 1]} : vector<6x128xf32> to vector<1x128xf32>
    %6 = vector.extract_strided_slice %1 {offsets = [4, 0], sizes = [1, 128], strides = [1, 1]} : vector<6x128xf32> to vector<1x128xf32>
    %7 = vector.extract_strided_slice %1 {offsets = [5, 0], sizes = [1, 128], strides = [1, 1]} : vector<6x128xf32> to vector<1x128xf32>
    %c0_i32 = arith.constant 0 : i32
    %8 = arith.cmpi eq, %arg1, %c0_i32 : i32
    %9 = arith.extui %8 : i1 to i32
    %c0_i32_2 = arith.constant 0 : i32
    %10 = arith.cmpi ne, %9, %c0_i32_2 : i32
    scf.if %10 {
      %c0_56 = arith.constant 0 : index
      %c0_57 = arith.constant 0 : index
      %c0_58 = arith.constant 0 : index
      %127 = vector.load %arg2[%c0_56, %c0_57, %c0_58] : memref<1x128x128xf32, #tpu.memory_space<vmem>>, vector<1x128x128xf32>
      %128 = vector.shape_cast %127 : vector<1x128x128xf32> to vector<128x128xf32>
      %c0_59 = arith.constant 0 : index
      %c0_60 = arith.constant 0 : index
      %129 = vector.load %arg4[%c0_59, %c0_60] : memref<1x128xf32, #tpu.memory_space<vmem>>, vector<1x128xf32>
      %c0_61 = arith.constant 0 : index
      %c0_62 = arith.constant 0 : index
      %130 = vector.load %arg5[%c0_61, %c0_62] : memref<1x128xf32, #tpu.memory_space<vmem>>, vector<1x128xf32>
      %cst_63 = arith.constant dense<0.000000e+00> : vector<128xf32>
      %131 = vector.multi_reduction <add>, %128, %cst_63 [1] : vector<128x128xf32> to vector<128xf32>
      %132 = vector.shape_cast %131 : vector<128xf32> to vector<128x1xf32>
      %cst_64 = arith.constant 1.280000e+02 : f32
      %133 = vector.broadcast %cst_64 : f32 to vector<128x1xf32>
      %134 = arith.divf %132, %133 : vector<128x1xf32>
      %135 = vector.broadcast %134 : vector<128x1xf32> to vector<128x128xf32>
      %136 = arith.subf %128, %135 : vector<128x128xf32>
      %137 = arith.mulf %136, %136 : vector<128x128xf32>
      %cst_65 = arith.constant dense<0.000000e+00> : vector<128xf32>
      %138 = vector.multi_reduction <add>, %137, %cst_65 [1] : vector<128x128xf32> to vector<128xf32>
      %139 = vector.shape_cast %138 : vector<128xf32> to vector<128x1xf32>
      %cst_66 = arith.constant 1.280000e+02 : f32
      %140 = vector.broadcast %cst_66 : f32 to vector<128x1xf32>
      %141 = arith.divf %139, %140 : vector<128x1xf32>
      %142 = vector.broadcast %134 : vector<128x1xf32> to vector<128x128xf32>
      %143 = arith.subf %128, %142 : vector<128x128xf32>
      %cst_67 = arith.constant 9.99999974E-6 : f32
      %144 = vector.broadcast %cst_67 : f32 to vector<128x1xf32>
      %145 = arith.addf %141, %144 : vector<128x1xf32>
      %146 = math.rsqrt %145 : vector<128x1xf32>
      %147 = vector.broadcast %146 : vector<128x1xf32> to vector<128x128xf32>
      %148 = arith.mulf %143, %147 : vector<128x128xf32>
      %149 = vector.broadcast %129 : vector<1x128xf32> to vector<128x128xf32>
      %150 = arith.mulf %148, %149 : vector<128x128xf32>
      %151 = vector.broadcast %130 : vector<1x128xf32> to vector<128x128xf32>
      %152 = arith.addf %150, %151 : vector<128x128xf32>
      %cst_68 = arith.constant 1.000000e+00 : f32
      %153 = vector.broadcast %cst_68 : f32 to vector<1x128xf32>
      %154 = arith.addf %153, %3 : vector<1x128xf32>
      %155 = vector.broadcast %154 : vector<1x128xf32> to vector<128x128xf32>
      %156 = arith.mulf %152, %155 : vector<128x128xf32>
      %157 = vector.broadcast %2 : vector<1x128xf32> to vector<128x128xf32>
      %158 = arith.addf %156, %157 : vector<128x128xf32>
      %159 = arith.truncf %158 : vector<128x128xf32> to vector<128x128xbf16>
      %c0_69 = arith.constant 0 : index
      %c0_70 = arith.constant 0 : index
      %160 = vector.load %arg6[%c0_69, %c0_70] : memref<128x128xbf16, #tpu.memory_space<vmem>>, vector<128x128xbf16>
      %cst_71 = arith.constant dense<0.000000e+00> : vector<128x128xf32>
      %161 = tpu.matmul %159, %160, %cst_71 {dimension_numbers = #tpu.dot_dimension_numbers<[1], [0], [0], [1], [0, 0, 1, 1], [], []>} : vector<128x128xbf16>, vector<128x128xbf16>, vector<128x128xf32> -> vector<128x128xf32>
      %c0_72 = arith.constant 0 : index
      %c0_73 = arith.constant 0 : index
      %162 = vector.load %arg7[%c0_72, %c0_73] : memref<1x128xf32, #tpu.memory_space<vmem>>, vector<1x128xf32>
      %163 = vector.broadcast %162 : vector<1x128xf32> to vector<128x128xf32>
      %164 = arith.addf %161, %163 : vector<128x128xf32>
      %c0_74 = arith.constant 0 : index
      %c0_75 = arith.constant 0 : index
      %165 = vector.load %arg8[%c0_74, %c0_75] : memref<128x128xbf16, #tpu.memory_space<vmem>>, vector<128x128xbf16>
      %cst_76 = arith.constant dense<0.000000e+00> : vector<128x128xf32>
      %166 = tpu.matmul %159, %165, %cst_76 {dimension_numbers = #tpu.dot_dimension_numbers<[1], [0], [0], [1], [0, 0, 1, 1], [], []>} : vector<128x128xbf16>, vector<128x128xbf16>, vector<128x128xf32> -> vector<128x128xf32>
      %c0_77 = arith.constant 0 : index
      %c0_78 = arith.constant 0 : index
      %167 = vector.load %arg9[%c0_77, %c0_78] : memref<1x128xf32, #tpu.memory_space<vmem>>, vector<1x128xf32>
      %168 = vector.broadcast %167 : vector<1x128xf32> to vector<128x128xf32>
      %169 = arith.addf %166, %168 : vector<128x128xf32>
      %c0_79 = arith.constant 0 : index
      %c0_80 = arith.constant 0 : index
      %170 = vector.load %arg10[%c0_79, %c0_80] : memref<128x128xbf16, #tpu.memory_space<vmem>>, vector<128x128xbf16>
      %cst_81 = arith.constant dense<0.000000e+00> : vector<128x128xf32>
      %171 = tpu.matmul %159, %170, %cst_81 {dimension_numbers = #tpu.dot_dimension_numbers<[1], [0], [0], [1], [0, 0, 1, 1], [], []>} : vector<128x128xbf16>, vector<128x128xbf16>, vector<128x128xf32> -> vector<128x128xf32>
      %c0_82 = arith.constant 0 : index
      %c0_83 = arith.constant 0 : index
      %172 = vector.load %arg11[%c0_82, %c0_83] : memref<1x128xf32, #tpu.memory_space<vmem>>, vector<1x128xf32>
      %173 = vector.broadcast %172 : vector<1x128xf32> to vector<128x128xf32>
      %174 = arith.addf %171, %173 : vector<128x128xf32>
      %cst_84 = arith.constant 2.500000e-01 : f32
      %175 = vector.broadcast %cst_84 : f32 to vector<128x128xf32>
      %176 = arith.mulf %164, %175 : vector<128x128xf32>
      %177 = vector.shape_cast %176 : vector<128x128xf32> to vector<128x8x16xf32>
      %178 = tpu.transpose %177, [1, 0, 2] : vector<128x8x16xf32> -> vector<8x128x16xf32>
      %179 = arith.truncf %178 : vector<8x128x16xf32> to vector<8x128x16xbf16>
      %c0_85 = arith.constant 0 : index
      %c0_86 = arith.constant 0 : index
      %c0_87 = arith.constant 0 : index
      %180 = vector.load %arg21[%c0_85, %c0_86, %c0_87] : memref<8x128x16xbf16, #tpu.memory_space<vmem>>, vector<8x128x16xbf16>
      tpu.vector_store %arg21[%c0_85, %c0_86, %c0_87], %179 {strides = array<i32>} : memref<8x128x16xbf16, #tpu.memory_space<vmem>>, vector<8x128x16xbf16>,
      %181 = tpu.transpose %169, [1, 0] : vector<128x128xf32> -> vector<128x128xf32>
      %182 = vector.shape_cast %181 : vector<128x128xf32> to vector<8x16x128xf32>
      %183 = arith.truncf %182 : vector<8x16x128xf32> to vector<8x16x128xbf16>
      %c0_88 = arith.constant 0 : index
      %c0_89 = arith.constant 0 : index
      %c0_90 = arith.constant 0 : index
      %184 = vector.load %arg22[%c0_88, %c0_89, %c0_90] : memref<8x16x128xbf16, #tpu.memory_space<vmem>>, vector<8x16x128xbf16>
      tpu.vector_store %arg22[%c0_88, %c0_89, %c0_90], %183 {strides = array<i32>} : memref<8x16x128xbf16, #tpu.memory_space<vmem>>, vector<8x16x128xbf16>,
      %185 = vector.shape_cast %174 : vector<128x128xf32> to vector<128x8x16xf32>
      %186 = tpu.transpose %185, [1, 0, 2] : vector<128x8x16xf32> -> vector<8x128x16xf32>
      %187 = arith.truncf %186 : vector<8x128x16xf32> to vector<8x128x16xbf16>
      %c0_91 = arith.constant 0 : index
      %c0_92 = arith.constant 0 : index
      %c0_93 = arith.constant 0 : index
      %188 = vector.load %arg23[%c0_91, %c0_92, %c0_93] : memref<8x128x16xbf16, #tpu.memory_space<vmem>>, vector<8x128x16xbf16>
      tpu.vector_store %arg23[%c0_91, %c0_92, %c0_93], %187 {strides = array<i32>} : memref<8x128x16xbf16, #tpu.memory_space<vmem>>, vector<8x128x16xbf16>,
    } else {
    }
    %c64_i32 = arith.constant 64 : i32
    %11 = arith.muli %arg1, %c64_i32 : i32
    %12 = tpu.assume_multiple %11, 64 : i32
    %c0_3 = arith.constant 0 : index
    %13 = arith.index_cast %12 : i32 to index
    %c0_4 = arith.constant 0 : index
    %14 = vector.load %arg21[%c0_3, %13, %c0_4] : memref<8x128x16xbf16, #tpu.memory_space<vmem>>, vector<8x64x16xbf16>
    %c0_5 = arith.constant 0 : index
    %c0_6 = arith.constant 0 : index
    %c0_7 = arith.constant 0 : index
    %15 = vector.load %arg22[%c0_5, %c0_6, %c0_7] : memref<8x16x128xbf16, #tpu.memory_space<vmem>>, vector<8x16x128xbf16>
    "tpu.trace_start"() <{level = 10 : i32, message = "hqd,hdn->hqn"}> : () -> ()
    %cst = arith.constant dense<0.000000e+00> : vector<8x64x128xf32>
    %16 = tpu.matmul %14, %15, %cst {dimension_numbers = #tpu.dot_dimension_numbers<[2], [1], [1], [2], [0, 0, 0, 1, 1, 2], [0], [0]>} : vector<8x64x16xbf16>, vector<8x16x128xbf16>, vector<8x64x128xf32> -> vector<8x64x128xf32>
    "tpu.trace_stop"() : () -> ()
    %cst_8 = arith.constant dense<0xFF800000> : vector<8x64xf32>
    %17 = vector.multi_reduction <maximumf>, %16, %cst_8 [2] : vector<8x64x128xf32> to vector<8x64xf32>
    %18 = vector.shape_cast %17 : vector<8x64xf32> to vector<8x64x1xf32>
    %19 = vector.broadcast %18 : vector<8x64x1xf32> to vector<8x64x128xf32>
    %20 = arith.subf %16, %19 : vector<8x64x128xf32>
    %21 = math.exp %20 : vector<8x64x128xf32>
    %cst_9 = arith.constant dense<0.000000e+00> : vector<8x64xf32>
    %22 = vector.multi_reduction <add>, %21, %cst_9 [2] : vector<8x64x128xf32> to vector<8x64xf32>
    %23 = vector.shape_cast %22 : vector<8x64xf32> to vector<8x64x1xf32>
    %24 = arith.truncf %21 : vector<8x64x128xf32> to vector<8x64x128xbf16>
    %c0_10 = arith.constant 0 : index
    %c0_11 = arith.constant 0 : index
    %c0_12 = arith.constant 0 : index
    %25 = vector.load %arg23[%c0_10, %c0_11, %c0_12] : memref<8x128x16xbf16, #tpu.memory_space<vmem>>, vector<8x128x16xbf16>
    "tpu.trace_start"() <{level = 10 : i32, message = "hqn,hnd->hqd"}> : () -> ()
    %cst_13 = arith.constant dense<0.000000e+00> : vector<8x64x16xf32>
    %26 = tpu.matmul %24, %25, %cst_13 {dimension_numbers = #tpu.dot_dimension_numbers<[2], [1], [1], [2], [0, 0, 0, 1, 1, 2], [0], [0]>} : vector<8x64x128xbf16>, vector<8x128x16xbf16>, vector<8x64x16xf32> -> vector<8x64x16xf32>
    "tpu.trace_stop"() : () -> ()
    %27 = tpu.reciprocal %23 : vector<8x64x1xf32> -> vector<8x64x1xf32>
    %28 = vector.broadcast %27 : vector<8x64x1xf32> to vector<8x64x16xf32>
    %29 = arith.mulf %26, %28 : vector<8x64x16xf32>
    %30 = tpu.transpose %29, [1, 0, 2] : vector<8x64x16xf32> -> vector<64x8x16xf32>
    %31 = vector.shape_cast %30 : vector<64x8x16xf32> to vector<64x128xf32>
    %32 = arith.truncf %31 : vector<64x128xf32> to vector<64x128xbf16>
    %c0_14 = arith.constant 0 : index
    %c0_15 = arith.constant 0 : index
    %33 = vector.load %arg12[%c0_14, %c0_15] : memref<128x128xbf16, #tpu.memory_space<vmem>>, vector<128x128xbf16>
    %cst_16 = arith.constant dense<0.000000e+00> : vector<64x128xf32>
    %34 = tpu.matmul %32, %33, %cst_16 {dimension_numbers = #tpu.dot_dimension_numbers<[1], [0], [0], [1], [0, 0, 1, 1], [], []>} : vector<64x128xbf16>, vector<128x128xbf16>, vector<64x128xf32> -> vector<64x128xf32>
    %c0_17 = arith.constant 0 : index
    %c0_18 = arith.constant 0 : index
    %35 = vector.load %arg13[%c0_17, %c0_18] : memref<1x128xf32, #tpu.memory_space<vmem>>, vector<1x128xf32>
    %36 = vector.broadcast %35 : vector<1x128xf32> to vector<64x128xf32>
    %37 = arith.addf %34, %36 : vector<64x128xf32>
    %c0_19 = arith.constant 0 : index
    %38 = arith.index_cast %12 : i32 to index
    %c0_20 = arith.constant 0 : index
    %39 = vector.load %arg2[%c0_19, %38, %c0_20] : memref<1x128x128xf32, #tpu.memory_space<vmem>>, vector<1x64x128xf32>
    %40 = vector.shape_cast %39 : vector<1x64x128xf32> to vector<64x128xf32>
    %41 = vector.broadcast %4 : vector<1x128xf32> to vector<64x128xf32>
    %42 = arith.mulf %41, %37 : vector<64x128xf32>
    %43 = arith.addf %40, %42 : vector<64x128xf32>
    %c0_21 = arith.constant 0 : index
    %c0_22 = arith.constant 0 : index
    %44 = vector.load %arg14[%c0_21, %c0_22] : memref<1x128xf32, #tpu.memory_space<vmem>>, vector<1x128xf32>
    %c0_23 = arith.constant 0 : index
    %c0_24 = arith.constant 0 : index
    %45 = vector.load %arg15[%c0_23, %c0_24] : memref<1x128xf32, #tpu.memory_space<vmem>>, vector<1x128xf32>
    %cst_25 = arith.constant dense<0.000000e+00> : vector<64xf32>
    %46 = vector.multi_reduction <add>, %43, %cst_25 [1] : vector<64x128xf32> to vector<64xf32>
    %47 = vector.shape_cast %46 : vector<64xf32> to vector<64x1xf32>
    %cst_26 = arith.constant 1.280000e+02 : f32
    %48 = vector.broadcast %cst_26 : f32 to vector<64x1xf32>
    %49 = arith.divf %47, %48 : vector<64x1xf32>
    %50 = vector.broadcast %49 : vector<64x1xf32> to vector<64x128xf32>
    %51 = arith.subf %43, %50 : vector<64x128xf32>
    %52 = arith.mulf %51, %51 : vector<64x128xf32>
    %cst_27 = arith.constant dense<0.000000e+00> : vector<64xf32>
    %53 = vector.multi_reduction <add>, %52, %cst_27 [1] : vector<64x128xf32> to vector<64xf32>
    %54 = vector.shape_cast %53 : vector<64xf32> to vector<64x1xf32>
    %cst_28 = arith.constant 1.280000e+02 : f32
    %55 = vector.broadcast %cst_28 : f32 to vector<64x1xf32>
    %56 = arith.divf %54, %55 : vector<64x1xf32>
    %57 = vector.broadcast %49 : vector<64x1xf32> to vector<64x128xf32>
    %58 = arith.subf %43, %57 : vector<64x128xf32>
    %cst_29 = arith.constant 9.99999974E-6 : f32
    %59 = vector.broadcast %cst_29 : f32 to vector<64x1xf32>
    %60 = arith.addf %56, %59 : vector<64x1xf32>
    %61 = math.rsqrt %60 : vector<64x1xf32>
    %62 = vector.broadcast %61 : vector<64x1xf32> to vector<64x128xf32>
    %63 = arith.mulf %58, %62 : vector<64x128xf32>
    %64 = vector.broadcast %44 : vector<1x128xf32> to vector<64x128xf32>
    %65 = arith.mulf %63, %64 : vector<64x128xf32>
    %66 = vector.broadcast %45 : vector<1x128xf32> to vector<64x128xf32>
    %67 = arith.addf %65, %66 : vector<64x128xf32>
    %cst_30 = arith.constant 1.000000e+00 : f32
    %68 = vector.broadcast %cst_30 : f32 to vector<1x128xf32>
    %69 = arith.addf %68, %6 : vector<1x128xf32>
    %70 = vector.broadcast %69 : vector<1x128xf32> to vector<64x128xf32>
    %71 = arith.mulf %67, %70 : vector<64x128xf32>
    %72 = vector.broadcast %5 : vector<1x128xf32> to vector<64x128xf32>
    %73 = arith.addf %71, %72 : vector<64x128xf32>
    %74 = arith.truncf %73 : vector<64x128xf32> to vector<64x128xbf16>
    %cst_31 = arith.constant 0.000000e+00 : f32
    %75 = vector.broadcast %cst_31 : f32 to vector<64x128xf32>
    %c0_i32_32 = arith.constant 0 : i32
    %76 = arith.index_cast %c0_i32_32 : i32 to index
    %c0_33 = arith.constant 0 : index
    %c0_34 = arith.constant 0 : index
    %77 = vector.load %arg16[%76, %c0_33, %c0_34] : memref<2x128x256xbf16, #tpu.memory_space<vmem>>, vector<1x128x256xbf16>
    %78 = vector.shape_cast %77 : vector<1x128x256xbf16> to vector<128x256xbf16>
    %cst_35 = arith.constant dense<0.000000e+00> : vector<64x256xf32>
    %79 = tpu.matmul %74, %78, %cst_35 {dimension_numbers = #tpu.dot_dimension_numbers<[1], [0], [0], [1], [0, 0, 1, 1], [], []>} : vector<64x128xbf16>, vector<128x256xbf16>, vector<64x256xf32> -> vector<64x256xf32>
    %80 = arith.index_cast %c0_i32_32 : i32 to index
    %c0_36 = arith.constant 0 : index
    %c0_37 = arith.constant 0 : index
    %81 = vector.load %arg17[%80, %c0_36, %c0_37] : memref<2x1x256xf32, #tpu.memory_space<vmem>>, vector<1x1x256xf32>
    %82 = vector.shape_cast %81 : vector<1x1x256xf32> to vector<1x256xf32>
    %83 = vector.broadcast %82 : vector<1x256xf32> to vector<64x256xf32>
    %84 = arith.addf %79, %83 : vector<64x256xf32>
    %85 = arith.negf %84 : vector<64x256xf32>
    %86 = math.exp %85 : vector<64x256xf32>
    %cst_38 = arith.constant 1.000000e+00 : f32
    %87 = vector.broadcast %cst_38 : f32 to vector<64x256xf32>
    %88 = arith.addf %87, %86 : vector<64x256xf32>
    %89 = arith.divf %87, %88 : vector<64x256xf32>
    %90 = arith.mulf %84, %89 : vector<64x256xf32>
    %91 = arith.truncf %90 : vector<64x256xf32> to vector<64x256xbf16>
    %92 = arith.index_cast %c0_i32_32 : i32 to index
    %c0_39 = arith.constant 0 : index
    %c0_40 = arith.constant 0 : index
    %93 = vector.load %arg18[%92, %c0_39, %c0_40] : memref<2x256x128xbf16, #tpu.memory_space<vmem>>, vector<1x256x128xbf16>
    %94 = vector.shape_cast %93 : vector<1x256x128xbf16> to vector<256x128xbf16>
    %cst_41 = arith.constant dense<0.000000e+00> : vector<64x128xf32>
    %95 = tpu.matmul %91, %94, %cst_41 {dimension_numbers = #tpu.dot_dimension_numbers<[1], [0], [0], [1], [0, 0, 1, 1], [], []>} : vector<64x256xbf16>, vector<256x128xbf16>, vector<64x128xf32> -> vector<64x128xf32>
    %96 = arith.addf %75, %95 : vector<64x128xf32>
    %c1_i32 = arith.constant 1 : i32
    %97 = arith.index_cast %c1_i32 : i32 to index
    %c0_42 = arith.constant 0 : index
    %c0_43 = arith.constant 0 : index
    %98 = vector.load %arg16[%97, %c0_42, %c0_43] : memref<2x128x256xbf16, #tpu.memory_space<vmem>>, vector<1x128x256xbf16>
    %99 = vector.shape_cast %98 : vector<1x128x256xbf16> to vector<128x256xbf16>
    %cst_44 = arith.constant dense<0.000000e+00> : vector<64x256xf32>
    %100 = tpu.matmul %74, %99, %cst_44 {dimension_numbers = #tpu.dot_dimension_numbers<[1], [0], [0], [1], [0, 0, 1, 1], [], []>} : vector<64x128xbf16>, vector<128x256xbf16>, vector<64x256xf32> -> vector<64x256xf32>
    %101 = arith.index_cast %c1_i32 : i32 to index
    %c0_45 = arith.constant 0 : index
    %c0_46 = arith.constant 0 : index
    %102 = vector.load %arg17[%101, %c0_45, %c0_46] : memref<2x1x256xf32, #tpu.memory_space<vmem>>, vector<1x1x256xf32>
    %103 = vector.shape_cast %102 : vector<1x1x256xf32> to vector<1x256xf32>
    %104 = vector.broadcast %103 : vector<1x256xf32> to vector<64x256xf32>
    %105 = arith.addf %100, %104 : vector<64x256xf32>
    %106 = arith.negf %105 : vector<64x256xf32>
    %107 = math.exp %106 : vector<64x256xf32>
    %cst_47 = arith.constant 1.000000e+00 : f32
    %108 = vector.broadcast %cst_47 : f32 to vector<64x256xf32>
    %109 = arith.addf %108, %107 : vector<64x256xf32>
    %110 = arith.divf %108, %109 : vector<64x256xf32>
    %111 = arith.mulf %105, %110 : vector<64x256xf32>
    %112 = arith.truncf %111 : vector<64x256xf32> to vector<64x256xbf16>
    %113 = arith.index_cast %c1_i32 : i32 to index
    %c0_48 = arith.constant 0 : index
    %c0_49 = arith.constant 0 : index
    %114 = vector.load %arg18[%113, %c0_48, %c0_49] : memref<2x256x128xbf16, #tpu.memory_space<vmem>>, vector<1x256x128xbf16>
    %115 = vector.shape_cast %114 : vector<1x256x128xbf16> to vector<256x128xbf16>
    %cst_50 = arith.constant dense<0.000000e+00> : vector<64x128xf32>
    %116 = tpu.matmul %112, %115, %cst_50 {dimension_numbers = #tpu.dot_dimension_numbers<[1], [0], [0], [1], [0, 0, 1, 1], [], []>} : vector<64x256xbf16>, vector<256x128xbf16>, vector<64x128xf32> -> vector<64x128xf32>
    %117 = arith.addf %96, %116 : vector<64x128xf32>
    %c2_i32 = arith.constant 2 : i32
    %c0_51 = arith.constant 0 : index
    %c0_52 = arith.constant 0 : index
    %118 = vector.load %arg19[%c0_51, %c0_52] : memref<1x128xf32, #tpu.memory_space<vmem>>, vector<1x128xf32>
    %119 = vector.broadcast %118 : vector<1x128xf32> to vector<64x128xf32>
    %120 = arith.addf %117, %119 : vector<64x128xf32>
    %121 = vector.broadcast %7 : vector<1x128xf32> to vector<64x128xf32>
    %122 = arith.mulf %121, %120 : vector<64x128xf32>
    %123 = arith.addf %43, %122 : vector<64x128xf32>
    %c0_53 = arith.constant 0 : index
    %c0_54 = arith.constant 0 : index
    %c0_55 = arith.constant 0 : index
    %124 = vector.load %arg20[%c0_53, %c0_54, %c0_55] : memref<1x64x128xf32, #tpu.memory_space<vmem>>, vector<1x64x128xf32>
    %125 = vector.shape_cast %124 : vector<1x64x128xf32> to vector<64x128xf32>
    %126 = vector.shape_cast %123 : vector<64x128xf32> to vector<1x64x128xf32>
    tpu.vector_store %arg20[%c0_53, %c0_54, %c0_55], %126 {strides = array<i32>} : memref<1x64x128xf32, #tpu.memory_space<vmem>>, vector<1x64x128xf32>,
    return
  }
  func.func @transform_0(%arg0: i32, %arg1: i32) -> (i32, i32, i32) {
    %c0_i32 = arith.constant 0 : i32
    %c0_i32_0 = arith.constant 0 : i32
    %c0_i32_1 = arith.constant 0 : i32
    return %arg0, %c0_i32, %c0_i32_0 : i32, i32, i32
  }
  func.func @transform_1(%arg0: i32, %arg1: i32) -> (i32, i32, i32) {
    %c0_i32 = arith.constant 0 : i32
    %c0_i32_0 = arith.constant 0 : i32
    %c0_i32_1 = arith.constant 0 : i32
    return %arg0, %c0_i32, %c0_i32_0 : i32, i32, i32
  }
  func.func @transform_2(%arg0: i32, %arg1: i32) -> (i32, i32) {
    %c0_i32 = arith.constant 0 : i32
    %c0_i32_0 = arith.constant 0 : i32
    %c0_i32_1 = arith.constant 0 : i32
    return %c0_i32, %c0_i32_0 : i32, i32
  }
  func.func @transform_3(%arg0: i32, %arg1: i32) -> (i32, i32) {
    %c0_i32 = arith.constant 0 : i32
    %c0_i32_0 = arith.constant 0 : i32
    %c0_i32_1 = arith.constant 0 : i32
    return %c0_i32, %c0_i32_0 : i32, i32
  }
  func.func @transform_4(%arg0: i32, %arg1: i32) -> (i32, i32) {
    %c0_i32 = arith.constant 0 : i32
    %c0_i32_0 = arith.constant 0 : i32
    %c0_i32_1 = arith.constant 0 : i32
    return %c0_i32, %c0_i32_0 : i32, i32
  }
  func.func @transform_5(%arg0: i32, %arg1: i32) -> (i32, i32) {
    %c0_i32 = arith.constant 0 : i32
    %c0_i32_0 = arith.constant 0 : i32
    %c0_i32_1 = arith.constant 0 : i32
    return %c0_i32, %c0_i32_0 : i32, i32
  }
  func.func @transform_6(%arg0: i32, %arg1: i32) -> (i32, i32) {
    %c0_i32 = arith.constant 0 : i32
    %c0_i32_0 = arith.constant 0 : i32
    %c0_i32_1 = arith.constant 0 : i32
    return %c0_i32, %c0_i32_0 : i32, i32
  }
  func.func @transform_7(%arg0: i32, %arg1: i32) -> (i32, i32) {
    %c0_i32 = arith.constant 0 : i32
    %c0_i32_0 = arith.constant 0 : i32
    %c0_i32_1 = arith.constant 0 : i32
    return %c0_i32, %c0_i32_0 : i32, i32
  }
  func.func @transform_8(%arg0: i32, %arg1: i32) -> (i32, i32) {
    %c0_i32 = arith.constant 0 : i32
    %c0_i32_0 = arith.constant 0 : i32
    %c0_i32_1 = arith.constant 0 : i32
    return %c0_i32, %c0_i32_0 : i32, i32
  }
  func.func @transform_9(%arg0: i32, %arg1: i32) -> (i32, i32) {
    %c0_i32 = arith.constant 0 : i32
    %c0_i32_0 = arith.constant 0 : i32
    %c0_i32_1 = arith.constant 0 : i32
    return %c0_i32, %c0_i32_0 : i32, i32
  }
  func.func @transform_10(%arg0: i32, %arg1: i32) -> (i32, i32) {
    %c0_i32 = arith.constant 0 : i32
    %c0_i32_0 = arith.constant 0 : i32
    %c0_i32_1 = arith.constant 0 : i32
    return %c0_i32, %c0_i32_0 : i32, i32
  }
  func.func @transform_11(%arg0: i32, %arg1: i32) -> (i32, i32) {
    %c0_i32 = arith.constant 0 : i32
    %c0_i32_0 = arith.constant 0 : i32
    %c0_i32_1 = arith.constant 0 : i32
    return %c0_i32, %c0_i32_0 : i32, i32
  }
  func.func @transform_12(%arg0: i32, %arg1: i32) -> (i32, i32) {
    %c0_i32 = arith.constant 0 : i32
    %c0_i32_0 = arith.constant 0 : i32
    %c0_i32_1 = arith.constant 0 : i32
    return %c0_i32, %c0_i32_0 : i32, i32
  }
  func.func @transform_13(%arg0: i32, %arg1: i32) -> (i32, i32) {
    %c0_i32 = arith.constant 0 : i32
    %c0_i32_0 = arith.constant 0 : i32
    %c0_i32_1 = arith.constant 0 : i32
    return %c0_i32, %c0_i32_0 : i32, i32
  }
  func.func @transform_14(%arg0: i32, %arg1: i32) -> (i32, i32, i32) {
    %c0_i32 = arith.constant 0 : i32
    %c0_i32_0 = arith.constant 0 : i32
    %c0_i32_1 = arith.constant 0 : i32
    %c0_i32_2 = arith.constant 0 : i32
    return %c0_i32, %c0_i32_0, %c0_i32_1 : i32, i32, i32
  }
  func.func @transform_15(%arg0: i32, %arg1: i32) -> (i32, i32, i32) {
    %c0_i32 = arith.constant 0 : i32
    %c0_i32_0 = arith.constant 0 : i32
    %c0_i32_1 = arith.constant 0 : i32
    %c0_i32_2 = arith.constant 0 : i32
    return %c0_i32, %c0_i32_0, %c0_i32_1 : i32, i32, i32
  }
  func.func @transform_16(%arg0: i32, %arg1: i32) -> (i32, i32, i32) {
    %c0_i32 = arith.constant 0 : i32
    %c0_i32_0 = arith.constant 0 : i32
    %c0_i32_1 = arith.constant 0 : i32
    %c0_i32_2 = arith.constant 0 : i32
    return %c0_i32, %c0_i32_0, %c0_i32_1 : i32, i32, i32
  }
  func.func @transform_17(%arg0: i32, %arg1: i32) -> (i32, i32) {
    %c0_i32 = arith.constant 0 : i32
    %c0_i32_0 = arith.constant 0 : i32
    %c0_i32_1 = arith.constant 0 : i32
    return %c0_i32, %c0_i32_0 : i32, i32
  }
  func.func @transform_18(%arg0: i32, %arg1: i32) -> (i32, i32, i32) {
    %c0_i32 = arith.constant 0 : i32
    %c0_i32_0 = arith.constant 0 : i32
    return %arg0, %arg1, %c0_i32 : i32, i32, i32
  }
}

</mosaic_0001>

<bundles_post_ra>
// kernel: tpu_custom_call.1
= control target key start
LH: loop header
LB: loop body
LE: loop exit
PB: predicated region body
PF: predicated region fallthrough
CT: control target
= control target key end

     0   :  { %s26447_s0 = inlined_call_operand.hbm [shape: f32[2,128,128], index: 0, kind: input, shape index: {}]   ;;  %s26448_s1 = inlined_call_operand.vmem [shape: f32[2,6,128], index: 1, kind: input, shape index: {}]   ;;  %s26449_s2 = inlined_call_operand.vmem [shape: f32[1,128], index: 2, kind: input, shape index: {}]   ;;  %s26450_s3 = inlined_call_operand.hbm [shape: f32[1,128], index: 3, kind: input, shape index: {}]   ;;  %s26451_s4 = inlined_call_operand.hbm [shape: bf16[128,128], index: 4, kind: input, shape index: {}]   ;;  %s26452_s5 = inlined_call_operand.hbm [shape: f32[1,128], index: 5, kind: input, shape index: {}]   ;;  %s26453_s6 = inlined_call_operand.hbm [shape: bf16[128,128], index: 6, kind: input, shape index: {}]   ;;  %s26454_s7 = inlined_call_operand.hbm [shape: f32[1,128], index: 7, kind: input, shape index: {}]   ;;  %s26455_s8 = inlined_call_operand.hbm [shape: bf16[128,128], index: 8, kind: input, shape index: {}]   ;;  %s26456_s9 = inlined_call_operand.hbm [shape: f32[1,128], index: 9, kind: input, shape index: {}]   ;;  %s26457_s10 = inlined_call_operand.vmem [shape: bf16[128,128], index: 10, kind: input, shape index: {}]   ;;  %s26458_s11 = inlined_call_operand.hbm [shape: f32[1,128], index: 11, kind: input, shape index: {}]   ;;  %s26459_s12 = inlined_call_operand.vmem [shape: f32[1,128], index: 12, kind: input, shape index: {}]   ;;  %s26460_s13 = inlined_call_operand.vmem [shape: f32[1,128], index: 13, kind: input, shape index: {}]   ;;  %s26461_s14 = inlined_call_operand.hbm [shape: bf16[2,128,256], index: 14, kind: input, shape index: {}]   ;;  %s26462_s15 = inlined_call_operand.vmem [shape: f32[2,1,256], index: 15, kind: input, shape index: {}]   ;;  %s26463_s16 = inlined_call_operand.hbm [shape: bf16[2,256,128], index: 16, kind: input, shape index: {}]   ;;  %s26464_s17 = inlined_call_operand.vmem [shape: f32[1,128], index: 17, kind: input, shape index: {}]   ;;  %s26465_s18 = inlined_call_operand.hbm [shape: f32[2,128,128], index: 18, kind: output, shape index: {}]  }
   0x1   :  { %26608 = sst [smem:[#allocation107_spill]] %s26447_s0 }
   0x2   :  { %26609 = sst [smem:[#allocation108_spill]] %s26448_s1 }
   0x3   :  { %26610 = sst [smem:[#allocation109_spill]] %s26449_s2 }
   0x4   :  { %26611 = sst [smem:[#allocation110_spill]] %s26450_s3 }
   0x5   :  { %26612 = sst [smem:[#allocation111_spill]] %s26451_s4 }
   0x6   :  { %26613 = sst [smem:[#allocation112_spill]] %s26452_s5 }
   0x7   :  { %26614 = sst [smem:[#allocation113_spill]] %s26453_s6 }
   0x8   :  { %26615 = sst [smem:[#allocation114_spill]] %s26454_s7 }
   0x9   :  { %26616 = sst [smem:[#allocation115_spill]] %s26455_s8 }
   0xa   :  { %26617 = sst [smem:[#allocation116_spill]] %s26457_s10 }
   0xb   :  { %26618 = sst [smem:[#allocation117_spill]] %s26459_s12 }
   0xc   :  { %26619 = sst [smem:[#allocation118_spill]] %s26460_s13 }
   0xd   :  { %26620 = sst [smem:[#allocation119_spill]] %s26462_s15 }
   0xe   :  { %26621 = sst [smem:[#allocation120_spill]] %s26464_s17 }
   0xf   :  { %26622 = sst [smem:[#allocation121_spill]] %s26465_s18 }
  0x10   :  { %23 = vsyncpa [#allocation6], 0 }
  0x11   :  { %25 = vsyncpa [#allocation6 + $0x1], 0 }
  0x12   :  { %26 = vsyncpa [#allocation9], 0 }
  0x13   :  { %27 = vsyncpa [#allocation12], 0 }
  0x14   :  { %28 = vsyncpa [#allocation15], 0 }
  0x15   :  { %29 = vsyncpa [#allocation18], 0 }
  0x16   :  { %30 = vsyncpa [#allocation21], 0 }
  0x17   :  { %31 = vsyncpa [#allocation7], 0 }
  0x18   :  { %33 = vsyncpa [#allocation7 + $0x1], 0  ;;  %s19883_s27 = smov 0   ;;  %s19885_s28 = smov 0  }
  0x19   :  { %s19887_s29 = smov 0   ;;  %s19889_s30 = smov 0  }
  0x1a   :  { %s19891_s0 = smov 0   ;;  %s19893_s19 = smov 0  }
  0x1b   :  { %s19895_s1 = smov 0   ;;  %s19897_s20 = smov 0  }
  0x1c   :  { %s19899_s21 = smov 0   ;;  %s19901_s22 = smov 0  }
  0x1d   :  { %s19903_s2 = smov 0  }
  0x1e LB: > { %26623 = sst [smem:[#allocation31_spill]] %s19709_s27  ;;  %s26469_s23 = sadd.s32 4294967295, %s19749_s2   ;;  %s19749_s2 = sphi %s19903_s2, %s39_s2   ;;  %s19745_s22 = sphi %s19901_s22, %s27036_s22   ;;  %s19741_s21 = sphi %s19899_s21, %s27035_s21   ;;  %s19737_s20 = sphi %s19897_s20, %s27034_s20   ;;  %s19733_s1 = sphi %s19895_s1, %s27033_s1   ;;  %s19729_s19 = sphi %s19893_s19, %s27032_s19   ;;  %s19725_s0 = sphi %s19891_s0, %s27031_s0   ;;  %s19721_s30 = sphi %s19889_s30, %s27030_s30   ;;  %s19717_s29 = sphi %s19887_s29, %s27029_s29   ;;  %s19713_s28 = sphi %s19885_s28, %s27028_s28   ;;  %s19709_s27 = sphi %s19883_s27, %s27027_s27  }
  0x1f   : > { %26624 = sst [smem:[#allocation32_spill]] %s19713_s28  ;;  %p17171_p0 = scmp.ge.s32.totalorder %s19749_s2, 1 }
  0x20   : > { %26625 = sst [smem:[#allocation33_spill]] %s19717_s29  ;;  %p19942_p1 = scmp.eq.s32.totalorder %s26469_s23, 0 }
  0x21   : > { %26626 = sst [smem:[#allocation34_spill]] %s19733_s1  ;;  %p472_p2 = scmp.lt.s32.totalorder %s19749_s2, 5 }
  0x22   : > { %26627 = sst [smem:[#allocation35_spill]] %s19737_s20  ;;  %s19751_s26 = smov [#allocation8]  }
  0x23   : > { %s26628_s24 = scalar_select %p19942_p1, 1, 0 }
  0x24   : > { %p19947_p3 = pnand %p17171_p0, %p472_p2  ;;  %s488_s18 = sshll.u32 %s19751_s26, 4  ;;  %s489_s18 = int_to_ptr.vmem [resolvable:$true] %s488_s18 }
  0x25   : > { %s19752_s17 = smov [#allocation11]   ;;  %s19753_s13 = smov [#allocation14]  }
  0x26   : > { %s26629_s25 = scalar_select %p19947_p3, 1, 0 }
  0x27   : > { %p18428_p4 = pneg %p19947_p3  ;;  %s512_s15 = sshll.u32 %s19752_s17, 4  ;;  %s19959_s15 = int_to_ptr.vmem [resolvable:$true] %s512_s15 }
  0x28   : > { %26630 = sst [smem:[#allocation36_spill]] %s26629_s25  ;;  %s536_s12 = sshll.u32 %s19753_s13, 4  ;;  %s19961_s12 = int_to_ptr.vmem [resolvable:$true] %s536_s12 }
  0x29   : > { %p19955_p5 = pnand %p18428_p4, %p19942_p1  ;;  %s26632_s3 = sld [smem:[#allocation110_spill]] }
  0x2b   : > { %p19971_p7 = pneg %p19955_p5 }
  0x2f   : > { %s19297_s26 = scalar_lea.hbm %s26632_s3, 16 }
  0x30   : > { %p19298_p6 = scmp.ne.s32.totalorder %s26632_s3, %s19297_s26  ;;  %p19304_p10 = scmp.lt.u32.totalorder %s19297_s26, %s26632_s3 }
  0x32   : > { %p19300_p8 = pnand %p19971_p7, %p19298_p6 }
  0x34   : > { %p19301_p9 = pneg %p19300_p8 }
  0x36   : > { %p19306_p11 = pnand %p19304_p10, %p19301_p9 }
  0x38   : > { %19309 = shalt.err (!%p19306_p11)
}
  0x39   : > { %s19310_s10 = scalar_lea.vmem %s489_s18, 16  ;;  %s19317_s1 = scalar_lea.vmem %s489_s18, 32 }
  0x3a   : > { %p19311_p12 = scmp.ne.s32.totalorder %s489_s18, %s19310_s10  ;;  %p19318_p2 = scmp.lt.s32.totalorder %s489_s18, %s489_s18 }
  0x3b   : > { %p19319_p4 = scmp.lt.s32.totalorder %s19317_s1, %s19310_s10 }
  0x3c   : > { %p19313_p13 = pnand %p19311_p12, %p19971_p7 }
  0x3d   : > { %p19320_p3 = por %p19319_p4, %p19318_p2 }
  0x3e   : > { %p19314_p0 = pneg %p19313_p13 }
  0x40   : > { %p19321_p1 = pnand %p19320_p3, %p19314_p0 }
  0x42   : > { %19324 = shalt.err (!%p19321_p1)
}
  0x43   : > { %18431 = dma.hbm_to_vmem [thread:$0]  (!%p19955_p5), %s26632_s3, 16, %s489_s18, [#allocation9]  }
  0x44   : > { %s26634_s5 = sld [smem:[#allocation112_spill]] }
  0x4a   : > { %s19325_s13 = scalar_lea.hbm %s26634_s5, 16 }
  0x4b   : > { %p19326_p6 = scmp.ne.s32.totalorder %s26634_s5, %s19325_s13  ;;  %p19332_p1 = scmp.lt.u32.totalorder %s19325_s13, %s26634_s5 }
  0x4d   : > { %p19328_p8 = pnand %p19326_p6, %p19971_p7 }
  0x4f   : > { %p19329_p9 = pneg %p19328_p8 }
  0x51   : > { %p19334_p3 = pnand %p19332_p1, %p19329_p9 }
  0x53   : > { %19337 = shalt.err (!%p19334_p3)
}
  0x54   : > { %s19338_s18 = scalar_lea.vmem %s19959_s15, 16  ;;  %s19345_s28 = scalar_lea.vmem %s19959_s15, 32 }
  0x55   : > { %p19339_p10 = scmp.ne.s32.totalorder %s19959_s15, %s19338_s18  ;;  %p19346_p13 = scmp.lt.s32.totalorder %s19959_s15, %s19959_s15 }
  0x56   : > { %p19347_p0 = scmp.lt.s32.totalorder %s19345_s28, %s19338_s18 }
  0x57   : > { %p19341_p11 = pnand %p19339_p10, %p19971_p7 }
  0x58   : > { %p19348_p2 = por %p19347_p0, %p19346_p13 }
  0x59   : > { %p19342_p12 = pneg %p19341_p11 }
  0x5b   : > { %p19349_p4 = pnand %p19348_p2, %p19342_p12 }
  0x5d   : > { %19352 = shalt.err (!%p19349_p4)
}
  0x5e   : > { %18437 = dma.hbm_to_vmem [thread:$0]  (!%p19955_p5), %s26634_s5, 16, %s19959_s15, [#allocation12]  }
  0x5f   : > { %s26635_s7 = sld [smem:[#allocation114_spill]] }
  0x65   : > { %s19353_s26 = scalar_lea.hbm %s26635_s7, 16 }
  0x66   : > { %p19354_p6 = scmp.ne.s32.totalorder %s26635_s7, %s19353_s26  ;;  %p19360_p1 = scmp.lt.u32.totalorder %s19353_s26, %s26635_s7 }
  0x68   : > { %p19356_p8 = pnand %p19354_p6, %p19971_p7 }
  0x6a   : > { %p19357_p9 = pneg %p19356_p8 }
  0x6c   : > { %p19362_p3 = pnand %p19360_p1, %p19357_p9 }
  0x6e   : > { %19365 = shalt.err (!%p19362_p3)
}
  0x6f   : > { %s19366_s15 = scalar_lea.vmem %s19961_s12, 16  ;;  %s19373_s28 = scalar_lea.vmem %s19961_s12, 32 }
  0x70   : > { %p19367_p10 = scmp.ne.s32.totalorder %s19961_s12, %s19366_s15  ;;  %p19374_p13 = scmp.lt.s32.totalorder %s19961_s12, %s19961_s12 }
  0x71   : > { %p19375_p0 = scmp.lt.s32.totalorder %s19373_s28, %s19366_s15 }
  0x72   : > { %p19369_p11 = pnand %p19367_p10, %p19971_p7 }
  0x73   : > { %p19376_p2 = por %p19375_p0, %p19374_p13 }
  0x74   : > { %p19370_p12 = pneg %p19369_p11 }
  0x76   : > { %p19377_p4 = pnand %p19376_p2, %p19370_p12 }
  0x78   : > { %19380 = shalt.err (!%p19377_p4)
}
  0x79   : > { %18443 = dma.hbm_to_vmem [thread:$0]  (!%p19955_p5), %s26635_s7, 16, %s19961_s12, [#allocation15]  }
  0x7a   : > { %s19754_s25 = smov [#allocation17]   ;;  %s19755_s26 = smov [#allocation20]  }
  0x7b   : > { %s560_s27 = sshll.u32 %s19754_s25, 4  ;;  %s590_s13 = sshll.u32 %s19755_s26, 4  ;;  %s561_s27 = int_to_ptr.vmem [resolvable:$true] %s560_s27  ;;  %s591_s13 = int_to_ptr.vmem [resolvable:$true] %s590_s13 }
  0x7c   : > { %s19381_s18 = scalar_lea.hbm %s26456_s9, 16 }
  0x7d   : > { %p19382_p6 = scmp.ne.s32.totalorder %s26456_s9, %s19381_s18  ;;  %p19388_p1 = scmp.lt.u32.totalorder %s19381_s18, %s26456_s9 }
  0x7f   : > { %p19384_p8 = pnand %p19382_p6, %p19971_p7 }
  0x81   : > { %p19385_p9 = pneg %p19384_p8 }
  0x83   : > { %p19390_p3 = pnand %p19388_p1, %p19385_p9 }
  0x85   : > { %19393 = shalt.err (!%p19390_p3)
}
  0x86   : > { %s19394_s12 = scalar_lea.vmem %s561_s27, 16  ;;  %s19401_s20 = scalar_lea.vmem %s561_s27, 32 }
  0x87   : > { %p19395_p10 = scmp.ne.s32.totalorder %s561_s27, %s19394_s12  ;;  %p19402_p13 = scmp.lt.s32.totalorder %s561_s27, %s561_s27 }
  0x88   : > { %p19403_p0 = scmp.lt.s32.totalorder %s19401_s20, %s19394_s12 }
  0x89   : > { %p19397_p11 = pnand %p19395_p10, %p19971_p7 }
  0x8a   : > { %p19404_p2 = por %p19403_p0, %p19402_p13 }
  0x8b   : > { %p19398_p12 = pneg %p19397_p11 }
  0x8d   : > { %p19405_p4 = pnand %p19404_p2, %p19398_p12 }
  0x8f   : > { %19408 = shalt.err (!%p19405_p4)
}
  0x90   : > { %18449 = dma.hbm_to_vmem [thread:$0]  (!%p19955_p5), %s26456_s9, 16, %s561_s27, [#allocation18]  }
  0x91   : > { %s19409_s1 = scalar_lea.hbm %s26461_s14, 4096 }
  0x92   : > { %p19410_p6 = scmp.ne.s32.totalorder %s26461_s14, %s19409_s1  ;;  %p19416_p1 = scmp.lt.u32.totalorder %s19409_s1, %s26461_s14 }
  0x94   : > { %p19412_p8 = pnand %p19410_p6, %p19971_p7 }
  0x96   : > { %p19413_p9 = pneg %p19412_p8 }
  0x98   : > { %p19418_p3 = pnand %p19416_p1, %p19413_p9 }
  0x9a   : > { %19421 = shalt.err (!%p19418_p3)
}
  0x9b   : > { %s19422_s12 = scalar_lea.vmem %s591_s13, 4096  ;;  %p19430_p13 = scmp.lt.s32.totalorder %s591_s13, %s591_s13 }
  0x9c   : > { %p19423_p10 = scmp.ne.s32.totalorder %s591_s13, %s19422_s12  ;;  %p19431_p0 = scmp.lt.s32.totalorder %s19422_s12, %s19422_s12 }
  0x9e   : > { %p19425_p11 = pnand %p19423_p10, %p19971_p7  ;;  %p19432_p2 = por %p19431_p0, %p19430_p13 }
  0xa0   : > { %p19426_p12 = pneg %p19425_p11 }
  0xa2   : > { %p19433_p4 = pnand %p19432_p2, %p19426_p12 }
  0xa4   : > { %19436 = shalt.err (!%p19433_p4)
}
  0xa5   : > { %s26480_s27 = smov 128   ;;  %s26481_s20 = smov 8  }
  0xa6   : > { %18455 = dma.hbm_to_vmem [thread:$0]  (!%p19955_p5), %s26461_s14, 4096, %s591_s13, [#allocation21], %s26480_s27, %s26480_s27, %s26481_s20  }
  0xa7   : > { %s19758_s3 = smov [#allocation10]   ;;  %s26636_s4 = sld [smem:[#allocation111_spill]] }
  0xa8   : > { %s498_s10 = sshll.u32 %s19758_s3, 4  ;;  %s499_s10 = int_to_ptr.vmem [resolvable:$true] %s498_s10 }
  0xad   : > { %s19437_s15 = scalar_lea.hbm %s26636_s4, 1024 }
  0xae   : > { %p19438_p6 = scmp.ne.s32.totalorder %s26636_s4, %s19437_s15  ;;  %p19444_p1 = scmp.lt.u32.totalorder %s19437_s15, %s26636_s4 }
  0xb0   : > { %p19440_p8 = pnand %p19438_p6, %p19971_p7 }
  0xb2   : > { %p19441_p9 = pneg %p19440_p8 }
  0xb4   : > { %p19446_p3 = pnand %p19444_p1, %p19441_p9 }
  0xb6   : > { %19449 = shalt.err (!%p19446_p3)
}
  0xb7   : > { %s19450_s13 = scalar_lea.vmem %s499_s10, 1024  ;;  %p19458_p13 = scmp.lt.s32.totalorder %s499_s10, %s499_s10 }
  0xb8   : > { %p19451_p10 = scmp.ne.s32.totalorder %s499_s10, %s19450_s13  ;;  %p19459_p0 = scmp.lt.s32.totalorder %s19450_s13, %s19450_s13 }
  0xba   : > { %p19453_p11 = pnand %p19451_p10, %p19971_p7  ;;  %p19460_p2 = por %p19459_p0, %p19458_p13 }
  0xbc   : > { %p19454_p12 = pneg %p19453_p11 }
  0xbe   : > { %p19461_p4 = pnand %p19460_p2, %p19454_p12 }
  0xc0   : > { %19464 = shalt.err (!%p19461_p4)
}
  0xc1   : > { %s19759_s25 = smov 64   ;;  %s19760_s26 = smov 4  }
  0xc2   : > { %18434 = dma.hbm_to_vmem [thread:$0]  (!%p19955_p5), %s26636_s4, 1024, %s499_s10, [#allocation9], %s19759_s25, %s19759_s25, %s19760_s26  }
  0xc3   : > { %s19761_s1 = smov [#allocation13]   ;;  %s19762_s15 = smov [#allocation16]  }
  0xc4   : > { %s522_s18 = sshll.u32 %s19761_s1, 4  ;;  %s546_s28 = sshll.u32 %s19762_s15, 4  ;;  %s523_s18 = int_to_ptr.vmem [resolvable:$true] %s522_s18  ;;  %s20095_s28 = int_to_ptr.vmem [resolvable:$true] %s546_s28 }
  0xc5   : > { %s26637_s6 = sld [smem:[#allocation113_spill]] }
  0xcb   : > { %s19465_s13 = scalar_lea.hbm %s26637_s6, 1024 }
  0xcc   : > { %p19466_p6 = scmp.ne.s32.totalorder %s26637_s6, %s19465_s13  ;;  %p19472_p1 = scmp.lt.u32.totalorder %s19465_s13, %s26637_s6 }
  0xce   : > { %p19468_p8 = pnand %p19466_p6, %p19971_p7 }
  0xd0   : > { %p19469_p9 = pneg %p19468_p8 }
  0xd2   : > { %p19474_p3 = pnand %p19472_p1, %p19469_p9 }
  0xd4   : > { %19477 = shalt.err (!%p19474_p3)
}
  0xd5   : > { %s19478_s3 = scalar_lea.vmem %s523_s18, 1024  ;;  %p19486_p13 = scmp.lt.s32.totalorder %s523_s18, %s523_s18 }
  0xd6   : > { %p19479_p10 = scmp.ne.s32.totalorder %s523_s18, %s19478_s3  ;;  %p19487_p0 = scmp.lt.s32.totalorder %s19478_s3, %s19478_s3 }
  0xd8   : > { %p19481_p11 = pnand %p19479_p10, %p19971_p7  ;;  %p19488_p2 = por %p19487_p0, %p19486_p13 }
  0xda   : > { %p19482_p12 = pneg %p19481_p11 }
  0xdc   : > { %p19489_p4 = pnand %p19488_p2, %p19482_p12 }
  0xde   : > { %19492 = shalt.err (!%p19489_p4)
}
  0xdf   : > { %18440 = dma.hbm_to_vmem [thread:$0]  (!%p19955_p5), %s26637_s6, 1024, %s523_s18, [#allocation12], %s19759_s25, %s19759_s25, %s19760_s26  }
  0xe0   : > { %s26638_s8 = sld [smem:[#allocation115_spill]] }
  0xe6   : > { %s19493_s29 = scalar_lea.hbm %s26638_s8, 1024 }
  0xe7   : > { %p19494_p6 = scmp.ne.s32.totalorder %s26638_s8, %s19493_s29  ;;  %p19500_p1 = scmp.lt.u32.totalorder %s19493_s29, %s26638_s8 }
  0xe9   : > { %p19496_p8 = pnand %p19494_p6, %p19971_p7 }
  0xeb   : > { %p19497_p9 = pneg %p19496_p8 }
  0xed   : > { %p19502_p3 = pnand %p19500_p1, %p19497_p9 }
  0xef   : > { %19505 = shalt.err (!%p19502_p3)
}
  0xf0   : > { %s19506_s18 = scalar_lea.vmem %s20095_s28, 1024  ;;  %p19514_p13 = scmp.lt.s32.totalorder %s20095_s28, %s20095_s28 }
  0xf1   : > { %p19507_p10 = scmp.ne.s32.totalorder %s20095_s28, %s19506_s18  ;;  %p19515_p0 = scmp.lt.s32.totalorder %s19506_s18, %s19506_s18 }
  0xf3   : > { %p19509_p11 = pnand %p19507_p10, %p19971_p7  ;;  %p19516_p2 = por %p19515_p0, %p19514_p13 }
  0xf5   : > { %p19510_p12 = pneg %p19509_p11 }
  0xf7   : > { %p19517_p4 = pnand %p19516_p2, %p19510_p12 }
  0xf9   : > { %19520 = shalt.err (!%p19517_p4)
}
  0xfa   : > { %18446 = dma.hbm_to_vmem [thread:$0]  (!%p19955_p5), %s26638_s8, 1024, %s20095_s28, [#allocation15], %s19759_s25, %s19759_s25, %s19760_s26  }
  0xfb   : > { %s19763_s20 = smov [#allocation19]   ;;  %s19764_s15 = smov [#allocation22]  }
  0xfc   : > { %s574_s1 = sshll.u32 %s19763_s20, 4  ;;  %s606_s29 = sshll.u32 %s19764_s15, 4  ;;  %s575_s1 = int_to_ptr.vmem [resolvable:$true] %s574_s1  ;;  %s20144_s29 = int_to_ptr.vmem [resolvable:$true] %s606_s29 }
  0xfd   : > { %s19521_s5 = scalar_lea.hbm %s26458_s11, 16 }
  0xfe   : > { %p19522_p6 = scmp.ne.s32.totalorder %s26458_s11, %s19521_s5  ;;  %p19528_p1 = scmp.lt.u32.totalorder %s19521_s5, %s26458_s11 }
 0x100   : > { %p19524_p8 = pnand %p19522_p6, %p19971_p7 }
 0x102   : > { %p19525_p9 = pneg %p19524_p8 }
 0x104   : > { %p19530_p3 = pnand %p19528_p1, %p19525_p9 }
 0x106   : > { %19533 = shalt.err (!%p19530_p3)
}
 0x107   : > { %s19534_s27 = scalar_lea.vmem %s575_s1, 16  ;;  %s19541_s20 = scalar_lea.vmem %s575_s1, 32 }
 0x108   : > { %p19535_p10 = scmp.ne.s32.totalorder %s575_s1, %s19534_s27  ;;  %p19542_p13 = scmp.lt.s32.totalorder %s575_s1, %s575_s1 }
 0x109   : > { %p19543_p0 = scmp.lt.s32.totalorder %s19541_s20, %s19534_s27 }
 0x10a   : > { %p19537_p11 = pnand %p19535_p10, %p19971_p7 }
 0x10b   : > { %p19544_p2 = por %p19543_p0, %p19542_p13 }
 0x10c   : > { %p19538_p12 = pneg %p19537_p11 }
 0x10e   : > { %p19545_p4 = pnand %p19544_p2, %p19538_p12 }
 0x110   : > { %19548 = shalt.err (!%p19545_p4)
}
 0x111   : > { %18452 = dma.hbm_to_vmem [thread:$0]  (!%p19955_p5), %s26458_s11, 16, %s575_s1, [#allocation18]  }
 0x112   : > { %s19549_s10 = scalar_lea.hbm %s26463_s16, 4096 }
 0x113   : > { %p19550_p6 = scmp.ne.s32.totalorder %s26463_s16, %s19549_s10  ;;  %p19556_p1 = scmp.lt.u32.totalorder %s19549_s10, %s26463_s16 }
 0x115   : > { %p19552_p8 = pnand %p19550_p6, %p19971_p7 }
 0x117   : > { %p19553_p9 = pneg %p19552_p8 }
 0x119   : > { %p19558_p3 = pnand %p19556_p1, %p19553_p9 }
 0x11b   : > { %19561 = shalt.err (!%p19558_p3)
}
 0x11c   : > { %s19562_s1 = scalar_lea.vmem %s20144_s29, 4096  ;;  %p19570_p13 = scmp.lt.s32.totalorder %s20144_s29, %s20144_s29 }
 0x11d   : > { %p19563_p10 = scmp.ne.s32.totalorder %s20144_s29, %s19562_s1  ;;  %p19571_p0 = scmp.lt.s32.totalorder %s19562_s1, %s19562_s1 }
 0x11f   : > { %p19565_p11 = pnand %p19563_p10, %p19971_p7  ;;  %p19572_p2 = por %p19571_p0, %p19570_p13 }
 0x121   : > { %p19566_p12 = pneg %p19565_p11 }
 0x123   : > { %p19573_p4 = pnand %p19572_p2, %p19566_p12 }
 0x125   : > { %19576 = shalt.err (!%p19573_p4)
}
 0x126   : > { %18458 = dma.hbm_to_vmem [thread:$0]  (!%p19955_p5), %s26463_s16, 4096, %s20144_s29, [#allocation21], %s19759_s25, %s19759_s25, %s19760_s26  }
 0x127   : > { %s26639_s23 = sld [smem:[#allocation33_spill]]  ;;  %s17170_s17 = sadd.s32 4294967294, %s19749_s2  }
 0x128   : > { %s26640_s12 = sld [smem:[#allocation32_spill]]  ;;  %s48_s13 = sadd.s32 1, %s19741_s21 }
 0x129   : > { %p49_p7 = scmp.ge.s32.totalorder %s48_s13, 2  ;;  %s51_s5 = sadd.s32 1, %s19745_s22 }
 0x12a   : > { %s58_s10 = sadd.s32 1, %s19729_s19  ;;  %p65_p6 = scmp.ne.s32.totalorder %s19729_s19, %s19725_s0 }
 0x12b   : > { %s27038_s13 = smov (%p49_p7, %s48_s13), 0  ;;  %s27040_s5 = smov (!%p49_p7, %s51_s5), %s19745_s22 }
 0x12c   : > { %p66_p8 = scmp.eq.s32.totalorder %s19749_s2, 0  ;;  %p71_p9 = scmp.ne.s32.totalorder %s19725_s0, %s19721_s30 }
 0x12d   : > { %s26641_s25 = sld [smem:[#allocation31_spill]]  ;;  %p53_p5 = scmp.ge.s32.totalorder %s27040_s5, 2 }
 0x12e   : > { %s444_s26 = ssub.s32 %s19741_s21, %s27038_s13  ;;  %p20204_p1 = por %p66_p8, %p65_p6 }
 0x12f   : > { %p26643_p3 = scmp.ne.s32.totalorder %s26628_s24, 0  ;;  %s27042_s5 = smov (%p53_p5, %s27040_s5), 0 }
 0x130   : > { %s448_s3 = sadd.s32 1, %s26639_s23  ;;  %p458_p11 = scmp.ne.s32.totalorder %s26639_s23, %s26640_s12 }
 0x131   : > { %p20210_p10 = por %p26643_p3, %p71_p9  ;;  %s55_s30 = ssub.s32 %s19745_s22, %s27042_s5 }
 0x132   : > { %s26645_s28 = sadd.s32 4294967295, %s19749_s2   ;;  %p56_p13 = scmp.eq.s32.totalorder %s55_s30, 0 }
 0x133   : > { %p459_p12 = scmp.eq.s32.totalorder %s26645_s28, 3  ;;  %s445_s27 = sor.u32 %s444_s26, %s55_s30 }
 0x134   : > { %p446_p0 = scmp.eq.s32.totalorder %s445_s27, 0  ;;  %p464_p4 = scmp.ne.s32.totalorder %s26640_s12, %s26641_s25 }
 0x135   : > { %p20223_p2 = por %p459_p12, %p458_p11  ;;  %p465_p7 = scmp.eq.s32.totalorder %s17170_s17, 3 }
 0x136   : > { %s20228_s20 = scalar_select %p56_p13, %s19729_s19, %s58_s10  }
 0x137   : > { %s26646_s1 = scalar_select %p20223_p2, 1, 0 }
 0x138   : > { %s27044_s23 = smov (!%p446_p0, %s26639_s23), %s448_s3  ;;  %p18477_p6 = scmp.lt.s32.totalorder %s19749_s2, 4 }
 0x139   : > { %s623_s15 = sand.u32 1, %s19729_s19   ;;  %p20237_p8 = por %p465_p7, %p464_p4 }
 0x13a   : > { %s17183_s28 = sshll.u32 %s623_s15, 7  ;;  %s17699_s6 = sshll.u32 %s19745_s22, 11 }
 0x13b   : > { %s26647_s4 = scalar_select %p20237_p8, 1, 0 }
 0x13c   : > { %s26648_s27 = sld [smem:[#allocation107_spill]]  ;;  %s627_s10 = scalar_lea.vmem [#allocation5], %s17183_s28 }
 0x13d   : > { %s634_s12 = sshll.u32 %s627_s10, 4  ;;  %p20249_p9 = pnand %p18477_p6, %p20204_p1  ;;  %s20253_s12 = int_to_ptr.vmem [resolvable:$true] %s634_s12 }
 0x13e   : > { %s20255_s25 = scalar_lea.sflag [#allocation6], %s623_s15 }
 0x13f   : > { %p19579_p3 = pneg %p20249_p9 }
 0x142   : > { %s26649_s7 = smov %s26648_s27  ;;  %s20245_s8 = scalar_lea.hbm %s26648_s27, %s17699_s6 }
 0x143   : > { %s19577_s3 = scalar_lea.hbm %s20245_s8, 2048  ;;  %s19582_s28 = scalar_lea.hbm %s26649_s7, 4096 }
 0x144   : > { %p19578_p5 = scmp.ne.s32.totalorder %s20245_s8, %s19577_s3  ;;  %p19583_p1 = scmp.lt.u32.totalorder %s20245_s8, %s26649_s7 }
 0x145   : > { %p19584_p13 = scmp.lt.u32.totalorder %s19582_s28, %s19577_s3  ;;  %p19586_p4 = scmp.lt.u32.totalorder %s19577_s3, %s20245_s8 }
 0x146   : > { %p19580_p11 = pnand %p19579_p3, %p19578_p5 }
 0x147   : > { %p19585_p0 = por %p19584_p13, %p19583_p1 }
 0x148   : > { %p19581_p12 = pneg %p19580_p11 }
 0x149   : > { %p19587_p7 = por %p19586_p4, %p19585_p0 }
 0x14b   : > { %p19588_p6 = pnand %p19587_p7, %p19581_p12 }
 0x14d   : > { %19591 = shalt.err (!%p19588_p6)
}
 0x14e   : > { %s19592_s15 = scalar_lea.vmem %s20253_s12, 2048  ;;  %s19765_s27 = smov [#allocation5]  }
 0x14f   : > { %p19593_p5 = scmp.ne.s32.totalorder %s20253_s12, %s19592_s15  ;;  %s19597_s10 = sshll.u32 %s19765_s27, 4  ;;  %s19598_s10 = int_to_ptr.vmem [resolvable:$false] %s19597_s10 }
 0x150   : > { %s19599_s6 = scalar_lea.vmem %s19598_s10, 4096  ;;  %p19600_p2 = scmp.lt.s32.totalorder %s20253_s12, %s19598_s10 }
 0x151   : > { %p19595_p11 = pnand %p19593_p5, %p19579_p3  ;;  %p19601_p1 = scmp.lt.s32.totalorder %s19599_s6, %s19592_s15 }
 0x153   : > { %p19596_p8 = pneg %p19595_p11  ;;  %p19602_p13 = por %p19601_p1, %p19600_p2 }
 0x155   : > { %p19603_p0 = pnand %p19602_p13, %p19596_p8 }
 0x157   : > { %19606 = shalt.err (!%p19603_p0)
}
 0x158   : > { %s26651_s3 = smov 8   ;;  %s26652_s29 = smov 128  }
 0x159   : > { %18462 = dma.hbm_to_vmem [thread:$0]  (!%p20249_p9), %s20245_s8, 2048, %s20253_s12, %s20255_s25, %s26652_s29, %s26652_s29, %s26651_s3  }
 0x15a   : > { %s26653_s28 = sld [smem:[#allocation36_spill]] }
 0x160   : > { %p26654_p3 = scmp.ne.s32.totalorder %s26653_s28, 0 }
 0x162   : > { %653 = sbr.rel (%p26654_p3) target bundleno = 3716 (0xe84), region = 92 }
 0x169   : > { %s655_s26 = sand.u32 1, %s19725_s0  }
 0x16a   : > { %s17187_s30 = sshll.u32 %s655_s26, 7  ;;  %s656_s15 = scalar_lea.sflag [#allocation6], %s655_s26 }
 0x16b   : > { %s20289_s27 = scalar_lea.vmem [#allocation5], %s17187_s30 }
 0x16c   : > { %19680 = dma.done.wait (%p20210_p10), %s656_s15, 2048  }
 0x16d   : > { %19682 = vsyncadd (%p20210_p10), %s656_s15, 4294965248  ;;  %p26655_p2 = scmp.ne.s32.totalorder %s26628_s24, 0 }
 0x16f   : > { %19684 = dma.done.wait (%p26655_p2), [#allocation9], 1040  }
 0x170   : > { %19686 = vsyncadd (%p26655_p2), [#allocation9], 4294966256 }
 0x171   : > { %19688 = dma.done.wait (%p26655_p2), [#allocation12], 1040  }
 0x172   : > { %19690 = vsyncadd (%p26655_p2), [#allocation12], 4294966256 }
 0x173   : > { %19692 = dma.done.wait (%p26655_p2), [#allocation15], 1040  }
 0x174   : > { %19694 = vsyncadd (%p26655_p2), [#allocation15], 4294966256 }
 0x175   : > { %19696 = dma.done.wait (%p26655_p2), [#allocation18], 32  }
 0x176   : > { %19698 = vsyncadd (%p26655_p2), [#allocation18], 4294967264 }
 0x177   : > { %19700 = dma.done.wait (%p26655_p2), [#allocation21], 8192  }
 0x178   : > { %19702 = vsyncadd (%p26655_p2), [#allocation21], 4294959104  ;;  %s26656_s8 = sld [smem:[#allocation35_spill]]  ;;  %s26657_s18 = sld [smem:[#allocation32_spill]] }
 0x179   : > { %s26658_s3 = sld [smem:[#allocation108_spill]]  ;;  %s26660_s24 = sld [smem:[#allocation34_spill]] }
 0x17e   : > { %p756_p10 = scmp.lt.s32.totalorder %s26656_s8, 1  ;;  %s753_s12 = sand.u32 1, %s26657_s18  }
 0x17f   : > { %s17198_s17 = sshll.u32 %s753_s12, 6  ;;  %p17200_p8 = scmp.ne.s32.totalorder %s26660_s24, 0 }
 0x180   : > { %s27046_s8 = smov (!%p756_p10, %s26656_s8), 1  ;;  %s20325_s28 = scalar_lea.vmem [#allocation23], %s17198_s17 }
 0x181   : > { %s17199_s25 = sshll.u32 %s27046_s8, 3  ;;  %766 = sbr.rel (%p17200_p8) target bundleno = 1703 (0x6a7), region = 140 }
 0x182   : > { %s759_s29 = scalar_lea.vmem %s26658_s3, %s17199_s25 }
 0x183   : > { %v20323_v0 = vld [vmem:[%s759_s29] sm:$0x3f] }
 0x184   : > { %26659 = vst [vmem:[#allocation37_spill] sm:$0xff] %v20323_v0 }
 0x188   : > { %v767_v1 = vld [vmem:[%s20289_s27] sm:$0xff]  ;;  %v769_v2 = vld [vmem:[%s20289_s27 + $0x10] sm:$0xff]  ;;  %v768_v3 = vld [vmem:[%s20289_s27 + $0x8] sm:$0xff]  ;;  %s26661_s15 = sld [smem:[#allocation109_spill]]  ;;  %s19766_s8 = smov 96   ;;  %vm6343_vm0 = vcmask 130048  }
 0x189   : > { %785 = vadd.xlane.f32.xlu0 %v767_v1  ;;  %789 = vadd.xlane.f32.xlu1 %v769_v2  ;;  %v770_v4 = vld [vmem:[%s20289_s27 + $0x18] sm:$0xff]  ;;  %v771_v5 = vld [vmem:[%s20289_s27 + $0x20] sm:$0xff]  ;;  %v772_v6 = vld [vmem:[%s20289_s27 + $0x28] sm:$0xff]  ;;  %s19767_s18 = smov 112   ;;  %s19768_s17 = smov 80  }
 0x18a   : > { %v773_v7 = vld [vmem:[%s20289_s27 + $0x30] sm:$0xff]  ;;  %v774_v8 = vld [vmem:[%s20289_s27 + $0x38] sm:$0xff]  ;;  %v775_v9 = vld [vmem:[%s20289_s27 + $0x40] sm:$0xff]  ;;  %s19769_s25 = smov 64   ;;  %s19770_s10 = smov 48  }
 0x18b   : > { %v776_v10 = vld [vmem:[%s20289_s27 + $0x48] sm:$0xff]  ;;  %v20339_v11 = vld [vmem:[%s20289_s27 + $0x50] sm:$0xff]  ;;  %v20342_v12 = vld [vmem:[%s20289_s27 + $0x58] sm:$0xff]  ;;  %s19771_s6 = smov 32   ;;  %s19772_s3 = smov 16  }
 0x18c   : > { %v20347_v13 = vld [vmem:[%s20289_s27 + $0x60] sm:$0xff]  ;;  %v20350_v14 = vld [vmem:[%s20289_s27 + $0x68] sm:$0xff]  ;;  %v20355_v15 = vld [vmem:[%s20289_s27 + $0x70] sm:$0xff] }
 0x18d   : > { %787 = vadd.xlane.f32.xlu0 %v768_v3  ;;  %791 = vadd.xlane.f32.xlu1 %v770_v4  ;;  %v20358_v16 = vld [vmem:[%s20289_s27 + $0x78] sm:$0xff]  ;;  %v18612_v60 = vld [vmem:[#allocation10] sm:$0xff]  }
 0x18e   : > { %v18613_v61 = vld [vmem:[#allocation13] sm:$0xff]   ;;  %17976 = vmatprep.subr.bf16.mxu0 %v18612_v60 }
 0x18f   : > { %18008 = vmatprep.subr.bf16.mxu1 %v18613_v61  ;;  %17977 = vmatpush3.bf16.msra.mxu0 %v18612_v60 }
 0x190   : > { %18009 = vmatpush3.bf16.msra.mxu1 %v18613_v61 }
 0x191   : > { %793 = vadd.xlane.f32.xlu0 %v771_v5  ;;  %795 = vadd.xlane.f32.xlu1 %v772_v6 }
 0x195   : > { %797 = vadd.xlane.f32.xlu0 %v773_v7  ;;  %799 = vadd.xlane.f32.xlu1 %v774_v8 }
 0x199   : > { %801 = vadd.xlane.f32.xlu0 %v775_v9  ;;  %803 = vadd.xlane.f32.xlu1 %v776_v10 }
 0x19d   : > { %805 = vadd.xlane.f32.xlu0 %v20339_v11  ;;  %807 = vadd.xlane.f32.xlu1 %v20342_v12 }
 0x1a1   : > { %809 = vadd.xlane.f32.xlu0 %v20347_v13  ;;  %811 = vadd.xlane.f32.xlu1 %v20350_v14 }
 0x1a5   : > { %813 = vadd.xlane.f32.xlu0 %v20355_v15  ;;  %815 = vadd.xlane.f32.xlu1 %v20358_v16 }
 0x216   : > { %v786_v17 = vpop.xlane.xlu0 %785  ;;  %v790_v18 = vpop.xlane.xlu1 %789 }
 0x217   : > { %v818_v19 = vmul.f32 0.0078125, %v786_v17  ;;  %v820_v20 = vmul.f32 0.0078125, %v790_v18 }
 0x219   : > { %v20362_v21 = vsub.f32 %v767_v1, %v818_v19  ;;  %v20364_v22 = vsub.f32 %v769_v2, %v820_v20 }
 0x21a   : > { %v788_v23 = vpop.xlane.xlu0 %787  ;;  %v792_v24 = vpop.xlane.xlu1 %791 }
 0x21b   : > { %v819_v25 = vmul.f32 0.0078125, %v788_v23  ;;  %v850_v26 = vmul.f32 %v20362_v21, %v20362_v21  ;;  %v821_v27 = vmul.f32 0.0078125, %v792_v24  ;;  %v852_v28 = vmul.f32 %v20364_v22, %v20364_v22  ;;  %v18616_v24 = vld [vmem:[#allocation10 + $0x10] sm:$0xff]  }
 0x21d   : > { %866 = vadd.xlane.f32.xlu0 %v850_v26  ;;  %v20370_v29 = vsub.f32 %v768_v3, %v819_v25  ;;  %v20372_v30 = vsub.f32 %v770_v4, %v821_v27  ;;  %v18617_v25 = vld [vmem:[#allocation13 + $0x10] sm:$0xff]  }
 0x21e   : > { %v794_v31 = vpop.xlane.xlu0 %793  ;;  %v796_v32 = vpop.xlane.xlu1 %795 }
 0x21f   : > { %v822_v33 = vmul.f32 0.0078125, %v794_v31  ;;  %v851_v34 = vmul.f32 %v20370_v29, %v20370_v29  ;;  %v823_v35 = vmul.f32 0.0078125, %v796_v32  ;;  %v853_v36 = vmul.f32 %v20372_v30, %v20372_v30  ;;  %v18621_v31 = vld [vmem:[#allocation13 + $0x20] sm:$0xff]  }
 0x220   : > { %v18622_v32 = vld [vmem:[#allocation10 + $0x28] sm:$0xff]  }
 0x221   : > { %870 = vadd.xlane.f32.xlu0 %v852_v28  ;;  %868 = vadd.xlane.f32.xlu1 %v851_v34  ;;  %v20378_v37 = vsub.f32 %v771_v5, %v822_v33  ;;  %v20380_v38 = vsub.f32 %v772_v6, %v823_v35  ;;  %v18618_v28 = vld [vmem:[#allocation10 + $0x18] sm:$0xff]   ;;  %v18623_v33 = vld [vmem:[#allocation13 + $0x28] sm:$0xff]  }
 0x222   : > { %v798_v39 = vpop.xlane.xlu0 %797  ;;  %v800_v40 = vpop.xlane.xlu1 %799  ;;  %v18624_v34 = vld [vmem:[#allocation10 + $0x30] sm:$0xff]  }
 0x223   : > { %v824_v41 = vmul.f32 0.0078125, %v798_v39  ;;  %v854_v42 = vmul.f32 %v20378_v37, %v20378_v37  ;;  %v825_v43 = vmul.f32 0.0078125, %v800_v40  ;;  %v855_v44 = vmul.f32 %v20380_v38, %v20380_v38  ;;  %v18625_v35 = vld [vmem:[#allocation13 + $0x30] sm:$0xff]   ;;  %v18627_v39 = vld [vmem:[#allocation13 + $0x38] sm:$0xff]   ;;  %v20432_v40 = vld [vmem:[#allocation16] sm:$0xff]  }
 0x225   : > { %872 = vadd.xlane.f32.xlu1 %v853_v36  ;;  %874 = vadd.xlane.f32.xlu0 %v854_v42  ;;  %v20386_v45 = vsub.f32 %v773_v7, %v824_v41  ;;  %v20388_v46 = vsub.f32 %v774_v8, %v825_v43  ;;  %v18626_v36 = vld [vmem:[#allocation10 + $0x38] sm:$0xff]  }
 0x226   : > { %v802_v47 = vpop.xlane.xlu0 %801  ;;  %v804_v48 = vpop.xlane.xlu1 %803 }
 0x227   : > { %v826_v49 = vmul.f32 0.0078125, %v802_v47  ;;  %v856_v50 = vmul.f32 %v20386_v45, %v20386_v45  ;;  %v827_v51 = vmul.f32 0.0078125, %v804_v48  ;;  %v857_v52 = vmul.f32 %v20388_v46, %v20388_v46 }
 0x229   : > { %876 = vadd.xlane.f32.xlu1 %v855_v44  ;;  %878 = vadd.xlane.f32.xlu0 %v856_v50  ;;  %v20394_v53 = vsub.f32 %v775_v9, %v826_v49  ;;  %v20396_v54 = vsub.f32 %v776_v10, %v827_v51  ;;  %v18614_v10 = vld [vmem:[#allocation10 + $0x8] sm:$0xff]  }
 0x22a   : > { %v806_v55 = vpop.xlane.xlu0 %805  ;;  %v808_v56 = vpop.xlane.xlu1 %807  ;;  %17978 = vmatprep.subr.bf16.mxu0 %v18614_v10 }
 0x22b   : > { %v828_v57 = vmul.f32 0.0078125, %v806_v55  ;;  %v858_v58 = vmul.f32 %v20394_v53, %v20394_v53  ;;  %v829_v59 = vmul.f32 0.0078125, %v808_v56  ;;  %v859_v62 = vmul.f32 %v20396_v54, %v20396_v54  ;;  %17979 = vmatpush3.bf16.msra.mxu0 %v18614_v10 }
 0x22c   : > { %17980 = vmatprep.subr.bf16.mxu0 %v18616_v24 }
 0x22d   : > { %880 = vadd.xlane.f32.xlu1 %v857_v52  ;;  %882 = vadd.xlane.f32.xlu0 %v858_v58  ;;  %v20403_v63 = vsub.f32 %v20339_v11, %v828_v57  ;;  %v20406_v1 = vsub.f32 %v20342_v12, %v829_v59  ;;  %v18615_v11 = vld [vmem:[#allocation13 + $0x8] sm:$0xff]   ;;  %v1007_v52 = vlaneseq }
 0x22e   : > { %v810_v2 = vpop.xlane.xlu0 %809  ;;  %v812_v3 = vpop.xlane.xlu1 %811  ;;  %18010 = vmatprep.subr.bf16.mxu1 %v18615_v11 }
 0x22f   : > { %v830_v4 = vmul.f32 0.0078125, %v810_v2  ;;  %v860_v5 = vmul.f32 %v20403_v63, %v20403_v63  ;;  %v831_v6 = vmul.f32 0.0078125, %v812_v3  ;;  %v861_v7 = vmul.f32 %v20406_v1, %v20406_v1  ;;  %18011 = vmatpush3.bf16.msra.mxu1 %v18615_v11  ;;  %17981 = vmatpush3.bf16.msra.mxu0 %v18616_v24  ;;  %v20446_v24 = vld [vmem:[#allocation8] ss:$0 sm:$0xff] }
 0x230   : > { %18012 = vmatprep.subr.bf16.mxu1 %v18617_v25  ;;  %17982 = vmatprep.subr.bf16.mxu0 %v18618_v28  ;;  %v20436_v61 = vshrl.u32 %v1007_v52, 7  ;;  %v1006_v11 = vadd.f32 1.0, %v20323_v0 }
 0x231   : > { %884 = vadd.xlane.f32.xlu1 %v859_v62  ;;  %886 = vadd.xlane.f32.xlu0 %v860_v5  ;;  %v20413_v8 = vsub.f32 %v20347_v13, %v830_v4  ;;  %v20416_v9 = vsub.f32 %v20350_v14, %v831_v6  ;;  %v20441_v5 = vld [vmem:[%s26661_s15] ss:$0 sm:$0xff] }
 0x232   : > { %v814_v12 = vpop.xlane.xlu0 %813  ;;  %v816_v17 = vpop.xlane.xlu1 %815 }
 0x233   : > { %v832_v18 = vmul.f32 0.0078125, %v814_v12  ;;  %v862_v19 = vmul.f32 %v20413_v8, %v20413_v8  ;;  %v833_v20 = vmul.f32 0.0078125, %v816_v17  ;;  %v863_v13 = vmul.f32 %v20416_v9, %v20416_v9  ;;  %18013 = vmatpush3.bf16.msra.mxu1 %v18617_v25  ;;  %17983 = vmatpush3.bf16.msra.mxu0 %v18618_v28 }
 0x234   : > { %v1009_v12 = vsub.s32 1, %v20436_v61 }
 0x235   : > { %888 = vadd.xlane.f32.xlu1 %v861_v7  ;;  %890 = vadd.xlane.f32.xlu0 %v862_v19  ;;  %v20423_v14 = vsub.f32 %v20355_v15, %v832_v18  ;;  %v20426_v23 = vsub.f32 %v20358_v16, %v833_v20  ;;  %v18619_v15 = vld [vmem:[#allocation13 + $0x18] sm:$0xff]  }
 0x236   : > { %18014 = vmatprep.subr.bf16.mxu1 %v18619_v15  ;;  %v18620_v16 = vld [vmem:[#allocation10 + $0x20] sm:$0xff]  }
 0x237   : > { %v864_v26 = vmul.f32 %v20423_v14, %v20423_v14  ;;  %v865_v27 = vmul.f32 %v20426_v23, %v20426_v23  ;;  %18015 = vmatpush3.bf16.msra.mxu1 %v18619_v15  ;;  %17984 = vmatprep.subr.bf16.mxu0 %v18620_v16 }
 0x238   : > { %18016 = vmatprep.subr.bf16.mxu1 %v18621_v31  ;;  %17985 = vmatpush3.bf16.msra.mxu0 %v18620_v16  ;;  %v20450_v16 = vrot.slane %v1006_v11, %v1009_v12 }
 0x239   : > { %892 = vadd.xlane.f32.xlu1 %v863_v13  ;;  %894 = vadd.xlane.f32.xlu0 %v864_v26  ;;  %v1029_v26 = vsub.s32 0, %v20436_v61 }
 0x23a   : > { %17986 = vmatprep.subr.bf16.mxu0 %v18622_v32 }
 0x23b   : > { %18017 = vmatpush3.bf16.msra.mxu1 %v18621_v31 }
 0x23c   : > { %18018 = vmatprep.subr.bf16.mxu1 %v18623_v33  ;;  %17987 = vmatpush3.bf16.msra.mxu0 %v18622_v32 }
 0x23d   : > { %896 = vadd.xlane.f32.xlu1 %v865_v27  ;;  %17988 = vmatprep.subr.bf16.mxu0 %v18624_v34 }
 0x23f   : > { %18019 = vmatpush3.bf16.msra.mxu1 %v18623_v33 }
 0x240   : > { %18020 = vmatprep.subr.bf16.mxu1 %v18625_v35  ;;  %17989 = vmatpush3.bf16.msra.mxu0 %v18624_v34 }
 0x241   : > { %17990 = vmatprep.subr.bf16.mxu0 %v18626_v36 }
 0x243   : > { %18021 = vmatpush3.bf16.msra.mxu1 %v18625_v35 }
 0x244   : > { %18022 = vmatprep.subr.bf16.mxu1 %v18627_v39  ;;  %17991 = vmatpush3.bf16.msra.mxu0 %v18626_v36 }
 0x245   : > { %18040 = vmatprep.subr.bf16.mxu0 %v20432_v40 }
 0x247   : > { %18023 = vmatpush3.bf16.msra.mxu1 %v18627_v39 }
 0x248   : > { %18368 = vmatprep.subr.bf16.mxu1 %v20432_v40 }
 0x2aa   : > { %v867_v41 = vpop.xlane.xlu0 %866 }
 0x2ab   : > { %v898_v42 = vmul.f32 0.0078125, %v867_v41 }
 0x2ad   : > { %v914_v43 = vadd.f32 1e-05, %v898_v42  ;;  %v20457_v42 = vrot.slane %v20323_v0, %v1029_v26 }
 0x2ae   : > { %v869_v44 = vpop.xlane.xlu1 %868  ;;  %v871_v47 = vpop.xlane.xlu0 %870 }
 0x2af   : > { %18636 = vrsqrt.f32 %v914_v43  ;;  %v899_v48 = vmul.f32 0.0078125, %v869_v44  ;;  %v900_v49 = vmul.f32 0.0078125, %v871_v47 }
 0x2b1   : > { %v915_v50 = vadd.f32 1e-05, %v899_v48  ;;  %v916_v51 = vadd.f32 1e-05, %v900_v49 }
 0x2b2   : > { %v873_v55 = vpop.xlane.xlu1 %872  ;;  %v875_v56 = vpop.xlane.xlu0 %874 }
 0x2b3   : > { %18638 = vrsqrt.f32 %v915_v50  ;;  %v901_v57 = vmul.f32 0.0078125, %v873_v55  ;;  %v902_v58 = vmul.f32 0.0078125, %v875_v56 }
 0x2b4   : > { %18640 = vrsqrt.f32 %v916_v51 }
 0x2b5   : > { %v917_v59 = vadd.f32 1e-05, %v901_v57  ;;  %v918_v60 = vadd.f32 1e-05, %v902_v58 }
 0x2b6   : > { %v877_v62 = vpop.xlane.xlu1 %876  ;;  %v879_v2 = vpop.xlane.xlu0 %878 }
 0x2b7   : > { %18642 = vrsqrt.f32 %v917_v59  ;;  %v903_v3 = vmul.f32 0.0078125, %v877_v62  ;;  %v904_v4 = vmul.f32 0.0078125, %v879_v2 }
 0x2b8   : > { %18644 = vrsqrt.f32 %v918_v60 }
 0x2b9   : > { %v18637_v6 = vpop.eup %18636  ;;  %v919_v7 = vadd.f32 1e-05, %v903_v3  ;;  %v920_v10 = vadd.f32 1e-05, %v904_v4 }
 0x2ba   : > { %v946_v17 = vmul.f32 %v18637_v6, %v20362_v21  ;;  %v881_v18 = vpop.xlane.xlu1 %880  ;;  %v883_v19 = vpop.xlane.xlu0 %882 }
 0x2bb   : > { %18646 = vrsqrt.f32 %v919_v7  ;;  %v905_v20 = vmul.f32 0.0078125, %v881_v18  ;;  %v906_v13 = vmul.f32 0.0078125, %v883_v19 }
 0x2bc   : > { %18648 = vrsqrt.f32 %v920_v10  ;;  %v968_v25 = vmul.f32 %v20441_v5, %v946_v17 }
 0x2bd   : > { %v18639_v27 = vpop.eup %18638  ;;  %v921_v28 = vadd.f32 1e-05, %v905_v20  ;;  %v922_v15 = vadd.f32 1e-05, %v906_v13 }
 0x2be   : > { %v18641_v31 = vpop.eup %18640  ;;  %v947_v21 = vmul.f32 %v18639_v27, %v20370_v29  ;;  %v885_v32 = vpop.xlane.xlu1 %884  ;;  %v990_v34 = vadd.f32 %v20446_v24, %v968_v25 }
 0x2bf   : > { %v887_v33 = vpop.xlane.xlu0 %886  ;;  %v948_v35 = vmul.f32 %v18641_v31, %v20364_v22  ;;  %18650 = vrsqrt.f32 %v921_v28  ;;  %v907_v36 = vmul.f32 0.0078125, %v885_v32 }
 0x2c0   : > { %v908_v39 = vmul.f32 0.0078125, %v887_v33  ;;  %18652 = vrsqrt.f32 %v922_v15  ;;  %v969_v41 = vmul.f32 %v20441_v5, %v947_v21  ;;  %v1011_v29 = vmul.f32 %v20450_v16, %v990_v34 }
 0x2c1   : > { %v18643_v43 = vpop.eup %18642  ;;  %v923_v44 = vadd.f32 1e-05, %v907_v36  ;;  %v970_v48 = vmul.f32 %v20441_v5, %v948_v35 }
 0x2c2   : > { %v924_v47 = vadd.f32 1e-05, %v908_v39  ;;  %v18645_v49 = vpop.eup %18644  ;;  %v949_v50 = vmul.f32 %v18643_v43, %v20372_v30  ;;  %v889_v22 = vpop.xlane.xlu1 %888  ;;  %v991_v52 = vadd.f32 %v20446_v24, %v969_v41  ;;  %v1031_v30 = vadd.f32 %v20457_v42, %v1011_v29  ;;  %v18629_v43 = vld [vmem:[#allocation16 + $0x8] sm:$0xff]  }
 0x2c3   : > { %v891_v51 = vpop.xlane.xlu0 %890  ;;  %v950_v55 = vmul.f32 %v18645_v49, %v20378_v37  ;;  %18654 = vrsqrt.f32 %v923_v44  ;;  %v909_v56 = vmul.f32 0.0078125, %v889_v22  ;;  %v992_v60 = vadd.f32 %v20446_v24, %v970_v48 }
 0x2c4   : > { %v910_v57 = vmul.f32 0.0078125, %v891_v51  ;;  %18656 = vrsqrt.f32 %v924_v47  ;;  %v1012_v58 = vmul.f32 %v20450_v16, %v991_v52  ;;  %v971_v59 = vmul.f32 %v20441_v5, %v949_v50 }
 0x2c5   : > { %v18647_v62 = vpop.eup %18646  ;;  %v925_v2 = vadd.f32 1e-05, %v909_v56  ;;  %v972_v4 = vmul.f32 %v20441_v5, %v950_v55  ;;  %v1013_v17 = vmul.f32 %v20450_v16, %v992_v60 }
 0x2c6   : > { %v926_v3 = vadd.f32 1e-05, %v910_v57  ;;  %v18649_v6 = vpop.eup %18648  ;;  %v951_v37 = vmul.f32 %v18647_v62, %v20380_v38  ;;  %v893_v7 = vpop.xlane.xlu1 %892  ;;  %v1032_v11 = vadd.f32 %v20457_v42, %v1012_v58  ;;  %v993_v12 = vadd.f32 %v20446_v24, %v971_v59 }
 0x2c7   : > { %v895_v10 = vpop.xlane.xlu0 %894  ;;  %v952_v18 = vmul.f32 %v18649_v6, %v20386_v45  ;;  %18658 = vrsqrt.f32 %v925_v2  ;;  %v911_v19 = vmul.f32 0.0078125, %v893_v7  ;;  %v1033_v38 = vadd.f32 %v20457_v42, %v1013_v17  ;;  %v18630_v2 = vld [vmem:[#allocation16 + $0x10] sm:$0xff]   ;;  %v18631_v17 = vld [vmem:[#allocation16 + $0x18] sm:$0xff]  }
 0x2c8   : > { %v912_v20 = vmul.f32 0.0078125, %v895_v10  ;;  %18660 = vrsqrt.f32 %v926_v3  ;;  %v20474_v13 = vpack.c.bf16 %v1032_v11, %v1031_v30  ;;  %v1014_v25 = vmul.f32 %v20450_v16, %v993_v12 }
 0x2c9   : > { %v18651_v26 = vpop.eup %18650  ;;  %v927_v27 = vadd.f32 1e-05, %v911_v19  ;;  %v973_v15 = vmul.f32 %v20441_v5, %v951_v37  ;;  %v994_v31 = vadd.f32 %v20446_v24, %v972_v4  ;;  %v974_v34 = vmul.f32 %v20441_v5, %v952_v18 }
 0x2ca   : > { %v928_v28 = vadd.f32 1e-05, %v912_v20  ;;  %v18653_v21 = vpop.eup %18652  ;;  %v953_v45 = vmul.f32 %v18651_v26, %v20388_v46  ;;  %v897_v32 = vpop.xlane.xlu1 %896  ;;  %17992 = vmatprep.mubr.bf16.mxu0 %v20474_v13  ;;  %18024 = vmatprep.mubr.bf16.mxu1 %v20474_v13  ;;  %v1034_v33 = vadd.f32 %v20457_v42, %v1014_v25 }
 0x2cb   : > { %v954_v35 = vmul.f32 %v18653_v21, %v20394_v53  ;;  %18662 = vrsqrt.f32 %v927_v27  ;;  %v913_v36 = vmul.f32 0.0078125, %v897_v32  ;;  %v995_v39 = vadd.f32 %v20446_v24, %v973_v15  ;;  %v18632_v32 = vld [vmem:[#allocation16 + $0x20] sm:$0xff]  }
 0x2cc   : > { %18664 = vrsqrt.f32 %v928_v28  ;;  %v20487_v41 = vpack.c.bf16 %v1034_v33, %v1033_v38  ;;  %v1015_v46 = vmul.f32 %v20450_v16, %v994_v31  ;;  %v975_v44 = vmul.f32 %v20441_v5, %v953_v45 }
 0x2cd   : > { %v18655_v47 = vpop.eup %18654  ;;  %v929_v29 = vadd.f32 1e-05, %v913_v36  ;;  %v1016_v48 = vmul.f32 %v20450_v16, %v995_v39  ;;  %v996_v49 = vadd.f32 %v20446_v24, %v974_v34  ;;  %v976_v53 = vmul.f32 %v20441_v5, %v954_v35 }
 0x2ce   : > { %v18657_v50 = vpop.eup %18656  ;;  %v955_v22 = vmul.f32 %v18655_v47, %v20396_v54  ;;  %17993 = vmatmul.mubr.bf16.vlgmr.msra.gmra.mrb[0].mxu0 %v20487_v41  ;;  %18025 = vmatmul.mubr.bf16.vlgmr.msra.gmra.mrb[0].mxu1 %v20487_v41  ;;  %v1035_v51 = vadd.f32 %v20457_v42, %v1015_v46  ;;  %v997_v52 = vadd.f32 %v20446_v24, %v975_v44 }
 0x2cf   : > { %v956_v55 = vmul.f32 %v18657_v50, %v20403_v63  ;;  %18666 = vrsqrt.f32 %v929_v29  ;;  %18041 = vmatpush3.bf16.msra.mxu0 %v20432_v40  ;;  %18376 = vmatpush3.bf16.msra.mxu1 %v20432_v40  ;;  %v1036_v56 = vadd.f32 %v20457_v42, %v1016_v48  ;;  %v1017_v57 = vmul.f32 %v20450_v16, %v996_v49 }
 0x2d0   : > { %18042 = vmatprep.subr.bf16.mxu0 %v18629_v43  ;;  %18369 = vmatprep.subr.bf16.mxu1 %v18629_v43  ;;  %v1018_v54 = vmul.f32 %v20450_v16, %v997_v52  ;;  %v977_v58 = vmul.f32 %v20441_v5, %v955_v22  ;;  %v998_v59 = vadd.f32 %v20446_v24, %v976_v53 }
 0x2d1   : > { %v18659_v60 = vpop.eup %18658  ;;  %v20507_v62 = vpack.c.bf16 %v1036_v56, %v1035_v51  ;;  %v1037_v63 = vadd.f32 %v20457_v42, %v1017_v57  ;;  %v978_v40 = vmul.f32 %v20441_v5, %v956_v55  ;;  %v18635_v55 = vld [vmem:[#allocation16 + $0x38] sm:$0xff]  }
 0x2d2   : > { %v18661_v3 = vpop.eup %18660  ;;  %v957_v30 = vmul.f32 %v18659_v60, %v20406_v1  ;;  %v1038_v4 = vadd.f32 %v20457_v42, %v1018_v54  ;;  %v999_v6 = vadd.f32 %v20446_v24, %v977_v58  ;;  %v1019_v37 = vmul.f32 %v20450_v16, %v998_v59 }
 0x2d3   : > { %v958_v7 = vmul.f32 %v18661_v3, %v20413_v8  ;;  %17996 = vmatprep.mubr.bf16.mxu0 %v20507_v62  ;;  %18028 = vmatprep.mubr.bf16.mxu1 %v20507_v62  ;;  %v1000_v10 = vadd.f32 %v20446_v24, %v978_v40 }
 0x2d4   : > { %18043 = vmatpush3.bf16.msra.mxu0 %v18629_v43  ;;  %18377 = vmatpush3.bf16.msra.mxu1 %v18629_v43  ;;  %v20519_v11 = vpack.c.bf16 %v1038_v4, %v1037_v63  ;;  %v1020_v1 = vmul.f32 %v20450_v16, %v999_v6  ;;  %v979_v18 = vmul.f32 %v20441_v5, %v957_v30 }
 0x2d5   : > { %v18663_v12 = vpop.eup %18662  ;;  %18044 = vmatprep.subr.bf16.mxu0 %v18630_v2  ;;  %18370 = vmatprep.subr.bf16.mxu1 %v18630_v2  ;;  %v980_v8 = vmul.f32 %v20441_v5, %v958_v7  ;;  %v1039_v25 = vadd.f32 %v20457_v42, %v1019_v37  ;;  %v1021_v28 = vmul.f32 %v20450_v16, %v1000_v10 }
 0x2d6   : > { %v18665_v19 = vpop.eup %18664  ;;  %v959_v20 = vmul.f32 %v18663_v12, %v20416_v9  ;;  %17997 = vmatmul.mubr.bf16.gmra.mrb[4].mxu0 %v20519_v11  ;;  %18029 = vmatmul.mubr.bf16.gmra.mrb[4].mxu1 %v20519_v11  ;;  %v1040_v38 = vadd.f32 %v20457_v42, %v1020_v1  ;;  %v1001_v27 = vadd.f32 %v20446_v24, %v979_v18 }
 0x2d7   : > { %v960_v26 = vmul.f32 %v18665_v19, %v20423_v14  ;;  %v1002_v15 = vadd.f32 %v20446_v24, %v980_v8  ;;  %v1041_v36 = vadd.f32 %v20457_v42, %v1021_v28 }
 0x2d8   : > { %18045 = vmatpush3.bf16.msra.mxu0 %v18630_v2  ;;  %18378 = vmatpush3.bf16.msra.mxu1 %v18630_v2  ;;  %v1051_v31 = vpack.c.bf16 %v1040_v38, %v1039_v25  ;;  %v981_v9 = vmul.f32 %v20441_v5, %v959_v20  ;;  %v1022_v45 = vmul.f32 %v20450_v16, %v1001_v27 }
 0x2d9   : > { %v18667_v21 = vpop.eup %18666  ;;  %18046 = vmatprep.subr.bf16.mxu0 %v18631_v17  ;;  %18371 = vmatprep.subr.bf16.mxu1 %v18631_v17  ;;  %v982_v33 = vmul.f32 %v20441_v5, %v960_v26  ;;  %v1023_v35 = vmul.f32 %v20450_v16, %v1002_v15 }
 0x2da   : > { %v961_v14 = vmul.f32 %v18667_v21, %v20426_v23  ;;  %18000 = vmatprep.mubr.bf16.mxu0 %v1051_v31  ;;  %18032 = vmatprep.mubr.bf16.mxu1 %v1051_v31  ;;  %v1003_v34 = vadd.f32 %v20446_v24, %v981_v9  ;;  %v1042_v39 = vadd.f32 %v20457_v42, %v1022_v45  ;;  %v18633_v23 = vld [vmem:[#allocation16 + $0x28] sm:$0xff]  }
 0x2db   : > { %v1004_v46 = vadd.f32 %v20446_v24, %v982_v33  ;;  %v1043_v29 = vadd.f32 %v20457_v42, %v1023_v35 }
 0x2dc   : > { %18047 = vmatpush3.bf16.msra.mxu0 %v18631_v17  ;;  %18379 = vmatpush3.bf16.msra.mxu1 %v18631_v17  ;;  %v1024_v43 = vmul.f32 %v20450_v16, %v1003_v34  ;;  %v983_v44 = vmul.f32 %v20441_v5, %v961_v14  ;;  %v1052_v47 = vpack.c.bf16 %v1042_v39, %v1041_v36  ;;  %v18634_v5 = vld [vmem:[#allocation16 + $0x30] sm:$0xff]  }
 0x2dd   : > { %18048 = vmatprep.subr.bf16.mxu0 %v18632_v32  ;;  %18372 = vmatprep.subr.bf16.mxu1 %v18632_v32  ;;  %v1025_v53 = vmul.f32 %v20450_v16, %v1004_v46 }
 0x2de   : > { %v1044_v48 = vadd.f32 %v20457_v42, %v1024_v43  ;;  %v1005_v49 = vadd.f32 %v20446_v24, %v983_v44  ;;  %18001 = vmatmul.mubr.bf16.gmra.mrb[8].mxu0 %v1052_v47  ;;  %18033 = vmatmul.mubr.bf16.gmra.mrb[8].mxu1 %v1052_v47 }
 0x2df   : > { %v1045_v51 = vadd.f32 %v20457_v42, %v1025_v53 }
 0x2e0   : > { %18049 = vmatpush3.bf16.msra.mxu0 %v18632_v32  ;;  %18380 = vmatpush3.bf16.msra.mxu1 %v18632_v32  ;;  %v1053_v50 = vpack.c.bf16 %v1044_v48, %v1043_v29  ;;  %v1026_v22 = vmul.f32 %v20450_v16, %v1005_v49  ;;  %v20555_v16 = vld [vmem:[#allocation11] ss:$0 sm:$0xff] }
 0x2e1   : > { %18050 = vmatprep.subr.bf16.mxu0 %v18633_v23  ;;  %18373 = vmatprep.subr.bf16.mxu1 %v18633_v23 }
 0x2e2   : > { %18004 = vmatprep.mubr.bf16.mxu0 %v1053_v50  ;;  %18036 = vmatprep.mubr.bf16.mxu1 %v1053_v50  ;;  %v1046_v52 = vadd.f32 %v20457_v42, %v1026_v22 }
 0x2e4   : > { %18051 = vmatpush3.bf16.msra.mxu0 %v18633_v23  ;;  %18381 = vmatpush3.bf16.msra.mxu1 %v18633_v23  ;;  %v1054_v24 = vpack.c.bf16 %v1046_v52, %v1045_v51  ;;  %v20661_v23 = vld [vmem:[#allocation17] ss:$0 sm:$0xff] }
 0x2e5   : > { %18052 = vmatprep.subr.bf16.mxu0 %v18634_v5  ;;  %18374 = vmatprep.subr.bf16.mxu1 %v18634_v5 }
 0x2e6   : > { %18005 = vmatmul.mubr.bf16.gmra.mrb[12].mxu0 %v1054_v24  ;;  %18037 = vmatmul.mubr.bf16.gmra.mrb[12].mxu1 %v1054_v24 }
 0x2e7   : > { %18056 = vmatprep.mubr.bf16.mxu0 %v20474_v13  ;;  %18064 = vmatprep.mubr.bf16.mxu1 %v1051_v31 }
 0x2e8   : > { %18053 = vmatpush3.bf16.msra.mxu0 %v18634_v5  ;;  %18382 = vmatpush3.bf16.msra.mxu1 %v18634_v5 }
 0x2e9   : > { %18054 = vmatprep.subr.bf16.mxu0 %v18635_v55  ;;  %18375 = vmatprep.subr.bf16.mxu1 %v18635_v55 }
 0x2ec   : > { %18055 = vmatpush3.bf16.msra.mxu0 %v18635_v55  ;;  %18383 = vmatpush3.bf16.msra.mxu1 %v18635_v55 }
 0x2ef   : > { %18057 = vmatmul.mubr.bf16.vlgmr.msra.gmra.mrb[16].mxu0 %v20487_v41  ;;  %18065 = vmatmul.mubr.bf16.vlgmr.msra.gmra.mrb[16].mxu1 %v1052_v47 }
 0x2f0   : > { %18060 = vmatprep.mubr.bf16.mxu0 %v20507_v62  ;;  %18068 = vmatprep.mubr.bf16.mxu1 %v1053_v50 }
 0x2f7   : > { %18061 = vmatmul.mubr.bf16.gmra.mrb[20].mxu0 %v20519_v11  ;;  %18069 = vmatmul.mubr.bf16.gmra.mrb[20].mxu1 %v1054_v24 }
 0x3a1   : > { %v17994_v42 = vpop.f32.mrb[0].mxu0  ;;  %v20557_v56 = vpop.f32.mrb[0].mxu1 }
 0x3a2   : > { %v1169_v13 = vadd.f32 %v17994_v42, %v20555_v16  ;;  %v1160_v57 = vpop.f32.mrb[1].mxu0  ;;  %v20560_v54 = vpop.f32.mrb[1].mxu1 }
 0x3a3   : > { %v17995_v58 = vpop.f32.mrb[2].mxu0  ;;  %v20562_v59 = vpop.f32.mrb[2].mxu1  ;;  %v1161_v31 = vadd.f32 %v20555_v16, %v1160_v57 }
 0x3a4   : > { %v20564_v41 = vmul.f32 0.25, %v1169_v13  ;;  %v1172_v60 = vadd.f32 %v17995_v58, %v20555_v16  ;;  %v1163_v62 = vpop.f32.mrb[3].mxu0  ;;  %v20567_v63 = vpop.f32.mrb[3].mxu1 }
 0x3a5   : > { %v20641_v14 = vmul.f32 0.25, %v1161_v31  ;;  %v1164_v47 = vadd.f32 %v20555_v16, %v1163_v62 }
 0x3a6   : > { %1643 = vrot.lane.b32.xlu0 %v20564_v41, %s19766_s8  ;;  %1595 = vrot.lane.b32.xlu1 %v20564_v41, %s19767_s18  ;;  %v20573_v2 = vmul.f32 0.25, %v1172_v60 }
 0x3a7   : > { %v20673_v50 = vmul.f32 0.25, %v1164_v47 }
 0x3a9   : > { %v20575_v40 = vpop.f32.mrb[4].mxu0  ;;  %v20577_v3 = vpop.f32.mrb[4].mxu1 }
 0x3aa   : > { %1691 = vrot.lane.b32.xlu0 %v20564_v41, %s19768_s17  ;;  %1597 = vrot.lane.b32.xlu1 %v20573_v2, %s19767_s18  ;;  %v1176_v30 = vpop.f32.mrb[5].mxu0  ;;  %v20583_v4 = vpop.f32.mrb[5].mxu1 }
 0x3ab   : > { %v20586_v6 = vadd.f32 %v20555_v16, %v1176_v30  ;;  %v20588_v37 = vpop.f32.mrb[6].mxu0  ;;  %v20590_v7 = vpop.f32.mrb[6].mxu1 }
 0x3ac   : > { %v1179_v10 = vpop.f32.mrb[7].mxu0  ;;  %v20592_v11 = vpop.f32.mrb[7].mxu1  ;;  %v1188_v47 = vadd.f32 %v20588_v37, %v20555_v16 }
 0x3ad   : > { %v20595_v1 = vadd.f32 %v20555_v16, %v1179_v10 }
 0x3ae   : > { %1739 = vrot.lane.b32.xlu0 %v20564_v41, %s19769_s25  ;;  %1645 = vrot.lane.b32.xlu1 %v20573_v2, %s19766_s8 }
 0x3af   : > { %v20778_v37 = vmul.f32 0.25, %v20595_v1  ;;  %v19773_v1 = vmov 1983009808  }
 0x3b1   : > { %v18002_v12 = vpop.f32.mrb[8].mxu0  ;;  %v20601_v17 = vpop.f32.mrb[8].mxu1 }
 0x3b2   : > { %1787 = vrot.lane.b32.xlu0 %v20564_v41, %s19770_s10  ;;  %1693 = vrot.lane.b32.xlu1 %v20573_v2, %s19768_s17  ;;  %v20608_v18 = vadd.f32 %v18002_v12, %v20555_v16  ;;  %v1192_v8 = vpop.f32.mrb[9].mxu0  ;;  %v20610_v19 = vpop.f32.mrb[9].mxu1 }
 0x3b3   : > { %v20613_v20 = vadd.f32 %v20555_v16, %v1192_v8  ;;  %v18003_v25 = vpop.f32.mrb[10].mxu0  ;;  %v20615_v38 = vpop.f32.mrb[10].mxu1 }
 0x3b4   : > { %v20618_v26 = vadd.f32 %v18003_v25, %v20555_v16  ;;  %v1195_v27 = vpop.f32.mrb[11].mxu0  ;;  %v20620_v28 = vpop.f32.mrb[11].mxu1 }
 0x3b5   : > { %v20623_v15 = vadd.f32 %v20555_v16, %v1195_v27 }
 0x3b6   : > { %1835 = vrot.lane.b32.xlu0 %v20564_v41, %s19771_s6  ;;  %1741 = vrot.lane.b32.xlu1 %v20573_v2, %s19769_s25 }
 0x3b9   : > { %v18006_v9 = vpop.f32.mrb[12].mxu0  ;;  %v20630_v21 = vpop.f32.mrb[12].mxu1 }
 0x3ba   : > { %1883 = vrot.lane.b32.xlu0 %v20564_v41, %s19772_s3  ;;  %1789 = vrot.lane.b32.xlu1 %v20573_v2, %s19770_s10  ;;  %v20637_v45 = vadd.f32 %v18006_v9, %v20555_v16  ;;  %v1208_v32 = vpop.f32.mrb[13].mxu0  ;;  %v20639_v33 = vpop.f32.mrb[13].mxu1 }
 0x3bb   : > { %v20644_v34 = vadd.f32 %v20555_v16, %v1208_v32  ;;  %v18007_v35 = vpop.f32.mrb[14].mxu0  ;;  %v20646_v36 = vpop.f32.mrb[14].mxu1 }
 0x3bc   : > { %v20649_v39 = vadd.f32 %v18007_v35, %v20555_v16  ;;  %v1211_v46 = vpop.f32.mrb[15].mxu0  ;;  %v20651_v43 = vpop.f32.mrb[15].mxu1  ;;  %v1185_v35 = vadd.f32 %v20575_v40, %v20555_v16  ;;  %v20744_v40 = vmul.f32 0.25, %v1188_v47 }
 0x3bd   : > { %v20654_v44 = vadd.f32 %v20555_v16, %v1211_v46  ;;  %v20767_v16 = vmul.f32 0.25, %v20586_v6  ;;  %v20801_v6 = vmul.f32 0.25, %v20608_v18  ;;  %v17212_v18 = vld [vmem:[#allocation14] ss:$0 sm:$0xff] }
 0x3be   : > { %1837 = vrot.lane.b32.xlu1 %v20573_v2, %s19771_s6  ;;  %1591 = vrot.lane.b32.xlu0 %v20641_v14, %s19767_s18  ;;  %v20732_v46 = vmul.f32 0.25, %v1185_v35  ;;  %v20821_v47 = vadd.f32 %v20557_v56, %v17212_v18  ;;  %v20857_v0 = vadd.f32 %v20615_v38, %v17212_v18 }
 0x3c0   : > { %26669 = vst [vmem:[#allocation45_spill] sm:$0xff] %v20821_v47  ;;  %26679 = vst [vmem:[#allocation55_spill] sm:$0xff] %v20857_v0 }
 0x3c2   : > { %v20663_v29 = vpop.f32.mrb[16].mxu0  ;;  %v20665_v48 = vpop.f32.mrb[16].mxu1  ;;  %1885 = vrot.lane.b32.xlu1 %v20573_v2, %s19772_s3  ;;  %1639 = vrot.lane.b32.xlu0 %v20641_v14, %s19766_s8 }
 0x3c3   : > { %v20671_v49 = vpop.f32.mrb[17].mxu0  ;;  %v1528_v53 = vpop.f32.mrb[17].mxu1 }
 0x3c4   : > { %v20676_v22 = vadd.f32 %v20661_v23, %v1528_v53  ;;  %v20678_v5 = vpop.f32.mrb[18].mxu0  ;;  %v20680_v51 = vpop.f32.mrb[18].mxu1  ;;  %v1930_v53 = vunpack.c.l.s4 %v19773_v1  ;;  %v20824_v1 = vadd.f32 %v17212_v18, %v20560_v54 }
 0x3c5   : > { %v20682_v52 = vpop.f32.mrb[19].mxu0  ;;  %v20684_v24 = vpop.f32.mrb[19].mxu1 }
 0x3c6   : > { %1593 = vrot.lane.b32.xlu1 %v20673_v50, %s19767_s18  ;;  %1687 = vrot.lane.b32.xlu0 %v20641_v14, %s19768_s17  ;;  %26670 = vst [vmem:[#allocation46_spill] sm:$0xff] %v20824_v1 }
 0x3ca   : > { %v18062_v55 = vpop.f32.mrb[20].mxu0  ;;  %v18070_v42 = vpop.f32.mrb[20].mxu1  ;;  %1641 = vrot.lane.b32.xlu1 %v20673_v50, %s19766_s8  ;;  %1735 = vrot.lane.b32.xlu0 %v20641_v14, %s19769_s25 }
 0x3cb   : > { %v20695_v13 = vadd.f32 %v18062_v55, %v20661_v23  ;;  %v20698_v57 = vadd.f32 %v18070_v42, %v20661_v23  ;;  %v1512_v58 = vpop.f32.mrb[21].mxu0  ;;  %v1544_v60 = vpop.f32.mrb[21].mxu1  ;;  %v19774_v55 = vmov 1934713408  }
 0x3cc   : > { %v20701_v62 = vadd.f32 %v20661_v23, %v1512_v58  ;;  %v20704_v30 = vadd.f32 %v20661_v23, %v1544_v60  ;;  %v18063_v10 = vpop.f32.mrb[22].mxu0  ;;  %v18071_v12 = vpop.f32.mrb[22].mxu1  ;;  %v1994_v42 = vunpack.c.l.s4 %v19774_v55  ;;  %v1931_v58 = vunpack.c.0.s8 %v1930_v53 }
 0x3cd   : > { %26662 = vst [vmem:[#allocation38_spill] sm:$0xff] %v20698_v57  ;;  %v20707_v8 = vadd.f32 %v18063_v10, %v20661_v23  ;;  %v20710_v25 = vadd.f32 %v18071_v12, %v20661_v23  ;;  %v1515_v27 = vpop.f32.mrb[23].mxu0  ;;  %v1547_v31 = vpop.f32.mrb[23].mxu1  ;;  %v20812_v10 = vmul.f32 0.25, %v20618_v26  ;;  %v20827_v53 = vadd.f32 %v20562_v59, %v17212_v18 }
 0x3ce   : > { %26663 = vst [vmem:[#allocation39_spill] sm:$0xff] %v20701_v62  ;;  %26664 = vst [vmem:[#allocation40_spill] sm:$0xff] %v20704_v30  ;;  %v20713_v9 = vadd.f32 %v20661_v23, %v1515_v27  ;;  %v20716_v32 = vadd.f32 %v20661_v23, %v1547_v31  ;;  %1689 = vrot.lane.b32.xlu1 %v20673_v50, %s19768_s17  ;;  %1783 = vrot.lane.b32.xlu0 %v20641_v14, %s19770_s10  ;;  %v1995_v60 = vunpack.c.0.s8 %v1994_v42 }
 0x3cf   : > { %26665 = vst [vmem:[#allocation41_spill] sm:$0xff] %v20707_v8  ;;  %26666 = vst [vmem:[#allocation42_spill] sm:$0xff] %v20710_v25  ;;  %v20815_v31 = vsub.s32 %v1931_v58, %v20436_v61  ;;  %v20834_v26 = vadd.f32 %v17212_v18, %v20567_v63  ;;  %v20842_v55 = vadd.f32 %v17212_v18, %v20583_v4 }
 0x3d0   : > { %26667 = vst [vmem:[#allocation43_spill] sm:$0xff] %v20713_v9  ;;  %26668 = vst [vmem:[#allocation44_spill] sm:$0xff] %v20716_v32  ;;  %v20818_v35 = vsub.s32 %v1995_v60, %v20436_v61  ;;  %v20837_v61 = vadd.f32 %v20577_v3, %v17212_v18  ;;  %v20845_v59 = vadd.f32 %v20590_v7, %v17212_v18  ;;  %v20863_v7 = vmul.f32 0.25, %v20623_v15 }
 0x3d1   : > { %26671 = vst [vmem:[#allocation47_spill] sm:$0xff] %v20827_v53  ;;  %26672 = vst [vmem:[#allocation48_spill] sm:$0xff] %v20834_v26  ;;  %v20848_v42 = vadd.f32 %v17212_v18, %v20592_v11  ;;  %v20851_v58 = vadd.f32 %v20601_v17, %v17212_v18  ;;  %v20854_v3 = vadd.f32 %v17212_v18, %v20610_v19 }
 0x3d2   : > { %1737 = vrot.lane.b32.xlu1 %v20673_v50, %s19769_s25  ;;  %1831 = vrot.lane.b32.xlu0 %v20641_v14, %s19771_s6  ;;  %26673 = vst [vmem:[#allocation49_spill] sm:$0xff] %v20837_v61  ;;  %26674 = vst [vmem:[#allocation50_spill] sm:$0xff] %v20842_v55  ;;  %v20866_v11 = vadd.f32 %v17212_v18, %v20620_v28  ;;  %v20869_v17 = vadd.f32 %v20630_v21, %v17212_v18  ;;  %v20880_v28 = vmul.f32 0.25, %v20637_v45 }
 0x3d3   : > { %26675 = vst [vmem:[#allocation51_spill] sm:$0xff] %v20845_v59  ;;  %26676 = vst [vmem:[#allocation52_spill] sm:$0xff] %v20848_v42  ;;  %v20883_v21 = vmul.f32 0.25, %v20644_v34  ;;  %v20897_v45 = vadd.f32 %v17212_v18, %v20651_v43  ;;  %v20905_v34 = vadd.f32 %v20665_v48, %v20661_v23  ;;  %v20921_v48 = vadd.f32 %v20678_v5, %v20661_v23 }
 0x3d4   : > { %26677 = vst [vmem:[#allocation53_spill] sm:$0xff] %v20851_v58  ;;  %26678 = vst [vmem:[#allocation54_spill] sm:$0xff] %v20854_v3 }
 0x3d5   : > { %26680 = vst [vmem:[#allocation56_spill] sm:$0xff] %v20866_v11  ;;  %26681 = vst [vmem:[#allocation57_spill] sm:$0xff] %v20869_v17 }
 0x3d6   : > { %1785 = vrot.lane.b32.xlu1 %v20673_v50, %s19770_s10  ;;  %1879 = vrot.lane.b32.xlu0 %v20641_v14, %s19772_s3  ;;  %26682 = vst [vmem:[#allocation58_spill] sm:$0xff] %v20880_v28  ;;  %26683 = vst [vmem:[#allocation59_spill] sm:$0xff] %v20883_v21 }
 0x3d7   : > { %26687 = vst [vmem:[#allocation63_spill] sm:$0xff] %v20897_v45  ;;  %26689 = vst [vmem:[#allocation65_spill] sm:$0xff] %v20905_v34 }
 0x3d8   : > { %26690 = vst [vmem:[#allocation66_spill] sm:$0xff] %v20921_v48 }
 0x3da   : > { %1833 = vrot.lane.b32.xlu1 %v20673_v50, %s19771_s6  ;;  %1603 = vrot.lane.b32.xlu0 %v20732_v46, %s19767_s18 }
 0x3de   : > { %1881 = vrot.lane.b32.xlu1 %v20673_v50, %s19772_s3  ;;  %1651 = vrot.lane.b32.xlu0 %v20732_v46, %s19766_s8 }
 0x3e2   : > { %1699 = vrot.lane.b32.xlu0 %v20732_v46, %s19768_s17  ;;  %1605 = vrot.lane.b32.xlu1 %v20744_v40, %s19767_s18 }
 0x3e6   : > { %1747 = vrot.lane.b32.xlu0 %v20732_v46, %s19769_s25  ;;  %1653 = vrot.lane.b32.xlu1 %v20744_v40, %s19766_s8 }
 0x3ea   : > { %1795 = vrot.lane.b32.xlu0 %v20732_v46, %s19770_s10  ;;  %1701 = vrot.lane.b32.xlu1 %v20744_v40, %s19768_s17 }
 0x3ee   : > { %1843 = vrot.lane.b32.xlu0 %v20732_v46, %s19771_s6  ;;  %1749 = vrot.lane.b32.xlu1 %v20744_v40, %s19769_s25 }
 0x3f2   : > { %1891 = vrot.lane.b32.xlu0 %v20732_v46, %s19772_s3  ;;  %1797 = vrot.lane.b32.xlu1 %v20744_v40, %s19770_s10 }
 0x3f6   : > { %1845 = vrot.lane.b32.xlu1 %v20744_v40, %s19771_s6  ;;  %1599 = vrot.lane.b32.xlu0 %v20767_v16, %s19767_s18 }
 0x3fa   : > { %1893 = vrot.lane.b32.xlu1 %v20744_v40, %s19772_s3  ;;  %1647 = vrot.lane.b32.xlu0 %v20767_v16, %s19766_s8 }
 0x3fe   : > { %1601 = vrot.lane.b32.xlu1 %v20778_v37, %s19767_s18  ;;  %1695 = vrot.lane.b32.xlu0 %v20767_v16, %s19768_s17 }
 0x402   : > { %1649 = vrot.lane.b32.xlu1 %v20778_v37, %s19766_s8  ;;  %1743 = vrot.lane.b32.xlu0 %v20767_v16, %s19769_s25 }
 0x406   : > { %1697 = vrot.lane.b32.xlu1 %v20778_v37, %s19768_s17  ;;  %1791 = vrot.lane.b32.xlu0 %v20767_v16, %s19770_s10 }
 0x40a   : > { %1745 = vrot.lane.b32.xlu1 %v20778_v37, %s19769_s25  ;;  %1839 = vrot.lane.b32.xlu0 %v20767_v16, %s19771_s6 }
 0x40e   : > { %1793 = vrot.lane.b32.xlu1 %v20778_v37, %s19770_s10  ;;  %1887 = vrot.lane.b32.xlu0 %v20767_v16, %s19772_s3 }
 0x412   : > { %1841 = vrot.lane.b32.xlu1 %v20778_v37, %s19771_s6  ;;  %1611 = vrot.lane.b32.xlu0 %v20801_v6, %s19767_s18 }
 0x416   : > { %1889 = vrot.lane.b32.xlu1 %v20778_v37, %s19772_s3  ;;  %1659 = vrot.lane.b32.xlu0 %v20801_v6, %s19766_s8 }
 0x418   : > { %v1596_v12 = vpop.permute.xlu1 %1595  ;;  %v1644_v27 = vpop.permute.xlu0 %1643 }
 0x419   : > { %v2199_v56 = vcombine.low %v20564_v41, %v1644_v27  ;;  %v2200_v54 = vcombine.high %v20564_v41, %v1644_v27  ;;  %v20860_v27 = vmul.f32 0.25, %v20613_v20 }
 0x41a   : > { %1707 = vrot.lane.b32.xlu0 %v20801_v6, %s19768_s17  ;;  %1613 = vrot.lane.b32.xlu1 %v20812_v10, %s19767_s18 }
 0x41b   : > { %v2207_v19 = vrot.slane %v2199_v56, %v20815_v31  ;;  %v2214_v20 = vrot.slane %v2200_v54, %v20815_v31 }
 0x41c   : > { %v1598_v63 = vpop.permute.xlu1 %1597  ;;  %v1692_v60 = vpop.permute.xlu0 %1691 }
 0x41d   : > { %v2215_v41 = vcombine.low %v1596_v12, %v1692_v60  ;;  %v2216_v4 = vcombine.high %v1596_v12, %v1692_v60  ;;  %v20886_v12 = vadd.f32 %v17212_v18, %v20639_v33  ;;  %v20889_v60 = vadd.f32 %v20646_v36, %v17212_v18 }
 0x41e   : > { %1755 = vrot.lane.b32.xlu0 %v20801_v6, %s19769_s25  ;;  %1661 = vrot.lane.b32.xlu1 %v20812_v10, %s19766_s8  ;;  %v20901_v33 = vadd.f32 %v20663_v29, %v20661_v23  ;;  %v20917_v29 = vadd.f32 %v20661_v23, %v20671_v49  ;;  %v20932_v49 = vadd.f32 %v20680_v51, %v20661_v23 }
 0x41f   : > { %v2223_v38 = vrot.slane %v2215_v41, %v20815_v31  ;;  %v2230_v15 = vrot.slane %v2216_v4, %v20815_v31  ;;  %26684 = vst [vmem:[#allocation60_spill] sm:$0xff] %v20886_v12  ;;  %26685 = vst [vmem:[#allocation61_spill] sm:$0xff] %v20889_v60  ;;  %v20894_v4 = vmul.f32 0.25, %v20649_v39 }
 0x420   : > { %v1646_v17 = vpop.permute.xlu1 %1645  ;;  %v20891_v56 = vpop.permute.xlu0 %1739  ;;  %26688 = vst [vmem:[#allocation64_spill] sm:$0xff] %v20901_v33  ;;  %26692 = vst [vmem:[#allocation68_spill] sm:$0xff] %v20932_v49 }
 0x421   : > { %v2263_v54 = vcombine.low %v2207_v19, %v2223_v38  ;;  %v2264_v0 = vcombine.high %v2207_v19, %v2223_v38  ;;  %v2279_v41 = vcombine.low %v2214_v20, %v2230_v15  ;;  %v2280_v58 = vcombine.high %v2214_v20, %v2230_v15  ;;  %26686 = vst [vmem:[#allocation62_spill] sm:$0xff] %v20894_v4 }
 0x422   : > { %1803 = vrot.lane.b32.xlu0 %v20801_v6, %s19770_s10  ;;  %1709 = vrot.lane.b32.xlu1 %v20812_v10, %s19768_s17  ;;  %v2335_v19 = vcombine.low %v20573_v2, %v1646_v17  ;;  %v2336_v20 = vcombine.high %v20573_v2, %v1646_v17 }
 0x423   : > { %v2271_v36 = vrot.slane %v2263_v54, %v20818_v35  ;;  %v2278_v39 = vrot.slane %v2264_v0, %v20818_v35  ;;  %v2287_v43 = vrot.slane %v2279_v41, %v20818_v35  ;;  %v2294_v18 = vrot.slane %v2280_v58, %v20818_v35 }
 0x424   : > { %v1694_v38 = vpop.permute.xlu1 %1693  ;;  %v20925_v15 = vpop.permute.xlu0 %1787  ;;  %v20928_v58 = vmul.f32 0.25, %v20654_v44  ;;  %v2350_v23 = vrot.slane %v2336_v20, %v20815_v31 }
 0x425   : > { %v17246_v0 = vcombine.low %v2271_v36, %v2278_v39  ;;  %v17248_v54 = vcombine.high %v2271_v36, %v2278_v39  ;;  %v17250_v41 = vcombine.low %v2287_v43, %v2294_v18  ;;  %v17252_v60 = vcombine.high %v2287_v43, %v2294_v18 }
 0x426   : > { %26691 = vst [vmem:[#allocation67_spill] sm:$0xff] %v20928_v58  ;;  %v2351_v5 = vcombine.low %v1598_v63, %v1694_v38  ;;  %v2352_v45 = vcombine.high %v1598_v63, %v1694_v38  ;;  %1851 = vrot.lane.b32.xlu0 %v20801_v6, %s19771_s6  ;;  %1757 = vrot.lane.b32.xlu1 %v20812_v10, %s19769_s25 }
 0x427   : > { %v4383_v2 = vrot.slane %v17246_v0, %v20815_v31  ;;  %v4399_v17 = vrot.slane %v17248_v54, %v20815_v31  ;;  %v4415_v36 = vrot.slane %v17250_v41, %v20815_v31  ;;  %v4431_v44 = vrot.slane %v17252_v60, %v20815_v31 }
 0x428   : > { %v2343_v39 = vrot.slane %v2335_v19, %v20815_v31  ;;  %v2359_v51 = vrot.slane %v2351_v5, %v20815_v31  ;;  %v2366_v63 = vrot.slane %v2352_v45, %v20815_v31  ;;  %v20946_v43 = vpop.permute.xlu1 %1741  ;;  %v1836_v18 = vpop.permute.xlu0 %1835 }
 0x429   : > { %v4439_v38 = vcombine.low %v4383_v2, %v4399_v17  ;;  %v4440_v12 = vcombine.high %v4383_v2, %v4399_v17  ;;  %v4471_v0 = vcombine.low %v4415_v36, %v4431_v44  ;;  %v4472_v11 = vcombine.high %v4415_v36, %v4431_v44 }
 0x42a   : > { %v2399_v54 = vcombine.low %v2343_v39, %v2359_v51  ;;  %v2400_v3 = vcombine.high %v2343_v39, %v2359_v51  ;;  %v2415_v41 = vcombine.low %v2350_v23, %v2366_v63  ;;  %v2416_v59 = vcombine.high %v2350_v23, %v2366_v63  ;;  %1899 = vrot.lane.b32.xlu0 %v20801_v6, %s19772_s3 }
 0x42b   : > { %v20951_v60 = vrot.slane %v4439_v38, %v20818_v35  ;;  %v20954_v19 = vrot.slane %v4440_v12, %v20818_v35  ;;  %v20957_v45 = vrot.slane %v4471_v0, %v20818_v35  ;;  %v20960_v20 = vrot.slane %v4472_v11, %v20818_v35  ;;  %1805 = vrot.lane.b32.xlu1 %v20812_v10, %s19770_s10 }
 0x42c   : > { %v2407_v5 = vrot.slane %v2399_v54, %v20818_v35  ;;  %v2414_v2 = vrot.slane %v2400_v3, %v20818_v35  ;;  %v2423_v17 = vrot.slane %v2415_v41, %v20818_v35  ;;  %v2430_v36 = vrot.slane %v2416_v59, %v20818_v35  ;;  %v20968_v44 = vpop.permute.xlu1 %1789  ;;  %v1884_v12 = vpop.permute.xlu0 %1883 }
 0x42d   : > { %v4503_v39 = vcombine.low %v20951_v60, %v20957_v45  ;;  %v4504_v11 = vcombine.high %v20951_v60, %v20957_v45  ;;  %v4505_v23 = vcombine.low %v20954_v19, %v20960_v20  ;;  %v4506_v51 = vcombine.high %v20954_v19, %v20960_v20 }
 0x42e   : > { %v17254_v3 = vcombine.low %v2407_v5, %v2414_v2  ;;  %v17256_v63 = vcombine.high %v2407_v5, %v2414_v2  ;;  %v17258_v38 = vcombine.low %v2423_v17, %v2430_v36  ;;  %v17260_v0 = vcombine.high %v2423_v17, %v2430_v36  ;;  %1607 = vrot.lane.b32.xlu0 %v20860_v27, %s19767_s18 }
 0x42f   : > { %v2231_v59 = vcombine.low %v20891_v56, %v1836_v18  ;;  %v2232_v54 = vcombine.high %v20891_v56, %v1836_v18  ;;  %v2247_v41 = vcombine.low %v20925_v15, %v1884_v12  ;;  %v2248_v60 = vcombine.high %v20925_v15, %v1884_v12  ;;  %1853 = vrot.lane.b32.xlu1 %v20812_v10, %s19771_s6 }
 0x430   : > { %v4519_v19 = vrot.slane %v17254_v3, %v20815_v31  ;;  %v4535_v45 = vrot.slane %v17256_v63, %v20815_v31  ;;  %v4551_v20 = vrot.slane %v17258_v38, %v20815_v31  ;;  %v4567_v5 = vrot.slane %v17260_v0, %v20815_v31  ;;  %v1838_v2 = vpop.permute.xlu1 %1837  ;;  %v20990_v17 = vpop.permute.xlu0 %1591 }
 0x431   : > { %v2239_v56 = vrot.slane %v2231_v59, %v20815_v31  ;;  %v2246_v18 = vrot.slane %v2232_v54, %v20815_v31  ;;  %v2255_v15 = vrot.slane %v2247_v41, %v20815_v31  ;;  %v2262_v36 = vrot.slane %v2248_v60, %v20815_v31 }
 0x432   : > { %v4575_v12 = vcombine.low %v4519_v19, %v4535_v45  ;;  %v4576_v61 = vcombine.high %v4519_v19, %v4535_v45  ;;  %v4607_v3 = vcombine.low %v4551_v20, %v4567_v5  ;;  %v4608_v42 = vcombine.high %v4551_v20, %v4567_v5  ;;  %1655 = vrot.lane.b32.xlu0 %v20860_v27, %s19766_s8 }
 0x433   : > { %v2295_v63 = vcombine.low %v2239_v56, %v2255_v15  ;;  %v2296_v38 = vcombine.high %v2239_v56, %v2255_v15  ;;  %v2311_v0 = vcombine.low %v2246_v18, %v2262_v36  ;;  %v2312_v55 = vcombine.high %v2246_v18, %v2262_v36  ;;  %1901 = vrot.lane.b32.xlu1 %v20812_v10, %s19772_s3 }
 0x434   : > { %v4583_v59 = vrot.slane %v4575_v12, %v20818_v35  ;;  %v4590_v54 = vrot.slane %v4576_v61, %v20818_v35  ;;  %v4615_v41 = vrot.slane %v4607_v3, %v20818_v35  ;;  %v4622_v60 = vrot.slane %v4608_v42, %v20818_v35  ;;  %v1886_v19 = vpop.permute.xlu1 %1885  ;;  %v21004_v45 = vpop.permute.xlu0 %1639 }
 0x435   : > { %v2303_v20 = vrot.slane %v2295_v63, %v20818_v35  ;;  %v2310_v5 = vrot.slane %v2296_v38, %v20818_v35  ;;  %v2319_v56 = vrot.slane %v2311_v0, %v20818_v35  ;;  %v2326_v18 = vrot.slane %v2312_v55, %v20818_v35 }
 0x436   : > { %v4639_v15 = vcombine.low %v4583_v59, %v4615_v41  ;;  %v4640_v36 = vcombine.high %v4583_v59, %v4615_v41  ;;  %v4641_v12 = vcombine.low %v4590_v54, %v4622_v60  ;;  %v4642_v30 = vcombine.high %v4590_v54, %v4622_v60  ;;  %1703 = vrot.lane.b32.xlu0 %v20860_v27, %s19768_s17 }
 0x437   : > { %v17247_v61 = vcombine.low %v2303_v20, %v2310_v5  ;;  %v17249_v42 = vcombine.high %v2303_v20, %v2310_v5  ;;  %v17251_v3 = vcombine.low %v2319_v56, %v2326_v18  ;;  %v17253_v53 = vcombine.high %v2319_v56, %v2326_v18  ;;  %1609 = vrot.lane.b32.xlu1 %v20863_v7, %s19767_s18 }
 0x438   : > { %v6280_v63 = vpack.c.bf16 %v4639_v15, %v4503_v39  ;;  %v6288_v38 = vpack.c.bf16 %v4640_v36, %v4504_v11  ;;  %v6296_v62 = vpack.c.bf16 %v4641_v12, %v4505_v23  ;;  %v6304_v0 = vpack.c.bf16 %v4642_v30, %v4506_v51  ;;  %v21014_v47 = vpop.permute.xlu1 %1593  ;;  %v1688_v55 = vpop.permute.xlu0 %1687 }
 0x439   : > { %v4390_v59 = vrot.slane %v17247_v61, %v20815_v31  ;;  %v4406_v54 = vrot.slane %v17249_v42, %v20815_v31  ;;  %v4422_v41 = vrot.slane %v17251_v3, %v20815_v31  ;;  %v4438_v60 = vrot.slane %v17253_v53, %v20815_v31 }
 0x43a   : > { %6345 = vst.msk [vmem:[#allocation2 + $0x8] sm:$0xff] %vm6343_vm0, %v6280_v63  ;;  %6353 = vst.msk [vmem:[#allocation2 + $0x48] sm:$0xff] %vm6343_vm0, %v6288_v38  ;;  %v2367_v30 = vcombine.low %v20946_v43, %v1838_v2  ;;  %v2368_v39 = vcombine.high %v20946_v43, %v1838_v2  ;;  %v2383_v11 = vcombine.low %v20968_v44, %v1886_v19  ;;  %1751 = vrot.lane.b32.xlu0 %v20860_v27, %s19769_s25 }
 0x43b   : > { %6361 = vst.msk [vmem:[#allocation2 + $0x88] sm:$0xff] %vm6343_vm0, %v6296_v62  ;;  %6369 = vst.msk [vmem:[#allocation2 + $0xc8] sm:$0xff] %vm6343_vm0, %v6304_v0  ;;  %v2384_v23 = vcombine.high %v20968_v44, %v1886_v19  ;;  %v4455_v53 = vcombine.low %v4390_v59, %v4406_v54  ;;  %v4456_v51 = vcombine.high %v4390_v59, %v4406_v54  ;;  %1657 = vrot.lane.b32.xlu1 %v20863_v7, %s19766_s8 }
 0x43c   : > { %v4487_v20 = vcombine.low %v4422_v41, %v4438_v60  ;;  %v4488_v5 = vcombine.high %v4422_v41, %v4438_v60  ;;  %v2375_v62 = vrot.slane %v2367_v30, %v20815_v31  ;;  %v2382_v56 = vrot.slane %v2368_v39, %v20815_v31  ;;  %v21036_v18 = vpop.permute.xlu1 %1641  ;;  %v21038_v44 = vpop.permute.xlu0 %1735 }
 0x43d   : > { %v2391_v43 = vrot.slane %v2383_v11, %v20815_v31  ;;  %v2398_v2 = vrot.slane %v2384_v23, %v20815_v31  ;;  %v21041_v19 = vrot.slane %v4455_v53, %v20818_v35  ;;  %v21044_v15 = vrot.slane %v4456_v51, %v20818_v35 }
 0x43e   : > { %v21047_v36 = vrot.slane %v4487_v20, %v20818_v35  ;;  %v21050_v12 = vrot.slane %v4488_v5, %v20818_v35  ;;  %1799 = vrot.lane.b32.xlu0 %v20860_v27, %s19770_s10  ;;  %v1927_v53 = vcombine.low %v20641_v14, %v21004_v45  ;;  %v1928_v51 = vcombine.high %v20641_v14, %v21004_v45 }
 0x43f   : > { %v2431_v61 = vcombine.low %v2375_v62, %v2391_v43  ;;  %v2432_v42 = vcombine.high %v2375_v62, %v2391_v43  ;;  %v2447_v3 = vcombine.low %v2382_v56, %v2398_v2  ;;  %v2448_v63 = vcombine.high %v2382_v56, %v2398_v2  ;;  %1705 = vrot.lane.b32.xlu1 %v20863_v7, %s19768_s17 }
 0x440   : > { %v21068_v11 = vpop.permute.xlu1 %1689  ;;  %v21070_v23 = vpop.permute.xlu0 %1783  ;;  %v1943_v20 = vcombine.low %v20990_v17, %v1688_v55  ;;  %v1944_v5 = vcombine.high %v20990_v17, %v1688_v55 }
 0x441   : > { %v2439_v41 = vrot.slane %v2431_v61, %v20818_v35  ;;  %v2446_v60 = vrot.slane %v2432_v42, %v20818_v35  ;;  %v2455_v30 = vrot.slane %v2447_v3, %v20818_v35  ;;  %v2462_v39 = vrot.slane %v2448_v63, %v20818_v35 }
 0x442   : > { %1847 = vrot.lane.b32.xlu0 %v20860_v27, %s19771_s6  ;;  %v1935_v61 = vrot.slane %v1927_v53, %v20815_v31  ;;  %v1942_v42 = vrot.slane %v1928_v51, %v20815_v31  ;;  %v1951_v3 = vrot.slane %v1943_v20, %v20815_v31  ;;  %v1958_v63 = vrot.slane %v1944_v5, %v20815_v31 }
 0x443   : > { %v17255_v62 = vcombine.low %v2439_v41, %v2446_v60  ;;  %v17257_v56 = vcombine.high %v2439_v41, %v2446_v60  ;;  %v17259_v43 = vcombine.low %v2455_v30, %v2462_v39  ;;  %v17261_v2 = vcombine.high %v2455_v30, %v2462_v39  ;;  %1753 = vrot.lane.b32.xlu1 %v20863_v7, %s19769_s25 }
 0x444   : > { %v21090_v41 = vpop.permute.xlu1 %1737  ;;  %v21092_v60 = vpop.permute.xlu0 %1831  ;;  %v1991_v30 = vcombine.low %v1935_v61, %v1951_v3  ;;  %v1992_v39 = vcombine.high %v1935_v61, %v1951_v3  ;;  %v2007_v53 = vcombine.low %v1942_v42, %v1958_v63  ;;  %v2008_v51 = vcombine.high %v1942_v42, %v1958_v63 }
 0x445   : > { %v4526_v14 = vrot.slane %v17255_v62, %v20815_v31  ;;  %v4542_v17 = vrot.slane %v17257_v56, %v20815_v31  ;;  %v4558_v45 = vrot.slane %v17259_v43, %v20815_v31  ;;  %v4574_v55 = vrot.slane %v17261_v2, %v20815_v31 }
 0x446   : > { %1895 = vrot.lane.b32.xlu0 %v20860_v27, %s19772_s3  ;;  %v1999_v62 = vrot.slane %v1991_v30, %v20818_v35  ;;  %v2006_v56 = vrot.slane %v1992_v39, %v20818_v35  ;;  %v2015_v43 = vrot.slane %v2007_v53, %v20818_v35  ;;  %v2022_v2 = vrot.slane %v2008_v51, %v20818_v35 }
 0x447   : > { %v4591_v20 = vcombine.low %v4526_v14, %v4542_v17  ;;  %v4592_v5 = vcombine.high %v4526_v14, %v4542_v17  ;;  %v4623_v54 = vcombine.low %v4558_v45, %v4574_v55  ;;  %v4624_v59 = vcombine.high %v4558_v45, %v4574_v55  ;;  %1801 = vrot.lane.b32.xlu1 %v20863_v7, %s19770_s10 }
 0x448   : > { %v21106_v14 = vpop.permute.xlu1 %1785  ;;  %v21108_v17 = vpop.permute.xlu0 %1879  ;;  %v17230_v45 = vcombine.low %v1999_v62, %v2006_v56  ;;  %v17232_v55 = vcombine.high %v1999_v62, %v2006_v56  ;;  %v17234_v30 = vcombine.low %v2015_v43, %v2022_v2  ;;  %v17236_v39 = vcombine.high %v2015_v43, %v2022_v2 }
 0x449   : > { %v4599_v61 = vrot.slane %v4591_v20, %v20818_v35  ;;  %v4606_v42 = vrot.slane %v4592_v5, %v20818_v35  ;;  %v4631_v3 = vrot.slane %v4623_v54, %v20818_v35  ;;  %v4638_v63 = vrot.slane %v4624_v59, %v20818_v35 }
 0x44a   : > { %1619 = vrot.lane.b32.xlu0 %v20880_v28, %s19767_s18  ;;  %v4111_v20 = vrot.slane %v17230_v45, %v20815_v31  ;;  %v4127_v54 = vrot.slane %v17232_v55, %v20815_v31  ;;  %v4143_v59 = vrot.slane %v17234_v30, %v20815_v31  ;;  %v4159_v5 = vrot.slane %v17236_v39, %v20815_v31 }
 0x44b   : > { %v4643_v53 = vcombine.low %v4599_v61, %v4631_v3  ;;  %v4644_v51 = vcombine.high %v4599_v61, %v4631_v3  ;;  %v4645_v0 = vcombine.low %v4606_v42, %v4638_v63  ;;  %v4646_v38 = vcombine.high %v4606_v42, %v4638_v63  ;;  %1849 = vrot.lane.b32.xlu1 %v20863_v7, %s19771_s6 }
 0x44c   : > { %v26693_v62 = vcombine.low %v21041_v19, %v21047_v36  ;;  %v26694_v43 = vcombine.high %v21041_v19, %v21047_v36  ;;  %v26695_v61 = vcombine.low %v21044_v15, %v21050_v12  ;;  %v26696_v3 = vcombine.high %v21044_v15, %v21050_v12  ;;  %v21130_v45 = vpop.permute.xlu1 %1833  ;;  %v21132_v55 = vpop.permute.xlu0 %1603 }
 0x44d   : > { %v4167_v30 = vcombine.low %v4111_v20, %v4127_v54  ;;  %v4168_v39 = vcombine.high %v4111_v20, %v4127_v54  ;;  %v4199_v26 = vcombine.low %v4143_v59, %v4159_v5  ;;  %v2063_v19 = vcombine.low %v20673_v50, %v21036_v18 }
 0x44e   : > { %v6312_v56 = vpack.c.bf16 %v4643_v53, %v26693_v62  ;;  %v6320_v2 = vpack.c.bf16 %v4644_v51, %v26694_v43  ;;  %v6328_v42 = vpack.c.bf16 %v4645_v0, %v26695_v61  ;;  %v6336_v63 = vpack.c.bf16 %v4646_v38, %v26696_v3  ;;  %1667 = vrot.lane.b32.xlu0 %v20880_v28, %s19766_s8 }
 0x44f   : > { %v4200_v53 = vcombine.high %v4143_v59, %v4159_v5  ;;  %v2064_v15 = vcombine.high %v20673_v50, %v21036_v18  ;;  %v2079_v36 = vcombine.low %v21014_v47, %v21068_v11  ;;  %v2080_v12 = vcombine.high %v21014_v47, %v21068_v11  ;;  %1897 = vrot.lane.b32.xlu1 %v20863_v7, %s19772_s3 }
 0x450   : > { %6377 = vst.msk [vmem:[#allocation2 + $0x108] sm:$0xff] %vm6343_vm0, %v6312_v56  ;;  %6385 = vst.msk [vmem:[#allocation2 + $0x148] sm:$0xff] %vm6343_vm0, %v6320_v2  ;;  %v21149_v38 = vrot.slane %v4167_v30, %v20818_v35  ;;  %v21152_v0 = vrot.slane %v4168_v39, %v20818_v35  ;;  %v21155_v51 = vrot.slane %v4199_v26, %v20818_v35  ;;  %v21166_v54 = vpop.permute.xlu1 %1881  ;;  %v21168_v59 = vpop.permute.xlu0 %1651 }
 0x451   : > { %6393 = vst.msk [vmem:[#allocation2 + $0x188] sm:$0xff] %vm6343_vm0, %v6328_v42  ;;  %6401 = vst.msk [vmem:[#allocation2 + $0x1c8] sm:$0xff] %vm6343_vm0, %v6336_v63  ;;  %v21158_v50 = vrot.slane %v4200_v53, %v20818_v35  ;;  %v2071_v47 = vrot.slane %v2063_v19, %v20815_v31  ;;  %v2078_v18 = vrot.slane %v2064_v15, %v20815_v31 }
 0x452   : > { %v2087_v11 = vrot.slane %v2079_v36, %v20815_v31  ;;  %v2094_v20 = vrot.slane %v2080_v12, %v20815_v31  ;;  %1715 = vrot.lane.b32.xlu0 %v20880_v28, %s19768_s17  ;;  %v1959_v3 = vcombine.low %v21038_v44, %v21092_v60  ;;  %v1960_v63 = vcombine.high %v21038_v44, %v21092_v60 }
 0x453   : > { %v1975_v30 = vcombine.low %v21070_v23, %v21108_v17  ;;  %v1976_v39 = vcombine.high %v21070_v23, %v21108_v17  ;;  %1621 = vrot.lane.b32.xlu1 %v20894_v4, %s19767_s18 }
 0x454   : > { %v2127_v43 = vcombine.low %v2071_v47, %v2087_v11  ;;  %v2128_v2 = vcombine.high %v2071_v47, %v2087_v11  ;;  %v2143_v61 = vcombine.low %v2078_v18, %v2094_v20  ;;  %v2144_v42 = vcombine.high %v2078_v18, %v2094_v20  ;;  %v21194_v12 = vpop.permute.xlu1 %1605  ;;  %v21196_v44 = vpop.permute.xlu0 %1699 }
 0x455   : > { %v1967_v60 = vrot.slane %v1959_v3, %v20815_v31  ;;  %v1974_v47 = vrot.slane %v1960_v63, %v20815_v31  ;;  %v1983_v23 = vrot.slane %v1975_v30, %v20815_v31  ;;  %v1990_v17 = vrot.slane %v1976_v39, %v20815_v31 }
 0x456   : > { %v2135_v53 = vrot.slane %v2127_v43, %v20818_v35  ;;  %v2142_v19 = vrot.slane %v2128_v2, %v20818_v35  ;;  %v2151_v15 = vrot.slane %v2143_v61, %v20818_v35  ;;  %v2158_v36 = vrot.slane %v2144_v42, %v20818_v35  ;;  %1763 = vrot.lane.b32.xlu0 %v20880_v28, %s19769_s25 }
 0x457   : > { %v2023_v2 = vcombine.low %v1967_v60, %v1983_v23  ;;  %v2024_v61 = vcombine.high %v1967_v60, %v1983_v23  ;;  %v2039_v42 = vcombine.low %v1974_v47, %v1990_v17  ;;  %v2040_v56 = vcombine.high %v1974_v47, %v1990_v17  ;;  %1669 = vrot.lane.b32.xlu1 %v20894_v4, %s19766_s8 }
 0x458   : > { %v17238_v18 = vcombine.low %v2135_v53, %v2142_v19  ;;  %v17240_v11 = vcombine.high %v2135_v53, %v2142_v19  ;;  %v17242_v20 = vcombine.low %v2151_v15, %v2158_v36  ;;  %v17244_v43 = vcombine.high %v2151_v15, %v2158_v36  ;;  %v21210_v53 = vpop.permute.xlu1 %1653  ;;  %v21212_v19 = vpop.permute.xlu0 %1747 }
 0x459   : > { %v2031_v15 = vrot.slane %v2023_v2, %v20818_v35  ;;  %v2038_v36 = vrot.slane %v2024_v61, %v20818_v35  ;;  %v2047_v60 = vrot.slane %v2039_v42, %v20818_v35  ;;  %v2054_v47 = vrot.slane %v2040_v56, %v20818_v35 }
 0x45a   : > { %v4247_v3 = vrot.slane %v17238_v18, %v20815_v31  ;;  %v4263_v63 = vrot.slane %v17240_v11, %v20815_v31  ;;  %v4279_v30 = vrot.slane %v17242_v20, %v20815_v31  ;;  %v4295_v39 = vrot.slane %v17244_v43, %v20815_v31  ;;  %1811 = vrot.lane.b32.xlu0 %v20880_v28, %s19770_s10 }
 0x45b   : > { %v17231_v20 = vcombine.low %v2031_v15, %v2038_v36  ;;  %v17233_v43 = vcombine.high %v2031_v15, %v2038_v36  ;;  %v17235_v62 = vcombine.low %v2047_v60, %v2054_v47  ;;  %v17237_v5 = vcombine.high %v2047_v60, %v2054_v47  ;;  %1717 = vrot.lane.b32.xlu1 %v20894_v4, %s19768_s17 }
 0x45c   : > { %v4303_v23 = vcombine.low %v4247_v3, %v4263_v63  ;;  %v4304_v17 = vcombine.high %v4247_v3, %v4263_v63  ;;  %v4335_v18 = vcombine.low %v4279_v30, %v4295_v39  ;;  %v4336_v11 = vcombine.high %v4279_v30, %v4295_v39  ;;  %v21226_v3 = vpop.permute.xlu1 %1701  ;;  %v21228_v63 = vpop.permute.xlu0 %1795 }
 0x45d   : > { %v4118_v30 = vrot.slane %v17231_v20, %v20815_v31  ;;  %v4134_v39 = vrot.slane %v17233_v43, %v20815_v31  ;;  %v4150_v15 = vrot.slane %v17235_v62, %v20815_v31  ;;  %v4166_v36 = vrot.slane %v17237_v5, %v20815_v31 }
 0x45e   : > { %v4311_v2 = vrot.slane %v4303_v23, %v20818_v35  ;;  %v4318_v61 = vrot.slane %v4304_v17, %v20818_v35  ;;  %v4343_v56 = vrot.slane %v4335_v18, %v20818_v35  ;;  %v4350_v42 = vrot.slane %v4336_v11, %v20818_v35  ;;  %1859 = vrot.lane.b32.xlu0 %v20880_v28, %s19771_s6 }
 0x45f   : > { %v4183_v18 = vcombine.low %v4118_v30, %v4134_v39  ;;  %v4184_v11 = vcombine.high %v4118_v30, %v4134_v39  ;;  %v4215_v26 = vcombine.low %v4150_v15, %v4166_v36  ;;  %v4216_v1 = vcombine.high %v4150_v15, %v4166_v36  ;;  %1765 = vrot.lane.b32.xlu1 %v20894_v4, %s19769_s25 }
 0x460   : > { %v4367_v60 = vcombine.low %v4311_v2, %v4343_v56  ;;  %v4368_v47 = vcombine.high %v4311_v2, %v4343_v56  ;;  %v4369_v23 = vcombine.low %v4318_v61, %v4350_v42  ;;  %v4370_v17 = vcombine.high %v4318_v61, %v4350_v42  ;;  %v21250_v30 = vpop.permute.xlu1 %1749  ;;  %v21252_v39 = vpop.permute.xlu0 %1843 }
 0x461   : > { %v26697_v20 = vcombine.low %v21149_v38, %v21155_v51  ;;  %v26698_v5 = vcombine.high %v21149_v38, %v21155_v51  ;;  %v26699_v2 = vcombine.low %v21152_v0, %v21158_v50  ;;  %v26700_v56 = vcombine.high %v21152_v0, %v21158_v50 }
 0x462   : > { %v21255_v15 = vrot.slane %v4183_v18, %v20818_v35  ;;  %v21258_v36 = vrot.slane %v4184_v11, %v20818_v35  ;;  %v21261_v38 = vrot.slane %v4215_v26, %v20818_v35  ;;  %v21264_v51 = vrot.slane %v4216_v1, %v20818_v35  ;;  %1907 = vrot.lane.b32.xlu0 %v20880_v28, %s19772_s3 }
 0x463   : > { %v6279_v62 = vpack.c.bf16 %v4367_v60, %v26697_v20  ;;  %v6287_v43 = vpack.c.bf16 %v4368_v47, %v26698_v5  ;;  %v6295_v61 = vpack.c.bf16 %v4369_v23, %v26699_v2  ;;  %v6303_v42 = vpack.c.bf16 %v4370_v17, %v26700_v56  ;;  %1813 = vrot.lane.b32.xlu1 %v20894_v4, %s19770_s10 }
 0x464   : > { %v2095_v0 = vcombine.low %v21090_v41, %v21130_v45  ;;  %v2096_v50 = vcombine.high %v21090_v41, %v21130_v45  ;;  %v2111_v26 = vcombine.low %v21106_v14, %v21166_v54  ;;  %v2112_v1 = vcombine.high %v21106_v14, %v21166_v54  ;;  %v21294_v18 = vpop.permute.xlu1 %1797  ;;  %v21296_v11 = vpop.permute.xlu0 %1891 }
 0x465   : > { %6344 = vst.msk [vmem:[#allocation2] sm:$0xff] %vm6343_vm0, %v6279_v62  ;;  %6352 = vst.msk [vmem:[#allocation2 + $0x40] sm:$0xff] %vm6343_vm0, %v6287_v43  ;;  %v2743_v20 = vcombine.low %v20732_v46, %v21168_v59  ;;  %v2744_v62 = vcombine.high %v20732_v46, %v21168_v59  ;;  %v2759_v5 = vcombine.low %v21132_v55, %v21196_v44 }
 0x466   : > { %6360 = vst.msk [vmem:[#allocation2 + $0x80] sm:$0xff] %vm6343_vm0, %v6295_v61  ;;  %6368 = vst.msk [vmem:[#allocation2 + $0xc0] sm:$0xff] %vm6343_vm0, %v6303_v42  ;;  %v2103_v14 = vrot.slane %v2095_v0, %v20815_v31  ;;  %v2110_v45 = vrot.slane %v2096_v50, %v20815_v31  ;;  %v2119_v54 = vrot.slane %v2111_v26, %v20815_v31  ;;  %1615 = vrot.lane.b32.xlu0 %v20883_v21, %s19767_s18 }
 0x467   : > { %v2126_v17 = vrot.slane %v2112_v1, %v20815_v31  ;;  %v2760_v43 = vcombine.high %v21132_v55, %v21196_v44  ;;  %v2751_v0 = vrot.slane %v2743_v20, %v20815_v31  ;;  %v2758_v50 = vrot.slane %v2744_v62, %v20815_v31  ;;  %1861 = vrot.lane.b32.xlu1 %v20894_v4, %s19771_s6 }
 0x468   : > { %v2159_v2 = vcombine.low %v2103_v14, %v2119_v54  ;;  %v2160_v61 = vcombine.high %v2103_v14, %v2119_v54  ;;  %v2767_v26 = vrot.slane %v2759_v5, %v20815_v31  ;;  %v21318_v14 = vpop.permute.xlu1 %1845 }
 0x469   : > { %v2175_v56 = vcombine.low %v2110_v45, %v2126_v17  ;;  %v2176_v42 = vcombine.high %v2110_v45, %v2126_v17  ;;  %v2774_v46 = vrot.slane %v2760_v43, %v20815_v31  ;;  %v21320_v45 = vpop.permute.xlu0 %1599 }
 0x46a   : > { %v2167_v55 = vrot.slane %v2159_v2, %v20818_v35  ;;  %v2174_v59 = vrot.slane %v2160_v61, %v20818_v35  ;;  %v2807_v54 = vcombine.low %v2751_v0, %v2767_v26  ;;  %v2808_v17 = vcombine.high %v2751_v0, %v2767_v26  ;;  %1663 = vrot.lane.b32.xlu0 %v20883_v21, %s19766_s8 }
 0x46b   : > { %v2183_v44 = vrot.slane %v2175_v56, %v20818_v35  ;;  %v2190_v1 = vrot.slane %v2176_v42, %v20818_v35  ;;  %v2823_v20 = vcombine.low %v2758_v50, %v2774_v46  ;;  %v2824_v62 = vcombine.high %v2758_v50, %v2774_v46  ;;  %1909 = vrot.lane.b32.xlu1 %v20894_v4, %s19772_s3 }
 0x46c   : > { %v17239_v5 = vcombine.low %v2167_v55, %v2174_v59  ;;  %v17241_v43 = vcombine.high %v2167_v55, %v2174_v59  ;;  %v2815_v2 = vrot.slane %v2807_v54, %v20818_v35  ;;  %v2822_v61 = vrot.slane %v2808_v17, %v20818_v35  ;;  %v21334_v55 = vpop.permute.xlu1 %1893 }
 0x46d   : > { %v17243_v41 = vcombine.low %v2183_v44, %v2190_v1  ;;  %v17245_v23 = vcombine.high %v2183_v44, %v2190_v1  ;;  %v2831_v56 = vrot.slane %v2823_v20, %v20818_v35  ;;  %v2838_v42 = vrot.slane %v2824_v62, %v20818_v35  ;;  %v21336_v59 = vpop.permute.xlu0 %1647 }
 0x46e   : > { %v4254_v0 = vrot.slane %v17239_v5, %v20815_v31  ;;  %v4270_v50 = vrot.slane %v17241_v43, %v20815_v31  ;;  %v17278_v44 = vcombine.low %v2815_v2, %v2822_v61  ;;  %v17280_v1 = vcombine.high %v2815_v2, %v2822_v61  ;;  %1711 = vrot.lane.b32.xlu0 %v20883_v21, %s19768_s17 }
 0x46f   : > { %v4286_v26 = vrot.slane %v17243_v41, %v20815_v31  ;;  %v4302_v46 = vrot.slane %v17245_v23, %v20815_v31  ;;  %v17282_v54 = vcombine.low %v2831_v56, %v2838_v42  ;;  %v17284_v17 = vcombine.high %v2831_v56, %v2838_v42  ;;  %1617 = vrot.lane.b32.xlu1 %v20928_v58, %s19767_s18 }
 0x470   : > { %v4319_v20 = vcombine.low %v4254_v0, %v4270_v50  ;;  %v4320_v62 = vcombine.high %v4254_v0, %v4270_v50  ;;  %v4927_v5 = vrot.slane %v17278_v44, %v20815_v31  ;;  %v4943_v41 = vrot.slane %v17280_v1, %v20815_v31  ;;  %v21350_v0 = vpop.permute.xlu1 %1601 }
 0x471   : > { %v4351_v47 = vcombine.low %v4286_v26, %v4302_v46  ;;  %v4352_v60 = vcombine.high %v4286_v26, %v4302_v46  ;;  %v4959_v23 = vrot.slane %v17282_v54, %v20815_v31  ;;  %v4975_v43 = vrot.slane %v17284_v17, %v20815_v31  ;;  %v21352_v50 = vpop.permute.xlu0 %1695 }
 0x472   : > { %v4327_v2 = vrot.slane %v4319_v20, %v20818_v35  ;;  %v4334_v61 = vrot.slane %v4320_v62, %v20818_v35  ;;  %v4983_v26 = vcombine.low %v4927_v5, %v4943_v41  ;;  %v4984_v46 = vcombine.high %v4927_v5, %v4943_v41  ;;  %1759 = vrot.lane.b32.xlu0 %v20883_v21, %s19769_s25  ;;  %v18668_v20 = vld [vmem:[#allocation17] ss:$0 sm:$0xff] }
 0x473   : > { %v4359_v56 = vrot.slane %v4351_v47, %v20818_v35  ;;  %v4366_v42 = vrot.slane %v4352_v60, %v20818_v35  ;;  %v5015_v44 = vcombine.low %v4959_v23, %v4975_v43  ;;  %v5016_v1 = vcombine.high %v4959_v23, %v4975_v43  ;;  %1665 = vrot.lane.b32.xlu1 %v20928_v58, %s19766_s8 }
 0x474   : > { %v21357_v47 = vadd.f32 %v18668_v20, %v20682_v52  ;;  %v21360_v60 = vadd.f32 %v18668_v20, %v20684_v24  ;;  %v21363_v62 = vrot.slane %v4983_v26, %v20818_v35  ;;  %v26703_v41 = vcombine.low %v21255_v15, %v21261_v38 }
 0x475   : > { %v4371_v54 = vcombine.low %v4327_v2, %v4359_v56  ;;  %v4372_v17 = vcombine.high %v4327_v2, %v4359_v56  ;;  %v4373_v57 = vcombine.low %v4334_v61, %v4366_v42  ;;  %v4374_v4 = vcombine.high %v4334_v61, %v4366_v42  ;;  %v21382_v42 = vpop.permute.xlu1 %1649  ;;  %v21384_v26 = vpop.permute.xlu0 %1743 }
 0x476   : > { %26701 = vst [vmem:[#allocation69_spill] sm:$0xff] %v21357_v47  ;;  %26702 = vst [vmem:[#allocation70_spill] sm:$0xff] %v21360_v60  ;;  %v21366_v5 = vrot.slane %v5015_v44, %v20818_v35  ;;  %v26704_v52 = vcombine.high %v21255_v15, %v21261_v38  ;;  %v26705_v24 = vcombine.low %v21258_v36, %v21264_v51  ;;  %1807 = vrot.lane.b32.xlu0 %v20883_v21, %s19770_s10 }
 0x477   : > { %v6311_v23 = vpack.c.bf16 %v4371_v54, %v26703_v41  ;;  %v26706_v61 = vcombine.high %v21258_v36, %v21264_v51  ;;  %v21387_v44 = vrot.slane %v4984_v46, %v20818_v35  ;;  %v21390_v54 = vrot.slane %v5016_v1, %v20818_v35  ;;  %1713 = vrot.lane.b32.xlu1 %v20928_v58, %s19768_s17 }
 0x478   : > { %v6319_v43 = vpack.c.bf16 %v4372_v17, %v26704_v52  ;;  %v6327_v2 = vpack.c.bf16 %v4373_v57, %v26705_v24  ;;  %v2880_v36 = vcombine.high %v20744_v40, %v21210_v53  ;;  %v2895_v38 = vcombine.low %v21194_v12, %v21226_v3 }
 0x479   : > { %v6335_v56 = vpack.c.bf16 %v4374_v4, %v26706_v61  ;;  %6376 = vst.msk [vmem:[#allocation2 + $0x100] sm:$0xff] %vm6343_vm0, %v6311_v23  ;;  %v2879_v4 = vcombine.low %v20744_v40, %v21210_v53  ;;  %v2896_v51 = vcombine.high %v21194_v12, %v21226_v3  ;;  %v2775_v46 = vcombine.low %v21212_v19, %v21252_v39  ;;  %v21424_v41 = vpop.permute.xlu1 %1697 }
 0x47a   : > { %6384 = vst.msk [vmem:[#allocation2 + $0x140] sm:$0xff] %vm6343_vm0, %v6319_v43  ;;  %6392 = vst.msk [vmem:[#allocation2 + $0x180] sm:$0xff] %vm6343_vm0, %v6327_v2  ;;  %v2776_v1 = vcombine.high %v21212_v19, %v21252_v39  ;;  %v2791_v17 = vcombine.low %v21228_v63, %v21296_v11  ;;  %v2792_v40 = vcombine.high %v21228_v63, %v21296_v11  ;;  %v21426_v19 = vpop.permute.xlu0 %1791  ;;  %1855 = vrot.lane.b32.xlu0 %v20883_v21, %s19771_s6 }
 0x47b   : > { %6400 = vst.msk [vmem:[#allocation2 + $0x1c0] sm:$0xff] %vm6343_vm0, %v6335_v56  ;;  %v2887_v12 = vrot.slane %v2879_v4, %v20815_v31  ;;  %v2894_v53 = vrot.slane %v2880_v36, %v20815_v31  ;;  %v2903_v3 = vrot.slane %v2895_v38, %v20815_v31  ;;  %v2910_v20 = vrot.slane %v2896_v51, %v20815_v31 }
 0x47c   : > { %v2783_v39 = vrot.slane %v2775_v46, %v20815_v31  ;;  %v2790_v23 = vrot.slane %v2776_v1, %v20815_v31  ;;  %v2799_v63 = vrot.slane %v2791_v17, %v20815_v31  ;;  %v2806_v11 = vrot.slane %v2792_v40, %v20815_v31  ;;  %1761 = vrot.lane.b32.xlu1 %v20928_v58, %s19769_s25 }
 0x47d   : > { %v2943_v52 = vcombine.low %v2887_v12, %v2903_v3  ;;  %v2944_v43 = vcombine.high %v2887_v12, %v2903_v3  ;;  %v2959_v24 = vcombine.low %v2894_v53, %v2910_v20  ;;  %v2960_v2 = vcombine.high %v2894_v53, %v2910_v20  ;;  %v21440_v17 = vpop.permute.xlu1 %1745 }
 0x47e   : > { %v2839_v61 = vcombine.low %v2783_v39, %v2799_v63  ;;  %v2840_v56 = vcombine.high %v2783_v39, %v2799_v63  ;;  %v2855_v4 = vcombine.low %v2790_v23, %v2806_v11  ;;  %v2856_v36 = vcombine.high %v2790_v23, %v2806_v11  ;;  %v21442_v40 = vpop.permute.xlu0 %1839  ;;  %1903 = vrot.lane.b32.xlu0 %v20883_v21, %s19772_s3 }
 0x47f   : > { %v2951_v38 = vrot.slane %v2943_v52, %v20818_v35  ;;  %v2958_v51 = vrot.slane %v2944_v43, %v20818_v35  ;;  %v2967_v46 = vrot.slane %v2959_v24, %v20818_v35  ;;  %v2974_v1 = vrot.slane %v2960_v2, %v20818_v35 }
 0x480   : > { %v2847_v12 = vrot.slane %v2839_v61, %v20818_v35  ;;  %v2854_v53 = vrot.slane %v2840_v56, %v20818_v35  ;;  %v2863_v3 = vrot.slane %v2855_v4, %v20818_v35  ;;  %v2870_v20 = vrot.slane %v2856_v36, %v20818_v35  ;;  %1809 = vrot.lane.b32.xlu1 %v20928_v58, %s19770_s10 }
 0x481   : > { %v17286_v39 = vcombine.low %v2951_v38, %v2958_v51  ;;  %v17288_v23 = vcombine.high %v2951_v38, %v2958_v51  ;;  %v17290_v63 = vcombine.low %v2967_v46, %v2974_v1  ;;  %v17292_v11 = vcombine.high %v2967_v46, %v2974_v1  ;;  %v21456_v38 = vpop.permute.xlu1 %1793 }
 0x482   : > { %v17279_v52 = vcombine.low %v2847_v12, %v2854_v53  ;;  %v17281_v43 = vcombine.high %v2847_v12, %v2854_v53  ;;  %v17283_v24 = vcombine.low %v2863_v3, %v2870_v20  ;;  %v17285_v2 = vcombine.high %v2863_v3, %v2870_v20  ;;  %v21458_v51 = vpop.permute.xlu0 %1887  ;;  %6574 = vrot.lane.b32.xlu0 %v20921_v48, %s19768_s17 }
 0x483   : > { %v5063_v61 = vrot.slane %v17286_v39, %v20815_v31  ;;  %v5079_v56 = vrot.slane %v17288_v23, %v20815_v31  ;;  %v5095_v4 = vrot.slane %v17290_v63, %v20815_v31  ;;  %v5111_v36 = vrot.slane %v17292_v11, %v20815_v31 }
 0x484   : > { %v4934_v46 = vrot.slane %v17279_v52, %v20815_v31  ;;  %v4950_v1 = vrot.slane %v17281_v43, %v20815_v31  ;;  %v4966_v12 = vrot.slane %v17283_v24, %v20815_v31  ;;  %v4982_v53 = vrot.slane %v17285_v2, %v20815_v31  ;;  %1857 = vrot.lane.b32.xlu1 %v20928_v58, %s19771_s6 }
 0x485   : > { %v5119_v3 = vcombine.low %v5063_v61, %v5079_v56  ;;  %v5120_v20 = vcombine.high %v5063_v61, %v5079_v56  ;;  %v5151_v39 = vcombine.low %v5095_v4, %v5111_v36  ;;  %v5152_v23 = vcombine.high %v5095_v4, %v5111_v36  ;;  %v21472_v61 = vpop.permute.xlu1 %1841 }
 0x486   : > { %v4999_v63 = vcombine.low %v4934_v46, %v4950_v1  ;;  %v5000_v11 = vcombine.high %v4934_v46, %v4950_v1  ;;  %v5031_v57 = vcombine.low %v4966_v12, %v4982_v53  ;;  %v5032_v15 = vcombine.high %v4966_v12, %v4982_v53  ;;  %v21474_v56 = vpop.permute.xlu0 %1611  ;;  %6590 = vrot.lane.b32.xlu0 %v20932_v49, %s19768_s17 }
 0x487   : > { %v5127_v52 = vrot.slane %v5119_v3, %v20818_v35  ;;  %v5134_v43 = vrot.slane %v5120_v20, %v20818_v35  ;;  %v5159_v24 = vrot.slane %v5151_v39, %v20818_v35  ;;  %v5166_v2 = vrot.slane %v5152_v23, %v20818_v35 }
 0x488   : > { %v5049_v4 = vcombine.low %v21387_v44, %v21390_v54  ;;  %v5050_v36 = vcombine.high %v21387_v44, %v21390_v54  ;;  %v21481_v46 = vrot.slane %v4999_v63, %v20818_v35  ;;  %v21484_v1 = vrot.slane %v5031_v57, %v20818_v35  ;;  %1905 = vrot.lane.b32.xlu1 %v20928_v58, %s19772_s3 }
 0x489   : > { %v5183_v12 = vcombine.low %v5127_v52, %v5159_v24  ;;  %v5184_v53 = vcombine.high %v5127_v52, %v5159_v24  ;;  %v5185_v3 = vcombine.low %v5134_v43, %v5166_v2  ;;  %v5186_v20 = vcombine.high %v5134_v43, %v5166_v2  ;;  %v21506_v24 = vpop.permute.xlu1 %1889 }
 0x48a   : > { %v21489_v39 = vrot.slane %v5000_v11, %v20818_v35  ;;  %v21492_v23 = vrot.slane %v5032_v15, %v20818_v35  ;;  %v26707_v57 = vcombine.low %v21363_v62, %v21366_v5  ;;  %v26708_v11 = vcombine.high %v21363_v62, %v21366_v5  ;;  %v21508_v2 = vpop.permute.xlu0 %1659  ;;  %6622 = vrot.lane.b32.xlu0 %v20921_v48, %s19769_s25 }
 0x48b   : > { %v6298_v43 = vpack.c.bf16 %v5185_v3, %v5049_v4  ;;  %v6306_v15 = vpack.c.bf16 %v5186_v20, %v5050_v36  ;;  %v2911_v54 = vcombine.low %v21250_v30, %v21318_v14  ;;  %v2912_v44 = vcombine.high %v21250_v30, %v21318_v14 }
 0x48c   : > { %v6282_v63 = vpack.c.bf16 %v5183_v12, %v26707_v57  ;;  %v6290_v52 = vpack.c.bf16 %v5184_v53, %v26708_v11  ;;  %v2927_v58 = vcombine.low %v21294_v18, %v21334_v55  ;;  %v2928_v12 = vcombine.high %v21294_v18, %v21334_v55  ;;  %6476 = vrot.lane.b32.xlu1 %v20901_v33, %s19767_s18 }
 0x48d   : > { %6363 = vst.msk [vmem:[#allocation2 + $0x98] sm:$0xff] %vm6343_vm0, %v6298_v43  ;;  %6371 = vst.msk [vmem:[#allocation2 + $0xd8] sm:$0xff] %vm6343_vm0, %v6306_v15  ;;  %v2471_v62 = vcombine.low %v20767_v16, %v21336_v59  ;;  %v2472_v30 = vcombine.high %v20767_v16, %v21336_v59  ;;  %v2487_v14 = vcombine.low %v21320_v45, %v21352_v50  ;;  %v21542_v53 = vpop.permute.xlu1 %1613 }
 0x48e   : > { %6347 = vst.msk [vmem:[#allocation2 + $0x18] sm:$0xff] %vm6343_vm0, %v6282_v63  ;;  %6355 = vst.msk [vmem:[#allocation2 + $0x58] sm:$0xff] %vm6343_vm0, %v6290_v52  ;;  %v2488_v18 = vcombine.high %v21320_v45, %v21352_v50  ;;  %v2919_v55 = vrot.slane %v2911_v54, %v20815_v31  ;;  %v2926_v5 = vrot.slane %v2912_v44, %v20815_v31  ;;  %v21544_v3 = vpop.permute.xlu0 %1707  ;;  %6638 = vrot.lane.b32.xlu0 %v20932_v49, %s19769_s25 }
 0x48f   : > { %v2935_v4 = vrot.slane %v2927_v58, %v20815_v31  ;;  %v2942_v36 = vrot.slane %v2928_v12, %v20815_v31  ;;  %v2479_v16 = vrot.slane %v2471_v62, %v20815_v31  ;;  %v2486_v59 = vrot.slane %v2472_v30, %v20815_v31 }
 0x490   : > { %v2495_v45 = vrot.slane %v2487_v14, %v20815_v31  ;;  %v2502_v50 = vrot.slane %v2488_v18, %v20815_v31  ;;  %6492 = vrot.lane.b32.xlu1 %v20905_v34, %s19767_s18 }
 0x491   : > { %v2975_v20 = vcombine.low %v2919_v55, %v2935_v4  ;;  %v2976_v44 = vcombine.high %v2919_v55, %v2935_v4  ;;  %v2991_v58 = vcombine.low %v2926_v5, %v2942_v36  ;;  %v2992_v54 = vcombine.high %v2926_v5, %v2942_v36  ;;  %v21558_v5 = vpop.permute.xlu1 %1661 }
 0x492   : > { %v2535_v57 = vcombine.low %v2479_v16, %v2495_v45  ;;  %v2536_v63 = vcombine.high %v2479_v16, %v2495_v45  ;;  %v2551_v11 = vcombine.low %v2486_v59, %v2502_v50  ;;  %v2552_v52 = vcombine.high %v2486_v59, %v2502_v50  ;;  %v21560_v4 = vpop.permute.xlu0 %1755  ;;  %6670 = vrot.lane.b32.xlu0 %v20921_v48, %s19770_s10 }
 0x493   : > { %v2983_v43 = vrot.slane %v2975_v20, %v20818_v35  ;;  %v2990_v15 = vrot.slane %v2976_v44, %v20818_v35  ;;  %v2999_v12 = vrot.slane %v2991_v58, %v20818_v35  ;;  %v3006_v62 = vrot.slane %v2992_v54, %v20818_v35 }
 0x494   : > { %v2543_v30 = vrot.slane %v2535_v57, %v20818_v35  ;;  %v2550_v14 = vrot.slane %v2536_v63, %v20818_v35  ;;  %v2559_v18 = vrot.slane %v2551_v11, %v20818_v35  ;;  %v2566_v55 = vrot.slane %v2552_v52, %v20818_v35  ;;  %6524 = vrot.lane.b32.xlu1 %v20901_v33, %s19766_s8 }
 0x495   : > { %v17287_v36 = vcombine.low %v2983_v43, %v2990_v15  ;;  %v17289_v16 = vcombine.high %v2983_v43, %v2990_v15  ;;  %v17291_v59 = vcombine.low %v2999_v12, %v3006_v62  ;;  %v17293_v45 = vcombine.high %v2999_v12, %v3006_v62  ;;  %v21574_v62 = vpop.permute.xlu1 %1709 }
 0x496   : > { %v17262_v50 = vcombine.low %v2543_v30, %v2550_v14  ;;  %v17264_v20 = vcombine.high %v2543_v30, %v2550_v14  ;;  %v17266_v44 = vcombine.low %v2559_v18, %v2566_v55  ;;  %v17268_v58 = vcombine.high %v2559_v18, %v2566_v55  ;;  %v21576_v30 = vpop.permute.xlu0 %1803  ;;  %6686 = vrot.lane.b32.xlu0 %v20932_v49, %s19770_s10 }
 0x497   : > { %v5070_v54 = vrot.slane %v17287_v36, %v20815_v31  ;;  %v5086_v57 = vrot.slane %v17289_v16, %v20815_v31  ;;  %v5102_v63 = vrot.slane %v17291_v59, %v20815_v31  ;;  %v5118_v11 = vrot.slane %v17293_v45, %v20815_v31 }
 0x498   : > { %v4655_v52 = vrot.slane %v17262_v50, %v20815_v31  ;;  %v4671_v43 = vrot.slane %v17264_v20, %v20815_v31  ;;  %v4687_v15 = vrot.slane %v17266_v44, %v20815_v31  ;;  %v4703_v12 = vrot.slane %v17268_v58, %v20815_v31  ;;  %6540 = vrot.lane.b32.xlu1 %v20905_v34, %s19766_s8 }
 0x499   : > { %v5135_v14 = vcombine.low %v5070_v54, %v5086_v57  ;;  %v5136_v18 = vcombine.high %v5070_v54, %v5086_v57  ;;  %v5167_v55 = vcombine.low %v5102_v63, %v5118_v11  ;;  %v5168_v36 = vcombine.high %v5102_v63, %v5118_v11 }
 0x49a   : > { %v4711_v16 = vcombine.low %v4655_v52, %v4671_v43  ;;  %v4712_v59 = vcombine.high %v4655_v52, %v4671_v43  ;;  %v4743_v45 = vcombine.low %v4687_v15, %v4703_v12  ;;  %v4744_v21 = vcombine.high %v4687_v15, %v4703_v12  ;;  %v21596_v52 = vpop.permute.xlu1 %1757  ;;  %v21598_v43 = vpop.permute.xlu0 %1851  ;;  %6718 = vrot.lane.b32.xlu0 %v20921_v48, %s19771_s6 }
 0x49b   : > { %v5143_v50 = vrot.slane %v5135_v14, %v20818_v35  ;;  %v5150_v20 = vrot.slane %v5136_v18, %v20818_v35  ;;  %v5175_v44 = vrot.slane %v5167_v55, %v20818_v35  ;;  %v5182_v58 = vrot.slane %v5168_v36, %v20818_v35 }
 0x49c   : > { %v5053_v54 = vcombine.low %v21489_v39, %v21492_v23  ;;  %v5054_v57 = vcombine.high %v21489_v39, %v21492_v23  ;;  %v21591_v63 = vrot.slane %v4711_v16, %v20818_v35  ;;  %v21594_v11 = vrot.slane %v4743_v45, %v20818_v35  ;;  %6572 = vrot.lane.b32.xlu1 %v20901_v33, %s19768_s17 }
 0x49d   : > { %v5187_v15 = vcombine.low %v5143_v50, %v5175_v44  ;;  %v5188_v12 = vcombine.high %v5143_v50, %v5175_v44  ;;  %v5189_v14 = vcombine.low %v5150_v20, %v5182_v58  ;;  %v5190_v18 = vcombine.high %v5150_v20, %v5182_v58 }
 0x49e   : > { %v21601_v55 = vrot.slane %v4712_v59, %v20818_v35  ;;  %v21604_v36 = vrot.slane %v4744_v21, %v20818_v35  ;;  %v26709_v16 = vcombine.low %v21481_v46, %v21484_v1  ;;  %v26710_v59 = vcombine.high %v21481_v46, %v21484_v1  ;;  %6734 = vrot.lane.b32.xlu0 %v20932_v49, %s19771_s6 }
 0x49f   : > { %v6330_v20 = vpack.c.bf16 %v5189_v14, %v5053_v54  ;;  %v6338_v21 = vpack.c.bf16 %v5190_v18, %v5054_v57  ;;  %v2607_v44 = vcombine.low %v20778_v37, %v21382_v42  ;;  %v2608_v58 = vcombine.high %v20778_v37, %v21382_v42 }
 0x4a0   : > { %v6314_v45 = vpack.c.bf16 %v5187_v15, %v26709_v16  ;;  %v6322_v50 = vpack.c.bf16 %v5188_v12, %v26710_v59  ;;  %v2623_v23 = vcombine.low %v21350_v0, %v21424_v41  ;;  %v2624_v15 = vcombine.high %v21350_v0, %v21424_v41  ;;  %v21628_v16 = vpop.permute.xlu0 %1899  ;;  %v21642_v41 = vpop.permute.xlu1 %1805  ;;  %6588 = vrot.lane.b32.xlu1 %v20905_v34, %s19768_s17 }
 0x4a1   : > { %6395 = vst.msk [vmem:[#allocation2 + $0x198] sm:$0xff] %vm6343_vm0, %v6330_v20  ;;  %6403 = vst.msk [vmem:[#allocation2 + $0x1d8] sm:$0xff] %vm6343_vm0, %v6338_v21  ;;  %v2503_v46 = vcombine.low %v21384_v26, %v21442_v40  ;;  %v2504_v37 = vcombine.high %v21384_v26, %v21442_v40  ;;  %v2519_v42 = vcombine.low %v21426_v19, %v21458_v51 }
 0x4a2   : > { %6379 = vst.msk [vmem:[#allocation2 + $0x118] sm:$0xff] %vm6343_vm0, %v6314_v45  ;;  %6387 = vst.msk [vmem:[#allocation2 + $0x158] sm:$0xff] %vm6343_vm0, %v6322_v50  ;;  %v2520_v0 = vcombine.high %v21426_v19, %v21458_v51  ;;  %v2615_v1 = vrot.slane %v2607_v44, %v20815_v31  ;;  %v2622_v54 = vrot.slane %v2608_v58, %v20815_v31  ;;  %6766 = vrot.lane.b32.xlu0 %v20921_v48, %s19772_s3 }
 0x4a3   : > { %v2631_v57 = vrot.slane %v2623_v23, %v20815_v31  ;;  %v2638_v12 = vrot.slane %v2624_v15, %v20815_v31  ;;  %v2511_v26 = vrot.slane %v2503_v46, %v20815_v31  ;;  %v2518_v40 = vrot.slane %v2504_v37, %v20815_v31 }
 0x4a4   : > { %v2527_v14 = vrot.slane %v2519_v42, %v20815_v31  ;;  %v2534_v19 = vrot.slane %v2520_v0, %v20815_v31  ;;  %v21656_v59 = vpop.permute.xlu0 %1607  ;;  %v21658_v58 = vpop.permute.xlu1 %1853  ;;  %6620 = vrot.lane.b32.xlu1 %v20901_v33, %s19769_s25 }
 0x4a5   : > { %v2671_v51 = vcombine.low %v2615_v1, %v2631_v57  ;;  %v2672_v18 = vcombine.high %v2615_v1, %v2631_v57  ;;  %v2687_v45 = vcombine.low %v2622_v54, %v2638_v12  ;;  %v2688_v23 = vcombine.high %v2622_v54, %v2638_v12 }
 0x4a6   : > { %v2567_v50 = vcombine.low %v2511_v26, %v2527_v14  ;;  %v2568_v20 = vcombine.high %v2511_v26, %v2527_v14  ;;  %v2583_v21 = vcombine.low %v2518_v40, %v2534_v19  ;;  %v2584_v44 = vcombine.high %v2518_v40, %v2534_v19  ;;  %6570 = vrot.lane.b32.xlu0 %v21357_v47, %s19768_s17 }
 0x4a7   : > { %v2679_v15 = vrot.slane %v2671_v51, %v20818_v35  ;;  %v2686_v46 = vrot.slane %v2672_v18, %v20818_v35  ;;  %v2695_v37 = vrot.slane %v2687_v45, %v20818_v35  ;;  %v2702_v42 = vrot.slane %v2688_v23, %v20818_v35 }
 0x4a8   : > { %v2575_v0 = vrot.slane %v2567_v50, %v20818_v35  ;;  %v2582_v1 = vrot.slane %v2568_v20, %v20818_v35  ;;  %v2591_v54 = vrot.slane %v2583_v21, %v20818_v35  ;;  %v2598_v57 = vrot.slane %v2584_v44, %v20818_v35  ;;  %v21672_v19 = vpop.permute.xlu0 %1655  ;;  %v21674_v50 = vpop.permute.xlu1 %1901  ;;  %6636 = vrot.lane.b32.xlu1 %v20905_v34, %s19769_s25 }
 0x4a9   : > { %v17270_v12 = vcombine.low %v2679_v15, %v2686_v46  ;;  %v17272_v26 = vcombine.high %v2679_v15, %v2686_v46  ;;  %v17274_v40 = vcombine.low %v2695_v37, %v2702_v42  ;;  %v17276_v14 = vcombine.high %v2695_v37, %v2702_v42 }
 0x4aa   : > { %v17263_v51 = vcombine.low %v2575_v0, %v2582_v1  ;;  %v17265_v18 = vcombine.high %v2575_v0, %v2582_v1  ;;  %v17267_v45 = vcombine.low %v2591_v54, %v2598_v57  ;;  %v17269_v23 = vcombine.high %v2591_v54, %v2598_v57  ;;  %6586 = vrot.lane.b32.xlu0 %v21360_v60, %s19768_s17 }
 0x4ab   : > { %v4791_v20 = vrot.slane %v17270_v12, %v20815_v31  ;;  %v4807_v21 = vrot.slane %v17272_v26, %v20815_v31  ;;  %v4823_v44 = vrot.slane %v17274_v40, %v20815_v31  ;;  %v4839_v39 = vrot.slane %v17276_v14, %v20815_v31 }
 0x4ac   : > { %v4662_v15 = vrot.slane %v17263_v51, %v20815_v31  ;;  %v4678_v46 = vrot.slane %v17265_v18, %v20815_v31  ;;  %v4694_v37 = vrot.slane %v17267_v45, %v20815_v31  ;;  %v4710_v42 = vrot.slane %v17269_v23, %v20815_v31  ;;  %v21688_v12 = vpop.permute.xlu0 %1703  ;;  %v21690_v51 = vpop.permute.xlu1 %1609  ;;  %6668 = vrot.lane.b32.xlu1 %v20901_v33, %s19770_s10 }
 0x4ad   : > { %v4847_v0 = vcombine.low %v4791_v20, %v4807_v21  ;;  %v4848_v1 = vcombine.high %v4791_v20, %v4807_v21  ;;  %v4879_v54 = vcombine.low %v4823_v44, %v4839_v39  ;;  %v4880_v57 = vcombine.high %v4823_v44, %v4839_v39 }
 0x4ae   : > { %v4727_v26 = vcombine.low %v4662_v15, %v4678_v46  ;;  %v4728_v40 = vcombine.high %v4662_v15, %v4678_v46  ;;  %v4759_v14 = vcombine.low %v4694_v37, %v4710_v42  ;;  %v4760_v32 = vcombine.high %v4694_v37, %v4710_v42  ;;  %6618 = vrot.lane.b32.xlu0 %v21357_v47, %s19769_s25 }
 0x4af   : > { %v4855_v18 = vrot.slane %v4847_v0, %v20818_v35  ;;  %v4862_v45 = vrot.slane %v4848_v1, %v20818_v35  ;;  %v4887_v23 = vrot.slane %v4879_v54, %v20818_v35  ;;  %v4894_v28 = vrot.slane %v4880_v57, %v20818_v35 }
 0x4b0   : > { %v4777_v39 = vcombine.low %v21601_v55, %v21604_v36  ;;  %v4778_v20 = vcombine.high %v21601_v55, %v21604_v36  ;;  %v21703_v21 = vrot.slane %v4727_v26, %v20818_v35  ;;  %v21706_v44 = vrot.slane %v4759_v14, %v20818_v35  ;;  %v21710_v0 = vpop.permute.xlu0 %1751  ;;  %v21722_v57 = vpop.permute.xlu1 %1657  ;;  %6684 = vrot.lane.b32.xlu1 %v20905_v34, %s19770_s10 }
 0x4b1   : > { %v4911_v15 = vcombine.low %v4855_v18, %v4887_v23  ;;  %v4912_v46 = vcombine.high %v4855_v18, %v4887_v23  ;;  %v4913_v37 = vcombine.low %v4862_v45, %v4894_v28  ;;  %v4914_v42 = vcombine.high %v4862_v45, %v4894_v28 }
 0x4b2   : > { %v21713_v1 = vrot.slane %v4728_v40, %v20818_v35  ;;  %v21716_v55 = vrot.slane %v4760_v32, %v20818_v35  ;;  %v26711_v26 = vcombine.low %v21591_v63, %v21594_v11  ;;  %v26712_v14 = vcombine.high %v21591_v63, %v21594_v11  ;;  %6634 = vrot.lane.b32.xlu0 %v21360_v60, %s19769_s25 }
 0x4b3   : > { %v6297_v18 = vpack.c.bf16 %v4913_v37, %v4777_v39  ;;  %v6305_v45 = vpack.c.bf16 %v4914_v42, %v4778_v20  ;;  %v2639_v32 = vcombine.low %v21440_v17, %v21472_v61  ;;  %v2640_v23 = vcombine.high %v21440_v17, %v21472_v61 }
 0x4b4   : > { %v6281_v28 = vpack.c.bf16 %v4911_v15, %v26711_v26  ;;  %v6289_v40 = vpack.c.bf16 %v4912_v46, %v26712_v14  ;;  %v2655_v54 = vcombine.low %v21456_v38, %v21506_v24  ;;  %v2656_v15 = vcombine.high %v21456_v38, %v21506_v24  ;;  %v21754_v63 = vpop.permute.xlu0 %1799  ;;  %v21760_v37 = vpop.permute.xlu1 %1705  ;;  %6716 = vrot.lane.b32.xlu1 %v20901_v33, %s19771_s6 }
 0x4b5   : > { %6362 = vst.msk [vmem:[#allocation2 + $0x90] sm:$0xff] %vm6343_vm0, %v6297_v18  ;;  %6370 = vst.msk [vmem:[#allocation2 + $0xd0] sm:$0xff] %vm6343_vm0, %v6305_v45  ;;  %v3287_v17 = vcombine.low %v20801_v6, %v21508_v2  ;;  %v3288_v61 = vcombine.high %v20801_v6, %v21508_v2  ;;  %v3303_v38 = vcombine.low %v21474_v56, %v21544_v3 }
 0x4b6   : > { %6346 = vst.msk [vmem:[#allocation2 + $0x10] sm:$0xff] %vm6343_vm0, %v6281_v28  ;;  %6354 = vst.msk [vmem:[#allocation2 + $0x50] sm:$0xff] %vm6343_vm0, %v6289_v40  ;;  %v3304_v24 = vcombine.high %v21474_v56, %v21544_v3  ;;  %v2647_v11 = vrot.slane %v2639_v32, %v20815_v31  ;;  %v2654_v39 = vrot.slane %v2640_v23, %v20815_v31  ;;  %6666 = vrot.lane.b32.xlu0 %v21357_v47, %s19770_s10 }
 0x4b7   : > { %v2663_v20 = vrot.slane %v2655_v54, %v20815_v31  ;;  %v2670_v46 = vrot.slane %v2656_v15, %v20815_v31  ;;  %v3295_v6 = vrot.slane %v3287_v17, %v20815_v31  ;;  %v3302_v2 = vrot.slane %v3288_v61, %v20815_v31 }
 0x4b8   : > { %v3311_v42 = vrot.slane %v3303_v38, %v20815_v31  ;;  %v3318_v56 = vrot.slane %v3304_v24, %v20815_v31  ;;  %v21770_v32 = vpop.permute.xlu0 %1847  ;;  %v21776_v38 = vpop.permute.xlu1 %1753  ;;  %6732 = vrot.lane.b32.xlu1 %v20905_v34, %s19771_s6 }
 0x4b9   : > { %v2703_v3 = vcombine.low %v2647_v11, %v2663_v20  ;;  %v2704_v26 = vcombine.high %v2647_v11, %v2663_v20  ;;  %v2719_v28 = vcombine.low %v2654_v39, %v2670_v46  ;;  %v2720_v14 = vcombine.high %v2654_v39, %v2670_v46 }
 0x4ba   : > { %v3351_v54 = vcombine.low %v3295_v6, %v3311_v42  ;;  %v3352_v40 = vcombine.high %v3295_v6, %v3311_v42  ;;  %v3367_v18 = vcombine.low %v3302_v2, %v3318_v56  ;;  %v3368_v45 = vcombine.high %v3302_v2, %v3318_v56  ;;  %6682 = vrot.lane.b32.xlu0 %v21360_v60, %s19770_s10 }
 0x4bb   : > { %v2711_v23 = vrot.slane %v2703_v3, %v20818_v35  ;;  %v2718_v15 = vrot.slane %v2704_v26, %v20818_v35  ;;  %v2727_v17 = vrot.slane %v2719_v28, %v20818_v35  ;;  %v2734_v61 = vrot.slane %v2720_v14, %v20818_v35 }
 0x4bc   : > { %v3359_v24 = vrot.slane %v3351_v54, %v20818_v35  ;;  %v3366_v11 = vrot.slane %v3352_v40, %v20818_v35  ;;  %v3375_v39 = vrot.slane %v3367_v18, %v20818_v35  ;;  %v3382_v20 = vrot.slane %v3368_v45, %v20818_v35  ;;  %v21786_v14 = vpop.permute.xlu0 %1895  ;;  %6764 = vrot.lane.b32.xlu1 %v20901_v33, %s19772_s3 }
 0x4bd   : > { %v17271_v46 = vcombine.low %v2711_v23, %v2718_v15  ;;  %v17273_v6 = vcombine.high %v2711_v23, %v2718_v15  ;;  %v17275_v2 = vcombine.low %v2727_v17, %v2734_v61  ;;  %v17277_v42 = vcombine.high %v2727_v17, %v2734_v61  ;;  %v21792_v23 = vpop.permute.xlu1 %1801 }
 0x4be   : > { %v17310_v56 = vcombine.low %v3359_v24, %v3366_v11  ;;  %v17312_v3 = vcombine.high %v3359_v24, %v3366_v11  ;;  %v17314_v26 = vcombine.low %v3375_v39, %v3382_v20  ;;  %v17316_v28 = vcombine.high %v3375_v39, %v3382_v20  ;;  %6714 = vrot.lane.b32.xlu0 %v21357_v47, %s19771_s6 }
 0x4bf   : > { %v4798_v54 = vrot.slane %v17271_v46, %v20815_v31  ;;  %v4814_v40 = vrot.slane %v17273_v6, %v20815_v31  ;;  %v4830_v18 = vrot.slane %v17275_v2, %v20815_v31  ;;  %v4846_v45 = vrot.slane %v17277_v42, %v20815_v31 }
 0x4c0   : > { %v5471_v15 = vrot.slane %v17310_v56, %v20815_v31  ;;  %v5487_v17 = vrot.slane %v17312_v3, %v20815_v31  ;;  %v5503_v61 = vrot.slane %v17314_v26, %v20815_v31  ;;  %v5519_v24 = vrot.slane %v17316_v28, %v20815_v31  ;;  %v21802_v36 = vpop.permute.xlu0 %1619  ;;  %6472 = vrot.lane.b32.xlu1 %v20917_v29, %s19767_s18 }
 0x4c1   : > { %v4863_v11 = vcombine.low %v4798_v54, %v4814_v40  ;;  %v4864_v39 = vcombine.high %v4798_v54, %v4814_v40  ;;  %v4895_v20 = vcombine.low %v4830_v18, %v4846_v45  ;;  %v4896_v46 = vcombine.high %v4830_v18, %v4846_v45  ;;  %v21808_v54 = vpop.permute.xlu1 %1849 }
 0x4c2   : > { %v5527_v6 = vcombine.low %v5471_v15, %v5487_v17  ;;  %v5528_v2 = vcombine.high %v5471_v15, %v5487_v17  ;;  %v5559_v42 = vcombine.low %v5503_v61, %v5519_v24  ;;  %v5560_v56 = vcombine.high %v5503_v61, %v5519_v24  ;;  %6730 = vrot.lane.b32.xlu0 %v21360_v60, %s19771_s6 }
 0x4c3   : > { %v4871_v3 = vrot.slane %v4863_v11, %v20818_v35  ;;  %v4878_v26 = vrot.slane %v4864_v39, %v20818_v35  ;;  %v4903_v28 = vrot.slane %v4895_v20, %v20818_v35  ;;  %v4910_v34 = vrot.slane %v4896_v46, %v20818_v35 }
 0x4c4   : > { %v4781_v40 = vcombine.low %v21713_v1, %v21716_v55  ;;  %v4782_v18 = vcombine.high %v21713_v1, %v21716_v55  ;;  %v21815_v45 = vrot.slane %v5527_v6, %v20818_v35  ;;  %v21818_v15 = vrot.slane %v5559_v42, %v20818_v35  ;;  %v21834_v46 = vpop.permute.xlu0 %1667  ;;  %6488 = vrot.lane.b32.xlu1 %v20676_v22, %s19767_s18 }
 0x4c5   : > { %v4915_v17 = vcombine.low %v4871_v3, %v4903_v28  ;;  %v4916_v61 = vcombine.high %v4871_v3, %v4903_v28  ;;  %v4917_v24 = vcombine.low %v4878_v26, %v4910_v34  ;;  %v4918_v11 = vcombine.high %v4878_v26, %v4910_v34 }
 0x4c6   : > { %v21825_v39 = vrot.slane %v5528_v2, %v20818_v35  ;;  %v21828_v1 = vrot.slane %v5560_v56, %v20818_v35  ;;  %v26713_v34 = vcombine.low %v21703_v21, %v21706_v44  ;;  %v26714_v42 = vcombine.high %v21703_v21, %v21706_v44  ;;  %v21842_v56 = vpop.permute.xlu1 %1897  ;;  %6762 = vrot.lane.b32.xlu0 %v21357_v47, %s19772_s3 }
 0x4c7   : > { %v6329_v3 = vpack.c.bf16 %v4917_v24, %v4781_v40  ;;  %v6337_v26 = vpack.c.bf16 %v4918_v11, %v4782_v18  ;;  %v3423_v28 = vcombine.low %v20812_v10, %v21558_v5  ;;  %v3424_v20 = vcombine.high %v20812_v10, %v21558_v5 }
 0x4c8   : > { %v6313_v6 = vpack.c.bf16 %v4915_v17, %v26713_v34  ;;  %v6321_v2 = vpack.c.bf16 %v4916_v61, %v26714_v42  ;;  %v3439_v55 = vcombine.low %v21542_v53, %v21574_v62  ;;  %v3440_v17 = vcombine.high %v21542_v53, %v21574_v62  ;;  %v21872_v61 = vpop.permute.xlu0 %1715  ;;  %6520 = vrot.lane.b32.xlu1 %v20917_v29, %s19766_s8 }
 0x4c9   : > { %6394 = vst.msk [vmem:[#allocation2 + $0x190] sm:$0xff] %vm6343_vm0, %v6329_v3  ;;  %6402 = vst.msk [vmem:[#allocation2 + $0x1d0] sm:$0xff] %vm6343_vm0, %v6337_v26  ;;  %v3319_v10 = vcombine.low %v21560_v4, %v21598_v43  ;;  %v3320_v5 = vcombine.high %v21560_v4, %v21598_v43  ;;  %v3335_v53 = vcombine.low %v21576_v30, %v21628_v16 }
 0x4ca   : > { %6378 = vst.msk [vmem:[#allocation2 + $0x110] sm:$0xff] %vm6343_vm0, %v6313_v6  ;;  %6386 = vst.msk [vmem:[#allocation2 + $0x150] sm:$0xff] %vm6343_vm0, %v6321_v2  ;;  %v3336_v62 = vcombine.high %v21576_v30, %v21628_v16  ;;  %v3431_v21 = vrot.slane %v3423_v28, %v20815_v31  ;;  %v3438_v44 = vrot.slane %v3424_v20, %v20815_v31  ;;  %v21878_v16 = vpop.permute.xlu1 %1621  ;;  %6778 = vrot.lane.b32.xlu0 %v21360_v60, %s19772_s3 }
 0x4cb   : > { %v3447_v40 = vrot.slane %v3439_v55, %v20815_v31  ;;  %v3454_v18 = vrot.slane %v3440_v17, %v20815_v31  ;;  %v3327_v4 = vrot.slane %v3319_v10, %v20815_v31  ;;  %v3334_v43 = vrot.slane %v3320_v5, %v20815_v31 }
 0x4cc   : > { %v3343_v24 = vrot.slane %v3335_v53, %v20815_v31  ;;  %v3350_v30 = vrot.slane %v3336_v62, %v20815_v31  ;;  %v21888_v5 = vpop.permute.xlu0 %1763  ;;  %6536 = vrot.lane.b32.xlu1 %v20676_v22, %s19766_s8 }
 0x4cd   : > { %v3487_v11 = vcombine.low %v3431_v21, %v3447_v40  ;;  %v3488_v34 = vcombine.high %v3431_v21, %v3447_v40  ;;  %v3503_v6 = vcombine.low %v3438_v44, %v3454_v18  ;;  %v3504_v20 = vcombine.high %v3438_v44, %v3454_v18 }
 0x4ce   : > { %v3383_v55 = vcombine.low %v3327_v4, %v3343_v24  ;;  %v3384_v42 = vcombine.high %v3327_v4, %v3343_v24  ;;  %v3399_v2 = vcombine.low %v3334_v43, %v3350_v30  ;;  %v3400_v3 = vcombine.high %v3334_v43, %v3350_v30  ;;  %v21894_v40 = vpop.permute.xlu1 %1669  ;;  %6532 = vrot.lane.b32.xlu0 %v20695_v13, %s19766_s8 }
 0x4cf   : > { %v3495_v26 = vrot.slane %v3487_v11, %v20818_v35  ;;  %v3502_v28 = vrot.slane %v3488_v34, %v20818_v35  ;;  %v3511_v17 = vrot.slane %v3503_v6, %v20818_v35  ;;  %v3518_v10 = vrot.slane %v3504_v20, %v20818_v35 }
 0x4d0   : > { %v3391_v53 = vrot.slane %v3383_v55, %v20818_v35  ;;  %v3398_v62 = vrot.slane %v3384_v42, %v20818_v35  ;;  %v3407_v21 = vrot.slane %v3399_v2, %v20818_v35  ;;  %v3414_v44 = vrot.slane %v3400_v3, %v20818_v35  ;;  %v21904_v3 = vpop.permute.xlu0 %1811  ;;  %6568 = vrot.lane.b32.xlu1 %v20917_v29, %s19768_s17 }
 0x4d1   : > { %v17318_v18 = vcombine.low %v3495_v26, %v3502_v28  ;;  %v17320_v4 = vcombine.high %v3495_v26, %v3502_v28  ;;  %v17322_v43 = vcombine.low %v3511_v17, %v3518_v10  ;;  %v17324_v24 = vcombine.high %v3511_v17, %v3518_v10 }
 0x4d2   : > { %v17311_v30 = vcombine.low %v3391_v53, %v3398_v62  ;;  %v17313_v11 = vcombine.high %v3391_v53, %v3398_v62  ;;  %v17315_v34 = vcombine.low %v3407_v21, %v3414_v44  ;;  %v17317_v6 = vcombine.high %v3407_v21, %v3414_v44  ;;  %v21910_v53 = vpop.permute.xlu1 %1717  ;;  %6582 = vrot.lane.b32.xlu0 %v20707_v8, %s19768_s17 }
 0x4d3   : > { %v5607_v20 = vrot.slane %v17318_v18, %v20815_v31  ;;  %v5623_v55 = vrot.slane %v17320_v4, %v20815_v31  ;;  %v5639_v42 = vrot.slane %v17322_v43, %v20815_v31  ;;  %v5655_v2 = vrot.slane %v17324_v24, %v20815_v31 }
 0x4d4   : > { %v5478_v26 = vrot.slane %v17311_v30, %v20815_v31  ;;  %v5494_v28 = vrot.slane %v17313_v11, %v20815_v31  ;;  %v5510_v17 = vrot.slane %v17315_v34, %v20815_v31  ;;  %v5526_v10 = vrot.slane %v17317_v6, %v20815_v31  ;;  %6584 = vrot.lane.b32.xlu1 %v20676_v22, %s19768_s17 }
 0x4d5   : > { %v5663_v62 = vcombine.low %v5607_v20, %v5623_v55  ;;  %v5664_v21 = vcombine.high %v5607_v20, %v5623_v55  ;;  %v5695_v44 = vcombine.low %v5639_v42, %v5655_v2  ;;  %v5696_v18 = vcombine.high %v5639_v42, %v5655_v2  ;;  %v21920_v20 = vpop.permute.xlu0 %1859 }
 0x4d6   : > { %v5543_v4 = vcombine.low %v5478_v26, %v5494_v28  ;;  %v5544_v43 = vcombine.high %v5478_v26, %v5494_v28  ;;  %v5575_v24 = vcombine.low %v5510_v17, %v5526_v10  ;;  %v5576_v33 = vcombine.high %v5510_v17, %v5526_v10  ;;  %v21932_v28 = vpop.permute.xlu1 %1765  ;;  %6598 = vrot.lane.b32.xlu0 %v20710_v25, %s19768_s17 }
 0x4d7   : > { %v5671_v30 = vrot.slane %v5663_v62, %v20818_v35  ;;  %v5678_v11 = vrot.slane %v5664_v21, %v20818_v35  ;;  %v5703_v34 = vrot.slane %v5695_v44, %v20818_v35  ;;  %v5710_v6 = vrot.slane %v5696_v18, %v20818_v35 }
 0x4d8   : > { %v5593_v55 = vcombine.low %v21825_v39, %v21828_v1  ;;  %v5594_v42 = vcombine.high %v21825_v39, %v21828_v1  ;;  %v21927_v2 = vrot.slane %v5543_v4, %v20818_v35  ;;  %v21930_v26 = vrot.slane %v5575_v24, %v20818_v35  ;;  %6616 = vrot.lane.b32.xlu1 %v20917_v29, %s19769_s25 }
 0x4d9   : > { %v5727_v17 = vcombine.low %v5671_v30, %v5703_v34  ;;  %v5728_v10 = vcombine.high %v5671_v30, %v5703_v34  ;;  %v5729_v62 = vcombine.low %v5678_v11, %v5710_v6  ;;  %v5730_v21 = vcombine.high %v5678_v11, %v5710_v6  ;;  %v21954_v34 = vpop.permute.xlu0 %1907 }
 0x4da   : > { %v21937_v44 = vrot.slane %v5544_v43, %v20818_v35  ;;  %v21940_v39 = vrot.slane %v5576_v33, %v20818_v35  ;;  %v26715_v4 = vcombine.low %v21815_v45, %v21818_v15  ;;  %v26716_v43 = vcombine.high %v21815_v45, %v21818_v15  ;;  %6630 = vrot.lane.b32.xlu0 %v20707_v8, %s19769_s25 }
 0x4db   : > { %v6300_v11 = vpack.c.bf16 %v5729_v62, %v5593_v55  ;;  %v6308_v33 = vpack.c.bf16 %v5730_v21, %v5594_v42  ;;  %v3455_v6 = vcombine.low %v21596_v52, %v21658_v58  ;;  %v3456_v18 = vcombine.high %v21596_v52, %v21658_v58 }
 0x4dc   : > { %v6284_v24 = vpack.c.bf16 %v5727_v17, %v26715_v4  ;;  %v6292_v30 = vpack.c.bf16 %v5728_v10, %v26716_v43  ;;  %v3471_v1 = vcombine.low %v21642_v41, %v21674_v50  ;;  %v3472_v17 = vcombine.high %v21642_v41, %v21674_v50  ;;  %v21964_v4 = vpop.permute.xlu1 %1813  ;;  %6632 = vrot.lane.b32.xlu1 %v20676_v22, %s19769_s25 }
 0x4dd   : > { %6365 = vst.msk [vmem:[#allocation2 + $0xa8] sm:$0xff] %vm6343_vm0, %v6300_v11  ;;  %6373 = vst.msk [vmem:[#allocation2 + $0xe8] sm:$0xff] %vm6343_vm0, %v6308_v33  ;;  %v3015_v45 = vcombine.low %v20860_v27, %v21672_v19  ;;  %v3016_v52 = vcombine.high %v20860_v27, %v21672_v19  ;;  %v3031_v58 = vcombine.low %v21656_v59, %v21688_v12  ;;  %v21990_v10 = vpop.permute.xlu0 %1615 }
 0x4de   : > { %6349 = vst.msk [vmem:[#allocation2 + $0x28] sm:$0xff] %vm6343_vm0, %v6284_v24  ;;  %6357 = vst.msk [vmem:[#allocation2 + $0x68] sm:$0xff] %vm6343_vm0, %v6292_v30  ;;  %v3032_v41 = vcombine.high %v21656_v59, %v21688_v12  ;;  %v3463_v50 = vrot.slane %v3455_v6, %v20815_v31  ;;  %v3470_v15 = vrot.slane %v3456_v18, %v20815_v31  ;;  %6646 = vrot.lane.b32.xlu0 %v20710_v25, %s19769_s25 }
 0x4df   : > { %v3479_v55 = vrot.slane %v3471_v1, %v20815_v31  ;;  %v3486_v42 = vrot.slane %v3472_v17, %v20815_v31  ;;  %v3023_v27 = vrot.slane %v3015_v45, %v20815_v31  ;;  %v3030_v19 = vrot.slane %v3016_v52, %v20815_v31  ;;  %26717 = vst [vmem:[#allocation71_spill] sm:$0xff] %v21990_v10 }
 0x4e0   : > { %v3039_v59 = vrot.slane %v3031_v58, %v20815_v31  ;;  %v3046_v12 = vrot.slane %v3032_v41, %v20815_v31  ;;  %v21992_v1 = vpop.permute.xlu1 %1861  ;;  %6664 = vrot.lane.b32.xlu1 %v20917_v29, %s19770_s10 }
 0x4e1   : > { %v3519_v62 = vcombine.low %v3463_v50, %v3479_v55  ;;  %v3520_v21 = vcombine.high %v3463_v50, %v3479_v55  ;;  %v3535_v18 = vcombine.low %v3470_v15, %v3486_v42  ;;  %v3536_v24 = vcombine.high %v3470_v15, %v3486_v42  ;;  %v22006_v55 = vpop.permute.xlu0 %1663 }
 0x4e2   : > { %v3079_v43 = vcombine.low %v3023_v27, %v3039_v59  ;;  %v3080_v30 = vcombine.high %v3023_v27, %v3039_v59  ;;  %v3095_v11 = vcombine.low %v3030_v19, %v3046_v12  ;;  %v3096_v33 = vcombine.high %v3030_v19, %v3046_v12  ;;  %26718 = vst [vmem:[#allocation72_spill] sm:$0xff] %v22006_v55 }
 0x4e3   : > { %v3527_v6 = vrot.slane %v3519_v62, %v20818_v35  ;;  %v3534_v17 = vrot.slane %v3520_v21, %v20818_v35  ;;  %v3543_v45 = vrot.slane %v3535_v18, %v20818_v35  ;;  %v3550_v52 = vrot.slane %v3536_v24, %v20818_v35  ;;  %6678 = vrot.lane.b32.xlu0 %v20707_v8, %s19770_s10 }
 0x4e4   : > { %v3087_v58 = vrot.slane %v3079_v43, %v20818_v35  ;;  %v3094_v41 = vrot.slane %v3080_v30, %v20818_v35  ;;  %v3103_v50 = vrot.slane %v3095_v11, %v20818_v35  ;;  %v3110_v15 = vrot.slane %v3096_v33, %v20818_v35  ;;  %v22008_v12 = vpop.permute.xlu1 %1909  ;;  %6680 = vrot.lane.b32.xlu1 %v20676_v22, %s19770_s10 }
 0x4e5   : > { %v17319_v42 = vcombine.low %v3527_v6, %v3534_v17  ;;  %v17321_v27 = vcombine.high %v3527_v6, %v3534_v17  ;;  %v17323_v19 = vcombine.low %v3543_v45, %v3550_v52  ;;  %v17325_v59 = vcombine.high %v3543_v45, %v3550_v52 }
 0x4e6   : > { %v17294_v62 = vcombine.low %v3087_v58, %v3094_v41  ;;  %v17296_v21 = vcombine.high %v3087_v58, %v3094_v41  ;;  %v17298_v18 = vcombine.low %v3103_v50, %v3110_v15  ;;  %v17300_v24 = vcombine.high %v3103_v50, %v3110_v15  ;;  %v22022_v58 = vpop.permute.xlu0 %1711 }
 0x4e7   : > { %v5614_v43 = vrot.slane %v17319_v42, %v20815_v31  ;;  %v5630_v30 = vrot.slane %v17321_v27, %v20815_v31  ;;  %v5646_v11 = vrot.slane %v17323_v19, %v20815_v31  ;;  %v5662_v33 = vrot.slane %v17325_v59, %v20815_v31  ;;  %6694 = vrot.lane.b32.xlu0 %v20710_v25, %s19770_s10 }
 0x4e8   : > { %v5199_v6 = vrot.slane %v17294_v62, %v20815_v31  ;;  %v5215_v17 = vrot.slane %v17296_v21, %v20815_v31  ;;  %v5231_v45 = vrot.slane %v17298_v18, %v20815_v31  ;;  %v5247_v52 = vrot.slane %v17300_v24, %v20815_v31  ;;  %v22024_v27 = vpop.permute.xlu1 %1617  ;;  %6712 = vrot.lane.b32.xlu1 %v20917_v29, %s19771_s6 }
 0x4e9   : > { %v5679_v41 = vcombine.low %v5614_v43, %v5630_v30  ;;  %v5680_v50 = vcombine.high %v5614_v43, %v5630_v30  ;;  %v5711_v15 = vcombine.low %v5646_v11, %v5662_v33  ;;  %v5712_v42 = vcombine.high %v5646_v11, %v5662_v33 }
 0x4ea   : > { %v5255_v19 = vcombine.low %v5199_v6, %v5215_v17  ;;  %v5256_v59 = vcombine.high %v5199_v6, %v5215_v17  ;;  %v5287_v10 = vcombine.low %v5231_v45, %v5247_v52  ;;  %v5288_v55 = vcombine.high %v5231_v45, %v5247_v52  ;;  %v22044_v6 = vpop.permute.xlu0 %1759 }
 0x4eb   : > { %v5687_v62 = vrot.slane %v5679_v41, %v20818_v35  ;;  %v5694_v21 = vrot.slane %v5680_v50, %v20818_v35  ;;  %v5719_v18 = vrot.slane %v5711_v15, %v20818_v35  ;;  %v5726_v24 = vrot.slane %v5712_v42, %v20818_v35  ;;  %6726 = vrot.lane.b32.xlu0 %v20707_v8, %s19771_s6 }
 0x4ec   : > { %v5597_v43 = vcombine.low %v21937_v44, %v21940_v39  ;;  %v5598_v30 = vcombine.high %v21937_v44, %v21940_v39  ;;  %v22039_v11 = vrot.slane %v5255_v19, %v20818_v35  ;;  %v22042_v33 = vrot.slane %v5287_v10, %v20818_v35  ;;  %v22046_v50 = vpop.permute.xlu1 %1665  ;;  %6728 = vrot.lane.b32.xlu1 %v20676_v22, %s19771_s6 }
 0x4ed   : > { %v5731_v17 = vcombine.low %v5687_v62, %v5719_v18  ;;  %v5732_v45 = vcombine.high %v5687_v62, %v5719_v18  ;;  %v5733_v52 = vcombine.low %v5694_v21, %v5726_v24  ;;  %v5734_v41 = vcombine.high %v5694_v21, %v5726_v24 }
 0x4ee   : > { %v22049_v15 = vrot.slane %v5256_v59, %v20818_v35  ;;  %v22052_v42 = vrot.slane %v5288_v55, %v20818_v35  ;;  %v26719_v10 = vcombine.low %v21927_v2, %v21930_v26  ;;  %v26720_v59 = vcombine.high %v21927_v2, %v21930_v26 }
 0x4ef   : > { %v6332_v21 = vpack.c.bf16 %v5733_v52, %v5597_v43  ;;  %v6340_v55 = vpack.c.bf16 %v5734_v41, %v5598_v30  ;;  %v3151_v18 = vcombine.low %v20863_v7, %v21722_v57  ;;  %v3152_v24 = vcombine.high %v20863_v7, %v21722_v57  ;;  %6742 = vrot.lane.b32.xlu0 %v20710_v25, %s19771_s6 }
 0x4f0   : > { %v6316_v19 = vpack.c.bf16 %v5731_v17, %v26719_v10  ;;  %v6324_v62 = vpack.c.bf16 %v5732_v45, %v26720_v59  ;;  %v3167_v39 = vcombine.low %v21690_v51, %v21760_v37  ;;  %v3168_v17 = vcombine.high %v21690_v51, %v21760_v37  ;;  %v22076_v10 = vpop.permute.xlu0 %1807  ;;  %v22090_v37 = vpop.permute.xlu1 %1713  ;;  %6760 = vrot.lane.b32.xlu1 %v20917_v29, %s19772_s3 }
 0x4f1   : > { %6397 = vst.msk [vmem:[#allocation2 + $0x1a8] sm:$0xff] %vm6343_vm0, %v6332_v21  ;;  %6405 = vst.msk [vmem:[#allocation2 + $0x1e8] sm:$0xff] %vm6343_vm0, %v6340_v55  ;;  %v3047_v2 = vcombine.low %v21710_v0, %v21770_v32  ;;  %v3048_v7 = vcombine.high %v21710_v0, %v21770_v32  ;;  %v3063_v57 = vcombine.low %v21754_v63, %v21786_v14 }
 0x4f2   : > { %6381 = vst.msk [vmem:[#allocation2 + $0x128] sm:$0xff] %vm6343_vm0, %v6316_v19  ;;  %6389 = vst.msk [vmem:[#allocation2 + $0x168] sm:$0xff] %vm6343_vm0, %v6324_v62  ;;  %v3064_v51 = vcombine.high %v21754_v63, %v21786_v14  ;;  %v3159_v26 = vrot.slane %v3151_v18, %v20815_v31  ;;  %v3166_v43 = vrot.slane %v3152_v24, %v20815_v31 }
 0x4f3   : > { %v3175_v30 = vrot.slane %v3167_v39, %v20815_v31  ;;  %v3182_v45 = vrot.slane %v3168_v17, %v20815_v31  ;;  %v3055_v0 = vrot.slane %v3047_v2, %v20815_v31  ;;  %v3062_v32 = vrot.slane %v3048_v7, %v20815_v31  ;;  %6774 = vrot.lane.b32.xlu0 %v20707_v8, %s19772_s3 }
 0x4f4   : > { %v3071_v52 = vrot.slane %v3063_v57, %v20815_v31  ;;  %v3078_v63 = vrot.slane %v3064_v51, %v20815_v31  ;;  %v22104_v59 = vpop.permute.xlu0 %1855  ;;  %v22106_v24 = vpop.permute.xlu1 %1761  ;;  %6776 = vrot.lane.b32.xlu1 %v20676_v22, %s19772_s3 }
 0x4f5   : > { %v3215_v14 = vcombine.low %v3159_v26, %v3175_v30  ;;  %v3216_v41 = vcombine.high %v3159_v26, %v3175_v30  ;;  %v3231_v19 = vcombine.low %v3166_v43, %v3182_v45  ;;  %v3232_v39 = vcombine.high %v3166_v43, %v3182_v45 }
 0x4f6   : > { %v3111_v62 = vcombine.low %v3055_v0, %v3071_v52  ;;  %v3112_v21 = vcombine.high %v3055_v0, %v3071_v52  ;;  %v3127_v55 = vcombine.low %v3062_v32, %v3078_v63  ;;  %v3128_v18 = vcombine.high %v3062_v32, %v3078_v63 }
 0x4f7   : > { %v3223_v17 = vrot.slane %v3215_v14, %v20818_v35  ;;  %v3230_v2 = vrot.slane %v3216_v41, %v20818_v35  ;;  %v3239_v7 = vrot.slane %v3231_v19, %v20818_v35  ;;  %v3246_v57 = vrot.slane %v3232_v39, %v20818_v35  ;;  %6782 = vrot.lane.b32.xlu0 %v20932_v49, %s19772_s3 }
 0x4f8   : > { %v3119_v51 = vrot.slane %v3111_v62, %v20818_v35  ;;  %v3126_v26 = vrot.slane %v3112_v21, %v20818_v35  ;;  %v3135_v43 = vrot.slane %v3127_v55, %v20818_v35  ;;  %v3142_v30 = vrot.slane %v3128_v18, %v20818_v35  ;;  %v22120_v39 = vpop.permute.xlu1 %1809  ;;  %v22122_v62 = vpop.permute.xlu0 %1903  ;;  %6478 = vrot.lane.b32.xlu1 %v20921_v48, %s19767_s18 }
 0x4f9   : > { %v17302_v45 = vcombine.low %v3223_v17, %v3230_v2  ;;  %v17304_v0 = vcombine.high %v3223_v17, %v3230_v2  ;;  %v17306_v32 = vcombine.low %v3239_v7, %v3246_v57  ;;  %v17308_v52 = vcombine.high %v3239_v7, %v3246_v57 }
 0x4fa   : > { %v17295_v63 = vcombine.low %v3119_v51, %v3126_v26  ;;  %v17297_v14 = vcombine.high %v3119_v51, %v3126_v26  ;;  %v17299_v41 = vcombine.low %v3135_v43, %v3142_v30  ;;  %v17301_v19 = vcombine.high %v3135_v43, %v3142_v30 }
 0x4fb   : > { %v5335_v21 = vrot.slane %v17302_v45, %v20815_v31  ;;  %v5351_v55 = vrot.slane %v17304_v0, %v20815_v31  ;;  %v5367_v18 = vrot.slane %v17306_v32, %v20815_v31  ;;  %v5383_v44 = vrot.slane %v17308_v52, %v20815_v31  ;;  %6578 = vrot.lane.b32.xlu0 %v20713_v9, %s19768_s17 }
 0x4fc   : > { %v5206_v17 = vrot.slane %v17295_v63, %v20815_v31  ;;  %v5222_v2 = vrot.slane %v17297_v14, %v20815_v31  ;;  %v5238_v7 = vrot.slane %v17299_v41, %v20815_v31  ;;  %v5254_v57 = vrot.slane %v17301_v19, %v20815_v31  ;;  %v22136_v25 = vpop.permute.xlu1 %1857  ;;  %6494 = vrot.lane.b32.xlu1 %v20932_v49, %s19767_s18 }
 0x4fd   : > { %v5391_v51 = vcombine.low %v5335_v21, %v5351_v55  ;;  %v5392_v26 = vcombine.high %v5335_v21, %v5351_v55  ;;  %v5423_v43 = vcombine.low %v5367_v18, %v5383_v44  ;;  %v5424_v30 = vcombine.high %v5367_v18, %v5383_v44 }
 0x4fe   : > { %v5271_v45 = vcombine.low %v5206_v17, %v5222_v2  ;;  %v5272_v0 = vcombine.high %v5206_v17, %v5222_v2  ;;  %v5303_v32 = vcombine.low %v5238_v7, %v5254_v57  ;;  %v5304_v52 = vcombine.high %v5238_v7, %v5254_v57  ;;  %v22154_v17 = vpop.permute.xlu0 %6574 }
 0x4ff   : > { %v5399_v63 = vrot.slane %v5391_v51, %v20818_v35  ;;  %v5406_v14 = vrot.slane %v5392_v26, %v20818_v35  ;;  %v5431_v41 = vrot.slane %v5423_v43, %v20818_v35  ;;  %v5438_v19 = vrot.slane %v5424_v30, %v20818_v35  ;;  %26721 = vst [vmem:[#allocation73_spill] sm:$0xff] %v22154_v17 }
 0x500   : > { %v5321_v44 = vcombine.low %v22049_v15, %v22052_v42  ;;  %v5322_v21 = vcombine.high %v22049_v15, %v22052_v42  ;;  %v22149_v55 = vrot.slane %v5271_v45, %v20818_v35  ;;  %v22152_v18 = vrot.slane %v5303_v32, %v20818_v35  ;;  %v22168_v30 = vpop.permute.xlu1 %1905  ;;  %6526 = vrot.lane.b32.xlu1 %v20921_v48, %s19766_s8 }
 0x501   : > { %v5455_v2 = vcombine.low %v5399_v63, %v5431_v41  ;;  %v5456_v7 = vcombine.high %v5399_v63, %v5431_v41  ;;  %v5457_v57 = vcombine.low %v5406_v14, %v5438_v19  ;;  %v5458_v51 = vcombine.high %v5406_v14, %v5438_v19 }
 0x502   : > { %v22159_v26 = vrot.slane %v5272_v0, %v20818_v35  ;;  %v22162_v15 = vrot.slane %v5304_v52, %v20818_v35  ;;  %v26722_v45 = vcombine.low %v22039_v11, %v22042_v33  ;;  %v26723_v63 = vcombine.high %v22039_v11, %v22042_v33  ;;  %v26724_v11 = vld [vmem:[#allocation58_spill] sm:$0xff] }
 0x503   : > { %v6299_v14 = vpack.c.bf16 %v5457_v57, %v5321_v44  ;;  %v6307_v41 = vpack.c.bf16 %v5458_v51, %v5322_v21  ;;  %v3183_v52 = vcombine.low %v21776_v38, %v21808_v54  ;;  %v3184_v19 = vcombine.high %v21776_v38, %v21808_v54  ;;  %v22204_v57 = vpop.permute.xlu0 %6590 }
 0x504   : > { %v6283_v32 = vpack.c.bf16 %v5455_v2, %v26722_v45  ;;  %v6291_v0 = vpack.c.bf16 %v5456_v7, %v26723_v63  ;;  %v3199_v43 = vcombine.low %v21792_v23, %v21842_v56  ;;  %v3200_v2 = vcombine.high %v21792_v23, %v21842_v56  ;;  %26725 = vst [vmem:[#allocation58_spill] sm:$0xff] %v22204_v57  ;;  %v22206_v51 = vpop.permute.xlu1 %6476 }
 0x505   : > { %6364 = vst.msk [vmem:[#allocation2 + $0xa0] sm:$0xff] %vm6343_vm0, %v6299_v14  ;;  %6372 = vst.msk [vmem:[#allocation2 + $0xe0] sm:$0xff] %vm6343_vm0, %v6307_v41  ;;  %v3831_v38 = vcombine.low %v26724_v11, %v21834_v46  ;;  %v3832_v54 = vcombine.high %v26724_v11, %v21834_v46  ;;  %v3847_v23 = vcombine.low %v21802_v36, %v21872_v61  ;;  %6542 = vrot.lane.b32.xlu1 %v20932_v49, %s19766_s8 }
 0x506   : > { %6348 = vst.msk [vmem:[#allocation2 + $0x20] sm:$0xff] %vm6343_vm0, %v6283_v32  ;;  %6356 = vst.msk [vmem:[#allocation2 + $0x60] sm:$0xff] %vm6343_vm0, %v6291_v0  ;;  %v3848_v56 = vcombine.high %v21802_v36, %v21872_v61  ;;  %v3191_v33 = vrot.slane %v3183_v52, %v20815_v31  ;;  %v3198_v44 = vrot.slane %v3184_v19, %v20815_v31  ;;  %v26726_v61 = vld [vmem:[#allocation44_spill] sm:$0xff] }
 0x507   : > { %v3207_v21 = vrot.slane %v3199_v43, %v20815_v31  ;;  %v3214_v7 = vrot.slane %v3200_v2, %v20815_v31  ;;  %v3839_v46 = vrot.slane %v3831_v38, %v20815_v31  ;;  %v3846_v45 = vrot.slane %v3832_v54, %v20815_v31  ;;  %6594 = vrot.lane.b32.xlu0 %v26726_v61, %s19768_s17 }
 0x508   : > { %v3855_v32 = vrot.slane %v3847_v23, %v20815_v31  ;;  %v3862_v36 = vrot.slane %v3848_v56, %v20815_v31  ;;  %v22220_v56 = vpop.permute.xlu1 %6492 }
 0x509   : > { %v3247_v63 = vcombine.low %v3191_v33, %v3207_v21  ;;  %v3248_v0 = vcombine.high %v3191_v33, %v3207_v21  ;;  %v3263_v43 = vcombine.low %v3198_v44, %v3214_v7  ;;  %v3264_v14 = vcombine.high %v3198_v44, %v3214_v7  ;;  %6474 = vrot.lane.b32.xlu1 %v21357_v47, %s19767_s18 }
 0x50a   : > { %v3895_v41 = vcombine.low %v3839_v46, %v3855_v32  ;;  %v3896_v52 = vcombine.high %v3839_v46, %v3855_v32  ;;  %v3911_v19 = vcombine.low %v3846_v45, %v3862_v36  ;;  %v3912_v2 = vcombine.high %v3846_v45, %v3862_v36 }
 0x50b   : > { %v3255_v11 = vrot.slane %v3247_v63, %v20818_v35  ;;  %v3262_v38 = vrot.slane %v3248_v0, %v20818_v35  ;;  %v3271_v54 = vrot.slane %v3263_v43, %v20818_v35  ;;  %v3278_v23 = vrot.slane %v3264_v14, %v20818_v35  ;;  %6626 = vrot.lane.b32.xlu0 %v20713_v9, %s19769_s25  ;;  %v22228_v63 = vpop.permute.xlu0 %6622 }
 0x50c   : > { %v3903_v33 = vrot.slane %v3895_v41, %v20818_v35  ;;  %v3910_v44 = vrot.slane %v3896_v52, %v20818_v35  ;;  %v3919_v21 = vrot.slane %v3911_v19, %v20818_v35  ;;  %v3926_v7 = vrot.slane %v3912_v2, %v20818_v35 }
 0x50d   : > { %v17303_v46 = vcombine.low %v3255_v11, %v3262_v38  ;;  %v17305_v45 = vcombine.high %v3255_v11, %v3262_v38  ;;  %v17307_v32 = vcombine.low %v3271_v54, %v3278_v23  ;;  %v17309_v36 = vcombine.high %v3271_v54, %v3278_v23  ;;  %v22236_v11 = vpop.permute.xlu1 %6524  ;;  %6490 = vrot.lane.b32.xlu1 %v21360_v60, %s19767_s18 }
 0x50e   : > { %v17342_v0 = vcombine.low %v3903_v33, %v3910_v44  ;;  %v17344_v43 = vcombine.high %v3903_v33, %v3910_v44  ;;  %v17346_v14 = vcombine.low %v3919_v21, %v3926_v7  ;;  %v17348_v41 = vcombine.high %v3919_v21, %v3926_v7 }
 0x50f   : > { %v5342_v52 = vrot.slane %v17303_v46, %v20815_v31  ;;  %v5358_v19 = vrot.slane %v17305_v45, %v20815_v31  ;;  %v5374_v2 = vrot.slane %v17307_v32, %v20815_v31  ;;  %v5390_v42 = vrot.slane %v17309_v36, %v20815_v31  ;;  %6642 = vrot.lane.b32.xlu0 %v26726_v61, %s19769_s25  ;;  %v22250_v57 = vpop.permute.xlu0 %6638 }
 0x510   : > { %v6015_v38 = vrot.slane %v17342_v0, %v20815_v31  ;;  %v6031_v54 = vrot.slane %v17344_v43, %v20815_v31  ;;  %v6047_v23 = vrot.slane %v17346_v14, %v20815_v31  ;;  %v6063_v33 = vrot.slane %v17348_v41, %v20815_v31 }
 0x511   : > { %v5407_v44 = vcombine.low %v5342_v52, %v5358_v19  ;;  %v5408_v21 = vcombine.high %v5342_v52, %v5358_v19  ;;  %v5439_v7 = vcombine.low %v5374_v2, %v5390_v42  ;;  %v5440_v46 = vcombine.high %v5374_v2, %v5390_v42  ;;  %v22252_v52 = vpop.permute.xlu1 %6540  ;;  %6522 = vrot.lane.b32.xlu1 %v21357_v47, %s19766_s8 }
 0x512   : > { %v6071_v45 = vcombine.low %v6015_v38, %v6031_v54  ;;  %v6072_v32 = vcombine.high %v6015_v38, %v6031_v54  ;;  %v6103_v36 = vcombine.low %v6047_v23, %v6063_v33  ;;  %v6104_v0 = vcombine.high %v6047_v23, %v6063_v33 }
 0x513   : > { %v5415_v43 = vrot.slane %v5407_v44, %v20818_v35  ;;  %v5422_v14 = vrot.slane %v5408_v21, %v20818_v35  ;;  %v5447_v41 = vrot.slane %v5439_v7, %v20818_v35  ;;  %v5454_v49 = vrot.slane %v5440_v46, %v20818_v35  ;;  %6674 = vrot.lane.b32.xlu0 %v20713_v9, %s19770_s10 }
 0x514   : > { %v5325_v42 = vcombine.low %v22159_v26, %v22162_v15  ;;  %v5326_v19 = vcombine.high %v22159_v26, %v22162_v15  ;;  %v22259_v2 = vrot.slane %v6071_v45, %v20818_v35  ;;  %v22262_v38 = vrot.slane %v6103_v36, %v20818_v35 }
 0x515   : > { %v5459_v54 = vcombine.low %v5415_v43, %v5447_v41  ;;  %v5460_v23 = vcombine.high %v5415_v43, %v5447_v41  ;;  %v5461_v33 = vcombine.low %v5422_v14, %v5454_v49  ;;  %v5462_v44 = vcombine.high %v5422_v14, %v5454_v49  ;;  %v22284_v14 = vpop.permute.xlu1 %6572  ;;  %6538 = vrot.lane.b32.xlu1 %v21360_v60, %s19766_s8 }
 0x516   : > { %v22269_v21 = vrot.slane %v6072_v32, %v20818_v35  ;;  %v22272_v26 = vrot.slane %v6104_v0, %v20818_v35  ;;  %v26727_v46 = vcombine.low %v22149_v55, %v22152_v18  ;;  %v26728_v49 = vcombine.high %v22149_v55, %v22152_v18  ;;  %v26729_v0 = vld [vmem:[#allocation62_spill] sm:$0xff]  ;;  %v22308_v18 = vpop.permute.xlu0 %6670 }
 0x517   : > { %v6331_v43 = vpack.c.bf16 %v5461_v33, %v5325_v42  ;;  %v6339_v32 = vpack.c.bf16 %v5462_v44, %v5326_v19  ;;  %v3967_v41 = vcombine.low %v26729_v0, %v21894_v40  ;;  %v3968_v15 = vcombine.high %v26729_v0, %v21894_v40  ;;  %6690 = vrot.lane.b32.xlu0 %v26726_v61, %s19770_s10 }
 0x518   : > { %v6315_v45 = vpack.c.bf16 %v5459_v54, %v26727_v46  ;;  %v6323_v36 = vpack.c.bf16 %v5460_v23, %v26728_v49  ;;  %v3983_v7 = vcombine.low %v21878_v16, %v21910_v53  ;;  %v3984_v54 = vcombine.high %v21878_v16, %v21910_v53 }
 0x519   : > { %6396 = vst.msk [vmem:[#allocation2 + $0x1a0] sm:$0xff] %vm6343_vm0, %v6331_v43  ;;  %6404 = vst.msk [vmem:[#allocation2 + $0x1e0] sm:$0xff] %vm6343_vm0, %v6339_v32  ;;  %v3863_v40 = vcombine.low %v21888_v5, %v21920_v20  ;;  %v3864_v55 = vcombine.high %v21888_v5, %v21920_v20  ;;  %v3879_v16 = vcombine.low %v21904_v3, %v21954_v34  ;;  %6484 = vrot.lane.b32.xlu1 %v20695_v13, %s19767_s18 }
 0x51a   : > { %6380 = vst.msk [vmem:[#allocation2 + $0x120] sm:$0xff] %vm6343_vm0, %v6315_v45  ;;  %6388 = vst.msk [vmem:[#allocation2 + $0x160] sm:$0xff] %vm6343_vm0, %v6323_v36  ;;  %v3880_v53 = vcombine.high %v21904_v3, %v21954_v34  ;;  %v3975_v42 = vrot.slane %v3967_v41, %v20815_v31  ;;  %v3982_v19 = vrot.slane %v3968_v15, %v20815_v31  ;;  %v22320_v34 = vpop.permute.xlu1 %6588 }
 0x51b   : > { %v3991_v23 = vrot.slane %v3983_v7, %v20815_v31  ;;  %v3998_v33 = vrot.slane %v3984_v54, %v20815_v31  ;;  %v3871_v5 = vrot.slane %v3863_v40, %v20815_v31  ;;  %v3878_v20 = vrot.slane %v3864_v55, %v20815_v31  ;;  %6722 = vrot.lane.b32.xlu0 %v20713_v9, %s19771_s6 }
 0x51c   : > { %v3887_v44 = vrot.slane %v3879_v16, %v20815_v31  ;;  %v3894_v3 = vrot.slane %v3880_v53, %v20815_v31  ;;  %v4016_v60 = vcombine.high %v21964_v4, %v22008_v12 }
 0x51d   : > { %v4031_v46 = vcombine.low %v3975_v42, %v3991_v23  ;;  %v4032_v45 = vcombine.high %v3975_v42, %v3991_v23  ;;  %v4047_v49 = vcombine.low %v3982_v19, %v3998_v33  ;;  %v4048_v36 = vcombine.high %v3982_v19, %v3998_v33  ;;  %v22334_v19 = vpop.permute.xlu0 %6686 }
 0x51e   : > { %v3927_v15 = vcombine.low %v3871_v5, %v3887_v44  ;;  %v3928_v7 = vcombine.high %v3871_v5, %v3887_v44  ;;  %v3943_v43 = vcombine.low %v3878_v20, %v3894_v3  ;;  %v3944_v32 = vcombine.high %v3878_v20, %v3894_v3  ;;  %26730 = vst [vmem:[#allocation62_spill] sm:$0xff] %v22334_v19  ;;  %v22336_v23 = vpop.permute.xlu1 %6620 }
 0x51f   : > { %v4039_v0 = vrot.slane %v4031_v46, %v20818_v35  ;;  %v4046_v41 = vrot.slane %v4032_v45, %v20818_v35  ;;  %v4055_v54 = vrot.slane %v4047_v49, %v20818_v35  ;;  %v4062_v40 = vrot.slane %v4048_v36, %v20818_v35  ;;  %6738 = vrot.lane.b32.xlu0 %v26726_v61, %s19771_s6 }
 0x520   : > { %v3935_v55 = vrot.slane %v3927_v15, %v20818_v35  ;;  %v3942_v16 = vrot.slane %v3928_v7, %v20818_v35  ;;  %v3951_v53 = vrot.slane %v3943_v43, %v20818_v35  ;;  %v3958_v42 = vrot.slane %v3944_v32, %v20818_v35 }
 0x521   : > { %v17350_v33 = vcombine.low %v4039_v0, %v4046_v41  ;;  %v17352_v5 = vcombine.high %v4039_v0, %v4046_v41  ;;  %v17354_v20 = vcombine.low %v4055_v54, %v4062_v40  ;;  %v17356_v44 = vcombine.high %v4055_v54, %v4062_v40 }
 0x522   : > { %v17343_v3 = vcombine.low %v3935_v55, %v3942_v16  ;;  %v17345_v46 = vcombine.high %v3935_v55, %v3942_v16  ;;  %v17347_v45 = vcombine.low %v3951_v53, %v3958_v42  ;;  %v17349_v49 = vcombine.high %v3951_v53, %v3958_v42  ;;  %v22350_v40 = vpop.permute.xlu1 %6636 }
 0x523   : > { %v6151_v36 = vrot.slane %v17350_v33, %v20815_v31  ;;  %v6167_v15 = vrot.slane %v17352_v5, %v20815_v31  ;;  %v6183_v7 = vrot.slane %v17354_v20, %v20815_v31  ;;  %v6199_v43 = vrot.slane %v17356_v44, %v20815_v31  ;;  %6770 = vrot.lane.b32.xlu0 %v20713_v9, %s19772_s3 }
 0x524   : > { %v6022_v32 = vrot.slane %v17343_v3, %v20815_v31  ;;  %v6038_v0 = vrot.slane %v17345_v46, %v20815_v31  ;;  %v6054_v41 = vrot.slane %v17347_v45, %v20815_v31  ;;  %v6070_v54 = vrot.slane %v17349_v49, %v20815_v31  ;;  %v22354_v3 = vpop.permute.xlu0 %6718  ;;  %v26731_v46 = vld [vmem:[#allocation38_spill] sm:$0xff] }
 0x525   : > { %v6207_v55 = vcombine.low %v6151_v36, %v6167_v15  ;;  %v6208_v16 = vcombine.high %v6151_v36, %v6167_v15  ;;  %v6239_v53 = vcombine.low %v6183_v7, %v6199_v43  ;;  %v6240_v42 = vcombine.high %v6183_v7, %v6199_v43  ;;  %6500 = vrot.lane.b32.xlu1 %v26731_v46, %s19767_s18 }
 0x526   : > { %v6087_v33 = vcombine.low %v6022_v32, %v6038_v0  ;;  %v6088_v5 = vcombine.high %v6022_v32, %v6038_v0  ;;  %v6119_v20 = vcombine.low %v6054_v41, %v6070_v54  ;;  %v6120_v44 = vcombine.high %v6054_v41, %v6070_v54  ;;  %v22372_v41 = vpop.permute.xlu1 %6668 }
 0x527   : > { %v6215_v45 = vrot.slane %v6207_v55, %v20818_v35  ;;  %v6222_v49 = vrot.slane %v6208_v16, %v20818_v35  ;;  %v6247_v36 = vrot.slane %v6239_v53, %v20818_v35  ;;  %v6254_v15 = vrot.slane %v6240_v42, %v20818_v35  ;;  %6786 = vrot.lane.b32.xlu0 %v26726_v61, %s19772_s3 }
 0x528   : > { %v6137_v7 = vcombine.low %v22269_v21, %v22272_v26  ;;  %v6138_v43 = vcombine.high %v22269_v21, %v22272_v26  ;;  %v22367_v32 = vrot.slane %v6087_v33, %v20818_v35  ;;  %v22370_v0 = vrot.slane %v6119_v20, %v20818_v35  ;;  %v22402_v47 = vpop.permute.xlu0 %6734 }
 0x529   : > { %v6271_v54 = vcombine.low %v6215_v45, %v6247_v36  ;;  %v6272_v55 = vcombine.high %v6215_v45, %v6247_v36  ;;  %v6273_v16 = vcombine.low %v6222_v49, %v6254_v15  ;;  %v6274_v53 = vcombine.high %v6222_v49, %v6254_v15  ;;  %6548 = vrot.lane.b32.xlu1 %v26731_v46, %s19766_s8 }
 0x52a   : > { %v22377_v42 = vrot.slane %v6088_v5, %v20818_v35  ;;  %v22380_v21 = vrot.slane %v6120_v44, %v20818_v35  ;;  %v26732_v20 = vcombine.low %v22259_v2, %v22262_v38  ;;  %v26733_v5 = vcombine.high %v22259_v2, %v22262_v38  ;;  %v26735_v2 = vld [vmem:[#allocation72_spill] sm:$0xff] }
 0x52b   : > { %v6302_v36 = vpack.c.bf16 %v6273_v16, %v6137_v7  ;;  %v6310_v44 = vpack.c.bf16 %v6274_v53, %v6138_v43  ;;  %v3999_v15 = vcombine.low %v21932_v28, %v21992_v1  ;;  %v4000_v26 = vcombine.high %v21932_v28, %v21992_v1  ;;  %v26736_v28 = vld [vmem:[#allocation59_spill] sm:$0xff] }
 0x52c   : > { %v6286_v45 = vpack.c.bf16 %v6271_v54, %v26732_v20  ;;  %v6294_v49 = vpack.c.bf16 %v6272_v55, %v26733_v5  ;;  %v4015_v33 = vcombine.low %v21964_v4, %v22008_v12  ;;  %v22404_v54 = vpop.permute.xlu1 %6684  ;;  %v3559_v1 = vcombine.low %v26736_v28, %v26735_v2  ;;  %v26737_v4 = vld [vmem:[#allocation71_spill] sm:$0xff] }
 0x52d   : > { %26734 = vst [vmem:[#allocation74_spill] sm:$0xff] %v22404_v54  ;;  %6367 = vst.msk [vmem:[#allocation2 + $0xb8] sm:$0xff] %vm6343_vm0, %v6302_v36  ;;  %v3560_v38 = vcombine.high %v26736_v28, %v26735_v2  ;;  %v3575_v12 = vcombine.low %v26737_v4, %v22022_v58  ;;  %v3576_v7 = vcombine.high %v26737_v4, %v22022_v58  ;;  %6580 = vrot.lane.b32.xlu1 %v20695_v13, %s19768_s17  ;;  %v22434_v54 = vpop.permute.xlu0 %6766 }
 0x52e   : > { %6351 = vst.msk [vmem:[#allocation2 + $0x38] sm:$0xff] %vm6343_vm0, %v6286_v45  ;;  %6359 = vst.msk [vmem:[#allocation2 + $0x78] sm:$0xff] %vm6343_vm0, %v6294_v49  ;;  %v4007_v43 = vrot.slane %v3999_v15, %v20815_v31  ;;  %v4014_v55 = vrot.slane %v4000_v26, %v20815_v31  ;;  %v4023_v16 = vrot.slane %v4015_v33, %v20815_v31 }
 0x52f   : > { %6375 = vst.msk [vmem:[#allocation2 + $0xf8] sm:$0xff] %vm6343_vm0, %v6310_v44  ;;  %v4030_v53 = vrot.slane %v4016_v60, %v20815_v31  ;;  %v3567_v20 = vrot.slane %v3559_v1, %v20815_v31  ;;  %v3574_v45 = vrot.slane %v3560_v38, %v20815_v31  ;;  %v3583_v5 = vrot.slane %v3575_v12, %v20815_v31 }
 0x530   : > { %v3590_v49 = vrot.slane %v3576_v7, %v20815_v31  ;;  %v4063_v58 = vcombine.low %v4007_v43, %v4023_v16  ;;  %v4064_v36 = vcombine.high %v4007_v43, %v4023_v16  ;;  %v22428_v26 = vpop.permute.xlu1 %6716 }
 0x531   : > { %v4079_v44 = vcombine.low %v4014_v55, %v4030_v53  ;;  %v4080_v15 = vcombine.high %v4014_v55, %v4030_v53  ;;  %v3623_v33 = vcombine.low %v3567_v20, %v3583_v5  ;;  %v3624_v2 = vcombine.high %v3567_v20, %v3583_v5  ;;  %6596 = vrot.lane.b32.xlu1 %v26731_v46, %s19768_s17 }
 0x532   : > { %v3639_v60 = vcombine.low %v3574_v45, %v3590_v49  ;;  %v3640_v28 = vcombine.high %v3574_v45, %v3590_v49  ;;  %v4071_v4 = vrot.slane %v4063_v58, %v20818_v35  ;;  %v4078_v1 = vrot.slane %v4064_v36, %v20818_v35 }
 0x533   : > { %v4087_v38 = vrot.slane %v4079_v44, %v20818_v35  ;;  %v4094_v12 = vrot.slane %v4080_v15, %v20818_v35  ;;  %v3631_v7 = vrot.slane %v3623_v33, %v20818_v35  ;;  %v3638_v43 = vrot.slane %v3624_v2, %v20818_v35 }
 0x534   : > { %v3647_v55 = vrot.slane %v3639_v60, %v20818_v35  ;;  %v3654_v16 = vrot.slane %v3640_v28, %v20818_v35  ;;  %v17351_v53 = vcombine.low %v4071_v4, %v4078_v1  ;;  %v17353_v20 = vcombine.high %v4071_v4, %v4078_v1  ;;  %v22442_v49 = vpop.permute.xlu1 %6732 }
 0x535   : > { %v17355_v45 = vcombine.low %v4087_v38, %v4094_v12  ;;  %v17357_v5 = vcombine.high %v4087_v38, %v4094_v12  ;;  %v17326_v58 = vcombine.low %v3631_v7, %v3638_v43  ;;  %v17328_v36 = vcombine.high %v3631_v7, %v3638_v43  ;;  %6628 = vrot.lane.b32.xlu1 %v20695_v13, %s19769_s25 }
 0x536   : > { %v17330_v44 = vcombine.low %v3647_v55, %v3654_v16  ;;  %v17332_v15 = vcombine.high %v3647_v55, %v3654_v16  ;;  %v6158_v48 = vrot.slane %v17351_v53, %v20815_v31  ;;  %v6174_v33 = vrot.slane %v17353_v20, %v20815_v31  ;;  %v22454_v16 = vpop.permute.xlu0 %6570 }
 0x537   : > { %v6190_v2 = vrot.slane %v17355_v45, %v20815_v31  ;;  %v6206_v60 = vrot.slane %v17357_v5, %v20815_v31  ;;  %v5743_v28 = vrot.slane %v17326_v58, %v20815_v31  ;;  %v5759_v4 = vrot.slane %v17328_v36, %v20815_v31  ;;  %26738 = vst [vmem:[#allocation72_spill] sm:$0xff] %v22454_v16 }
 0x538   : > { %v5775_v1 = vrot.slane %v17330_v44, %v20815_v31  ;;  %v5791_v38 = vrot.slane %v17332_v15, %v20815_v31  ;;  %v6223_v12 = vcombine.low %v6158_v48, %v6174_v33  ;;  %v6224_v7 = vcombine.high %v6158_v48, %v6174_v33  ;;  %v22456_v53 = vpop.permute.xlu1 %6764 }
 0x539   : > { %v6255_v43 = vcombine.low %v6190_v2, %v6206_v60  ;;  %v6256_v55 = vcombine.high %v6190_v2, %v6206_v60  ;;  %v5799_v20 = vcombine.low %v5743_v28, %v5759_v4  ;;  %v5800_v45 = vcombine.high %v5743_v28, %v5759_v4  ;;  %6644 = vrot.lane.b32.xlu1 %v26731_v46, %s19769_s25 }
 0x53a   : > { %v5831_v5 = vcombine.low %v5775_v1, %v5791_v38  ;;  %v5832_v19 = vcombine.high %v5775_v1, %v5791_v38  ;;  %v6231_v58 = vrot.slane %v6223_v12, %v20818_v35  ;;  %v6238_v36 = vrot.slane %v6224_v7, %v20818_v35 }
 0x53b   : > { %v6263_v44 = vrot.slane %v6255_v43, %v20818_v35  ;;  %v6270_v15 = vrot.slane %v6256_v55, %v20818_v35  ;;  %v6141_v48 = vcombine.low %v22377_v42, %v22380_v21  ;;  %v6142_v33 = vcombine.high %v22377_v42, %v22380_v21 }
 0x53c   : > { %v22469_v2 = vrot.slane %v5799_v20, %v20818_v35  ;;  %v22472_v60 = vrot.slane %v5831_v5, %v20818_v35  ;;  %v22474_v12 = vpop.permute.xlu1 %6472  ;;  %v22477_v7 = vrot.slane %v5800_v45, %v20818_v35  ;;  %v22480_v43 = vrot.slane %v5832_v19, %v20818_v35  ;;  %v26742_v19 = vld [vmem:[#allocation67_spill] sm:$0xff] }
 0x53d   : > { %v6275_v28 = vcombine.low %v6231_v58, %v6263_v44  ;;  %v6276_v4 = vcombine.high %v6231_v58, %v6263_v44  ;;  %v6277_v1 = vcombine.low %v6238_v36, %v6270_v15  ;;  %v6278_v38 = vcombine.high %v6238_v36, %v6270_v15  ;;  %v22492_v44 = vpop.permute.xlu0 %6586  ;;  %6676 = vrot.lane.b32.xlu1 %v20695_v13, %s19770_s10 }
 0x53e   : > { %v26739_v55 = vcombine.low %v22367_v32, %v22370_v0  ;;  %v26740_v5 = vcombine.high %v22367_v32, %v22370_v0  ;;  %26741 = vst [vmem:[#allocation59_spill] sm:$0xff] %v22492_v44  ;;  %v3695_v15 = vcombine.low %v26742_v19, %v22046_v50  ;;  %v3696_v21 = vcombine.high %v26742_v19, %v22046_v50 }
 0x53f   : > { %v6334_v36 = vpack.c.bf16 %v6277_v1, %v6141_v48  ;;  %v6342_v45 = vpack.c.bf16 %v6278_v38, %v6142_v33  ;;  %v3712_v32 = vcombine.high %v22024_v27, %v22090_v37  ;;  %v3591_v0 = vcombine.low %v22044_v6, %v22104_v59 }
 0x540   : > { %v6318_v20 = vpack.c.bf16 %v6275_v28, %v26739_v55  ;;  %v6326_v58 = vpack.c.bf16 %v6276_v4, %v26740_v5  ;;  %v3711_v28 = vcombine.low %v22024_v27, %v22090_v37  ;;  %v3592_v50 = vcombine.high %v22044_v6, %v22104_v59  ;;  %v22516_v37 = vpop.permute.xlu1 %6488 }
 0x541   : > { %6399 = vst.msk [vmem:[#allocation2 + $0x1b8] sm:$0xff] %vm6343_vm0, %v6334_v36  ;;  %6407 = vst.msk [vmem:[#allocation2 + $0x1f8] sm:$0xff] %vm6343_vm0, %v6342_v45  ;;  %v3607_v48 = vcombine.low %v22076_v10, %v22122_v62  ;;  %v3608_v27 = vcombine.high %v22076_v10, %v22122_v62  ;;  %v3703_v33 = vrot.slane %v3695_v15, %v20815_v31  ;;  %6692 = vrot.lane.b32.xlu1 %v26731_v46, %s19770_s10  ;;  %v22528_v15 = vpop.permute.xlu0 %6618 }
 0x542   : > { %6383 = vst.msk [vmem:[#allocation2 + $0x138] sm:$0xff] %vm6343_vm0, %v6318_v20  ;;  %6391 = vst.msk [vmem:[#allocation2 + $0x178] sm:$0xff] %vm6343_vm0, %v6326_v58  ;;  %v3710_v4 = vrot.slane %v3696_v21, %v20815_v31  ;;  %v3719_v1 = vrot.slane %v3711_v28, %v20815_v31  ;;  %v3726_v38 = vrot.slane %v3712_v32, %v20815_v31 }
 0x543   : > { %v3599_v55 = vrot.slane %v3591_v0, %v20815_v31  ;;  %v3606_v6 = vrot.slane %v3592_v50, %v20815_v31  ;;  %v3615_v59 = vrot.slane %v3607_v48, %v20815_v31  ;;  %v3622_v20 = vrot.slane %v3608_v27, %v20815_v31 }
 0x544   : > { %v3759_v10 = vcombine.low %v3703_v33, %v3719_v1  ;;  %v3760_v62 = vcombine.high %v3703_v33, %v3719_v1  ;;  %v3775_v5 = vcombine.low %v3710_v4, %v3726_v38  ;;  %v3776_v58 = vcombine.high %v3710_v4, %v3726_v38  ;;  %v22530_v28 = vpop.permute.xlu1 %6520 }
 0x545   : > { %v3655_v21 = vcombine.low %v3599_v55, %v3615_v59  ;;  %v3656_v36 = vcombine.high %v3599_v55, %v3615_v59  ;;  %v3671_v45 = vcombine.low %v3606_v6, %v3622_v20  ;;  %v3672_v19 = vcombine.high %v3606_v6, %v3622_v20  ;;  %6724 = vrot.lane.b32.xlu1 %v20695_v13, %s19771_s6  ;;  %v26743_v20 = vld [vmem:[#allocation46_spill] sm:$0xff] }
 0x546   : > { %v3767_v32 = vrot.slane %v3759_v10, %v20818_v35  ;;  %v3774_v0 = vrot.slane %v3760_v62, %v20818_v35  ;;  %v3783_v50 = vrot.slane %v3775_v5, %v20818_v35  ;;  %v3790_v48 = vrot.slane %v3776_v58, %v20818_v35  ;;  %6408 = vxpose.xlu0.b32.start [1/16] %v26743_v20, 128 }
 0x547   : > { %v3663_v27 = vrot.slane %v3655_v21, %v20818_v35  ;;  %v3670_v33 = vrot.slane %v3656_v36, %v20818_v35  ;;  %v3679_v4 = vrot.slane %v3671_v45, %v20818_v35  ;;  %v3686_v1 = vrot.slane %v3672_v19, %v20818_v35 }
 0x548   : > { %v17334_v38 = vcombine.low %v3767_v32, %v3774_v0  ;;  %v17336_v55 = vcombine.high %v3767_v32, %v3774_v0  ;;  %v17338_v6 = vcombine.low %v3783_v50, %v3790_v48  ;;  %v17340_v59 = vcombine.high %v3783_v50, %v3790_v48  ;;  %v22543_v21 = vpop.permute.xlu1 %6536 }
 0x549   : > { %v17327_v10 = vcombine.low %v3663_v27, %v3670_v33  ;;  %v17329_v62 = vcombine.high %v3663_v27, %v3670_v33  ;;  %v17331_v5 = vcombine.low %v3679_v4, %v3686_v1  ;;  %v17333_v58 = vcombine.high %v3679_v4, %v3686_v1  ;;  %v22553_v27 = vpop.permute.xlu0 %6634  ;;  %6740 = vrot.lane.b32.xlu1 %v26731_v46, %s19771_s6 }
 0x54a   : > { %v5879_v36 = vrot.slane %v17334_v38, %v20815_v31  ;;  %v5895_v45 = vrot.slane %v17336_v55, %v20815_v31  ;;  %v5911_v19 = vrot.slane %v17338_v6, %v20815_v31  ;;  %v5927_v42 = vrot.slane %v17340_v59, %v20815_v31  ;;  %v26744_v55 = vld [vmem:[#allocation48_spill] sm:$0xff] }
 0x54b   : > { %v5750_v32 = vrot.slane %v17327_v10, %v20815_v31  ;;  %v5766_v0 = vrot.slane %v17329_v62, %v20815_v31  ;;  %v5782_v50 = vrot.slane %v17331_v5, %v20815_v31  ;;  %v5798_v48 = vrot.slane %v17333_v58, %v20815_v31  ;;  %6409 = vxpose.xlu0.b32.cont [2/16] %v26744_v55, 128 }
 0x54c   : > { %v5935_v33 = vcombine.low %v5879_v36, %v5895_v45  ;;  %v5936_v4 = vcombine.high %v5879_v36, %v5895_v45  ;;  %v5967_v1 = vcombine.low %v5911_v19, %v5927_v42  ;;  %v5968_v38 = vcombine.high %v5911_v19, %v5927_v42  ;;  %v22558_v62 = vpop.permute.xlu1 %6568 }
 0x54d   : > { %v5815_v6 = vcombine.low %v5750_v32, %v5766_v0  ;;  %v5816_v59 = vcombine.high %v5750_v32, %v5766_v0  ;;  %v5847_v20 = vcombine.low %v5782_v50, %v5798_v48  ;;  %v5848_v10 = vcombine.high %v5782_v50, %v5798_v48  ;;  %6772 = vrot.lane.b32.xlu1 %v20695_v13, %s19772_s3 }
 0x54e   : > { %v5943_v5 = vrot.slane %v5935_v33, %v20818_v35  ;;  %v5950_v58 = vrot.slane %v5936_v4, %v20818_v35  ;;  %v5975_v44 = vrot.slane %v5967_v1, %v20818_v35  ;;  %v5982_v16 = vrot.slane %v5968_v38, %v20818_v35  ;;  %v26745_v33 = vld [vmem:[#allocation45_spill] sm:$0xff]  ;;  %v22587_v38 = vpop.permute.xlu0 %6666 }
 0x54f   : > { %v5865_v36 = vcombine.low %v22477_v7, %v22480_v43  ;;  %v5866_v42 = vcombine.high %v22477_v7, %v22480_v43  ;;  %v22569_v45 = vrot.slane %v5815_v6, %v20818_v35  ;;  %v22572_v19 = vrot.slane %v5847_v20, %v20818_v35  ;;  %6410 = vxpose.xlu0.b32.cont [3/16] %v26745_v33, 128 }
 0x550   : > { %v5999_v32 = vcombine.low %v5943_v5, %v5975_v44  ;;  %v6000_v0 = vcombine.high %v5943_v5, %v5975_v44  ;;  %v6001_v50 = vcombine.low %v5950_v58, %v5982_v16  ;;  %v6002_v48 = vcombine.high %v5950_v58, %v5982_v16  ;;  %v22589_v55 = vpop.permute.xlu1 %6584 }
 0x551   : > { %v22578_v4 = vrot.slane %v5816_v59, %v20818_v35  ;;  %v22581_v7 = vrot.slane %v5848_v10, %v20818_v35  ;;  %v26746_v16 = vcombine.low %v22469_v2, %v22472_v60  ;;  %v26747_v6 = vcombine.high %v22469_v2, %v22472_v60  ;;  %v26749_v2 = vld [vmem:[#allocation64_spill] sm:$0xff]  ;;  %v26750_v60 = vld [vmem:[#allocation65_spill] sm:$0xff] }
 0x552   : > { %v6301_v20 = vpack.c.bf16 %v6001_v50, %v5865_v36  ;;  %v6309_v10 = vpack.c.bf16 %v6002_v48, %v5866_v42  ;;  %v3727_v5 = vcombine.low %v22106_v24, %v22136_v25  ;;  %v3728_v58 = vcombine.high %v22106_v24, %v22136_v25  ;;  %v26751_v36 = vld [vmem:[#allocation47_spill] sm:$0xff] }
 0x553   : > { %v6285_v44 = vpack.c.bf16 %v5999_v32, %v26746_v16  ;;  %v6293_v59 = vpack.c.bf16 %v6000_v0, %v26747_v6  ;;  %v3743_v33 = vcombine.low %v22120_v39, %v22168_v30  ;;  %v3744_v1 = vcombine.high %v22120_v39, %v22168_v30  ;;  %v26748_v32 = vld [vmem:[#allocation39_spill] sm:$0xff]  ;;  %6411 = vxpose.xlu0.b32.cont [4/16] %v26751_v36, 128  ;;  %v26753_v36 = vld [vmem:[#allocation50_spill] sm:$0xff] }
 0x554   : > { %6480 = vrot.lane.b32.xlu1 %v26748_v32, %s19767_s18  ;;  %6366 = vst.msk [vmem:[#allocation2 + $0xb0] sm:$0xff] %vm6343_vm0, %v6301_v20  ;;  %6374 = vst.msk [vmem:[#allocation2 + $0xf0] sm:$0xff] %vm6343_vm0, %v6309_v10  ;;  %v7080_v25 = vcombine.low %v26749_v2, %v22236_v11  ;;  %v7081_v24 = vcombine.high %v26749_v2, %v22236_v11  ;;  %v8168_v39 = vcombine.low %v26750_v60, %v22252_v52  ;;  %v22624_v16 = vpop.permute.xlu1 %6616 }
 0x555   : > { %6350 = vst.msk [vmem:[#allocation2 + $0x30] sm:$0xff] %vm6343_vm0, %v6285_v44  ;;  %6358 = vst.msk [vmem:[#allocation2 + $0x70] sm:$0xff] %vm6343_vm0, %v6293_v59  ;;  %v8169_v30 = vcombine.high %v26750_v60, %v22252_v52  ;;  %v3735_v42 = vrot.slane %v3727_v5, %v20815_v31  ;;  %v3742_v0 = vrot.slane %v3728_v58, %v20815_v31  ;;  %v22632_v58 = vpop.permute.xlu0 %6682 }
 0x556   : > { %v3751_v50 = vrot.slane %v3743_v33, %v20815_v31  ;;  %v3758_v48 = vrot.slane %v3744_v1, %v20815_v31  ;;  %v7088_v52 = vrot.slane %v7080_v25, %v20815_v31  ;;  %v7095_v6 = vrot.slane %v7081_v24, %v20815_v31  ;;  %v26752_v1 = vld [vmem:[#allocation40_spill] sm:$0xff] }
 0x557   : > { %v22637_v33 = vrot.slane %v8168_v39, %v20815_v31  ;;  %v22640_v2 = vrot.slane %v8169_v30, %v20815_v31  ;;  %v7096_v25 = vcombine.low %v22206_v51, %v22284_v14  ;;  %v7097_v24 = vcombine.high %v22206_v51, %v22284_v14  ;;  %6412 = vxpose.xlu0.b32.cont [5/16] %v26753_v36, 128 }
 0x558   : > { %v3791_v59 = vcombine.low %v3735_v42, %v3751_v50  ;;  %v3792_v20 = vcombine.high %v3735_v42, %v3751_v50  ;;  %v3807_v10 = vcombine.low %v3742_v0, %v3758_v48  ;;  %v3808_v5 = vcombine.high %v3742_v0, %v3758_v48  ;;  %6496 = vrot.lane.b32.xlu1 %v26752_v1, %s19767_s18  ;;  %v22651_v48 = vpop.permute.xlu1 %6632 }
 0x559   : > { %v7104_v30 = vrot.slane %v7096_v25, %v20815_v31  ;;  %v7111_v44 = vrot.slane %v7097_v24, %v20815_v31  ;;  %v26754_v25 = vld [vmem:[#allocation52_spill] sm:$0xff] }
 0x55a   : > { %v3799_v42 = vrot.slane %v3791_v59, %v20818_v35  ;;  %v3806_v0 = vrot.slane %v3792_v20, %v20818_v35  ;;  %v3815_v50 = vrot.slane %v3807_v10, %v20818_v35  ;;  %v3822_v39 = vrot.slane %v3808_v5, %v20818_v35 }
 0x55b   : > { %v7144_v10 = vcombine.low %v7088_v52, %v7104_v30  ;;  %v7145_v5 = vcombine.high %v7088_v52, %v7104_v30  ;;  %v7160_v43 = vcombine.low %v7095_v6, %v7111_v44  ;;  %v7161_v17 = vcombine.high %v7095_v6, %v7111_v44  ;;  %6413 = vxpose.xlu0.b32.cont [6/16] %v26754_v25, 128 }
 0x55c   : > { %v17335_v14 = vcombine.low %v3799_v42, %v3806_v0  ;;  %v17337_v59 = vcombine.high %v3799_v42, %v3806_v0  ;;  %v17339_v36 = vcombine.low %v3815_v50, %v3822_v39  ;;  %v17341_v20 = vcombine.high %v3815_v50, %v3822_v39  ;;  %6528 = vrot.lane.b32.xlu1 %v26748_v32, %s19766_s8  ;;  %v22666_v42 = vpop.permute.xlu0 %6714  ;;  %v22668_v0 = vpop.permute.xlu1 %6664 }
 0x55d   : > { %26755 = vst [vmem:[#allocation71_spill] sm:$0xff] %v22668_v0  ;;  %v7152_v50 = vrot.slane %v7144_v10, %v20818_v35  ;;  %v7159_v52 = vrot.slane %v7145_v5, %v20818_v35  ;;  %v7168_v44 = vrot.slane %v7160_v43, %v20818_v35  ;;  %v7175_v6 = vrot.slane %v7161_v17, %v20818_v35  ;;  %v26756_v0 = vld [vmem:[#allocation49_spill] sm:$0xff] }
 0x55e   : > { %v5886_v24 = vrot.slane %v17335_v14, %v20815_v31  ;;  %v5902_v11 = vrot.slane %v17337_v59, %v20815_v31  ;;  %v5918_v46 = vrot.slane %v17339_v36, %v20815_v31  ;;  %v5934_v51 = vrot.slane %v17341_v20, %v20815_v31 }
 0x55f   : > { %v17374_v36 = vcombine.low %v7152_v50, %v7159_v52  ;;  %v17376_v20 = vcombine.high %v7152_v50, %v7159_v52  ;;  %v17378_v25 = vcombine.low %v7168_v44, %v7175_v6  ;;  %v17380_v60 = vcombine.high %v7168_v44, %v7175_v6  ;;  %6414 = vxpose.xlu0.b32.cont [7/16] %v26756_v0, 128 }
 0x560   : > { %v5951_v39 = vcombine.low %v5886_v24, %v5902_v11  ;;  %v5952_v30 = vcombine.high %v5886_v24, %v5902_v11  ;;  %v5983_v14 = vcombine.low %v5918_v46, %v5934_v51  ;;  %v5984_v59 = vcombine.high %v5918_v46, %v5934_v51  ;;  %6544 = vrot.lane.b32.xlu1 %v26752_v1, %s19766_s8  ;;  %v22681_v11 = vpop.permute.xlu1 %6680 }
 0x561   : > { %26757 = vst [vmem:[#allocation67_spill] sm:$0xff] %v22681_v11  ;;  %v9264_v46 = vrot.slane %v17374_v36, %v20815_v31  ;;  %v9280_v51 = vrot.slane %v17376_v20, %v20815_v31  ;;  %v9296_v24 = vrot.slane %v17378_v25, %v20815_v31  ;;  %v9312_v50 = vrot.slane %v17380_v60, %v20815_v31  ;;  %v26758_v36 = vld [vmem:[#allocation51_spill] sm:$0xff] }
 0x562   : > { %v5959_v10 = vrot.slane %v5951_v39, %v20818_v35  ;;  %v5966_v5 = vrot.slane %v5952_v30, %v20818_v35  ;;  %v5991_v43 = vrot.slane %v5983_v14, %v20818_v35  ;;  %v5998_v17 = vrot.slane %v5984_v59, %v20818_v35  ;;  %v22687_v39 = vpop.permute.xlu0 %6730 }
 0x563   : > { %v9320_v30 = vcombine.low %v9264_v46, %v9280_v51  ;;  %v9321_v14 = vcombine.high %v9264_v46, %v9280_v51  ;;  %v9352_v59 = vcombine.low %v9296_v24, %v9312_v50  ;;  %v9353_v11 = vcombine.high %v9296_v24, %v9312_v50  ;;  %6415 = vxpose.xlu0.b32.cont [8/16] %v26758_v36, 128 }
 0x564   : > { %v6003_v52 = vcombine.low %v5959_v10, %v5991_v43  ;;  %v6004_v0 = vcombine.high %v5959_v10, %v5991_v43  ;;  %v6005_v44 = vcombine.low %v5966_v5, %v5998_v17  ;;  %v6006_v6 = vcombine.high %v5966_v5, %v5998_v17  ;;  %6576 = vrot.lane.b32.xlu1 %v26748_v32, %s19768_s17  ;;  %v22704_v51 = vpop.permute.xlu1 %6712 }
 0x565   : > { %v26759_v20 = vcombine.low %v22569_v45, %v22572_v19  ;;  %v26760_v60 = vcombine.high %v22569_v45, %v22572_v19  ;;  %v26761_v5 = vcombine.low %v22578_v4, %v22581_v7  ;;  %v26762_v17 = vcombine.high %v22578_v4, %v22581_v7 }
 0x566   : > { %v22707_v24 = vrot.slane %v9320_v30, %v20818_v35  ;;  %v22710_v50 = vrot.slane %v9321_v14, %v20818_v35  ;;  %v22716_v45 = vrot.slane %v9353_v11, %v20818_v35  ;;  %v8184_v19 = vcombine.low %v22220_v56, %v22320_v34 }
 0x567   : > { %v6317_v25 = vpack.c.bf16 %v6003_v52, %v26759_v20  ;;  %v6325_v10 = vpack.c.bf16 %v6004_v0, %v26760_v60  ;;  %v6333_v43 = vpack.c.bf16 %v6005_v44, %v26761_v5  ;;  %v6341_v46 = vpack.c.bf16 %v6006_v6, %v26762_v17  ;;  %v22751_v20 = vpop.permute.xlu0 %6762 }
 0x568   : > { %v22713_v52 = vrot.slane %v9352_v59, %v20818_v35  ;;  %v8185_v4 = vcombine.high %v22220_v56, %v22320_v34  ;;  %v8336_v7 = vcombine.low %v22250_v57, %v22402_v47  ;;  %v8337_v11 = vcombine.high %v22250_v57, %v22402_v47  ;;  %6592 = vrot.lane.b32.xlu1 %v26752_v1, %s19768_s17  ;;  %v26765_v47 = vld [vmem:[#allocation54_spill] sm:$0xff] }
 0x569   : > { %6382 = vst.msk [vmem:[#allocation2 + $0x130] sm:$0xff] %vm6343_vm0, %v6317_v25  ;;  %6390 = vst.msk [vmem:[#allocation2 + $0x170] sm:$0xff] %vm6343_vm0, %v6325_v10  ;;  %v26763_v6 = vcombine.low %v22228_v63, %v22354_v3  ;;  %v26764_v34 = vcombine.high %v22228_v63, %v22354_v3  ;;  %6416 = vxpose.xlu0.b32.cont [9/16] %v26765_v47, 128  ;;  %v8192_v59 = vrot.slane %v8184_v19, %v20815_v31  ;;  %v22753_v25 = vpop.permute.xlu1 %6728 }
 0x56a   : > { %6398 = vst.msk [vmem:[#allocation2 + $0x1b0] sm:$0xff] %vm6343_vm0, %v6333_v43  ;;  %6406 = vst.msk [vmem:[#allocation2 + $0x1f0] sm:$0xff] %vm6343_vm0, %v6341_v46  ;;  %v8199_v36 = vrot.slane %v8185_v4, %v20815_v31  ;;  %v22756_v60 = vrot.slane %v8336_v7, %v20815_v31  ;;  %v22759_v63 = vrot.slane %v8337_v11, %v20815_v31 }
 0x56b   : > { %v7256_v56 = vrot.slane %v26763_v6, %v20815_v31  ;;  %v7263_v30 = vrot.slane %v26764_v34, %v20815_v31  ;;  %v7264_v3 = vcombine.low %v22308_v18, %v22434_v54  ;;  %v7265_v10 = vcombine.high %v22308_v18, %v22434_v54  ;;  %v26766_v54 = vld [vmem:[#allocation56_spill] sm:$0xff] }
 0x56c   : > { %v8232_v5 = vcombine.low %v22637_v33, %v8192_v59  ;;  %v8233_v43 = vcombine.high %v22637_v33, %v8192_v59  ;;  %v8248_v17 = vcombine.low %v22640_v2, %v8199_v36  ;;  %v8249_v46 = vcombine.high %v22640_v2, %v8199_v36  ;;  %6624 = vrot.lane.b32.xlu1 %v26748_v32, %s19769_s25 }
 0x56d   : > { %v7272_v19 = vrot.slane %v7264_v3, %v20815_v31  ;;  %v7279_v4 = vrot.slane %v7265_v10, %v20815_v31  ;;  %v7112_v7 = vcombine.low %v22336_v23, %v22428_v26  ;;  %v7113_v18 = vcombine.high %v22336_v23, %v22428_v26  ;;  %6417 = vxpose.xlu0.b32.cont [10/16] %v26766_v54, 128  ;;  %v22782_v34 = vpop.permute.xlu1 %6760  ;;  %v22784_v26 = vpop.permute.xlu0 %6778 }
 0x56e   : > { %v8240_v33 = vrot.slane %v8232_v5, %v20818_v35  ;;  %v8247_v11 = vrot.slane %v8233_v43, %v20818_v35  ;;  %v8256_v2 = vrot.slane %v8248_v17, %v20818_v35  ;;  %v8263_v6 = vrot.slane %v8249_v46, %v20818_v35 }
 0x56f   : > { %v7312_v47 = vcombine.low %v7256_v56, %v7272_v19  ;;  %v7313_v59 = vcombine.high %v7256_v56, %v7272_v19  ;;  %v7328_v36 = vcombine.low %v7263_v30, %v7279_v4  ;;  %v7329_v3 = vcombine.high %v7263_v30, %v7279_v4  ;;  %v26767_v56 = vld [vmem:[#allocation53_spill] sm:$0xff] }
 0x570   : > { %v17438_v10 = vcombine.low %v8240_v33, %v8247_v11  ;;  %v17440_v14 = vcombine.high %v8240_v33, %v8247_v11  ;;  %v17442_v57 = vcombine.low %v8256_v2, %v8263_v6  ;;  %v17444_v23 = vcombine.high %v8256_v2, %v8263_v6  ;;  %6640 = vrot.lane.b32.xlu1 %v26752_v1, %s19769_s25 }
 0x571   : > { %v7320_v5 = vrot.slane %v7312_v47, %v20818_v35  ;;  %v7327_v43 = vrot.slane %v7313_v59, %v20818_v35  ;;  %v7336_v17 = vrot.slane %v7328_v36, %v20818_v35  ;;  %v7343_v46 = vrot.slane %v7329_v3, %v20818_v35  ;;  %6418 = vxpose.xlu0.b32.cont [11/16] %v26767_v56, 128  ;;  %v22797_v33 = vpop.permute.xlu1 %6776  ;;  %v26768_v56 = vld [vmem:[#allocation55_spill] sm:$0xff] }
 0x572   : > { %v10352_v30 = vrot.slane %v17438_v10, %v20815_v31  ;;  %v10368_v19 = vrot.slane %v17440_v14, %v20815_v31  ;;  %v10384_v4 = vrot.slane %v17442_v57, %v20815_v31  ;;  %v10400_v54 = vrot.slane %v17444_v23, %v20815_v31 }
 0x573   : > { %v17383_v11 = vcombine.low %v7320_v5, %v7327_v43  ;;  %v17385_v2 = vcombine.high %v7320_v5, %v7327_v43  ;;  %v17387_v6 = vcombine.low %v7336_v17, %v7343_v46  ;;  %v17389_v47 = vcombine.high %v7336_v17, %v7343_v46 }
 0x574   : > { %v10408_v59 = vcombine.low %v10352_v30, %v10368_v19  ;;  %v10409_v36 = vcombine.high %v10352_v30, %v10368_v19  ;;  %v10440_v44 = vcombine.low %v10384_v4, %v10400_v54  ;;  %v10441_v3 = vcombine.high %v10384_v4, %v10400_v54  ;;  %6672 = vrot.lane.b32.xlu1 %v26748_v32, %s19770_s10  ;;  %v22818_v30 = vpop.permute.xlu0 %6532 }
 0x575   : > { %v9407_v10 = vrot.slane %v17383_v11, %v20815_v31  ;;  %v9423_v14 = vrot.slane %v17385_v2, %v20815_v31  ;;  %v9439_v57 = vrot.slane %v17387_v6, %v20815_v31  ;;  %v9455_v23 = vrot.slane %v17389_v47, %v20815_v31  ;;  %6419 = vxpose.xlu0.b32.cont [12/16] %v26768_v56, 128  ;;  %v22820_v19 = vpop.permute.xlu1 %6478 }
 0x576   : > { %v22807_v5 = vrot.slane %v10408_v59, %v20818_v35  ;;  %v22810_v43 = vrot.slane %v10409_v36, %v20818_v35  ;;  %v22813_v17 = vrot.slane %v10440_v44, %v20818_v35  ;;  %v22816_v46 = vrot.slane %v10441_v3, %v20818_v35 }
 0x577   : > { %v9472_v4 = vcombine.low %v9407_v10, %v9423_v14  ;;  %v9473_v54 = vcombine.high %v9407_v10, %v9423_v14  ;;  %v9504_v11 = vcombine.low %v9439_v57, %v9455_v23  ;;  %v9505_v2 = vcombine.high %v9439_v57, %v9455_v23  ;;  %v26773_v57 = vld [vmem:[#allocation60_spill] sm:$0xff] }
 0x578   : > { %26769 = vst [vmem:[#allocation46_spill] sm:$0xff] %v22807_v5  ;;  %26770 = vst [vmem:[#allocation48_spill] sm:$0xff] %v22810_v43  ;;  %v7120_v44 = vrot.slane %v7112_v7, %v20815_v31  ;;  %v7127_v59 = vrot.slane %v7113_v18, %v20815_v31  ;;  %6688 = vrot.lane.b32.xlu1 %v26752_v1, %s19770_s10  ;;  %v7128_v23 = vcombine.low %v22372_v41, %v22456_v53  ;;  %v22867_v47 = vpop.permute.xlu0 %6582 }
 0x579   : > { %26771 = vst [vmem:[#allocation45_spill] sm:$0xff] %v22813_v17  ;;  %26772 = vst [vmem:[#allocation64_spill] sm:$0xff] %v22816_v46  ;;  %v22831_v36 = vrot.slane %v9472_v4, %v20818_v35  ;;  %v22834_v3 = vrot.slane %v9473_v54, %v20818_v35  ;;  %v22837_v10 = vrot.slane %v9504_v11, %v20818_v35  ;;  %6420 = vxpose.xlu0.b32.cont [13/16] %v26773_v57, 128  ;;  %v22851_v4 = vpop.permute.xlu1 %6494 }
 0x57a   : > { %v22840_v14 = vrot.slane %v9505_v2, %v20818_v35  ;;  %v7129_v56 = vcombine.high %v22372_v41, %v22456_v53  ;;  %v8200_v2 = vcombine.low %v22350_v40, %v22442_v49  ;;  %v8201_v57 = vcombine.high %v22350_v40, %v22442_v49  ;;  %26774 = vst [vmem:[#allocation47_spill] sm:$0xff] %v22867_v47 }
 0x57b   : > { %v7136_v53 = vrot.slane %v7128_v23, %v20815_v31  ;;  %v6976_v6 = vcombine.low %v22528_v15, %v22666_v42  ;;  %v6977_v40 = vcombine.high %v22528_v15, %v22666_v42  ;;  %v8064_v49 = vcombine.low %v22553_v27, %v22687_v39  ;;  %v26775_v23 = vld [vmem:[#allocation63_spill] sm:$0xff] }
 0x57c   : > { %v7143_v7 = vrot.slane %v7129_v56, %v20815_v31  ;;  %6720 = vrot.lane.b32.xlu1 %v26748_v32, %s19771_s6  ;;  %v8065_v0 = vcombine.high %v22553_v27, %v22687_v39  ;;  %v22883_v47 = vrot.slane %v8200_v2, %v20815_v31  ;;  %v22886_v46 = vrot.slane %v8201_v57, %v20815_v31 }
 0x57d   : > { %6421 = vxpose.xlu0.b32.cont [14/16] %v26775_v23, 128  ;;  %v7176_v56 = vcombine.low %v7120_v44, %v7136_v53  ;;  %v7177_v41 = vcombine.high %v7120_v44, %v7136_v53  ;;  %v22880_v54 = vpop.permute.xlu1 %6526  ;;  %v6984_v15 = vrot.slane %v6976_v6, %v20815_v31  ;;  %v6991_v42 = vrot.slane %v6977_v40, %v20815_v31  ;;  %v22907_v23 = vpop.permute.xlu0 %6598 }
 0x57e   : > { %v7192_v18 = vcombine.low %v7127_v59, %v7143_v7  ;;  %v7193_v11 = vcombine.high %v7127_v59, %v7143_v7  ;;  %26776 = vst [vmem:[#allocation50_spill] sm:$0xff] %v22883_v47  ;;  %26777 = vst [vmem:[#allocation52_spill] sm:$0xff] %v22886_v46  ;;  %v22897_v7 = vrot.slane %v8064_v49, %v20815_v31  ;;  %v26780_v49 = vld [vmem:[#allocation61_spill] sm:$0xff] }
 0x57f   : > { %v7184_v27 = vrot.slane %v7176_v56, %v20818_v35  ;;  %v7191_v39 = vrot.slane %v7177_v41, %v20818_v35  ;;  %v22900_v2 = vrot.slane %v8065_v0, %v20815_v31  ;;  %v6992_v6 = vcombine.low %v22587_v38, %v22751_v20  ;;  %v26778_v41 = vld [vmem:[#allocation57_spill] sm:$0xff]  ;;  %26779 = vst [vmem:[#allocation49_spill] sm:$0xff] %v22907_v23 }
 0x580   : > { %v7200_v44 = vrot.slane %v7192_v18, %v20818_v35  ;;  %v7207_v59 = vrot.slane %v7193_v11, %v20818_v35  ;;  %6736 = vrot.lane.b32.xlu1 %v26752_v1, %s19771_s6  ;;  %v6993_v57 = vcombine.high %v22587_v38, %v22751_v20  ;;  %v26781_v5 = vcombine.low %v22831_v36, %v22837_v10 }
 0x581   : > { %6422 = vxpose.xlu0.b32.cont [15/16] %v26778_v41, 128  ;;  %v17375_v18 = vcombine.low %v7184_v27, %v7191_v39  ;;  %v17377_v53 = vcombine.high %v7184_v27, %v7191_v39  ;;  %v22909_v56 = vpop.permute.xlu1 %6542  ;;  %v7000_v46 = vrot.slane %v6992_v6, %v20815_v31 }
 0x582   : > { %v17379_v11 = vcombine.low %v7200_v44, %v7207_v59  ;;  %v17381_v40 = vcombine.high %v7200_v44, %v7207_v59  ;;  %v7007_v38 = vrot.slane %v6993_v57, %v20815_v31 }
 0x583   : > { %v9271_v20 = vrot.slane %v17375_v18, %v20815_v31  ;;  %v9287_v27 = vrot.slane %v17377_v53, %v20815_v31  ;;  %v7040_v59 = vcombine.low %v6984_v15, %v7000_v46  ;;  %v7041_v41 = vcombine.high %v6984_v15, %v7000_v46 }
 0x584   : > { %v9303_v39 = vrot.slane %v17379_v11, %v20815_v31  ;;  %v9319_v44 = vrot.slane %v17381_v40, %v20815_v31  ;;  %6768 = vrot.lane.b32.xlu1 %v26748_v32, %s19772_s3  ;;  %v7056_v0 = vcombine.low %v6991_v42, %v7007_v38  ;;  %v7057_v47 = vcombine.high %v6991_v42, %v7007_v38  ;;  %v22934_v38 = vpop.permute.xlu0 %6630 }
 0x585   : > { %6423 = vxpose.xlu0.b32.end [16/16] %v26780_v49, 128  ;;  %v9336_v6 = vcombine.low %v9271_v20, %v9287_v27  ;;  %v9337_v23 = vcombine.high %v9271_v20, %v9287_v27  ;;  %v22924_v18 = vpop.permute.xlu1 %6474  ;;  %v7048_v53 = vrot.slane %v7040_v59, %v20818_v35  ;;  %v7055_v11 = vrot.slane %v7041_v41, %v20818_v35 }
 0x586   : > { %v9368_v57 = vcombine.low %v9303_v39, %v9319_v44  ;;  %v9369_v43 = vcombine.high %v9303_v39, %v9319_v44  ;;  %v7064_v40 = vrot.slane %v7056_v0, %v20818_v35  ;;  %v7071_v32 = vrot.slane %v7057_v47, %v20818_v35 }
 0x587   : > { %v9344_v46 = vrot.slane %v9336_v6, %v20818_v35  ;;  %v9351_v15 = vrot.slane %v9337_v23, %v20818_v35  ;;  %v17367_v20 = vcombine.low %v7048_v53, %v7055_v11  ;;  %v17369_v27 = vcombine.high %v7048_v53, %v7055_v11 }
 0x588   : > { %v9376_v42 = vrot.slane %v9368_v57, %v20818_v35  ;;  %v9383_v49 = vrot.slane %v9369_v43, %v20818_v35  ;;  %6486 = vrot.lane.b32.xlu1 %v20707_v8, %s19767_s18  ;;  %v17371_v39 = vcombine.low %v7064_v40, %v7071_v32  ;;  %v17373_v44 = vcombine.high %v7064_v40, %v7071_v32 }
 0x589   : > { %v22938_v6 = vpop.permute.xlu1 %6490  ;;  %v9135_v23 = vrot.slane %v17367_v20, %v20815_v31  ;;  %v9151_v57 = vrot.slane %v17369_v27, %v20815_v31  ;;  %v26782_v32 = vcombine.high %v22831_v36, %v22837_v10  ;;  %v26783_v40 = vcombine.low %v22834_v3, %v22840_v14  ;;  %v22970_v10 = vpop.permute.xlu0 %6646 }
 0x58a   : > { %v9388_v0 = vcombine.low %v9344_v46, %v9376_v42  ;;  %v9389_v59 = vcombine.high %v9344_v46, %v9376_v42  ;;  %v9390_v47 = vcombine.low %v9351_v15, %v9383_v49  ;;  %v9391_v41 = vcombine.high %v9351_v15, %v9383_v49  ;;  %v26785_v49 = vld [vmem:[#allocation42_spill] sm:$0xff] }
 0x58b   : > { %v9167_v43 = vrot.slane %v17371_v39, %v20815_v31  ;;  %v9183_v17 = vrot.slane %v17373_v44, %v20815_v31  ;;  %v26784_v15 = vcombine.high %v22834_v3, %v22840_v14  ;;  %v9200_v20 = vcombine.low %v9135_v23, %v9151_v57 }
 0x58c   : > { %v11193_v53 = vpack.c.bf16 %v26781_v5, %v9388_v0  ;;  %v11201_v11 = vpack.c.bf16 %v26782_v32, %v9389_v59  ;;  %v11209_v46 = vpack.c.bf16 %v26783_v40, %v9390_v47  ;;  %6502 = vrot.lane.b32.xlu1 %v26785_v49, %s19767_s18  ;;  %v9201_v27 = vcombine.high %v9135_v23, %v9151_v57 }
 0x58d   : > { %v11217_v42 = vpack.c.bf16 %v26784_v15, %v9391_v41  ;;  %v9232_v39 = vcombine.low %v9167_v43, %v9183_v17  ;;  %v9233_v44 = vcombine.high %v9167_v43, %v9183_v17  ;;  %v7896_v5 = vcombine.low %v20676_v22, %v22543_v21  ;;  %v22972_v14 = vpop.permute.xlu1 %6522 }
 0x58e   : > { %11257 = vst.msk [vmem:[#allocation4 + $0x108] sm:$0xff] %vm6343_vm0, %v11193_v53  ;;  %11265 = vst.msk [vmem:[#allocation4 + $0x148] sm:$0xff] %vm6343_vm0, %v11201_v11  ;;  %v7897_v36 = vcombine.high %v20676_v22, %v22543_v21  ;;  %v8080_v3 = vcombine.low %v22632_v58, %v22784_v26  ;;  %v8081_v17 = vcombine.high %v22632_v58, %v22784_v26 }
 0x58f   : > { %11273 = vst.msk [vmem:[#allocation4 + $0x188] sm:$0xff] %vm6343_vm0, %v11209_v46  ;;  %11281 = vst.msk [vmem:[#allocation4 + $0x1c8] sm:$0xff] %vm6343_vm0, %v11217_v42  ;;  %v22975_v0 = vrot.slane %v9200_v20, %v20818_v35  ;;  %v22978_v59 = vrot.slane %v9201_v27, %v20818_v35  ;;  %v22981_v47 = vrot.slane %v9232_v39, %v20818_v35 }
 0x590   : > { %v22984_v22 = vrot.slane %v9233_v44, %v20818_v35  ;;  %v26786_v21 = vcombine.low %v20917_v29, %v22530_v28  ;;  %v26787_v26 = vcombine.high %v20917_v29, %v22530_v28  ;;  %v8088_v23 = vrot.slane %v8080_v3, %v20815_v31  ;;  %6534 = vrot.lane.b32.xlu1 %v20707_v8, %s19766_s8 }
 0x591   : > { %v8095_v57 = vrot.slane %v8081_v17, %v20815_v31  ;;  %v23003_v32 = vrot.slane %v7896_v5, %v20815_v31  ;;  %v23006_v11 = vrot.slane %v7897_v36, %v20815_v31  ;;  %v23012_v15 = vpop.permute.xlu1 %6538  ;;  %v6824_v27 = vcombine.low %v22474_v12, %v22558_v62  ;;  %v23026_v36 = vpop.permute.xlu0 %6678 }
 0x592   : > { %v6816_v58 = vrot.slane %v26786_v21, %v20815_v31  ;;  %v6823_v41 = vrot.slane %v26787_v26, %v20815_v31  ;;  %v8128_v29 = vcombine.low %v22897_v7, %v8088_v23  ;;  %v8129_v28 = vcombine.high %v22897_v7, %v8088_v23 }
 0x593   : > { %v8144_v40 = vcombine.low %v22900_v2, %v8095_v57  ;;  %v8145_v46 = vcombine.high %v22900_v2, %v8095_v57  ;;  %v6825_v39 = vcombine.high %v22474_v12, %v22558_v62  ;;  %v6832_v3 = vrot.slane %v6824_v27, %v20815_v31 }
 0x594   : > { %v8136_v7 = vrot.slane %v8128_v29, %v20818_v35  ;;  %v8143_v44 = vrot.slane %v8129_v28, %v20818_v35  ;;  %6550 = vrot.lane.b32.xlu1 %v26785_v49, %s19766_s8  ;;  %v7624_v12 = vcombine.low %v20695_v13, %v22818_v30  ;;  %v7625_v62 = vcombine.high %v20695_v13, %v22818_v30 }
 0x595   : > { %v8152_v2 = vrot.slane %v8144_v40, %v20818_v35  ;;  %v8159_v5 = vrot.slane %v8145_v46, %v20818_v35  ;;  %v6839_v17 = vrot.slane %v6825_v39, %v20815_v31  ;;  %v23036_v29 = vpop.permute.xlu1 %6484  ;;  %v6872_v28 = vcombine.low %v6816_v58, %v6832_v3 }
 0x596   : > { %v17431_v21 = vcombine.low %v8136_v7, %v8143_v44  ;;  %v17433_v26 = vcombine.high %v8136_v7, %v8143_v44  ;;  %v6873_v40 = vcombine.high %v6816_v58, %v6832_v3  ;;  %v23048_v3 = vpop.permute.xlu0 %6694 }
 0x597   : > { %v17435_v23 = vcombine.low %v8152_v2, %v8159_v5  ;;  %v17437_v57 = vcombine.high %v8152_v2, %v8159_v5  ;;  %v6888_v46 = vcombine.low %v6823_v41, %v6839_v17  ;;  %v6889_v20 = vcombine.high %v6823_v41, %v6839_v17  ;;  %26788 = vst [vmem:[#allocation51_spill] sm:$0xff] %v23048_v3 }
 0x598   : > { %v10223_v27 = vrot.slane %v17431_v21, %v20815_v31  ;;  %v10239_v39 = vrot.slane %v17433_v26, %v20815_v31  ;;  %6482 = vrot.lane.b32.xlu1 %v20713_v9, %s19767_s18  ;;  %v6880_v13 = vrot.slane %v6872_v28, %v20818_v35  ;;  %v6887_v30 = vrot.slane %v6873_v40, %v20818_v35 }
 0x599   : > { %v10255_v42 = vrot.slane %v17435_v23, %v20815_v31  ;;  %v10271_v53 = vrot.slane %v17437_v57, %v20815_v31  ;;  %v6896_v7 = vrot.slane %v6888_v46, %v20818_v35  ;;  %v6903_v58 = vrot.slane %v6889_v20, %v20818_v35  ;;  %v23050_v17 = vpop.permute.xlu1 %6500 }
 0x59a   : > { %v10288_v41 = vcombine.low %v10223_v27, %v10239_v39  ;;  %v10289_v44 = vcombine.high %v10223_v27, %v10239_v39  ;;  %26789 = vst [vmem:[#allocation54_spill] sm:$0xff] %v23050_v17  ;;  %v17358_v21 = vcombine.low %v6880_v13, %v6887_v30  ;;  %v17360_v26 = vcombine.high %v6880_v13, %v6887_v30 }
 0x59b   : > { %v10320_v2 = vcombine.low %v10255_v42, %v10271_v53  ;;  %v10321_v5 = vcombine.high %v10255_v42, %v10271_v53  ;;  %v17362_v23 = vcombine.low %v6896_v7, %v6903_v58  ;;  %v17364_v57 = vcombine.high %v6896_v7, %v6903_v58 }
 0x59c   : > { %v23053_v28 = vrot.slane %v10288_v41, %v20818_v35  ;;  %v23059_v20 = vrot.slane %v7624_v12, %v20815_v31  ;;  %v23062_v46 = vrot.slane %v7625_v62, %v20815_v31  ;;  %6498 = vrot.lane.b32.xlu1 %v26726_v61, %s19767_s18  ;;  %v8992_v53 = vrot.slane %v17358_v21, %v20815_v31 }
 0x59d   : > { %v23056_v40 = vrot.slane %v10320_v2, %v20818_v35  ;;  %v9008_v42 = vrot.slane %v17360_v26, %v20815_v31  ;;  %v9024_v27 = vrot.slane %v17362_v23, %v20815_v31  ;;  %v9040_v39 = vrot.slane %v17364_v57, %v20815_v31  ;;  %v23080_v21 = vpop.permute.xlu1 %6548  ;;  %v6727_v57 = vpop.permute.xlu0 %6726 }
 0x59e   : > { %26790 = vst [vmem:[#allocation56_spill] sm:$0xff] %v23059_v20  ;;  %26791 = vst [vmem:[#allocation53_spill] sm:$0xff] %v23062_v46  ;;  %v23071_v13 = vrot.slane %v10289_v44, %v20818_v35  ;;  %v23074_v12 = vrot.slane %v10321_v5, %v20818_v35  ;;  %v7912_v26 = vcombine.low %v22516_v37, %v22589_v55 }
 0x59f   : > { %v9048_v7 = vcombine.low %v8992_v53, %v9008_v42  ;;  %v9049_v58 = vcombine.high %v8992_v53, %v9008_v42  ;;  %v9080_v41 = vcombine.low %v9024_v27, %v9040_v39  ;;  %v9081_v2 = vcombine.high %v9024_v27, %v9040_v39 }
 0x5a0   : > { %v7913_v44 = vcombine.high %v22516_v37, %v22589_v55  ;;  %v6840_v5 = vcombine.low %v22624_v16, %v22704_v51  ;;  %v6841_v23 = vcombine.high %v22624_v16, %v22704_v51  ;;  %6530 = vrot.lane.b32.xlu1 %v20713_v9, %s19766_s8  ;;  %v7920_v51 = vrot.slane %v7912_v26, %v20815_v31 }
 0x5a1   : > { %v23093_v53 = vrot.slane %v9048_v7, %v20818_v35  ;;  %v23096_v42 = vrot.slane %v9049_v58, %v20818_v35  ;;  %v23099_v27 = vrot.slane %v9080_v41, %v20818_v35  ;;  %v23102_v37 = vrot.slane %v9081_v2, %v20818_v35 }
 0x5a2   : > { %v7927_v39 = vrot.slane %v7913_v44, %v20815_v31  ;;  %v6848_v41 = vrot.slane %v6840_v5, %v20815_v31  ;;  %v6855_v2 = vrot.slane %v6841_v23, %v20815_v31  ;;  %v7960_v30 = vcombine.low %v23003_v32, %v7920_v51  ;;  %v6743_v44 = vpop.permute.xlu0 %6742 }
 0x5a3   : > { %v7961_v55 = vcombine.high %v23003_v32, %v7920_v51  ;;  %v7928_v5 = vcombine.low %v22651_v48, %v22753_v25  ;;  %v7929_v23 = vcombine.high %v22651_v48, %v22753_v25  ;;  %v23130_v32 = vpop.permute.xlu1 %6580  ;;  %v7792_v43 = vcombine.low %v22934_v38, %v6727_v57 }
 0x5a4   : > { %v7976_v16 = vcombine.low %v23006_v11, %v7927_v39  ;;  %v7977_v26 = vcombine.high %v23006_v11, %v7927_v39  ;;  %6546 = vrot.lane.b32.xlu1 %v26726_v61, %s19766_s8  ;;  %v7968_v51 = vrot.slane %v7960_v30, %v20818_v35  ;;  %v7793_v48 = vcombine.high %v22934_v38, %v6727_v57 }
 0x5a5   : > { %v7975_v11 = vrot.slane %v7961_v55, %v20818_v35  ;;  %v23137_v62 = vrot.slane %v7928_v5, %v20815_v31  ;;  %v23140_v58 = vrot.slane %v7929_v23, %v20815_v31  ;;  %v26792_v55 = vld [vmem:[#allocation65_spill] sm:$0xff]  ;;  %v8880_v23 = vcombine.low %v22970_v10, %v6743_v44 }
 0x5a6   : > { %v7984_v39 = vrot.slane %v7976_v16, %v20818_v35  ;;  %v7991_v7 = vrot.slane %v7977_v26, %v20818_v35  ;;  %v26793_v16 = vld [vmem:[#allocation71_spill] sm:$0xff]  ;;  %v8881_v9 = vcombine.high %v22970_v10, %v6743_v44 }
 0x5a7   : > { %v17422_v25 = vcombine.low %v7968_v51, %v7975_v11  ;;  %v17424_v3 = vcombine.high %v7968_v51, %v7975_v11  ;;  %v6856_v26 = vcombine.low %v26793_v16, %v22782_v34  ;;  %v6857_v5 = vcombine.high %v26793_v16, %v22782_v34 }
 0x5a8   : > { %v17426_v30 = vcombine.low %v7984_v39, %v7991_v7  ;;  %v17428_v61 = vcombine.high %v7984_v39, %v7991_v7  ;;  %6780 = vrot.lane.b32.xlu1 %v26792_v55, %s19772_s3  ;;  %v23157_v51 = vrot.slane %v7792_v43, %v20815_v31  ;;  %v23160_v11 = vrot.slane %v7793_v48, %v20815_v31  ;;  %v23164_v55 = vpop.permute.xlu1 %6596 }
 0x5a9   : > { %v10080_v8 = vrot.slane %v17422_v25, %v20815_v31  ;;  %v10096_v38 = vrot.slane %v17424_v3, %v20815_v31  ;;  %v6864_v34 = vrot.slane %v6856_v26, %v20815_v31  ;;  %v6871_v39 = vrot.slane %v6857_v5, %v20815_v31 }
 0x5aa   : > { %v10112_v57 = vrot.slane %v17426_v30, %v20815_v31  ;;  %v10128_v7 = vrot.slane %v17428_v61, %v20815_v31  ;;  %v23175_v5 = vrot.slane %v8880_v23, %v20815_v31 }
 0x5ab   : > { %v10136_v10 = vcombine.low %v10080_v8, %v10096_v38  ;;  %v10137_v44 = vcombine.high %v10080_v8, %v10096_v38  ;;  %v6904_v61 = vcombine.low %v6848_v41, %v6864_v34  ;;  %v6905_v30 = vcombine.high %v6848_v41, %v6864_v34 }
 0x5ac   : > { %v10168_v25 = vcombine.low %v10112_v57, %v10128_v7  ;;  %v10169_v3 = vcombine.high %v10112_v57, %v10128_v7  ;;  %6784 = vrot.lane.b32.xlu1 %v26752_v1, %s19772_s3  ;;  %v6920_v43 = vcombine.low %v6855_v2, %v6871_v39  ;;  %v6921_v16 = vcombine.high %v6855_v2, %v6871_v39  ;;  %v6775_v7 = vpop.permute.xlu0 %6774 }
 0x5ad   : > { %v23169_v48 = vrot.slane %v10136_v10, %v20818_v35  ;;  %26794 = vst [vmem:[#allocation55_spill] sm:$0xff] %v23175_v5  ;;  %v23178_v8 = vrot.slane %v8881_v9, %v20815_v31  ;;  %v6912_v38 = vrot.slane %v6904_v61, %v20818_v35  ;;  %v6919_v41 = vrot.slane %v6905_v30, %v20818_v35  ;;  %v26796_v10 = vld [vmem:[#allocation38_spill] sm:$0xff] }
 0x5ae   : > { %v23172_v26 = vrot.slane %v10168_v25, %v20818_v35  ;;  %6790 = vrot.lane.b32.xlu0 %v26785_v49, %s19772_s3  ;;  %v6928_v2 = vrot.slane %v6920_v43, %v20818_v35  ;;  %v6935_v57 = vrot.slane %v6921_v16, %v20818_v35  ;;  %v23187_v34 = vrot.slane %v10137_v44, %v20818_v35  ;;  %v23198_v16 = vpop.permute.xlu1 %6628  ;;  %v26798_v44 = vld [vmem:[#allocation67_spill] sm:$0xff] }
 0x5af   : > { %26795 = vst [vmem:[#allocation60_spill] sm:$0xff] %v23178_v8  ;;  %v23190_v23 = vrot.slane %v10169_v3, %v20818_v35  ;;  %v17359_v25 = vcombine.low %v6912_v38, %v6919_v41  ;;  %v17361_v61 = vcombine.high %v6912_v38, %v6919_v41  ;;  %26797 = vst [vmem:[#allocation63_spill] sm:$0xff] %v23198_v16 }
 0x5b0   : > { %6788 = vrot.lane.b32.xlu1 %v26796_v10, %s19772_s3  ;;  %v17363_v30 = vcombine.low %v6928_v2, %v6935_v57  ;;  %v17365_v43 = vcombine.high %v6928_v2, %v6935_v57  ;;  %v7944_v8 = vcombine.low %v26798_v44, %v22797_v33  ;;  %v7945_v3 = vcombine.high %v26798_v44, %v22797_v33  ;;  %v23228_v17 = vpop.permute.xlu0 %6782 }
 0x5b1   : > { %v7808_v9 = vcombine.low %v23026_v36, %v6775_v7  ;;  %v7809_v5 = vcombine.high %v23026_v36, %v6775_v7  ;;  %v8999_v39 = vrot.slane %v17359_v25, %v20815_v31  ;;  %v9015_v49 = vrot.slane %v17361_v61, %v20815_v31 }
 0x5b2   : > { %v9031_v38 = vrot.slane %v17363_v30, %v20815_v31  ;;  %v9047_v41 = vrot.slane %v17365_v43, %v20815_v31  ;;  %v7952_v2 = vrot.slane %v7944_v8, %v20815_v31  ;;  %v7959_v57 = vrot.slane %v7945_v3, %v20815_v31  ;;  %v23222_v3 = vpop.permute.xlu1 %6644 }
 0x5b3   : > { %v7816_v1 = vrot.slane %v7808_v9, %v20815_v31  ;;  %v7823_v33 = vrot.slane %v7809_v5, %v20815_v31  ;;  %v9064_v44 = vcombine.low %v8999_v39, %v9015_v49  ;;  %v9065_v16 = vcombine.high %v8999_v39, %v9015_v49  ;;  %26799 = vst [vmem:[#allocation57_spill] sm:$0xff] %v23222_v3 }
 0x5b4   : > { %v9096_v46 = vcombine.low %v9031_v38, %v9047_v41  ;;  %v9097_v36 = vcombine.high %v9031_v38, %v9047_v41  ;;  %v7992_v7 = vcombine.low %v23137_v62, %v7952_v2  ;;  %v7993_v25 = vcombine.high %v23137_v62, %v7952_v2 }
 0x5b5   : > { %v8008_v61 = vcombine.low %v23140_v58, %v7959_v57  ;;  %v8009_v30 = vcombine.high %v23140_v58, %v7959_v57  ;;  %v9072_v8 = vrot.slane %v9064_v44, %v20818_v35  ;;  %v9079_v43 = vrot.slane %v9065_v16, %v20818_v35 }
 0x5b6   : > { %v9104_v9 = vrot.slane %v9096_v46, %v20818_v35  ;;  %v9111_v5 = vrot.slane %v9097_v36, %v20818_v35  ;;  %v8000_v49 = vrot.slane %v7992_v7, %v20818_v35  ;;  %v8007_v39 = vrot.slane %v7993_v25, %v20818_v35 }
 0x5b7   : > { %v8016_v62 = vrot.slane %v8008_v61, %v20818_v35  ;;  %v8023_v38 = vrot.slane %v8009_v30, %v20818_v35  ;;  %v26800_v36 = vcombine.low %v22975_v0, %v22981_v47  ;;  %v26801_v25 = vcombine.high %v22975_v0, %v22981_v47 }
 0x5b8   : > { %v9116_v41 = vcombine.low %v9072_v8, %v9104_v9  ;;  %v9117_v58 = vcombine.high %v9072_v8, %v9104_v9  ;;  %v9118_v2 = vcombine.low %v9079_v43, %v9111_v5  ;;  %v9119_v57 = vcombine.high %v9079_v43, %v9111_v5 }
 0x5b9   : > { %v17423_v44 = vcombine.low %v8000_v49, %v8007_v39  ;;  %v17425_v16 = vcombine.high %v8000_v49, %v8007_v39  ;;  %v17427_v20 = vcombine.low %v8016_v62, %v8023_v38  ;;  %v17429_v46 = vcombine.high %v8016_v62, %v8023_v38  ;;  %v23254_v38 = vpop.permute.xlu1 %6676 }
 0x5ba   : > { %v11192_v7 = vpack.c.bf16 %v26800_v36, %v9116_v41  ;;  %v11200_v61 = vpack.c.bf16 %v26801_v25, %v9117_v58  ;;  %v26802_v30 = vcombine.low %v22978_v59, %v22984_v22  ;;  %v26803_v43 = vcombine.high %v22978_v59, %v22984_v22  ;;  %v23264_v36 = vpop.permute.xlu0 %6578 }
 0x5bb   : > { %v10087_v5 = vrot.slane %v17423_v44, %v20815_v31  ;;  %v10103_v49 = vrot.slane %v17425_v16, %v20815_v31  ;;  %v10119_v39 = vrot.slane %v17427_v20, %v20815_v31  ;;  %v10135_v62 = vrot.slane %v17429_v46, %v20815_v31 }
 0x5bc   : > { %v11208_v8 = vpack.c.bf16 %v26802_v30, %v9118_v2  ;;  %v11216_v9 = vpack.c.bf16 %v26803_v43, %v9119_v57  ;;  %11256 = vst.msk [vmem:[#allocation4 + $0x100] sm:$0xff] %vm6343_vm0, %v11192_v7  ;;  %11264 = vst.msk [vmem:[#allocation4 + $0x140] sm:$0xff] %vm6343_vm0, %v11200_v61  ;;  %v7856_v0 = vcombine.low %v23157_v51, %v7816_v1 }
 0x5bd   : > { %v7857_v59 = vcombine.high %v23157_v51, %v7816_v1  ;;  %v7872_v47 = vcombine.low %v23160_v11, %v7823_v33  ;;  %v7873_v22 = vcombine.high %v23160_v11, %v7823_v33  ;;  %v10152_v20 = vcombine.low %v10087_v5, %v10103_v49 }
 0x5be   : > { %11272 = vst.msk [vmem:[#allocation4 + $0x180] sm:$0xff] %vm6343_vm0, %v11208_v8  ;;  %11280 = vst.msk [vmem:[#allocation4 + $0x1c0] sm:$0xff] %vm6343_vm0, %v11216_v9  ;;  %v10153_v41 = vcombine.high %v10087_v5, %v10103_v49  ;;  %v10184_v58 = vcombine.low %v10119_v39, %v10135_v62  ;;  %v10185_v2 = vcombine.high %v10119_v39, %v10135_v62 }
 0x5bf   : > { %v7864_v57 = vrot.slane %v7856_v0, %v20818_v35  ;;  %v7871_v44 = vrot.slane %v7857_v59, %v20818_v35  ;;  %v7880_v16 = vrot.slane %v7872_v47, %v20818_v35  ;;  %v7887_v46 = vrot.slane %v7873_v22, %v20818_v35  ;;  %v23270_v59 = vpop.permute.xlu1 %6692 }
 0x5c0   : > { %v10160_v1 = vrot.slane %v10152_v20, %v20818_v35  ;;  %v10167_v51 = vrot.slane %v10153_v41, %v20818_v35  ;;  %v10192_v11 = vrot.slane %v10184_v58, %v20818_v35  ;;  %v10199_v33 = vrot.slane %v10185_v2, %v20818_v35  ;;  %26804 = vst [vmem:[#allocation61_spill] sm:$0xff] %v23270_v59 }
 0x5c1   : > { %v17415_v7 = vcombine.low %v7864_v57, %v7871_v44  ;;  %v17417_v25 = vcombine.high %v7864_v57, %v7871_v44  ;;  %v17419_v61 = vcombine.low %v7880_v16, %v7887_v46  ;;  %v17421_v30 = vcombine.high %v7880_v16, %v7887_v46 }
 0x5c2   : > { %v10204_v8 = vcombine.low %v10160_v1, %v10192_v11  ;;  %v10205_v43 = vcombine.high %v10160_v1, %v10192_v11  ;;  %v10206_v9 = vcombine.low %v10167_v51, %v10199_v33  ;;  %v10207_v5 = vcombine.high %v10167_v51, %v10199_v33 }
 0x5c3   : > { %v9951_v49 = vrot.slane %v17415_v7, %v20815_v31  ;;  %v9967_v39 = vrot.slane %v17417_v25, %v20815_v31  ;;  %v9983_v62 = vrot.slane %v17419_v61, %v20815_v31  ;;  %v9999_v0 = vrot.slane %v17421_v30, %v20815_v31  ;;  %v23296_v7 = vpop.permute.xlu0 %6594 }
 0x5c4   : > { %v26805_v47 = vcombine.low %v23053_v28, %v23056_v40  ;;  %v26806_v20 = vcombine.high %v23053_v28, %v23056_v40  ;;  %v26807_v58 = vcombine.low %v23071_v13, %v23074_v12  ;;  %v26808_v57 = vcombine.high %v23071_v13, %v23074_v12  ;;  %v26809_v28 = vld [vmem:[#allocation73_spill] sm:$0xff]  ;;  %v26810_v13 = vld [vmem:[#allocation62_spill] sm:$0xff] }
 0x5c5   : > { %v10016_v16 = vcombine.low %v9951_v49, %v9967_v39  ;;  %v10017_v46 = vcombine.high %v9951_v49, %v9967_v39  ;;  %v10048_v1 = vcombine.low %v9983_v62, %v9999_v0  ;;  %v10049_v51 = vcombine.high %v9983_v62, %v9999_v0  ;;  %v23322_v0 = vpop.permute.xlu1 %6724 }
 0x5c6   : > { %v11196_v22 = vpack.c.bf16 %v26805_v47, %v10204_v8  ;;  %v11204_v41 = vpack.c.bf16 %v26806_v20, %v10205_v43  ;;  %v11212_v2 = vpack.c.bf16 %v26807_v58, %v10206_v9  ;;  %v11220_v44 = vpack.c.bf16 %v26808_v57, %v10207_v5  ;;  %v26811_v57 = vld [vmem:[#allocation66_spill] sm:$0xff] }
 0x5c7   : > { %v7232_v40 = vcombine.low %v22820_v19, %v26809_v28  ;;  %v7233_v11 = vcombine.high %v22820_v19, %v26809_v28  ;;  %v8352_v12 = vcombine.low %v26810_v13, %v23228_v17  ;;  %v8353_v33 = vcombine.high %v26810_v13, %v23228_v17  ;;  %v26812_v28 = vld [vmem:[#allocation58_spill] sm:$0xff] }
 0x5c8   : > { %11260 = vst.msk [vmem:[#allocation4 + $0x120] sm:$0xff] %vm6343_vm0, %v11196_v22  ;;  %11268 = vst.msk [vmem:[#allocation4 + $0x160] sm:$0xff] %vm6343_vm0, %v11204_v41  ;;  %v23299_v25 = vrot.slane %v10016_v16, %v20818_v35  ;;  %v23302_v61 = vrot.slane %v10017_v46, %v20818_v35  ;;  %v23305_v30 = vrot.slane %v10048_v1, %v20818_v35 }
 0x5c9   : > { %11276 = vst.msk [vmem:[#allocation4 + $0x1a0] sm:$0xff] %vm6343_vm0, %v11212_v2  ;;  %11284 = vst.msk [vmem:[#allocation4 + $0x1e0] sm:$0xff] %vm6343_vm0, %v11220_v44  ;;  %v23308_v8 = vrot.slane %v10049_v51, %v20818_v35  ;;  %v8360_v43 = vrot.slane %v8352_v12, %v20815_v31  ;;  %v8367_v9 = vrot.slane %v8353_v33, %v20815_v31  ;;  %v23340_v51 = vpop.permute.xlu0 %6626 }
 0x5ca   : > { %v7240_v39 = vrot.slane %v7232_v40, %v20815_v31  ;;  %v7247_v62 = vrot.slane %v7233_v11, %v20815_v31  ;;  %v7216_v44 = vcombine.low %v26811_v57, %v22880_v54  ;;  %v7217_v16 = vcombine.high %v26811_v57, %v22880_v54  ;;  %v23348_v57 = vpop.permute.xlu1 %6740 }
 0x5cb   : > { %v8400_v47 = vcombine.low %v22756_v60, %v8360_v43  ;;  %v8401_v22 = vcombine.high %v22756_v60, %v8360_v43  ;;  %v8416_v20 = vcombine.low %v22759_v63, %v8367_v9  ;;  %v8417_v41 = vcombine.high %v22759_v63, %v8367_v9  ;;  %26813 = vst [vmem:[#allocation65_spill] sm:$0xff] %v23348_v57 }
 0x5cc   : > { %v8320_v40 = vcombine.low %v22851_v4, %v26812_v28  ;;  %v8321_v11 = vcombine.high %v22851_v4, %v26812_v28  ;;  %v7224_v13 = vrot.slane %v7216_v44, %v20815_v31  ;;  %v7231_v54 = vrot.slane %v7217_v16, %v20815_v31 }
 0x5cd   : > { %v8408_v46 = vrot.slane %v8400_v47, %v20818_v35  ;;  %v8415_v60 = vrot.slane %v8401_v22, %v20818_v35  ;;  %v8424_v1 = vrot.slane %v8416_v20, %v20818_v35  ;;  %v8431_v63 = vrot.slane %v8417_v41, %v20818_v35 }
 0x5ce   : > { %v7280_v47 = vcombine.low %v7224_v13, %v7240_v39  ;;  %v7281_v22 = vcombine.high %v7224_v13, %v7240_v39  ;;  %v7296_v20 = vcombine.low %v7231_v54, %v7247_v62  ;;  %v7297_v41 = vcombine.high %v7231_v54, %v7247_v62  ;;  %v23358_v13 = vpop.permute.xlu0 %6642 }
 0x5cf   : > { %v17447_v12 = vcombine.low %v8408_v46, %v8415_v60  ;;  %v17449_v33 = vcombine.high %v8408_v46, %v8415_v60  ;;  %v17451_v43 = vcombine.low %v8424_v1, %v8431_v63  ;;  %v17453_v9 = vcombine.high %v8424_v1, %v8431_v63 }
 0x5d0   : > { %v7288_v16 = vrot.slane %v7280_v47, %v20818_v35  ;;  %v7295_v46 = vrot.slane %v7281_v22, %v20818_v35  ;;  %v7304_v60 = vrot.slane %v7296_v20, %v20818_v35  ;;  %v7311_v39 = vrot.slane %v7297_v41, %v20818_v35 }
 0x5d1   : > { %v10495_v2 = vrot.slane %v17447_v12, %v20815_v31  ;;  %v10511_v58 = vrot.slane %v17449_v33, %v20815_v31  ;;  %v10527_v4 = vrot.slane %v17451_v43, %v20815_v31  ;;  %v10543_v44 = vrot.slane %v17453_v9, %v20815_v31 }
 0x5d2   : > { %v17382_v54 = vcombine.low %v7288_v16, %v7295_v46  ;;  %v17384_v12 = vcombine.high %v7288_v16, %v7295_v46  ;;  %v17386_v33 = vcombine.low %v7304_v60, %v7311_v39  ;;  %v17388_v43 = vcombine.high %v7304_v60, %v7311_v39  ;;  %v23392_v16 = vpop.permute.xlu0 %6674 }
 0x5d3   : > { %v10560_v1 = vcombine.low %v10495_v2, %v10511_v58  ;;  %v10561_v62 = vcombine.high %v10495_v2, %v10511_v58  ;;  %v10592_v63 = vcombine.low %v10527_v4, %v10543_v44  ;;  %v10593_v28 = vcombine.high %v10527_v4, %v10543_v44  ;;  %v23376_v44 = vpop.permute.xlu1 %6772 }
 0x5d4   : > { %v9400_v58 = vrot.slane %v17382_v54, %v20815_v31  ;;  %v9416_v2 = vrot.slane %v17384_v12, %v20815_v31  ;;  %v9432_v41 = vrot.slane %v17386_v33, %v20815_v31  ;;  %v9448_v4 = vrot.slane %v17388_v43, %v20815_v31  ;;  %v26816_v33 = vld [vmem:[#allocation68_spill] sm:$0xff] }
 0x5d5   : > { %v23361_v9 = vrot.slane %v10560_v1, %v20818_v35  ;;  %v23364_v47 = vrot.slane %v10561_v62, %v20818_v35  ;;  %v23367_v22 = vrot.slane %v10592_v63, %v20818_v35  ;;  %v23370_v20 = vrot.slane %v10593_v28, %v20818_v35  ;;  %v26817_v12 = vld [vmem:[#allocation72_spill] sm:$0xff] }
 0x5d6   : > { %v8328_v60 = vrot.slane %v8320_v40, %v20815_v31  ;;  %v8335_v39 = vrot.slane %v8321_v11, %v20815_v31  ;;  %v9456_v1 = vcombine.low %v9400_v58, %v9416_v2  ;;  %v9457_v62 = vcombine.high %v9400_v58, %v9416_v2 }
 0x5d7   : > { %26814 = vst [vmem:[#allocation71_spill] sm:$0xff] %v23364_v47  ;;  %26815 = vst [vmem:[#allocation38_spill] sm:$0xff] %v23370_v20  ;;  %v9488_v63 = vcombine.low %v9432_v41, %v9448_v4  ;;  %v9489_v28 = vcombine.high %v9432_v41, %v9448_v4  ;;  %v8304_v43 = vcombine.low %v26816_v33, %v22909_v56  ;;  %v23404_v17 = vpop.permute.xlu1 %6480 }
 0x5d8   : > { %v8305_v46 = vcombine.high %v26816_v33, %v22909_v56  ;;  %v9464_v40 = vrot.slane %v9456_v1, %v20818_v35  ;;  %v9471_v11 = vrot.slane %v9457_v62, %v20818_v35  ;;  %v6960_v54 = vcombine.low %v22924_v18, %v26817_v12 }
 0x5d9   : > { %v9496_v58 = vrot.slane %v9488_v63, %v20818_v35  ;;  %v9503_v2 = vrot.slane %v9489_v28, %v20818_v35  ;;  %v8312_v41 = vrot.slane %v8304_v43, %v20815_v31  ;;  %v6961_v56 = vcombine.high %v22924_v18, %v26817_v12 }
 0x5da   : > { %v8319_v4 = vrot.slane %v8305_v46, %v20815_v31  ;;  %v26818_v43 = vcombine.low %v22707_v24, %v22713_v52  ;;  %v26819_v59 = vcombine.high %v22707_v24, %v22713_v52  ;;  %v26820_v18 = vcombine.low %v22710_v50, %v22716_v45  ;;  %v26822_v52 = vld [vmem:[#allocation69_spill] sm:$0xff] }
 0x5db   : > { %v9520_v33 = vcombine.low %v9464_v40, %v9496_v58  ;;  %v9521_v49 = vcombine.high %v9464_v40, %v9496_v58  ;;  %v9522_v5 = vcombine.low %v9471_v11, %v9503_v2  ;;  %v9523_v1 = vcombine.high %v9471_v11, %v9503_v2 }
 0x5dc   : > { %v8368_v62 = vcombine.low %v8312_v41, %v8328_v60  ;;  %v8369_v63 = vcombine.high %v8312_v41, %v8328_v60  ;;  %v8384_v19 = vcombine.low %v8319_v4, %v8335_v39  ;;  %v8385_v28 = vcombine.high %v8319_v4, %v8335_v39  ;;  %v23422_v41 = vpop.permute.xlu0 %6690 }
 0x5dd   : > { %v11161_v46 = vpack.c.bf16 %v9520_v33, %v26818_v43  ;;  %v11169_v20 = vpack.c.bf16 %v9521_v49, %v26819_v59  ;;  %v11177_v12 = vpack.c.bf16 %v9522_v5, %v26820_v18  ;;  %v26821_v40 = vcombine.high %v22710_v50, %v22716_v45  ;;  %v26823_v33 = vld [vmem:[#allocation59_spill] sm:$0xff] }
 0x5de   : > { %v8376_v60 = vrot.slane %v8368_v62, %v20818_v35  ;;  %v8383_v39 = vrot.slane %v8369_v63, %v20818_v35  ;;  %v8392_v58 = vrot.slane %v8384_v19, %v20818_v35  ;;  %v8399_v2 = vrot.slane %v8385_v28, %v20818_v35  ;;  %v23440_v62 = vpop.permute.xlu1 %6496 }
 0x5df   : > { %v11185_v11 = vpack.c.bf16 %v9523_v1, %v26821_v40  ;;  %11225 = vst.msk [vmem:[#allocation4 + $0x8] sm:$0xff] %vm6343_vm0, %v11161_v46  ;;  %11233 = vst.msk [vmem:[#allocation4 + $0x48] sm:$0xff] %vm6343_vm0, %v11169_v20  ;;  %v6968_v24 = vrot.slane %v6960_v54, %v20815_v31  ;;  %v6975_v50 = vrot.slane %v6961_v56, %v20815_v31 }
 0x5e0   : > { %11241 = vst.msk [vmem:[#allocation4 + $0x88] sm:$0xff] %vm6343_vm0, %v11177_v12  ;;  %v6944_v45 = vcombine.low %v26822_v52, %v22972_v14  ;;  %v6945_v59 = vcombine.high %v26822_v52, %v22972_v14  ;;  %v17446_v19 = vcombine.low %v8376_v60, %v8383_v39  ;;  %v17448_v5 = vcombine.high %v8376_v60, %v8383_v39 }
 0x5e1   : > { %11249 = vst.msk [vmem:[#allocation4 + $0xc8] sm:$0xff] %vm6343_vm0, %v11185_v11  ;;  %v17450_v49 = vcombine.low %v8392_v58, %v8399_v2  ;;  %v17452_v4 = vcombine.high %v8392_v58, %v8399_v2  ;;  %v8048_v20 = vcombine.low %v22938_v6, %v26823_v33  ;;  %v8049_v1 = vcombine.high %v22938_v6, %v26823_v33  ;;  %v23446_v58 = vpop.permute.xlu0 %6722 }
 0x5e2   : > { %v6952_v54 = vrot.slane %v6944_v45, %v20815_v31  ;;  %v6959_v56 = vrot.slane %v6945_v59, %v20815_v31  ;;  %v10488_v63 = vrot.slane %v17446_v19, %v20815_v31  ;;  %v10504_v14 = vrot.slane %v17448_v5, %v20815_v31 }
 0x5e3   : > { %v10520_v28 = vrot.slane %v17450_v49, %v20815_v31  ;;  %v10536_v43 = vrot.slane %v17452_v4, %v20815_v31 }
 0x5e4   : > { %v7008_v46 = vcombine.low %v6952_v54, %v6968_v24  ;;  %v7009_v18 = vcombine.high %v6952_v54, %v6968_v24  ;;  %v7024_v12 = vcombine.low %v6959_v56, %v6975_v50  ;;  %v7025_v40 = vcombine.high %v6959_v56, %v6975_v50  ;;  %v23456_v56 = vpop.permute.xlu1 %6528 }
 0x5e5   : > { %v10544_v11 = vcombine.low %v10488_v63, %v10504_v14  ;;  %v10545_v6 = vcombine.high %v10488_v63, %v10504_v14  ;;  %v10576_v60 = vcombine.low %v10520_v28, %v10536_v43  ;;  %v10577_v39 = vcombine.high %v10520_v28, %v10536_v43 }
 0x5e6   : > { %v7016_v2 = vrot.slane %v7008_v46, %v20818_v35  ;;  %v7023_v52 = vrot.slane %v7009_v18, %v20818_v35  ;;  %v7032_v45 = vrot.slane %v7024_v12, %v20818_v35  ;;  %v7039_v59 = vrot.slane %v7025_v40, %v20818_v35 }
 0x5e7   : > { %v10552_v19 = vrot.slane %v10544_v11, %v20818_v35  ;;  %v10559_v24 = vrot.slane %v10545_v6, %v20818_v35  ;;  %v10584_v50 = vrot.slane %v10576_v60, %v20818_v35  ;;  %v10591_v5 = vrot.slane %v10577_v39, %v20818_v35  ;;  %v26824_v11 = vld [vmem:[#allocation46_spill] sm:$0xff]  ;;  %v26825_v6 = vld [vmem:[#allocation45_spill] sm:$0xff] }
 0x5e8   : > { %v17366_v49 = vcombine.low %v7016_v2, %v7023_v52  ;;  %v17368_v4 = vcombine.high %v7016_v2, %v7023_v52  ;;  %v17370_v33 = vcombine.low %v7032_v45, %v7039_v59  ;;  %v17372_v54 = vcombine.high %v7032_v45, %v7039_v59  ;;  %v26828_v45 = vld [vmem:[#allocation48_spill] sm:$0xff] }
 0x5e9   : > { %v10608_v63 = vcombine.low %v10552_v19, %v10584_v50  ;;  %v10609_v14 = vcombine.high %v10552_v19, %v10584_v50  ;;  %v10610_v28 = vcombine.low %v10559_v24, %v10591_v5  ;;  %v10611_v43 = vcombine.high %v10559_v24, %v10591_v5  ;;  %v26829_v59 = vld [vmem:[#allocation64_spill] sm:$0xff] }
 0x5ea   : > { %v9128_v46 = vrot.slane %v17366_v49, %v20815_v31  ;;  %v9144_v18 = vrot.slane %v17368_v4, %v20815_v31  ;;  %v9160_v12 = vrot.slane %v17370_v33, %v20815_v31  ;;  %v9176_v40 = vrot.slane %v17372_v54, %v20815_v31  ;;  %v23474_v49 = vpop.permute.xlu0 %6738 }
 0x5eb   : > { %v26826_v60 = vcombine.low %v26824_v11, %v26825_v6  ;;  %v26827_v2 = vcombine.high %v26824_v11, %v26825_v6  ;;  %v26830_v19 = vcombine.low %v26828_v45, %v26829_v59  ;;  %v26831_v50 = vcombine.high %v26828_v45, %v26829_v59  ;;  %v23490_v6 = vpop.permute.xlu1 %6544 }
 0x5ec   : > { %v9184_v4 = vcombine.low %v9128_v46, %v9144_v18  ;;  %v9185_v33 = vcombine.high %v9128_v46, %v9144_v18  ;;  %v9216_v54 = vcombine.low %v9160_v12, %v9176_v40  ;;  %v9217_v47 = vcombine.high %v9160_v12, %v9176_v40 }
 0x5ed   : > { %v11165_v39 = vpack.c.bf16 %v10608_v63, %v26826_v60  ;;  %v11173_v52 = vpack.c.bf16 %v10609_v14, %v26827_v2  ;;  %v11181_v24 = vpack.c.bf16 %v10610_v28, %v26830_v19  ;;  %v11189_v5 = vpack.c.bf16 %v10611_v43, %v26831_v50  ;;  %v26832_v28 = vld [vmem:[#allocation70_spill] sm:$0xff] }
 0x5ee   : > { %v8056_v63 = vrot.slane %v8048_v20, %v20815_v31  ;;  %v8063_v14 = vrot.slane %v8049_v1, %v20815_v31  ;;  %v8032_v43 = vcombine.low %v26832_v28, %v23012_v15  ;;  %v8033_v46 = vcombine.high %v26832_v28, %v23012_v15  ;;  %v6771_v50 = vpop.permute.xlu0 %6770 }
 0x5ef   : > { %11229 = vst.msk [vmem:[#allocation4 + $0x28] sm:$0xff] %vm6343_vm0, %v11165_v39  ;;  %11237 = vst.msk [vmem:[#allocation4 + $0x68] sm:$0xff] %vm6343_vm0, %v11173_v52  ;;  %v9192_v18 = vrot.slane %v9184_v4, %v20818_v35  ;;  %v9199_v12 = vrot.slane %v9185_v33, %v20818_v35  ;;  %v9224_v40 = vrot.slane %v9216_v54, %v20818_v35 }
 0x5f0   : > { %11245 = vst.msk [vmem:[#allocation4 + $0xa8] sm:$0xff] %vm6343_vm0, %v11181_v24  ;;  %11253 = vst.msk [vmem:[#allocation4 + $0xe8] sm:$0xff] %vm6343_vm0, %v11189_v5  ;;  %v9231_v11 = vrot.slane %v9217_v47, %v20818_v35  ;;  %v8040_v20 = vrot.slane %v8032_v43, %v20815_v31  ;;  %v8047_v1 = vrot.slane %v8033_v46, %v20815_v31 }
 0x5f1   : > { %v7520_v60 = vcombine.low %v23340_v51, %v23446_v58  ;;  %v7521_v15 = vcombine.high %v23340_v51, %v23446_v58  ;;  %v9248_v39 = vcombine.low %v9192_v18, %v9224_v40  ;;  %v9249_v2 = vcombine.high %v9192_v18, %v9224_v40 }
 0x5f2   : > { %v9250_v52 = vcombine.low %v9199_v12, %v9231_v11  ;;  %v9251_v45 = vcombine.high %v9199_v12, %v9231_v11  ;;  %v8096_v59 = vcombine.low %v8040_v20, %v8056_v63  ;;  %v8097_v19 = vcombine.high %v8040_v20, %v8056_v63  ;;  %v23522_v12 = vpop.permute.xlu1 %6576 }
 0x5f3   : > { %v8112_v24 = vcombine.low %v8047_v1, %v8063_v14  ;;  %v8113_v47 = vcombine.high %v8047_v1, %v8063_v14  ;;  %v26833_v5 = vcombine.low %v23093_v53, %v23099_v27  ;;  %v26834_v33 = vcombine.high %v23093_v53, %v23099_v27 }
 0x5f4   : > { %v26835_v51 = vcombine.low %v23096_v42, %v23102_v37  ;;  %v26836_v28 = vcombine.high %v23096_v42, %v23102_v37  ;;  %v8104_v63 = vrot.slane %v8096_v59, %v20818_v35  ;;  %v8111_v14 = vrot.slane %v8097_v19, %v20818_v35 }
 0x5f5   : > { %v11160_v4 = vpack.c.bf16 %v9248_v39, %v26833_v5  ;;  %v11168_v54 = vpack.c.bf16 %v9249_v2, %v26834_v33  ;;  %v8120_v46 = vrot.slane %v8112_v24, %v20818_v35  ;;  %v8127_v18 = vrot.slane %v8113_v47, %v20818_v35 }
 0x5f6   : > { %v11176_v58 = vpack.c.bf16 %v9250_v52, %v26835_v51  ;;  %v11184_v43 = vpack.c.bf16 %v9251_v45, %v26836_v28  ;;  %v7528_v53 = vrot.slane %v7520_v60, %v20815_v31  ;;  %v7535_v42 = vrot.slane %v7521_v15, %v20815_v31  ;;  %v23538_v28 = vpop.permute.xlu1 %6592 }
 0x5f7   : > { %11224 = vst.msk [vmem:[#allocation4] sm:$0xff] %vm6343_vm0, %v11160_v4  ;;  %11232 = vst.msk [vmem:[#allocation4 + $0x40] sm:$0xff] %vm6343_vm0, %v11168_v54  ;;  %v7536_v27 = vcombine.low %v23392_v16, %v6771_v50  ;;  %v7537_v37 = vcombine.high %v23392_v16, %v6771_v50  ;;  %v17430_v40 = vcombine.low %v8104_v63, %v8111_v14 }
 0x5f8   : > { %11240 = vst.msk [vmem:[#allocation4 + $0x80] sm:$0xff] %vm6343_vm0, %v11176_v58  ;;  %11248 = vst.msk [vmem:[#allocation4 + $0xc0] sm:$0xff] %vm6343_vm0, %v11184_v43  ;;  %v17432_v11 = vcombine.high %v8104_v63, %v8111_v14  ;;  %v17434_v20 = vcombine.low %v8120_v46, %v8127_v18  ;;  %v17436_v1 = vcombine.high %v8120_v46, %v8127_v18 }
 0x5f9   : > { %v8608_v39 = vcombine.low %v23358_v13, %v23474_v49  ;;  %v8609_v2 = vcombine.high %v23358_v13, %v23474_v49  ;;  %v7544_v60 = vrot.slane %v7536_v27, %v20815_v31  ;;  %v7551_v15 = vrot.slane %v7537_v37, %v20815_v31  ;;  %v6787_v37 = vpop.permute.xlu0 %6786 }
 0x5fa   : > { %v10216_v52 = vrot.slane %v17430_v40, %v20815_v31  ;;  %v10232_v16 = vrot.slane %v17432_v11, %v20815_v31  ;;  %v10248_v45 = vrot.slane %v17434_v20, %v20815_v31  ;;  %v10264_v59 = vrot.slane %v17436_v1, %v20815_v31 }
 0x5fb   : > { %v7584_v19 = vcombine.low %v7528_v53, %v7544_v60  ;;  %v7585_v24 = vcombine.high %v7528_v53, %v7544_v60  ;;  %v7600_v47 = vcombine.low %v7535_v42, %v7551_v15  ;;  %v7601_v50 = vcombine.high %v7535_v42, %v7551_v15 }
 0x5fc   : > { %v10272_v5 = vcombine.low %v10216_v52, %v10232_v16  ;;  %v10273_v4 = vcombine.high %v10216_v52, %v10232_v16  ;;  %v10304_v33 = vcombine.low %v10248_v45, %v10264_v59  ;;  %v10305_v13 = vcombine.high %v10248_v45, %v10264_v59 }
 0x5fd   : > { %v7592_v49 = vrot.slane %v7584_v19, %v20818_v35  ;;  %v7599_v54 = vrot.slane %v7585_v24, %v20818_v35  ;;  %v7608_v51 = vrot.slane %v7600_v47, %v20818_v35  ;;  %v7615_v58 = vrot.slane %v7601_v50, %v20818_v35 }
 0x5fe   : > { %v10280_v43 = vrot.slane %v10272_v5, %v20818_v35  ;;  %v10287_v63 = vrot.slane %v10273_v4, %v20818_v35  ;;  %v10312_v14 = vrot.slane %v10304_v33, %v20818_v35  ;;  %v10319_v46 = vrot.slane %v10305_v13, %v20818_v35 }
 0x5ff   : > { %v17399_v18 = vcombine.low %v7592_v49, %v7599_v54  ;;  %v17401_v53 = vcombine.high %v7592_v49, %v7599_v54  ;;  %v17403_v42 = vcombine.low %v7608_v51, %v7615_v58  ;;  %v17405_v27 = vcombine.high %v7608_v51, %v7615_v58  ;;  %v23560_v51 = vpop.permute.xlu1 %6624  ;;  %v23562_v58 = vpop.trf.xlu0 }
 0x600   : > { %v10336_v40 = vcombine.low %v10280_v43, %v10312_v14  ;;  %v10337_v11 = vcombine.high %v10280_v43, %v10312_v14  ;;  %v10338_v20 = vcombine.low %v10287_v63, %v10319_v46  ;;  %v10339_v1 = vcombine.high %v10287_v63, %v10319_v46 }
 0x601   : > { %v9679_v60 = vrot.slane %v17399_v18, %v20815_v31  ;;  %v9695_v15 = vrot.slane %v17401_v53, %v20815_v31  ;;  %v9711_v52 = vrot.slane %v17403_v42, %v20815_v31  ;;  %v9727_v16 = vrot.slane %v17405_v27, %v20815_v31 }
 0x602   : > { %v26837_v45 = vcombine.low %v23169_v48, %v23172_v26  ;;  %v26838_v19 = vcombine.high %v23169_v48, %v23172_v26  ;;  %v26839_v47 = vcombine.low %v23187_v34, %v23190_v23  ;;  %v26840_v5 = vcombine.high %v23187_v34, %v23190_v23 }
 0x603   : > { %v9744_v33 = vcombine.low %v9679_v60, %v9695_v15  ;;  %v9745_v13 = vcombine.high %v9679_v60, %v9695_v15  ;;  %v9776_v49 = vcombine.low %v9711_v52, %v9727_v16  ;;  %v9777_v54 = vcombine.high %v9711_v52, %v9727_v16  ;;  %v23608_v52 = vpop.permute.xlu1 %6640  ;;  %v23610_v16 = vpop.trf.xlu0 }
 0x604   : > { %v11164_v59 = vpack.c.bf16 %v10336_v40, %v26837_v45  ;;  %v11172_v24 = vpack.c.bf16 %v10337_v11, %v26838_v19  ;;  %v11180_v50 = vpack.c.bf16 %v10338_v20, %v26839_v47  ;;  %v11188_v4 = vpack.c.bf16 %v10339_v1, %v26840_v5  ;;  %v26841_v5 = vld [vmem:[#allocation54_spill] sm:$0xff] }
 0x605   : > { %v8712_v48 = vcombine.low %v26796_v10, %v23080_v21  ;;  %v8713_v26 = vcombine.high %v26796_v10, %v23080_v21  ;;  %v8624_v34 = vcombine.low %v23422_v41, %v6787_v37  ;;  %v8625_v23 = vcombine.high %v23422_v41, %v6787_v37 }
 0x606   : > { %11228 = vst.msk [vmem:[#allocation4 + $0x20] sm:$0xff] %vm6343_vm0, %v11164_v59  ;;  %11236 = vst.msk [vmem:[#allocation4 + $0x60] sm:$0xff] %vm6343_vm0, %v11172_v24  ;;  %v23575_v43 = vrot.slane %v9744_v33, %v20818_v35  ;;  %v23578_v63 = vrot.slane %v9745_v13, %v20818_v35  ;;  %v23581_v14 = vrot.slane %v9776_v49, %v20818_v35 }
 0x607   : > { %11244 = vst.msk [vmem:[#allocation4 + $0xa0] sm:$0xff] %vm6343_vm0, %v11180_v50  ;;  %11252 = vst.msk [vmem:[#allocation4 + $0xe0] sm:$0xff] %vm6343_vm0, %v11188_v4  ;;  %v23584_v46 = vrot.slane %v9777_v54, %v20818_v35  ;;  %v8616_v18 = vrot.slane %v8608_v39, %v20815_v31  ;;  %v8623_v21 = vrot.slane %v8609_v2, %v20815_v31  ;;  %v26842_v54 = vld [vmem:[#allocation56_spill] sm:$0xff] }
 0x608   : > { %v8632_v10 = vrot.slane %v8624_v34, %v20815_v31  ;;  %v8639_v41 = vrot.slane %v8625_v23, %v20815_v31  ;;  %v23595_v27 = vrot.slane %v8712_v48, %v20815_v31  ;;  %v23598_v37 = vrot.slane %v8713_v26, %v20815_v31  ;;  %v26843_v34 = vld [vmem:[#allocation53_spill] sm:$0xff] }
 0x609   : > { %v7640_v60 = vcombine.low %v23036_v29, %v23130_v32  ;;  %v7641_v15 = vcombine.high %v23036_v29, %v23130_v32  ;;  %v8728_v4 = vcombine.low %v26841_v5, %v23164_v55  ;;  %v8729_v29 = vcombine.high %v26841_v5, %v23164_v55 }
 0x60a   : > { %v8672_v40 = vcombine.low %v8616_v18, %v8632_v10  ;;  %v8673_v39 = vcombine.high %v8616_v18, %v8632_v10  ;;  %v8688_v11 = vcombine.low %v8623_v21, %v8639_v41  ;;  %v8689_v2 = vcombine.high %v8623_v21, %v8639_v41 }
 0x60b   : > { %v7648_v47 = vrot.slane %v7640_v60, %v20815_v31  ;;  %v7655_v50 = vrot.slane %v7641_v15, %v20815_v31  ;;  %v23634_v60 = vpop.permute.xlu1 %6672  ;;  %v23636_v15 = vpop.trf.xlu0 }
 0x60c   : > { %v8680_v45 = vrot.slane %v8672_v40, %v20818_v35  ;;  %v8687_v59 = vrot.slane %v8673_v39, %v20818_v35  ;;  %v8696_v19 = vrot.slane %v8688_v11, %v20818_v35  ;;  %v8703_v24 = vrot.slane %v8689_v2, %v20818_v35 }
 0x60d   : > { %v7688_v48 = vcombine.low %v26842_v54, %v7648_v47  ;;  %v7689_v26 = vcombine.high %v26842_v54, %v7648_v47  ;;  %v7704_v23 = vcombine.low %v26843_v34, %v7655_v50  ;;  %v7705_v18 = vcombine.high %v26843_v34, %v7655_v50 }
 0x60e   : > { %v17463_v32 = vcombine.low %v8680_v45, %v8687_v59  ;;  %v17465_v33 = vcombine.high %v8680_v45, %v8687_v59  ;;  %v17467_v13 = vcombine.low %v8696_v19, %v8703_v24  ;;  %v17469_v49 = vcombine.high %v8696_v19, %v8703_v24 }
 0x60f   : > { %v7696_v40 = vrot.slane %v7688_v48, %v20818_v35  ;;  %v7703_v39 = vrot.slane %v7689_v26, %v20818_v35  ;;  %v7712_v11 = vrot.slane %v7704_v23, %v20818_v35  ;;  %v7719_v2 = vrot.slane %v7705_v18, %v20818_v35 }
 0x610   : > { %v10767_v21 = vrot.slane %v17463_v32, %v20815_v31  ;;  %v10783_v10 = vrot.slane %v17465_v33, %v20815_v31  ;;  %v10799_v41 = vrot.slane %v17467_v13, %v20815_v31  ;;  %v10815_v55 = vrot.slane %v17469_v49, %v20815_v31 }
 0x611   : > { %v17406_v47 = vcombine.low %v7696_v40, %v7703_v39  ;;  %v17408_v50 = vcombine.high %v7696_v40, %v7703_v39  ;;  %v17410_v5 = vcombine.low %v7712_v11, %v7719_v2  ;;  %v17412_v32 = vcombine.high %v7712_v11, %v7719_v2  ;;  %v23660_v39 = vpop.permute.xlu1 %6688  ;;  %v23662_v11 = vpop.trf.xlu0 }
 0x612   : > { %v10832_v45 = vcombine.low %v10767_v21, %v10783_v10  ;;  %v10833_v59 = vcombine.high %v10767_v21, %v10783_v10  ;;  %v10864_v19 = vcombine.low %v10799_v41, %v10815_v55  ;;  %v10865_v24 = vcombine.high %v10799_v41, %v10815_v55 }
 0x613   : > { %v8736_v49 = vrot.slane %v8728_v4, %v20815_v31  ;;  %v8743_v54 = vrot.slane %v8729_v29, %v20815_v31  ;;  %v9808_v48 = vrot.slane %v17406_v47, %v20815_v31  ;;  %v9824_v26 = vrot.slane %v17408_v50, %v20815_v31 }
 0x614   : > { %v23639_v33 = vrot.slane %v10832_v45, %v20818_v35  ;;  %v23642_v13 = vrot.slane %v10864_v19, %v20818_v35  ;;  %v9840_v34 = vrot.slane %v17410_v5, %v20815_v31  ;;  %v9856_v23 = vrot.slane %v17412_v32, %v20815_v31 }
 0x615   : > { %v23651_v18 = vrot.slane %v10833_v59, %v20818_v35  ;;  %v23654_v21 = vrot.slane %v10865_v24, %v20818_v35  ;;  %v9864_v29 = vcombine.low %v9808_v48, %v9824_v26  ;;  %v9865_v41 = vcombine.high %v9808_v48, %v9824_v26  ;;  %v23700_v48 = vpop.permute.xlu1 %6720  ;;  %v26850_v26 = vld [vmem:[#allocation40_spill] sm:$0xff] }
 0x616   : > { %26844 = vst [vmem:[#allocation67_spill] sm:$0xff] %v23639_v33  ;;  %26845 = vst [vmem:[#allocation73_spill] sm:$0xff] %v23642_v13  ;;  %v9896_v55 = vcombine.low %v9840_v34, %v9856_v23  ;;  %v9897_v40 = vcombine.high %v9840_v34, %v9856_v23  ;;  %v8776_v2 = vcombine.low %v23595_v27, %v8736_v49 }
 0x617   : > { %26846 = vst [vmem:[#allocation62_spill] sm:$0xff] %v23651_v18  ;;  %26847 = vst [vmem:[#allocation66_spill] sm:$0xff] %v23654_v21  ;;  %v8777_v45 = vcombine.high %v23595_v27, %v8736_v49  ;;  %v8792_v59 = vcombine.low %v23598_v37, %v8743_v54  ;;  %v8793_v19 = vcombine.high %v23598_v37, %v8743_v54  ;;  %v23702_v54 = vpop.trf.xlu0 }
 0x618   : > { %v23669_v24 = vrot.slane %v9864_v29, %v20818_v35  ;;  %v23672_v47 = vrot.slane %v9865_v41, %v20818_v35  ;;  %v23675_v50 = vrot.slane %v9896_v55, %v20818_v35  ;;  %v23678_v5 = vrot.slane %v9897_v40, %v20818_v35 }
 0x619   : > { %v8784_v32 = vrot.slane %v8776_v2, %v20818_v35  ;;  %v8791_v27 = vrot.slane %v8777_v45, %v20818_v35  ;;  %v8800_v49 = vrot.slane %v8792_v59, %v20818_v35  ;;  %v8807_v37 = vrot.slane %v8793_v19, %v20818_v35  ;;  %v26848_v45 = vld [vmem:[#allocation63_spill] sm:$0xff] }
 0x61a   : > { %v7656_v59 = vcombine.low %v26848_v45, %v23322_v0  ;;  %v7657_v19 = vcombine.high %v26848_v45, %v23322_v0  ;;  %v8440_v1 = vcombine.low %v26850_v26, %v23490_v6  ;;  %v8441_v20 = vcombine.high %v26850_v26, %v23490_v6 }
 0x61b   : > { %v17470_v23 = vcombine.low %v8784_v32, %v8791_v27  ;;  %v17472_v29 = vcombine.high %v8784_v32, %v8791_v27  ;;  %v17474_v41 = vcombine.low %v8800_v49, %v8807_v37  ;;  %v17476_v55 = vcombine.high %v8800_v49, %v8807_v37 }
 0x61c   : > { %v7664_v4 = vrot.slane %v7656_v59, %v20815_v31  ;;  %v7671_v10 = vrot.slane %v7657_v19, %v20815_v31 }
 0x61d   : > { %v10896_v32 = vrot.slane %v17470_v23, %v20815_v31  ;;  %v10912_v27 = vrot.slane %v17472_v29, %v20815_v31  ;;  %v10928_v49 = vrot.slane %v17474_v41, %v20815_v31  ;;  %v10944_v37 = vrot.slane %v17476_v55, %v20815_v31  ;;  %v26849_v55 = vld [vmem:[#allocation39_spill] sm:$0xff] }
 0x61e   : > { %v7672_v29 = vcombine.low %v23254_v38, %v23376_v44  ;;  %v7673_v41 = vcombine.high %v23254_v38, %v23376_v44  ;;  %v7352_v59 = vcombine.low %v26849_v55, %v23456_v56  ;;  %v7353_v19 = vcombine.high %v26849_v55, %v23456_v56 }
 0x61f   : > { %v10952_v45 = vcombine.low %v10896_v32, %v10912_v27  ;;  %v10953_v40 = vcombine.high %v10896_v32, %v10912_v27  ;;  %v10984_v34 = vcombine.low %v10928_v49, %v10944_v37  ;;  %v10985_v23 = vcombine.high %v10928_v49, %v10944_v37  ;;  %v23738_v37 = vpop.permute.xlu1 %6736 }
 0x620   : > { %v7680_v38 = vrot.slane %v7672_v29, %v20815_v31  ;;  %v7687_v44 = vrot.slane %v7673_v41, %v20815_v31  ;;  %v7360_v49 = vrot.slane %v7352_v59, %v20815_v31  ;;  %v7367_v56 = vrot.slane %v7353_v19, %v20815_v31 }
 0x621   : > { %v23723_v2 = vrot.slane %v10952_v45, %v20818_v35  ;;  %v23726_v0 = vrot.slane %v10953_v40, %v20818_v35  ;;  %v23729_v32 = vrot.slane %v10984_v34, %v20818_v35  ;;  %v23732_v27 = vrot.slane %v10985_v23, %v20818_v35  ;;  %v23740_v45 = vpop.trf.xlu0 }
 0x622   : > { %v7720_v41 = vcombine.low %v7664_v4, %v7680_v38  ;;  %v7721_v55 = vcombine.high %v7664_v4, %v7680_v38  ;;  %v7736_v59 = vcombine.low %v7671_v10, %v7687_v44  ;;  %v7737_v19 = vcombine.high %v7671_v10, %v7687_v44 }
 0x623   : > { %v7368_v40 = vcombine.low %v23404_v17, %v23522_v12  ;;  %v7369_v34 = vcombine.high %v23404_v17, %v23522_v12  ;;  %v23763_v38 = vrot.slane %v8440_v1, %v20815_v31  ;;  %v23766_v44 = vrot.slane %v8441_v20, %v20815_v31  ;;  %v23770_v53 = vpop.permute.xlu1 %6768 }
 0x624   : > { %v7728_v23 = vrot.slane %v7720_v41, %v20818_v35  ;;  %v7735_v29 = vrot.slane %v7721_v55, %v20818_v35  ;;  %v7744_v4 = vrot.slane %v7736_v59, %v20818_v35  ;;  %v7751_v10 = vrot.slane %v7737_v19, %v20818_v35 }
 0x625   : > { %v7376_v6 = vrot.slane %v7368_v40, %v20815_v31  ;;  %v7383_v26 = vrot.slane %v7369_v34, %v20815_v31  ;;  %v23772_v55 = vpop.trf.xlu0 }
 0x626   : > { %v17407_v42 = vcombine.low %v7728_v23, %v7735_v29  ;;  %v17409_v17 = vcombine.high %v7728_v23, %v7735_v29  ;;  %v17411_v12 = vcombine.low %v7744_v4, %v7751_v10  ;;  %v17413_v41 = vcombine.high %v7744_v4, %v7751_v10 }
 0x627   : > { %v7416_v59 = vcombine.low %v7360_v49, %v7376_v6  ;;  %v7417_v19 = vcombine.high %v7360_v49, %v7376_v6  ;;  %v7432_v57 = vcombine.low %v7367_v56, %v7383_v26  ;;  %v7433_v1 = vcombine.high %v7367_v56, %v7383_v26  ;;  %v23786_v13 = vpop.permute.xlu1 %6486 }
 0x628   : > { %v9815_v3 = vrot.slane %v17407_v42, %v20815_v31  ;;  %v9831_v20 = vrot.slane %v17409_v17, %v20815_v31  ;;  %v9847_v40 = vrot.slane %v17411_v12, %v20815_v31  ;;  %v9863_v34 = vrot.slane %v17413_v41, %v20815_v31 }
 0x629   : > { %v7424_v23 = vrot.slane %v7416_v59, %v20818_v35  ;;  %v7431_v29 = vrot.slane %v7417_v19, %v20818_v35  ;;  %v7440_v4 = vrot.slane %v7432_v57, %v20818_v35  ;;  %v7447_v10 = vrot.slane %v7433_v1, %v20818_v35  ;;  %v23788_v57 = vpop.trf.xlu0 }
 0x62a   : > { %v9880_v21 = vcombine.low %v9815_v3, %v9831_v20  ;;  %v9881_v49 = vcombine.high %v9815_v3, %v9831_v20  ;;  %v9912_v6 = vcombine.low %v9847_v40, %v9863_v34  ;;  %v9913_v56 = vcombine.high %v9847_v40, %v9863_v34 }
 0x62b   : > { %v17390_v26 = vcombine.low %v7424_v23, %v7431_v29  ;;  %v17392_v42 = vcombine.high %v7424_v23, %v7431_v29  ;;  %v17394_v18 = vcombine.low %v7440_v4, %v7447_v10  ;;  %v17396_v17 = vcombine.high %v7440_v4, %v7447_v10 }
 0x62c   : > { %v9888_v12 = vrot.slane %v9880_v21, %v20818_v35  ;;  %v9895_v41 = vrot.slane %v9881_v49, %v20818_v35  ;;  %v9920_v59 = vrot.slane %v9912_v6, %v20818_v35  ;;  %v9927_v19 = vrot.slane %v9913_v56, %v20818_v35 }
 0x62d   : > { %v9536_v3 = vrot.slane %v17390_v26, %v20815_v31  ;;  %v9552_v1 = vrot.slane %v17392_v42, %v20815_v31  ;;  %v9568_v20 = vrot.slane %v17394_v18, %v20815_v31  ;;  %v9584_v40 = vrot.slane %v17396_v17, %v20815_v31 }
 0x62e   : > { %v9932_v34 = vcombine.low %v9888_v12, %v9920_v59  ;;  %v9933_v21 = vcombine.high %v9888_v12, %v9920_v59  ;;  %v9934_v23 = vcombine.low %v9895_v41, %v9927_v19  ;;  %v9935_v29 = vcombine.high %v9895_v41, %v9927_v19 }
 0x62f   : > { %v9592_v4 = vcombine.low %v9536_v3, %v9552_v1  ;;  %v9593_v10 = vcombine.high %v9536_v3, %v9552_v1  ;;  %v9624_v49 = vcombine.low %v9568_v20, %v9584_v40  ;;  %v9625_v6 = vcombine.high %v9568_v20, %v9584_v40  ;;  %v23830_v20 = vpop.permute.xlu1 %6502 }
 0x630   : > { %v26851_v56 = vcombine.low %v23299_v25, %v23305_v30  ;;  %v26852_v26 = vcombine.high %v23299_v25, %v23305_v30  ;;  %v26853_v18 = vcombine.low %v23302_v61, %v23308_v8  ;;  %v26854_v12 = vcombine.high %v23302_v61, %v23308_v8 }
 0x631   : > { %v23807_v59 = vrot.slane %v9592_v4, %v20818_v35  ;;  %v23810_v19 = vrot.slane %v9593_v10, %v20818_v35  ;;  %v23813_v3 = vrot.slane %v9624_v49, %v20818_v35  ;;  %v23816_v25 = vrot.slane %v9625_v6, %v20818_v35 }
 0x632   : > { %v11195_v33 = vpack.c.bf16 %v26851_v56, %v9932_v34  ;;  %v11203_v42 = vpack.c.bf16 %v26852_v26, %v9933_v21  ;;  %v11211_v17 = vpack.c.bf16 %v26853_v18, %v9934_v23  ;;  %v11219_v41 = vpack.c.bf16 %v26854_v12, %v9935_v29  ;;  %v26855_v12 = vld [vmem:[#allocation47_spill] sm:$0xff] }
 0x633   : > { %v8456_v61 = vcombine.low %v23440_v62, %v23538_v28  ;;  %v8457_v30 = vcombine.high %v23440_v62, %v23538_v28  ;;  %v6440_v8 = vpack.c.bf16 %v23610_v16, %v23562_v58  ;;  %v6441_v1 = vpack.c.bf16 %v23662_v11, %v23636_v15 }
 0x634   : > { %11259 = vst.msk [vmem:[#allocation4 + $0x118] sm:$0xff] %vm6343_vm0, %v11195_v33  ;;  %11267 = vst.msk [vmem:[#allocation4 + $0x158] sm:$0xff] %vm6343_vm0, %v11203_v42  ;;  %v23832_v33 = vpop.trf.xlu0  ;;  %v9656_v40 = vcombine.low %v23807_v59, %v23813_v3  ;;  %v9657_v34 = vcombine.high %v23807_v59, %v23813_v3  ;;  %v9658_v21 = vcombine.low %v23810_v19, %v23816_v25  ;;  %v26874_v59 = vld [vmem:[#allocation50_spill] sm:$0xff] }
 0x635   : > { %11275 = vst.msk [vmem:[#allocation4 + $0x198] sm:$0xff] %vm6343_vm0, %v11211_v17  ;;  %11283 = vst.msk [vmem:[#allocation4 + $0x1d8] sm:$0xff] %vm6343_vm0, %v11219_v41  ;;  %v9659_v62 = vcombine.high %v23810_v19, %v23816_v25  ;;  %v8464_v28 = vrot.slane %v8456_v61, %v20815_v31  ;;  %v8471_v58 = vrot.slane %v8457_v30, %v20815_v31  ;;  %v26875_v19 = vld [vmem:[#allocation52_spill] sm:$0xff] }
 0x636   : > { %6448 = vst [vmem:[#allocation3] sm:$0xff] %v6440_v8  ;;  %6449 = vst [vmem:[#allocation3 + $0x8] sm:$0xff] %v6441_v1  ;;  %v7384_v16 = vcombine.low %v23560_v51, %v23700_v48  ;;  %v7385_v15 = vcombine.high %v23560_v51, %v23700_v48  ;;  %v8472_v11 = vcombine.low %v23608_v52, %v23738_v37 }
 0x637   : > { %v8473_v23 = vcombine.high %v23608_v52, %v23738_v37  ;;  %v6442_v29 = vpack.c.bf16 %v23740_v45, %v23702_v54  ;;  %v7400_v4 = vcombine.low %v23634_v60, %v23770_v53  ;;  %v8504_v10 = vcombine.low %v23763_v38, %v8464_v28 }
 0x638   : > { %v8505_v49 = vcombine.high %v23763_v38, %v8464_v28  ;;  %v8520_v6 = vcombine.low %v23766_v44, %v8471_v58  ;;  %v8521_v51 = vcombine.high %v23766_v44, %v8471_v58  ;;  %v7392_v48 = vrot.slane %v7384_v16, %v20815_v31  ;;  %v23872_v44 = vpop.permute.xlu1 %6534  ;;  %v23874_v42 = vpop.trf.xlu0 }
 0x639   : > { %v7399_v56 = vrot.slane %v7385_v15, %v20815_v31  ;;  %v23863_v52 = vrot.slane %v8472_v11, %v20815_v31  ;;  %v23866_v54 = vrot.slane %v8473_v23, %v20815_v31  ;;  %6450 = vst [vmem:[#allocation3 + $0x10] sm:$0xff] %v6442_v29  ;;  %v8512_v37 = vrot.slane %v8504_v10, %v20818_v35 }
 0x63a   : > { %v8519_v45 = vrot.slane %v8505_v49, %v20818_v35  ;;  %v8528_v38 = vrot.slane %v8520_v6, %v20818_v35  ;;  %v8535_v26 = vrot.slane %v8521_v51, %v20818_v35  ;;  %v7401_v18 = vcombine.high %v23634_v60, %v23770_v53 }
 0x63b   : > { %v7408_v17 = vrot.slane %v7400_v4, %v20815_v31  ;;  %v7776_v41 = vcombine.low %v23786_v13, %v26855_v12  ;;  %v7777_v61 = vcombine.high %v23786_v13, %v26855_v12 }
 0x63c   : > { %v17454_v30 = vcombine.low %v8512_v37, %v8519_v45  ;;  %v17456_v8 = vcombine.high %v8512_v37, %v8519_v45  ;;  %v17458_v1 = vcombine.low %v8528_v38, %v8535_v26  ;;  %v17460_v28 = vcombine.high %v8528_v38, %v8535_v26  ;;  %v23893_v45 = vpop.permute.xlu1 %6550  ;;  %v23895_v38 = vpop.trf.xlu0 }
 0x63d   : > { %v7415_v58 = vrot.slane %v7401_v18, %v20815_v31  ;;  %v7448_v16 = vcombine.low %v7392_v48, %v7408_v17  ;;  %v7449_v15 = vcombine.high %v7392_v48, %v7408_v17  ;;  %v23885_v11 = vrot.slane %v7776_v41, %v20815_v31 }
 0x63e   : > { %v10624_v53 = vrot.slane %v17454_v30, %v20815_v31  ;;  %v10640_v60 = vrot.slane %v17456_v8, %v20815_v31  ;;  %v10656_v23 = vrot.slane %v17458_v1, %v20815_v31  ;;  %v10672_v29 = vrot.slane %v17460_v28, %v20815_v31 }
 0x63f   : > { %v7456_v13 = vrot.slane %v7448_v16, %v20818_v35  ;;  %v7463_v4 = vrot.slane %v7449_v15, %v20818_v35  ;;  %v7464_v10 = vcombine.low %v7399_v56, %v7415_v58  ;;  %v7465_v49 = vcombine.high %v7399_v56, %v7415_v58 }
 0x640   : > { %v10680_v6 = vcombine.low %v10624_v53, %v10640_v60  ;;  %v10681_v51 = vcombine.high %v10624_v53, %v10640_v60  ;;  %v10712_v48 = vcombine.low %v10656_v23, %v10672_v29  ;;  %v10713_v37 = vcombine.high %v10656_v23, %v10672_v29 }
 0x641   : > { %v7472_v26 = vrot.slane %v7464_v10, %v20818_v35  ;;  %v7479_v18 = vrot.slane %v7465_v49, %v20818_v35  ;;  %v17391_v17 = vcombine.low %v7456_v13, %v7463_v4  ;;  %v17393_v12 = vcombine.high %v7456_v13, %v7463_v4 }
 0x642   : > { %v23900_v41 = vrot.slane %v10680_v6, %v20818_v35  ;;  %v23903_v30 = vrot.slane %v10681_v51, %v20818_v35  ;;  %v23906_v56 = vrot.slane %v10712_v48, %v20818_v35  ;;  %v23909_v8 = vrot.slane %v10713_v37, %v20818_v35  ;;  %v26856_v51 = vld [vmem:[#allocation49_spill] sm:$0xff] }
 0x643   : > { %v9543_v1 = vrot.slane %v17391_v17, %v20815_v31  ;;  %v9559_v28 = vrot.slane %v17393_v12, %v20815_v31  ;;  %v17395_v58 = vcombine.low %v7472_v26, %v7479_v18  ;;  %v17397_v16 = vcombine.high %v7472_v26, %v7479_v18  ;;  %v23930_v26 = vpop.permute.xlu1 %6482  ;;  %v23932_v18 = vpop.trf.xlu0 }
 0x644   : > { %v10744_v15 = vcombine.low %v23900_v41, %v23906_v56  ;;  %v10745_v53 = vcombine.high %v23900_v41, %v23906_v56  ;;  %v7791_v49 = vrot.slane %v7777_v61, %v20815_v31  ;;  %v6443_v6 = vpack.c.bf16 %v23788_v57, %v23772_v55  ;;  %v26857_v57 = vld [vmem:[#allocation41_spill] sm:$0xff]  ;;  %v26878_v56 = vld [vmem:[#allocation51_spill] sm:$0xff] }
 0x645   : > { %v9575_v29 = vrot.slane %v17395_v58, %v20815_v31  ;;  %v9591_v13 = vrot.slane %v17397_v16, %v20815_v31  ;;  %v9608_v4 = vcombine.low %v9543_v1, %v9559_v28  ;;  %v9609_v10 = vcombine.high %v9543_v1, %v9559_v28 }
 0x646   : > { %v8864_v48 = vcombine.low %v23830_v20, %v26856_v51  ;;  %v8865_v37 = vcombine.high %v23830_v20, %v26856_v51  ;;  %6451 = vst [vmem:[#allocation3 + $0x18] sm:$0xff] %v6443_v6  ;;  %v7760_v58 = vcombine.low %v26857_v57, %v23872_v44  ;;  %v7761_v20 = vcombine.high %v26857_v57, %v23872_v44 }
 0x647   : > { %v9616_v17 = vrot.slane %v9608_v4, %v20818_v35  ;;  %v9623_v12 = vrot.slane %v9609_v10, %v20818_v35  ;;  %v9640_v1 = vcombine.low %v9575_v29, %v9591_v13  ;;  %v9641_v28 = vcombine.high %v9575_v29, %v9591_v13  ;;  %v26858_v29 = vld [vmem:[#allocation42_spill] sm:$0xff] }
 0x648   : > { %v8872_v61 = vrot.slane %v8864_v48, %v20815_v31  ;;  %v8879_v55 = vrot.slane %v8865_v37, %v20815_v31  ;;  %v6444_v4 = vpack.c.bf16 %v23874_v42, %v23832_v33  ;;  %v8848_v13 = vcombine.low %v26858_v29, %v23893_v45 }
 0x649   : > { %v9648_v16 = vrot.slane %v9640_v1, %v20818_v35  ;;  %v9655_v51 = vrot.slane %v9641_v28, %v20818_v35  ;;  %v7768_v10 = vrot.slane %v7760_v58, %v20815_v31  ;;  %v7775_v6 = vrot.slane %v7761_v20, %v20815_v31  ;;  %v23956_v58 = vpop.permute.xlu1 %6498  ;;  %v23958_v20 = vpop.trf.xlu0 }
 0x64a   : > { %v8849_v48 = vcombine.high %v26858_v29, %v23893_v45  ;;  %v7504_v44 = vcombine.low %v23930_v26, %v23264_v36  ;;  %6452 = vst [vmem:[#allocation3 + $0x20] sm:$0xff] %v6444_v4  ;;  %v26859_v45 = vcombine.low %v23575_v43, %v23581_v14 }
 0x64b   : > { %v9660_v37 = vcombine.low %v9616_v17, %v9648_v16  ;;  %v9661_v1 = vcombine.high %v9616_v17, %v9648_v16  ;;  %v9662_v57 = vcombine.low %v9623_v12, %v9655_v51  ;;  %v9663_v28 = vcombine.high %v9623_v12, %v9655_v51 }
 0x64c   : > { %v7824_v33 = vcombine.low %v7768_v10, %v23885_v11  ;;  %v7825_v42 = vcombine.high %v7768_v10, %v23885_v11  ;;  %v7840_v23 = vcombine.low %v7775_v6, %v7791_v49  ;;  %v7841_v60 = vcombine.high %v7775_v6, %v7791_v49 }
 0x64d   : > { %v11194_v29 = vpack.c.bf16 %v26859_v45, %v9660_v37  ;;  %v26860_v17 = vcombine.high %v23575_v43, %v23581_v14  ;;  %v26861_v12 = vcombine.low %v23578_v63, %v23584_v46  ;;  %v26862_v11 = vcombine.high %v23578_v63, %v23584_v46 }
 0x64e   : > { %v7832_v4 = vrot.slane %v7824_v33, %v20818_v35  ;;  %v7839_v10 = vrot.slane %v7825_v42, %v20818_v35  ;;  %v7848_v6 = vrot.slane %v7840_v23, %v20818_v35  ;;  %v7855_v37 = vrot.slane %v7841_v60, %v20818_v35 }
 0x64f   : > { %v11202_v16 = vpack.c.bf16 %v26860_v17, %v9661_v1  ;;  %v11210_v51 = vpack.c.bf16 %v26861_v12, %v9662_v57  ;;  %v11218_v49 = vpack.c.bf16 %v26862_v11, %v9663_v28  ;;  %11258 = vst.msk [vmem:[#allocation4 + $0x110] sm:$0xff] %vm6343_vm0, %v11194_v29  ;;  %v8856_v43 = vrot.slane %v8848_v13, %v20815_v31 }
 0x650   : > { %v8863_v63 = vrot.slane %v8849_v48, %v20815_v31  ;;  %v7505_v14 = vcombine.high %v23930_v26, %v23264_v36  ;;  %v23985_v46 = vrot.slane %v7504_v44, %v20815_v31  ;;  %v17414_v23 = vcombine.low %v7832_v4, %v7839_v10  ;;  %v23991_v36 = vpop.permute.xlu1 %6530  ;;  %v23993_v26 = vpop.trf.xlu0 }
 0x651   : > { %11266 = vst.msk [vmem:[#allocation4 + $0x150] sm:$0xff] %vm6343_vm0, %v11202_v16  ;;  %11274 = vst.msk [vmem:[#allocation4 + $0x190] sm:$0xff] %vm6343_vm0, %v11210_v51  ;;  %v17416_v60 = vcombine.high %v7832_v4, %v7839_v10  ;;  %v17418_v1 = vcombine.low %v7848_v6, %v7855_v37  ;;  %v17420_v57 = vcombine.high %v7848_v6, %v7855_v37 }
 0x652   : > { %11282 = vst.msk [vmem:[#allocation4 + $0x1d0] sm:$0xff] %vm6343_vm0, %v11218_v49  ;;  %v8912_v28 = vcombine.low %v8856_v43, %v8872_v61  ;;  %v8913_v33 = vcombine.high %v8856_v43, %v8872_v61  ;;  %v8928_v42 = vcombine.low %v8863_v63, %v8879_v55  ;;  %v8929_v45 = vcombine.high %v8863_v63, %v8879_v55 }
 0x653   : > { %v9944_v29 = vrot.slane %v17414_v23, %v20815_v31  ;;  %v9960_v13 = vrot.slane %v17416_v60, %v20815_v31  ;;  %v9976_v48 = vrot.slane %v17418_v1, %v20815_v31  ;;  %v9992_v17 = vrot.slane %v17420_v57, %v20815_v31 }
 0x654   : > { %v8920_v44 = vrot.slane %v8912_v28, %v20818_v35  ;;  %v8927_v16 = vrot.slane %v8913_v33, %v20818_v35  ;;  %v8936_v61 = vrot.slane %v8928_v42, %v20818_v35  ;;  %v8943_v55 = vrot.slane %v8929_v45, %v20818_v35 }
 0x655   : > { %v10000_v12 = vcombine.low %v9944_v29, %v9960_v13  ;;  %v10001_v51 = vcombine.high %v9944_v29, %v9960_v13  ;;  %v10032_v11 = vcombine.low %v9976_v48, %v9992_v17  ;;  %v10033_v49 = vcombine.high %v9976_v48, %v9992_v17  ;;  %v6547_v48 = vpop.permute.xlu1 %6546  ;;  %v6438_v17 = vpop.trf.xlu0 }
 0x656   : > { %v17478_v4 = vcombine.low %v8920_v44, %v8927_v16  ;;  %v17480_v10 = vcombine.high %v8920_v44, %v8927_v16  ;;  %v17482_v6 = vcombine.low %v8936_v61, %v8943_v55  ;;  %v17484_v37 = vcombine.high %v8936_v61, %v8943_v55 }
 0x657   : > { %v10008_v43 = vrot.slane %v10000_v12, %v20818_v35  ;;  %v10015_v63 = vrot.slane %v10001_v51, %v20818_v35  ;;  %v10040_v23 = vrot.slane %v10032_v11, %v20818_v35  ;;  %v10047_v60 = vrot.slane %v10033_v49, %v20818_v35 }
 0x658   : > { %v11032_v1 = vrot.slane %v17478_v4, %v20815_v31  ;;  %v11048_v57 = vrot.slane %v17480_v10, %v20815_v31  ;;  %v11064_v28 = vrot.slane %v17482_v6, %v20815_v31  ;;  %v11080_v33 = vrot.slane %v17484_v37, %v20815_v31 }
 0x659   : > { %v10064_v42 = vcombine.low %v10008_v43, %v10040_v23  ;;  %v10065_v45 = vcombine.high %v10008_v43, %v10040_v23  ;;  %v10066_v29 = vcombine.low %v10015_v63, %v10047_v60  ;;  %v10067_v13 = vcombine.high %v10015_v63, %v10047_v60 }
 0x65a   : > { %v11088_v44 = vcombine.low %v11032_v1, %v11048_v57  ;;  %v11089_v16 = vcombine.high %v11032_v1, %v11048_v57  ;;  %v11120_v61 = vcombine.low %v11064_v28, %v11080_v33  ;;  %v11121_v55 = vcombine.high %v11064_v28, %v11080_v33 }
 0x65b   : > { %v26863_v12 = vcombine.low %v23669_v24, %v23675_v50  ;;  %v26864_v11 = vcombine.high %v23669_v24, %v23675_v50  ;;  %v26865_v4 = vcombine.low %v23672_v47, %v23678_v5  ;;  %v26866_v6 = vcombine.high %v23672_v47, %v23678_v5 }
 0x65c   : > { %v11096_v43 = vrot.slane %v11088_v44, %v20818_v35  ;;  %v11103_v63 = vrot.slane %v11089_v16, %v20818_v35  ;;  %v11128_v23 = vrot.slane %v11120_v61, %v20818_v35  ;;  %v11135_v60 = vrot.slane %v11121_v55, %v20818_v35 }
 0x65d   : > { %v11163_v51 = vpack.c.bf16 %v10064_v42, %v26863_v12  ;;  %v11171_v49 = vpack.c.bf16 %v10065_v45, %v26864_v11  ;;  %v11179_v10 = vpack.c.bf16 %v10066_v29, %v26865_v4  ;;  %v11187_v37 = vpack.c.bf16 %v10067_v13, %v26866_v6  ;;  %v6439_v13 = vpop.trf.xlu0  ;;  %v26872_v4 = vld [vmem:[#allocation44_spill] sm:$0xff] }
 0x65e   : > { %v7519_v24 = vrot.slane %v7505_v14, %v20815_v31  ;;  %v6445_v47 = vpack.c.bf16 %v23932_v18, %v23895_v38  ;;  %v8592_v50 = vcombine.low %v23956_v58, %v23296_v7  ;;  %v8593_v5 = vcombine.high %v23956_v58, %v23296_v7  ;;  %v26867_v14 = vld [vmem:[#allocation43_spill] sm:$0xff]  ;;  %v6781_v18 = vpop.permute.xlu1 %6780 }
 0x65f   : > { %11227 = vst.msk [vmem:[#allocation4 + $0x18] sm:$0xff] %vm6343_vm0, %v11163_v51  ;;  %11235 = vst.msk [vmem:[#allocation4 + $0x58] sm:$0xff] %vm6343_vm0, %v11171_v49  ;;  %v11152_v1 = vcombine.low %v11096_v43, %v11128_v23  ;;  %v11153_v57 = vcombine.high %v11096_v43, %v11128_v23  ;;  %v11154_v28 = vcombine.low %v11103_v63, %v11135_v60 }
 0x660   : > { %11243 = vst.msk [vmem:[#allocation4 + $0x98] sm:$0xff] %vm6343_vm0, %v11179_v10  ;;  %11251 = vst.msk [vmem:[#allocation4 + $0xd8] sm:$0xff] %vm6343_vm0, %v11187_v37  ;;  %v11155_v33 = vcombine.high %v11103_v63, %v11135_v60  ;;  %v8600_v42 = vrot.slane %v8592_v50, %v20815_v31  ;;  %v8607_v45 = vrot.slane %v8593_v5, %v20815_v31 }
 0x661   : > { %6453 = vst [vmem:[#allocation3 + $0x28] sm:$0xff] %v6445_v47  ;;  %v7488_v29 = vcombine.low %v26867_v14, %v23991_v36  ;;  %v7489_v38 = vcombine.high %v26867_v14, %v23991_v36  ;;  %v26868_v7 = vcombine.low %v23723_v2, %v23729_v32  ;;  %v26869_v44 = vcombine.high %v23723_v2, %v23729_v32 }
 0x662   : > { %v26870_v61 = vcombine.low %v23726_v0, %v23732_v27  ;;  %v26871_v12 = vcombine.high %v23726_v0, %v23732_v27  ;;  %v6446_v49 = vpack.c.bf16 %v23993_v26, %v23958_v20  ;;  %v8576_v10 = vcombine.low %v26872_v4, %v6547_v48  ;;  %v26873_v0 = vld [vmem:[#allocation74_spill] sm:$0xff] }
 0x663   : > { %v11167_v58 = vpack.c.bf16 %v11152_v1, %v26868_v7  ;;  %v11175_v16 = vpack.c.bf16 %v11153_v57, %v26869_v44  ;;  %v7496_v36 = vrot.slane %v7488_v29, %v20815_v31  ;;  %v7503_v11 = vrot.slane %v7489_v38, %v20815_v31 }
 0x664   : > { %v11183_v55 = vpack.c.bf16 %v11154_v28, %v26870_v61  ;;  %v11191_v51 = vpack.c.bf16 %v11155_v33, %v26871_v12  ;;  %v8577_v2 = vcombine.high %v26872_v4, %v6547_v48  ;;  %v8216_v32 = vcombine.low %v26873_v0, %v6781_v18  ;;  %6454 = vst [vmem:[#allocation3 + $0x30] sm:$0xff] %v6446_v49 }
 0x665   : > { %11231 = vst.msk [vmem:[#allocation4 + $0x38] sm:$0xff] %vm6343_vm0, %v11167_v58  ;;  %11239 = vst.msk [vmem:[#allocation4 + $0x78] sm:$0xff] %vm6343_vm0, %v11175_v16  ;;  %v8217_v27 = vcombine.high %v26873_v0, %v6781_v18  ;;  %v6447_v6 = vpack.c.bf16 %v6439_v13, %v6438_v17  ;;  %v7552_v37 = vcombine.low %v7496_v36, %v23985_v46 }
 0x666   : > { %11247 = vst.msk [vmem:[#allocation4 + $0xb8] sm:$0xff] %vm6343_vm0, %v11183_v55  ;;  %11255 = vst.msk [vmem:[#allocation4 + $0xf8] sm:$0xff] %vm6343_vm0, %v11191_v51  ;;  %v7553_v20 = vcombine.high %v7496_v36, %v23985_v46  ;;  %v7568_v26 = vcombine.low %v7503_v11, %v7519_v24  ;;  %v7569_v43 = vcombine.high %v7503_v11, %v7519_v24 }
 0x667   : > { %v8584_v63 = vrot.slane %v8576_v10, %v20815_v31  ;;  %v8591_v23 = vrot.slane %v8577_v2, %v20815_v31  ;;  %v24069_v60 = vrot.slane %v8216_v32, %v20815_v31  ;;  %v24072_v48 = vrot.slane %v8217_v27, %v20815_v31  ;;  %6455 = vst [vmem:[#allocation3 + $0x38] sm:$0xff] %v6447_v6 }
 0x668   : > { %v7560_v17 = vrot.slane %v7552_v37, %v20818_v35  ;;  %v7567_v47 = vrot.slane %v7553_v20, %v20818_v35  ;;  %v7576_v46 = vrot.slane %v7568_v26, %v20818_v35  ;;  %v7583_v24 = vrot.slane %v7569_v43, %v20818_v35 }
 0x669   : > { %v8640_v50 = vcombine.low %v8584_v63, %v8600_v42  ;;  %v8641_v5 = vcombine.high %v8584_v63, %v8600_v42  ;;  %v8656_v1 = vcombine.low %v8591_v23, %v8607_v45  ;;  %v8657_v57 = vcombine.high %v8591_v23, %v8607_v45 }
 0x66a   : > { %v17398_v28 = vcombine.low %v7560_v17, %v7567_v47  ;;  %v17400_v33 = vcombine.high %v7560_v17, %v7567_v47  ;;  %v17402_v14 = vcombine.low %v7576_v46, %v7583_v24  ;;  %v17404_v29 = vcombine.high %v7576_v46, %v7583_v24 }
 0x66b   : > { %v8648_v38 = vrot.slane %v8640_v50, %v20818_v35  ;;  %v8655_v18 = vrot.slane %v8641_v5, %v20818_v35  ;;  %v8664_v13 = vrot.slane %v8656_v1, %v20818_v35  ;;  %v8671_v7 = vrot.slane %v8657_v57, %v20818_v35 }
 0x66c   : > { %v9672_v58 = vrot.slane %v17398_v28, %v20815_v31  ;;  %v9688_v44 = vrot.slane %v17400_v33, %v20815_v31  ;;  %v9704_v42 = vrot.slane %v17402_v14, %v20815_v31  ;;  %v9720_v45 = vrot.slane %v17404_v29, %v20815_v31 }
 0x66d   : > { %v17462_v16 = vcombine.low %v8648_v38, %v8655_v18  ;;  %v17464_v61 = vcombine.high %v8648_v38, %v8655_v18  ;;  %v17466_v55 = vcombine.low %v8664_v13, %v8671_v7  ;;  %v17468_v12 = vcombine.high %v8664_v13, %v8671_v7 }
 0x66e   : > { %v9728_v51 = vcombine.low %v9672_v58, %v9688_v44  ;;  %v9729_v36 = vcombine.high %v9672_v58, %v9688_v44  ;;  %v9760_v11 = vcombine.low %v9704_v42, %v9720_v45  ;;  %v9761_v49 = vcombine.high %v9704_v42, %v9720_v45 }
 0x66f   : > { %v10760_v4 = vrot.slane %v17462_v16, %v20815_v31  ;;  %v10776_v10 = vrot.slane %v17464_v61, %v20815_v31  ;;  %v10792_v2 = vrot.slane %v17466_v55, %v20815_v31  ;;  %v10808_v0 = vrot.slane %v17468_v12, %v20815_v31 }
 0x670   : > { %v9736_v32 = vrot.slane %v9728_v51, %v20818_v35  ;;  %v9743_v27 = vrot.slane %v9729_v36, %v20818_v35  ;;  %v9768_v6 = vrot.slane %v9760_v11, %v20818_v35  ;;  %v9775_v37 = vrot.slane %v9761_v49, %v20818_v35 }
 0x671   : > { %v10816_v20 = vcombine.low %v10760_v4, %v10776_v10  ;;  %v10817_v26 = vcombine.high %v10760_v4, %v10776_v10  ;;  %v10848_v43 = vcombine.low %v10792_v2, %v10808_v0  ;;  %v10849_v63 = vcombine.high %v10792_v2, %v10808_v0 }
 0x672   : > { %v9792_v23 = vcombine.low %v9736_v32, %v9768_v6  ;;  %v9793_v17 = vcombine.high %v9736_v32, %v9768_v6  ;;  %v9794_v47 = vcombine.low %v9743_v27, %v9775_v37  ;;  %v9795_v46 = vcombine.high %v9743_v27, %v9775_v37 }
 0x673   : > { %v10824_v24 = vrot.slane %v10816_v20, %v20818_v35  ;;  %v10831_v50 = vrot.slane %v10817_v26, %v20818_v35  ;;  %v10856_v5 = vrot.slane %v10848_v43, %v20818_v35  ;;  %v10863_v1 = vrot.slane %v10849_v63, %v20818_v35 }
 0x674   : > { %v11162_v57 = vpack.c.bf16 %v9792_v23, %v9656_v40  ;;  %v11170_v28 = vpack.c.bf16 %v9793_v17, %v9657_v34  ;;  %v11178_v33 = vpack.c.bf16 %v9794_v47, %v9658_v21  ;;  %v11186_v14 = vpack.c.bf16 %v9795_v46, %v9659_v62  ;;  %v6785_v21 = vpop.permute.xlu1 %6784  ;;  %v6791_v62 = vpop.permute.xlu0 %6790 }
 0x675   : > { %v10880_v29 = vcombine.low %v10824_v24, %v10856_v5  ;;  %v10881_v38 = vcombine.high %v10824_v24, %v10856_v5  ;;  %v10882_v18 = vcombine.low %v10831_v50, %v10863_v1  ;;  %v10883_v13 = vcombine.high %v10831_v50, %v10863_v1 }
 0x676   : > { %11226 = vst.msk [vmem:[#allocation4 + $0x10] sm:$0xff] %vm6343_vm0, %v11162_v57  ;;  %11234 = vst.msk [vmem:[#allocation4 + $0x50] sm:$0xff] %vm6343_vm0, %v11170_v28  ;;  %v8264_v3 = vcombine.low %v26874_v59, %v24069_v60  ;;  %v8265_v40 = vcombine.high %v26874_v59, %v24069_v60  ;;  %v8280_v25 = vcombine.low %v26875_v19, %v24072_v48 }
 0x677   : > { %11242 = vst.msk [vmem:[#allocation4 + $0x90] sm:$0xff] %vm6343_vm0, %v11178_v33  ;;  %11250 = vst.msk [vmem:[#allocation4 + $0xd0] sm:$0xff] %vm6343_vm0, %v11186_v14  ;;  %v8281_v34 = vcombine.high %v26875_v19, %v24072_v48  ;;  %v11166_v7 = vpack.c.bf16 %v10880_v29, %v10744_v15  ;;  %v11174_v58 = vpack.c.bf16 %v10881_v38, %v10745_v53 }
 0x678   : > { %v26876_v44 = vcombine.low %v23903_v30, %v23909_v8  ;;  %v26877_v42 = vcombine.high %v23903_v30, %v23909_v8  ;;  %v8272_v48 = vrot.slane %v8264_v3, %v20818_v35  ;;  %v8279_v16 = vrot.slane %v8265_v40, %v20818_v35 }
 0x679   : > { %v8288_v61 = vrot.slane %v8280_v25, %v20818_v35  ;;  %v8295_v15 = vrot.slane %v8281_v34, %v20818_v35  ;;  %11230 = vst.msk [vmem:[#allocation4 + $0x30] sm:$0xff] %vm6343_vm0, %v11166_v7  ;;  %11238 = vst.msk [vmem:[#allocation4 + $0x70] sm:$0xff] %vm6343_vm0, %v11174_v58  ;;  %v8488_v41 = vcombine.low %v23660_v39, %v6785_v21  ;;  %v26882_v7 = vld [vmem:[#allocation38_spill] sm:$0xff] }
 0x67a   : > { %v11182_v60 = vpack.c.bf16 %v10882_v18, %v26876_v44  ;;  %v11190_v45 = vpack.c.bf16 %v10883_v13, %v26877_v42  ;;  %v8489_v30 = vcombine.high %v23660_v39, %v6785_v21  ;;  %v8896_v8 = vcombine.low %v26878_v56, %v6791_v62 }
 0x67b   : > { %v8897_v53 = vcombine.high %v26878_v56, %v6791_v62  ;;  %v17439_v55 = vcombine.low %v8272_v48, %v8279_v16  ;;  %v17441_v12 = vcombine.high %v8272_v48, %v8279_v16  ;;  %v17443_v51 = vcombine.low %v8288_v61, %v8295_v15  ;;  %v26881_v62 = vld [vmem:[#allocation71_spill] sm:$0xff] }
 0x67c   : > { %11246 = vst.msk [vmem:[#allocation4 + $0xb0] sm:$0xff] %vm6343_vm0, %v11182_v60  ;;  %11254 = vst.msk [vmem:[#allocation4 + $0xf0] sm:$0xff] %vm6343_vm0, %v11190_v45  ;;  %v17445_v36 = vcombine.high %v8288_v61, %v8295_v15  ;;  %v8496_v11 = vrot.slane %v8488_v41, %v20815_v31  ;;  %v8503_v49 = vrot.slane %v8489_v30, %v20815_v31  ;;  %v26886_v41 = vld [vmem:[#allocation60_spill] sm:$0xff] }
 0x67d   : > { %v8904_v4 = vrot.slane %v8896_v8, %v20815_v31  ;;  %v8911_v10 = vrot.slane %v8897_v53, %v20815_v31  ;;  %v10359_v2 = vrot.slane %v17439_v55, %v20815_v31  ;;  %v10375_v39 = vrot.slane %v17441_v12, %v20815_v31 }
 0x67e   : > { %v10391_v0 = vrot.slane %v17443_v51, %v20815_v31  ;;  %v10407_v32 = vrot.slane %v17445_v36, %v20815_v31  ;;  %v8536_v27 = vcombine.low %v23863_v52, %v8496_v11  ;;  %v8537_v6 = vcombine.high %v23863_v52, %v8496_v11 }
 0x67f   : > { %v8552_v37 = vcombine.low %v23866_v54, %v8503_v49  ;;  %v8553_v20 = vcombine.high %v23866_v54, %v8503_v49  ;;  %v10424_v26 = vcombine.low %v10359_v2, %v10375_v39  ;;  %v10425_v43 = vcombine.high %v10359_v2, %v10375_v39 }
 0x680   : > { %v10456_v63 = vcombine.low %v10391_v0, %v10407_v32  ;;  %v10457_v23 = vcombine.high %v10391_v0, %v10407_v32  ;;  %v8544_v17 = vrot.slane %v8536_v27, %v20818_v35  ;;  %v8551_v47 = vrot.slane %v8537_v6, %v20818_v35 }
 0x681   : > { %v8560_v46 = vrot.slane %v8552_v37, %v20818_v35  ;;  %v8567_v24 = vrot.slane %v8553_v20, %v20818_v35  ;;  %v10432_v50 = vrot.slane %v10424_v26, %v20818_v35  ;;  %v10439_v52 = vrot.slane %v10425_v43, %v20818_v35  ;;  %v6789_v37 = vpop.permute.xlu1 %6788  ;;  %v26887_v20 = vld [vmem:[#allocation67_spill] sm:$0xff]  ;;  %v26888_v26 = vld [vmem:[#allocation73_spill] sm:$0xff] }
 0x682   : > { %v10464_v5 = vrot.slane %v10456_v63, %v20818_v35  ;;  %v10471_v54 = vrot.slane %v10457_v23, %v20818_v35  ;;  %v17455_v1 = vcombine.low %v8544_v17, %v8551_v47  ;;  %v17457_v57 = vcombine.high %v8544_v17, %v8551_v47  ;;  %v26891_v47 = vld [vmem:[#allocation62_spill] sm:$0xff] }
 0x683   : > { %v17459_v28 = vcombine.low %v8560_v46, %v8567_v24  ;;  %v17461_v33 = vcombine.high %v8560_v46, %v8567_v24  ;;  %v26879_v19 = vcombine.low %v23361_v9, %v23367_v22  ;;  %v26880_v34 = vcombine.high %v23361_v9, %v23367_v22  ;;  %v26885_v9 = vld [vmem:[#allocation55_spill] sm:$0xff]  ;;  %v26892_v46 = vld [vmem:[#allocation66_spill] sm:$0xff] }
 0x684   : > { %v10476_v14 = vcombine.low %v10432_v50, %v10464_v5  ;;  %v10477_v29 = vcombine.high %v10432_v50, %v10464_v5  ;;  %v10478_v38 = vcombine.low %v10439_v52, %v10471_v54  ;;  %v10479_v18 = vcombine.high %v10439_v52, %v10471_v54  ;;  %v26895_v54 = vld [vmem:[#allocation61_spill] sm:$0xff] }
 0x685   : > { %v10631_v13 = vrot.slane %v17455_v1, %v20815_v31  ;;  %v10647_v59 = vrot.slane %v17457_v57, %v20815_v31  ;;  %v10663_v3 = vrot.slane %v17459_v28, %v20815_v31  ;;  %v10679_v40 = vrot.slane %v17461_v33, %v20815_v31 }
 0x686   : > { %v11197_v25 = vpack.c.bf16 %v26879_v19, %v10476_v14  ;;  %v11205_v21 = vpack.c.bf16 %v26880_v34, %v10477_v29  ;;  %v26883_v58 = vcombine.low %v26881_v62, %v26882_v7  ;;  %v26884_v60 = vcombine.high %v26881_v62, %v26882_v7 }
 0x687   : > { %v10696_v45 = vcombine.low %v10631_v13, %v10647_v59  ;;  %v10697_v48 = vcombine.high %v10631_v13, %v10647_v59  ;;  %v10728_v16 = vcombine.low %v10663_v3, %v10679_v40  ;;  %v10729_v61 = vcombine.high %v10663_v3, %v10679_v40 }
 0x688   : > { %v11213_v44 = vpack.c.bf16 %v26883_v58, %v10478_v38  ;;  %v11221_v42 = vpack.c.bf16 %v26884_v60, %v10479_v18  ;;  %11261 = vst.msk [vmem:[#allocation4 + $0x128] sm:$0xff] %vm6343_vm0, %v11197_v25  ;;  %11269 = vst.msk [vmem:[#allocation4 + $0x168] sm:$0xff] %vm6343_vm0, %v11205_v21  ;;  %v8944_v22 = vcombine.low %v26885_v9, %v8904_v4  ;;  %v26896_v38 = vld [vmem:[#allocation57_spill] sm:$0xff] }
 0x689   : > { %v8945_v15 = vcombine.high %v26885_v9, %v8904_v4  ;;  %v8960_v30 = vcombine.low %v26886_v41, %v8911_v10  ;;  %v8961_v56 = vcombine.high %v26886_v41, %v8911_v10  ;;  %v10704_v8 = vrot.slane %v10696_v45, %v20818_v35  ;;  %v26897_v18 = vld [vmem:[#allocation65_spill] sm:$0xff] }
 0x68a   : > { %11277 = vst.msk [vmem:[#allocation4 + $0x1a8] sm:$0xff] %vm6343_vm0, %v11213_v44  ;;  %11285 = vst.msk [vmem:[#allocation4 + $0x1e8] sm:$0xff] %vm6343_vm0, %v11221_v42  ;;  %v10711_v53 = vrot.slane %v10697_v48, %v20818_v35  ;;  %v10736_v55 = vrot.slane %v10728_v16, %v20818_v35  ;;  %v10743_v12 = vrot.slane %v10729_v61, %v20818_v35 }
 0x68b   : > { %v8952_v51 = vrot.slane %v8944_v22, %v20818_v35  ;;  %v8959_v36 = vrot.slane %v8945_v15, %v20818_v35  ;;  %v8968_v11 = vrot.slane %v8960_v30, %v20818_v35  ;;  %v8975_v49 = vrot.slane %v8961_v56, %v20818_v35 }
 0x68c   : > { %v10748_v4 = vcombine.low %v10704_v8, %v10736_v55  ;;  %v10749_v2 = vcombine.high %v10704_v8, %v10736_v55  ;;  %v10750_v39 = vcombine.low %v10711_v53, %v10743_v12  ;;  %v10751_v10 = vcombine.high %v10711_v53, %v10743_v12 }
 0x68d   : > { %v17479_v0 = vcombine.low %v8952_v51, %v8959_v36  ;;  %v17481_v32 = vcombine.high %v8952_v51, %v8959_v36  ;;  %v17483_v27 = vcombine.low %v8968_v11, %v8975_v49  ;;  %v17485_v6 = vcombine.high %v8968_v11, %v8975_v49 }
 0x68e   : > { %v26889_v43 = vcombine.low %v26887_v20, %v26888_v26  ;;  %v26890_v23 = vcombine.high %v26887_v20, %v26888_v26  ;;  %v26893_v24 = vcombine.low %v26891_v47, %v26892_v46  ;;  %v26894_v52 = vcombine.high %v26891_v47, %v26892_v46 }
 0x68f   : > { %v8760_v1 = vcombine.low %v26895_v54, %v6789_v37  ;;  %v8761_v57 = vcombine.high %v26895_v54, %v6789_v37  ;;  %v11039_v28 = vrot.slane %v17479_v0, %v20815_v31  ;;  %v11055_v33 = vrot.slane %v17481_v32, %v20815_v31 }
 0x690   : > { %v11198_v63 = vpack.c.bf16 %v26889_v43, %v10748_v4  ;;  %v11206_v17 = vpack.c.bf16 %v26890_v23, %v10749_v2  ;;  %v11214_v50 = vpack.c.bf16 %v26893_v24, %v10750_v39  ;;  %v11222_v5 = vpack.c.bf16 %v26894_v52, %v10751_v10 }
 0x691   : > { %v11071_v14 = vrot.slane %v17483_v27, %v20815_v31  ;;  %v11087_v29 = vrot.slane %v17485_v6, %v20815_v31  ;;  %v26898_v13 = vcombine.low %v26896_v38, %v26897_v18  ;;  %v26899_v3 = vcombine.high %v26896_v38, %v26897_v18 }
 0x692   : > { %11262 = vst.msk [vmem:[#allocation4 + $0x130] sm:$0xff] %vm6343_vm0, %v11198_v63  ;;  %11270 = vst.msk [vmem:[#allocation4 + $0x170] sm:$0xff] %vm6343_vm0, %v11206_v17  ;;  %v8768_v19 = vrot.slane %v8760_v1, %v20815_v31  ;;  %v8775_v25 = vrot.slane %v8761_v57, %v20815_v31  ;;  %v11104_v58 = vcombine.low %v11039_v28, %v11055_v33 }
 0x693   : > { %11278 = vst.msk [vmem:[#allocation4 + $0x1b0] sm:$0xff] %vm6343_vm0, %v11214_v50  ;;  %11286 = vst.msk [vmem:[#allocation4 + $0x1f0] sm:$0xff] %vm6343_vm0, %v11222_v5  ;;  %v8752_v59 = vrot.slane %v26898_v13, %v20815_v31  ;;  %v8759_v40 = vrot.slane %v26899_v3, %v20815_v31  ;;  %v11105_v44 = vcombine.high %v11039_v28, %v11055_v33 }
 0x694   : > { %v11136_v60 = vcombine.low %v11071_v14, %v11087_v29  ;;  %v11137_v42 = vcombine.high %v11071_v14, %v11087_v29  ;;  %v11112_v30 = vrot.slane %v11104_v58, %v20818_v35 }
 0x695   : > { %v8808_v34 = vcombine.low %v8752_v59, %v8768_v19  ;;  %v8809_v21 = vcombine.high %v8752_v59, %v8768_v19  ;;  %v8824_v62 = vcombine.low %v8759_v40, %v8775_v25  ;;  %v8825_v7 = vcombine.high %v8759_v40, %v8775_v25 }
 0x696   : > { %v11119_v56 = vrot.slane %v11105_v44, %v20818_v35  ;;  %v11144_v8 = vrot.slane %v11136_v60, %v20818_v35  ;;  %v11151_v53 = vrot.slane %v11137_v42, %v20818_v35 }
 0x697   : > { %v8816_v45 = vrot.slane %v8808_v34, %v20818_v35  ;;  %v8823_v48 = vrot.slane %v8809_v21, %v20818_v35  ;;  %v8832_v16 = vrot.slane %v8824_v62, %v20818_v35  ;;  %v8839_v61 = vrot.slane %v8825_v7, %v20818_v35 }
 0x698   : > { %v11156_v39 = vcombine.low %v11112_v30, %v11144_v8  ;;  %v11157_v10 = vcombine.high %v11112_v30, %v11144_v8  ;;  %v11158_v0 = vcombine.low %v11119_v56, %v11151_v53  ;;  %v11159_v32 = vcombine.high %v11119_v56, %v11151_v53 }
 0x699   : > { %v17471_v9 = vcombine.low %v8816_v45, %v8823_v48  ;;  %v17473_v22 = vcombine.high %v8816_v45, %v8823_v48  ;;  %v17475_v15 = vcombine.low %v8832_v16, %v8839_v61  ;;  %v17477_v41 = vcombine.high %v8832_v16, %v8839_v61 }
 0x69b   : > { %v10903_v55 = vrot.slane %v17471_v9, %v20815_v31  ;;  %v10919_v12 = vrot.slane %v17473_v22, %v20815_v31  ;;  %v10935_v51 = vrot.slane %v17475_v15, %v20815_v31  ;;  %v10951_v36 = vrot.slane %v17477_v41, %v20815_v31 }
 0x69d   : > { %v10968_v11 = vcombine.low %v10903_v55, %v10919_v12  ;;  %v10969_v49 = vcombine.high %v10903_v55, %v10919_v12  ;;  %v11000_v4 = vcombine.low %v10935_v51, %v10951_v36  ;;  %v11001_v2 = vcombine.high %v10935_v51, %v10951_v36 }
 0x69f   : > { %v10976_v27 = vrot.slane %v10968_v11, %v20818_v35  ;;  %v10983_v6 = vrot.slane %v10969_v49, %v20818_v35  ;;  %v11008_v37 = vrot.slane %v11000_v4, %v20818_v35  ;;  %v11015_v20 = vrot.slane %v11001_v2, %v20818_v35 }
 0x6a1   : > { %v11020_v26 = vcombine.low %v10976_v27, %v11008_v37  ;;  %v11021_v43 = vcombine.high %v10976_v27, %v11008_v37  ;;  %v11022_v63 = vcombine.low %v10983_v6, %v11015_v20  ;;  %v11023_v31 = vcombine.high %v10983_v6, %v11015_v20 }
 0x6a3   : > { %v11199_v23 = vpack.c.bf16 %v11156_v39, %v11020_v26  ;;  %v11207_v17 = vpack.c.bf16 %v11157_v10, %v11021_v43  ;;  %v11215_v47 = vpack.c.bf16 %v11158_v0, %v11022_v63  ;;  %v11223_v46 = vpack.c.bf16 %v11159_v32, %v11023_v31 }
 0x6a5   : > { %11263 = vst.msk [vmem:[#allocation4 + $0x138] sm:$0xff] %vm6343_vm0, %v11199_v23  ;;  %11271 = vst.msk [vmem:[#allocation4 + $0x178] sm:$0xff] %vm6343_vm0, %v11207_v17 }
 0x6a6   : > { %11279 = vst.msk [vmem:[#allocation4 + $0x1b8] sm:$0xff] %vm6343_vm0, %v11215_v47  ;;  %11287 = vst.msk [vmem:[#allocation4 + $0x1f8] sm:$0xff] %vm6343_vm0, %v11223_v46 }
 0x6a7 PF: > { %v11325_v24 = vld [vmem:[#allocation3] sm:$0xff]  ;;  %s26900_s29 = sld [smem:[#allocation34_spill]]  ;;  %v11326_v35 = vld [vmem:[#allocation3 + $0x8] sm:$0xff]  ;;  %v11327_v50 = vld [vmem:[#allocation3 + $0x10] sm:$0xff]  ;;  %vm11333_vm1 = vcmask 130048   ;;  %s19777_s8 = smov 16  }
 0x6a8   : > { %18072 = vmatprep.subr.bf16.mxu1 %v11325_v24  ;;  %18092 = vmatprep.subr.bf16.mxu0 %v11327_v50  ;;  %v11329_v52 = vld [vmem:[#allocation3 + $0x20] sm:$0xff]  ;;  %v11328_v57 = vld [vmem:[#allocation3 + $0x18] sm:$0xff]  ;;  %v11331_v29 = vld [vmem:[#allocation3 + $0x30] sm:$0xff]  ;;  %s19778_s18 = smov 32   ;;  %s19779_s17 = smov 48   ;;  %vm15550_vm2 = vcmask 261120  }
 0x6a9   : > { %18073 = vmatpush3.bf16.msra.mxu1 %v11325_v24  ;;  %18093 = vmatpush3.bf16.msra.mxu0 %v11327_v50  ;;  %v11330_v19 = vld [vmem:[#allocation3 + $0x28] sm:$0xff]  ;;  %v11332_v42 = vld [vmem:[#allocation3 + $0x38] sm:$0xff]  ;;  %v12430_v39 = vld [vmem:[#allocation4] sm:$0xff]  ;;  %s26974_s6 = sld [smem:[#allocation116_spill]]  ;;  %s19782_s25 = smov 96   ;;  %vm15559_vm3 = vcmask 392192  }
 0x6aa   : > { %18082 = vmatprep.subr.bf16.mxu1 %v11326_v35  ;;  %18112 = vmatprep.subr.bf16.mxu0 %v11329_v52  ;;  %v12431_v27 = vld [vmem:[#allocation4 + $0x8] sm:$0xff]  ;;  %v12432_v31 = vld [vmem:[#allocation4 + $0x10] sm:$0xff]  ;;  %s19783_s10 = smov 112   ;;  %vm15568_vm4 = vcmask 523264   ;;  %vm15577_vm5 = vcmask 654336   ;;  %vm15586_vm6 = vcmask 785408  }
 0x6ab   : > { %vm15595_vm7 = vcmask 916480   ;;  %p27024_p12 = scmp.ne.s32.totalorder %s26646_s1, 0 }
 0x6ad   : > { %s17486_s24 = sshll.u32 %s26900_s29, 6 }
 0x6ae   : > { %s11289_s26 = sshra.s32 %s17486_s24, 4  ;;  %s25991_s3 = scalar_lea.vmem %s20289_s27, %s17486_s24 [#allocation5] }
 0x6af   : > { %s17487_s30 = sshll.u32 %s11289_s26, 3  ;;  %s19780_s26 = smov 64  }
 0x6b0   : > { %s24253_s15 = scalar_lea.vmem [#allocation2], %s17487_s30  ;;  %s27018_s30 = sld [smem:[#allocation35_spill]] }
 0x6b1   : > { %v11293_v5 = vld [vmem:[%s24253_s15] sm:$0xff]  ;;  %v11294_v54 = vld [vmem:[%s24253_s15 + $0x8] sm:$0xff]  ;;  %v11295_v1 = vld [vmem:[%s24253_s15 + $0x10] sm:$0xff]  ;;  %s27023_s24 = sld [smem:[#allocation121_spill]] }
 0x6b2   : > { %18074 = vmatprep.mubr.msk.bf16.mxu1 %vm11333_vm1, %v11293_v5  ;;  %v11301_v28 = vld [vmem:[%s24253_s15 + $0x80] sm:$0xff]  ;;  %v11302_v33 = vld [vmem:[%s24253_s15 + $0x88] sm:$0xff]  ;;  %v11303_v14 = vld [vmem:[%s24253_s15 + $0x90] sm:$0xff] }
 0x6b3   : > { %18075 = vmatmul.mubr.msk.bf16.vlgmr.msra.gmra.mrb[0].mxu1 %vm11333_vm1, %v11294_v54  ;;  %18094 = vmatprep.mubr.msk.bf16.mxu0 %vm11333_vm1, %v11301_v28  ;;  %v11296_v38 = vld [vmem:[%s24253_s15 + $0x18] sm:$0xff]  ;;  %v11297_v18 = vld [vmem:[%s24253_s15 + $0x40] sm:$0xff]  ;;  %v11298_v3 = vld [vmem:[%s24253_s15 + $0x48] sm:$0xff] }
 0x6b4   : > { %18083 = vmatpush3.bf16.msra.mxu1 %v11326_v35  ;;  %18078 = vmatprep.mubr.msk.bf16.mxu1 %vm11333_vm1, %v11295_v1  ;;  %v11304_v13 = vld [vmem:[%s24253_s15 + $0x98] sm:$0xff]  ;;  %v11309_v59 = vld [vmem:[%s24253_s15 + $0x100] sm:$0xff]  ;;  %v11299_v40 = vld [vmem:[%s24253_s15 + $0x50] sm:$0xff] }
 0x6b5   : > { %18102 = vmatprep.subr.bf16.mxu1 %v11328_v57  ;;  %18095 = vmatmul.mubr.msk.bf16.vlgmr.msra.gmra.mrb[0].mxu0 %vm11333_vm1, %v11302_v33  ;;  %v11310_v25 = vld [vmem:[%s24253_s15 + $0x108] sm:$0xff]  ;;  %v11311_v34 = vld [vmem:[%s24253_s15 + $0x110] sm:$0xff]  ;;  %v11300_v21 = vld [vmem:[%s24253_s15 + $0x58] sm:$0xff] }
 0x6b6   : > { %18098 = vmatprep.mubr.msk.bf16.mxu0 %vm11333_vm1, %v11303_v14  ;;  %18113 = vmatpush3.bf16.msra.mxu0 %v11329_v52  ;;  %v11305_v62 = vld [vmem:[%s24253_s15 + $0xc0] sm:$0xff]  ;;  %v11312_v7 = vld [vmem:[%s24253_s15 + $0x118] sm:$0xff]  ;;  %v11306_v44 = vld [vmem:[%s24253_s15 + $0xc8] sm:$0xff] }
 0x6b7   : > { %18132 = vmatprep.subr.bf16.mxu0 %v11331_v29  ;;  %v11317_v58 = vld [vmem:[%s24253_s15 + $0x180] sm:$0xff]  ;;  %v11307_v60 = vld [vmem:[%s24253_s15 + $0xd0] sm:$0xff]  ;;  %v11318_v45 = vld [vmem:[%s24253_s15 + $0x188] sm:$0xff] }
 0x6b8   : > { %v11319_v48 = vld [vmem:[%s24253_s15 + $0x190] sm:$0xff]  ;;  %v11308_v16 = vld [vmem:[%s24253_s15 + $0xd8] sm:$0xff]  ;;  %v11313_v61 = vld [vmem:[%s24253_s15 + $0x140] sm:$0xff] }
 0x6b9   : > { %v11320_v9 = vld [vmem:[%s24253_s15 + $0x198] sm:$0xff]  ;;  %v11314_v22 = vld [vmem:[%s24253_s15 + $0x148] sm:$0xff]  ;;  %v11315_v15 = vld [vmem:[%s24253_s15 + $0x150] sm:$0xff] }
 0x6ba   : > { %v11316_v41 = vld [vmem:[%s24253_s15 + $0x158] sm:$0xff]  ;;  %v11321_v30 = vld [vmem:[%s24253_s15 + $0x1c0] sm:$0xff]  ;;  %v11322_v56 = vld [vmem:[%s24253_s15 + $0x1c8] sm:$0xff] }
 0x6bb   : > { %18079 = vmatmul.mubr.msk.bf16.gmra.mrb[4].mxu1 %vm11333_vm1, %v11296_v38  ;;  %v11323_v8 = vld [vmem:[%s24253_s15 + $0x1d0] sm:$0xff]  ;;  %v11324_v53 = vld [vmem:[%s24253_s15 + $0x1d8] sm:$0xff]  ;;  %v12434_v54 = vld [vmem:[#allocation4 + $0x20] sm:$0xff]  ;;  %s17694_s15 = sshll.u32 %s26900_s29, 3 }
 0x6bc   : > { %18084 = vmatprep.mubr.msk.bf16.mxu1 %vm11333_vm1, %v11297_v18  ;;  %v12433_v35 = vld [vmem:[#allocation4 + $0x18] sm:$0xff]  ;;  %v12438_v1 = vld [vmem:[#allocation4 + $0x40] sm:$0xff]  ;;  %v12439_v38 = vld [vmem:[#allocation4 + $0x48] sm:$0xff] }
 0x6bd   : > { %18099 = vmatmul.mubr.msk.bf16.gmra.mrb[4].mxu0 %vm11333_vm1, %v11304_v13 }
 0x6be   : > { %18114 = vmatprep.mubr.msk.bf16.mxu0 %vm11333_vm1, %v11309_v59 }
 0x6c3   : > { %18085 = vmatmul.mubr.msk.bf16.vlgmr.msra.gmra.mrb[8].mxu1 %vm11333_vm1, %v11298_v3 }
 0x6c4   : > { %18088 = vmatprep.mubr.msk.bf16.mxu1 %vm11333_vm1, %v11299_v40  ;;  %18103 = vmatpush3.bf16.msra.mxu1 %v11328_v57  ;;  %v12436_v40 = vld [vmem:[#allocation4 + $0x30] sm:$0xff] }
 0x6c5   : > { %18122 = vmatprep.subr.bf16.mxu1 %v11330_v19  ;;  %18115 = vmatmul.mubr.msk.bf16.vlgmr.msra.gmra.mrb[8].mxu0 %vm11333_vm1, %v11310_v25 }
 0x6c6   : > { %18118 = vmatprep.mubr.msk.bf16.mxu0 %vm11333_vm1, %v11311_v34  ;;  %18133 = vmatpush3.bf16.msra.mxu0 %v11331_v29  ;;  %v12435_v29 = vld [vmem:[#allocation4 + $0x28] sm:$0xff] }
 0x6c7   : > { %18152 = vmatprep.subr.bf16.mxu0 %v12430_v39 }
 0x6cb   : > { %18089 = vmatmul.mubr.msk.bf16.gmra.mrb[12].mxu1 %vm11333_vm1, %v11300_v21 }
 0x6cc   : > { %18104 = vmatprep.mubr.msk.bf16.mxu1 %vm11333_vm1, %v11305_v62 }
 0x6cd   : > { %18119 = vmatmul.mubr.msk.bf16.gmra.mrb[12].mxu0 %vm11333_vm1, %v11312_v7 }
 0x6ce   : > { %18134 = vmatprep.mubr.msk.bf16.mxu0 %vm11333_vm1, %v11317_v58  ;;  %v12437_v58 = vld [vmem:[#allocation4 + $0x38] sm:$0xff] }
 0x6d3   : > { %18105 = vmatmul.mubr.msk.bf16.vlgmr.msra.gmra.mrb[16].mxu1 %vm11333_vm1, %v11306_v44  ;;  %v12441_v44 = vld [vmem:[#allocation4 + $0x58] sm:$0xff] }
 0x6d4   : > { %18108 = vmatprep.mubr.msk.bf16.mxu1 %vm11333_vm1, %v11307_v60  ;;  %18123 = vmatpush3.bf16.msra.mxu1 %v11330_v19  ;;  %v12440_v19 = vld [vmem:[#allocation4 + $0x50] sm:$0xff] }
 0x6d5   : > { %18142 = vmatprep.subr.bf16.mxu1 %v11332_v42  ;;  %18135 = vmatmul.mubr.msk.bf16.vlgmr.msra.gmra.mrb[16].mxu0 %vm11333_vm1, %v11318_v45 }
 0x6d6   : > { %18138 = vmatprep.mubr.msk.bf16.mxu0 %vm11333_vm1, %v11319_v48  ;;  %18153 = vmatpush3.bf16.msra.mxu0 %v12430_v39  ;;  %v12442_v48 = vld [vmem:[#allocation4 + $0x60] sm:$0xff]  ;;  %v12444_v39 = vld [vmem:[#allocation4 + $0x70] sm:$0xff] }
 0x6d7   : > { %18154 = vmatprep.subr.bf16.mxu0 %v12431_v27 }
 0x6da   : > { %18155 = vmatpush3.bf16.msra.mxu0 %v12431_v27 }
 0x6db   : > { %18109 = vmatmul.mubr.msk.bf16.gmra.mrb[20].mxu1 %vm11333_vm1, %v11308_v16  ;;  %18156 = vmatprep.subr.bf16.mxu0 %v12432_v31  ;;  %v24417_v16 = vld [vmem:[#allocation4 + $0x80] sm:$0xff] }
 0x6dc   : > { %18124 = vmatprep.mubr.msk.bf16.mxu1 %vm11333_vm1, %v11313_v61 }
 0x6dd   : > { %18139 = vmatmul.mubr.msk.bf16.gmra.mrb[20].mxu0 %vm11333_vm1, %v11320_v9 }
 0x6de   : > { %18157 = vmatpush3.bf16.msra.mxu0 %v12432_v31 }
 0x6df   : > { %18158 = vmatprep.subr.bf16.mxu0 %v12433_v35 }
 0x6e2   : > { %18159 = vmatpush3.bf16.msra.mxu0 %v12433_v35 }
 0x6e3   : > { %18125 = vmatmul.mubr.msk.bf16.vlgmr.msra.gmra.mrb[24].mxu1 %vm11333_vm1, %v11314_v22  ;;  %18160 = vmatprep.subr.bf16.mxu0 %v12434_v54 }
 0x6e4   : > { %18128 = vmatprep.mubr.msk.bf16.mxu1 %vm11333_vm1, %v11315_v15  ;;  %18143 = vmatpush3.bf16.msra.mxu1 %v11332_v42 }
 0x6e5   : > { %18176 = vmatprep.subr.bf16.mxu1 %v12438_v1 }
 0x6e6   : > { %18161 = vmatpush3.bf16.msra.mxu0 %v12434_v54  ;;  %v12445_v54 = vld [vmem:[#allocation4 + $0x78] sm:$0xff] }
 0x6e7   : > { %18162 = vmatprep.subr.bf16.mxu0 %v12435_v29 }
 0x6ea   : > { %18163 = vmatpush3.bf16.msra.mxu0 %v12435_v29  ;;  %v24452_v29 = vld [vmem:[#allocation4 + $0xc0] sm:$0xff] }
 0x6eb   : > { %18129 = vmatmul.mubr.msk.bf16.gmra.mrb[28].mxu1 %vm11333_vm1, %v11316_v41  ;;  %18164 = vmatprep.subr.bf16.mxu0 %v12436_v40 }
 0x6ec   : > { %18144 = vmatprep.mubr.msk.bf16.mxu1 %vm11333_vm1, %v11321_v30  ;;  %v12443_v30 = vld [vmem:[#allocation4 + $0x68] sm:$0xff] }
 0x6ee   : > { %18165 = vmatpush3.bf16.msra.mxu0 %v12436_v40 }
 0x6ef   : > { %18166 = vmatprep.subr.bf16.mxu0 %v12437_v58 }
 0x6f2   : > { %18167 = vmatpush3.bf16.msra.mxu0 %v12437_v58 }
 0x6f3   : > { %18145 = vmatmul.mubr.msk.bf16.vlgmr.msra.gmra.mrb[32].mxu1 %vm11333_vm1, %v11322_v56  ;;  %18200 = vmatprep.subr.bf16.mxu0 %v24417_v16 }
 0x6f4   : > { %18148 = vmatprep.mubr.msk.bf16.mxu1 %vm11333_vm1, %v11323_v8  ;;  %18177 = vmatpush3.bf16.msra.mxu1 %v12438_v1 }
 0x6f5   : > { %18178 = vmatprep.subr.bf16.mxu1 %v12439_v38 }
 0x6f8   : > { %18179 = vmatpush3.bf16.msra.mxu1 %v12439_v38 }
 0x6f9   : > { %18180 = vmatprep.subr.bf16.mxu1 %v12440_v19 }
 0x6fb   : > { %18149 = vmatmul.mubr.msk.bf16.gmra.mrb[36].mxu1 %vm11333_vm1, %v11324_v53 }
 0x6fc   : > { %18181 = vmatpush3.bf16.msra.mxu1 %v12440_v19 }
 0x6fd   : > { %18182 = vmatprep.subr.bf16.mxu1 %v12441_v44 }
 0x700   : > { %18183 = vmatpush3.bf16.msra.mxu1 %v12441_v44 }
 0x701   : > { %18184 = vmatprep.subr.bf16.mxu1 %v12442_v48 }
 0x704   : > { %18185 = vmatpush3.bf16.msra.mxu1 %v12442_v48 }
 0x705   : > { %18186 = vmatprep.subr.bf16.mxu1 %v12443_v30 }
 0x708   : > { %18187 = vmatpush3.bf16.msra.mxu1 %v12443_v30 }
 0x709   : > { %18188 = vmatprep.subr.bf16.mxu1 %v12444_v39 }
 0x70c   : > { %18189 = vmatpush3.bf16.msra.mxu1 %v12444_v39 }
 0x70d   : > { %18190 = vmatprep.subr.bf16.mxu1 %v12445_v54 }
 0x710   : > { %18191 = vmatpush3.bf16.msra.mxu1 %v12445_v54 }
 0x711   : > { %18224 = vmatprep.subr.bf16.mxu1 %v24452_v29 }
 0x786   : > { %v24319_v55 = vpop.f32.mrb[0].mxu1 }
 0x787   : > { %11954 = vmax.xlane.f32.xlu0 %v24319_v55  ;;  %v24322_v12 = vpop.f32.mrb[1].mxu1 }
 0x788   : > { %v24324_v51 = vpop.f32.mrb[2].mxu1  ;;  %v24329_v11 = vpop.f32.mrb[0].mxu0 }
 0x789   : > { %11956 = vmax.xlane.f32.xlu1 %v24324_v51  ;;  %v24327_v36 = vpop.f32.mrb[3].mxu1  ;;  %v24331_v49 = vpop.f32.mrb[1].mxu0 }
 0x78a   : > { %v24334_v4 = vpop.f32.mrb[2].mxu0 }
 0x78b   : > { %11950 = vmax.xlane.f32.xlu0 %v24322_v12  ;;  %v24336_v2 = vpop.f32.mrb[3].mxu0 }
 0x78e   : > { %v24338_v10 = vpop.f32.mrb[4].mxu1 }
 0x78f   : > { %11952 = vmax.xlane.f32.xlu0 %v24327_v36  ;;  %v24341_v0 = vpop.f32.mrb[5].mxu1 }
 0x790   : > { %v24343_v32 = vpop.f32.mrb[6].mxu1  ;;  %v24347_v37 = vpop.f32.mrb[4].mxu0 }
 0x791   : > { %v24345_v6 = vpop.f32.mrb[7].mxu1  ;;  %v24349_v20 = vpop.f32.mrb[5].mxu0 }
 0x792   : > { %v24351_v26 = vpop.f32.mrb[6].mxu0 }
 0x793   : > { %v24353_v43 = vpop.f32.mrb[7].mxu0 }
 0x796   : > { %v24355_v63 = vpop.f32.mrb[8].mxu1 }
 0x797   : > { %11970 = vmax.xlane.f32.xlu0 %v24355_v63  ;;  %v24358_v23 = vpop.f32.mrb[9].mxu1 }
 0x798   : > { %11966 = vmax.xlane.f32.xlu1 %v24358_v23  ;;  %v24361_v17 = vpop.f32.mrb[10].mxu1  ;;  %v24365_v46 = vpop.f32.mrb[8].mxu0 }
 0x799   : > { %v24363_v47 = vpop.f32.mrb[11].mxu1  ;;  %26901 = vst [vmem:[#allocation75_spill] sm:$0xff] %v24365_v46  ;;  %v24367_v24 = vpop.f32.mrb[9].mxu0 }
 0x79a   : > { %26902 = vst [vmem:[#allocation76_spill] sm:$0xff] %v24367_v24  ;;  %v24370_v50 = vpop.f32.mrb[10].mxu0 }
 0x79b   : > { %11958 = vmax.xlane.f32.xlu0 %v24341_v0  ;;  %v24373_v52 = vpop.f32.mrb[11].mxu0 }
 0x79c   : > { %11972 = vmax.xlane.f32.xlu1 %v24361_v17 }
 0x79e   : > { %v24375_v5 = vpop.f32.mrb[12].mxu1 }
 0x79f   : > { %11962 = vmax.xlane.f32.xlu0 %v24338_v10  ;;  %v24378_v57 = vpop.f32.mrb[13].mxu1 }
 0x7a0   : > { %11968 = vmax.xlane.f32.xlu1 %v24363_v47  ;;  %v24381_v28 = vpop.f32.mrb[14].mxu1  ;;  %v24385_v14 = vpop.f32.mrb[12].mxu0 }
 0x7a1   : > { %v24383_v33 = vpop.f32.mrb[15].mxu1  ;;  %v24387_v18 = vpop.f32.mrb[13].mxu0 }
 0x7a2   : > { %v24390_v13 = vpop.f32.mrb[14].mxu0 }
 0x7a3   : > { %11982 = vmax.xlane.f32.xlu0 %v24331_v49  ;;  %v24393_v59 = vpop.f32.mrb[15].mxu0 }
 0x7a4   : > { %11960 = vmax.xlane.f32.xlu1 %v24345_v6 }
 0x7a6   : > { %v24395_v3 = vpop.f32.mrb[16].mxu1 }
 0x7a7   : > { %11986 = vmax.xlane.f32.xlu0 %v24329_v11  ;;  %v24398_v25 = vpop.f32.mrb[17].mxu1 }
 0x7a8   : > { %11964 = vmax.xlane.f32.xlu1 %v24343_v32  ;;  %v24401_v34 = vpop.f32.mrb[18].mxu1  ;;  %v24405_v62 = vpop.f32.mrb[16].mxu0 }
 0x7a9   : > { %v24403_v21 = vpop.f32.mrb[19].mxu1  ;;  %v24407_v7 = vpop.f32.mrb[17].mxu0 }
 0x7aa   : > { %v24410_v60 = vpop.f32.mrb[18].mxu0 }
 0x7ab   : > { %11978 = vmax.xlane.f32.xlu0 %v24375_v5  ;;  %26903 = vst [vmem:[#allocation77_spill] sm:$0xff] %v24410_v60  ;;  %v24413_v42 = vpop.f32.mrb[19].mxu0 }
 0x7ac   : > { %11984 = vmax.xlane.f32.xlu1 %v24336_v2 }
 0x7ae   : > { %v24415_v45 = vpop.f32.mrb[20].mxu1 }
 0x7af   : > { %11974 = vmax.xlane.f32.xlu0 %v24378_v57  ;;  %v24420_v61 = vpop.f32.mrb[21].mxu1 }
 0x7b0   : > { %11988 = vmax.xlane.f32.xlu1 %v24334_v4  ;;  %v24423_v9 = vpop.f32.mrb[22].mxu1  ;;  %v24428_v15 = vpop.f32.mrb[20].mxu0 }
 0x7b1   : > { %v24426_v22 = vpop.f32.mrb[23].mxu1  ;;  %26904 = vst [vmem:[#allocation78_spill] sm:$0xff] %v24428_v15  ;;  %v24430_v41 = vpop.f32.mrb[21].mxu0 }
 0x7b2   : > { %26905 = vst [vmem:[#allocation79_spill] sm:$0xff] %v24430_v41  ;;  %v24433_v56 = vpop.f32.mrb[22].mxu0 }
 0x7b3   : > { %12002 = vmax.xlane.f32.xlu0 %v24395_v3  ;;  %26906 = vst [vmem:[#allocation80_spill] sm:$0xff] %v24433_v56  ;;  %v24436_v8 = vpop.f32.mrb[23].mxu0 }
 0x7b4   : > { %11980 = vmax.xlane.f32.xlu1 %v24381_v28  ;;  %26907 = vst [vmem:[#allocation81_spill] sm:$0xff] %v24436_v8 }
 0x7b6   : > { %v24438_v53 = vpop.f32.mrb[24].mxu1 }
 0x7b7   : > { %11998 = vmax.xlane.f32.xlu0 %v24398_v25  ;;  %v24441_v27 = vpop.f32.mrb[25].mxu1 }
 0x7b8   : > { %11976 = vmax.xlane.f32.xlu1 %v24383_v33  ;;  %v24444_v31 = vpop.f32.mrb[26].mxu1 }
 0x7b9   : > { %v24446_v35 = vpop.f32.mrb[27].mxu1 }
 0x7bb   : > { %11990 = vmax.xlane.f32.xlu0 %v24349_v20 }
 0x7bc   : > { %12004 = vmax.xlane.f32.xlu1 %v24401_v34 }
 0x7be   : > { %v24450_v1 = vpop.f32.mrb[28].mxu1 }
 0x7bf   : > { %11994 = vmax.xlane.f32.xlu0 %v24347_v37  ;;  %v24455_v38 = vpop.f32.mrb[29].mxu1 }
 0x7c0   : > { %12000 = vmax.xlane.f32.xlu1 %v24403_v21  ;;  %v24459_v40 = vpop.f32.mrb[30].mxu1 }
 0x7c1   : > { %v24461_v19 = vpop.f32.mrb[31].mxu1 }
 0x7c2   : > { %26908 = vst [vmem:[#allocation82_spill] sm:$0xff] %v24461_v19 }
 0x7c3   : > { %12014 = vmax.xlane.f32.xlu0 %v24367_v24 }
 0x7c4   : > { %11992 = vmax.xlane.f32.xlu1 %v24353_v43 }
 0x7c6   : > { %v24465_v58 = vpop.f32.mrb[32].mxu1 }
 0x7c7   : > { %26909 = vst [vmem:[#allocation83_spill] sm:$0xff] %v24465_v58  ;;  %12018 = vmax.xlane.f32.xlu0 %v24365_v46  ;;  %v24468_v44 = vpop.f32.mrb[33].mxu1 }
 0x7c8   : > { %26910 = vst [vmem:[#allocation84_spill] sm:$0xff] %v24468_v44  ;;  %11996 = vmax.xlane.f32.xlu1 %v24351_v26  ;;  %v24471_v48 = vpop.f32.mrb[34].mxu1 }
 0x7c9   : > { %26911 = vst [vmem:[#allocation85_spill] sm:$0xff] %v24471_v48  ;;  %v24473_v30 = vpop.f32.mrb[35].mxu1 }
 0x7ca   : > { %26912 = vst [vmem:[#allocation86_spill] sm:$0xff] %v24473_v30 }
 0x7cb   : > { %12010 = vmax.xlane.f32.xlu0 %v24415_v45 }
 0x7cc   : > { %12016 = vmax.xlane.f32.xlu1 %v24373_v52 }
 0x7ce   : > { %v24477_v39 = vpop.f32.mrb[36].mxu1 }
 0x7cf   : > { %26913 = vst [vmem:[#allocation87_spill] sm:$0xff] %v24477_v39  ;;  %12006 = vmax.xlane.f32.xlu0 %v24420_v61  ;;  %v24480_v54 = vpop.f32.mrb[37].mxu1 }
 0x7d0   : > { %26914 = vst [vmem:[#allocation88_spill] sm:$0xff] %v24480_v54  ;;  %12020 = vmax.xlane.f32.xlu1 %v24370_v50  ;;  %v24483_v46 = vpop.f32.mrb[38].mxu1 }
 0x7d1   : > { %26915 = vst [vmem:[#allocation89_spill] sm:$0xff] %v24483_v46  ;;  %v24485_v24 = vpop.f32.mrb[39].mxu1 }
 0x7d2   : > { %26916 = vst [vmem:[#allocation90_spill] sm:$0xff] %v24485_v24 }
 0x7d3   : > { %12034 = vmax.xlane.f32.xlu0 %v24438_v53 }
 0x7d4   : > { %12012 = vmax.xlane.f32.xlu1 %v24423_v9 }
 0x7d7   : > { %12030 = vmax.xlane.f32.xlu0 %v24441_v27 }
 0x7d8   : > { %12008 = vmax.xlane.f32.xlu1 %v24426_v22 }
 0x7db   : > { %12022 = vmax.xlane.f32.xlu0 %v24387_v18 }
 0x7dc   : > { %12036 = vmax.xlane.f32.xlu1 %v24444_v31 }
 0x7df   : > { %12026 = vmax.xlane.f32.xlu0 %v24385_v14 }
 0x7e0   : > { %12032 = vmax.xlane.f32.xlu1 %v24446_v35 }
 0x7e3   : > { %12046 = vmax.xlane.f32.xlu0 %v24407_v7 }
 0x7e4   : > { %12024 = vmax.xlane.f32.xlu1 %v24393_v59 }
 0x7e7   : > { %12042 = vmax.xlane.f32.xlu0 %v24450_v1 }
 0x7e8   : > { %12028 = vmax.xlane.f32.xlu1 %v24390_v13 }
 0x7eb   : > { %12038 = vmax.xlane.f32.xlu0 %v24455_v38 }
 0x7ec   : > { %12048 = vmax.xlane.f32.xlu1 %v24413_v42 }
 0x7ef   : > { %12050 = vmax.xlane.f32.xlu0 %v24405_v62 }
 0x7f0   : > { %12044 = vmax.xlane.f32.xlu1 %v24459_v40 }
 0x7f3   : > { %12062 = vmax.xlane.f32.xlu0 %v24468_v44 }
 0x7f4   : > { %12040 = vmax.xlane.f32.xlu1 %v24461_v19 }
 0x7f7   : > { %12066 = vmax.xlane.f32.xlu0 %v24465_v58 }
 0x7f8   : > { %12052 = vmax.xlane.f32.xlu1 %v24410_v60 }
 0x7fb   : > { %12054 = vmax.xlane.f32.xlu0 %v24430_v41 }
 0x7fc   : > { %12064 = vmax.xlane.f32.xlu1 %v24473_v30 }
 0x7ff   : > { %12058 = vmax.xlane.f32.xlu0 %v24428_v15 }
 0x800   : > { %12068 = vmax.xlane.f32.xlu1 %v24471_v48 }
 0x803   : > { %12070 = vmax.xlane.f32.xlu0 %v24480_v54 }
 0x804   : > { %12056 = vmax.xlane.f32.xlu1 %v24436_v8 }
 0x807   : > { %12074 = vmax.xlane.f32.xlu0 %v24477_v39 }
 0x808   : > { %12060 = vmax.xlane.f32.xlu1 %v24433_v56 }
 0x80c   : > { %12072 = vmax.xlane.f32.xlu1 %v24485_v24 }
 0x810   : > { %12076 = vmax.xlane.f32.xlu1 %v24483_v46 }
 0x814   : > { %v11955_v58 = vpop.xlane.xlu0 %11954 }
 0x815   : > { %v12080_v41 = vsub.f32 %v24319_v55, %v11955_v58 }
 0x816   : > { %v11957_v30 = vpop.xlane.xlu1 %11956 }
 0x817   : > { %v12146_v60 = vmul.f32 1.442695, %v12080_v41  ;;  %v12081_v15 = vsub.f32 %v24324_v51, %v11957_v30 }
 0x818   : > { %v11951_v48 = vpop.xlane.xlu0 %11950 }
 0x819   : > { %18897 = vpow2.f32 %v12146_v60  ;;  %v12148_v54 = vmul.f32 1.442695, %v12081_v15  ;;  %v12078_v8 = vsub.f32 %v24322_v12, %v11951_v48 }
 0x81b   : > { %18899 = vpow2.f32 %v12148_v54  ;;  %v12142_v39 = vmul.f32 1.442695, %v12078_v8 }
 0x81c   : > { %v11953_v44 = vpop.xlane.xlu0 %11952 }
 0x81d   : > { %v12079_v56 = vsub.f32 %v24327_v36, %v11953_v44  ;;  %18901 = vpow2.f32 %v12142_v39  ;;  %v12447_v39 = vld [vmem:[#allocation4 + $0x88] sm:$0xff] }
 0x81f   : > { %v12144_v24 = vmul.f32 1.442695, %v12079_v56 }
 0x821   : > { %18903 = vpow2.f32 %v12144_v24 }
 0x823   : > { %v18898_v46 = vpop.eup %18897 }
 0x824   : > { %v11971_v19 = vpop.xlane.xlu0 %11970  ;;  %12274 = vadd.xlane.f32.xlu0 %v18898_v46 }
 0x825   : > { %v18900_v55 = vpop.eup %18899  ;;  %v12088_v41 = vsub.f32 %v24355_v63, %v11971_v19  ;;  %v11967_v51 = vpop.xlane.xlu1 %11966 }
 0x826   : > { %12276 = vadd.xlane.f32.xlu1 %v18900_v55  ;;  %v12399_v60 = vpack.c.bf16 %v18900_v55, %v18898_v46  ;;  %v12086_v12 = vsub.f32 %v24358_v23, %v11967_v51 }
 0x827   : > { %v12162_v58 = vmul.f32 1.442695, %v12088_v41  ;;  %v24523_v48 = vpop.eup %18901 }
 0x828   : > { %v11959_v15 = vpop.xlane.xlu0 %11958  ;;  %v12158_v63 = vmul.f32 1.442695, %v12086_v12 }
 0x829   : > { %v11973_v8 = vpop.xlane.xlu1 %11972  ;;  %18905 = vpow2.f32 %v12162_v58  ;;  %v12082_v46 = vsub.f32 %v24341_v0, %v11959_v15  ;;  %v12448_v15 = vld [vmem:[#allocation4 + $0x90] sm:$0xff] }
 0x82a   : > { %v12089_v36 = vsub.f32 %v24361_v17, %v11973_v8 }
 0x82b   : > { %v24526_v56 = vpop.eup %18903  ;;  %v12150_v41 = vmul.f32 1.442695, %v12082_v46 }
 0x82c   : > { %v12164_v24 = vmul.f32 1.442695, %v12089_v36  ;;  %v11963_v44 = vpop.xlane.xlu0 %11962  ;;  %v12398_v30 = vpack.c.bf16 %v24526_v56, %v24523_v48  ;;  %v12449_v36 = vld [vmem:[#allocation4 + $0x98] sm:$0xff] }
 0x82d   : > { %v11969_v19 = vpop.xlane.xlu1 %11968  ;;  %v12084_v17 = vsub.f32 %v24338_v10, %v11963_v44 }
 0x82e   : > { %18907 = vpow2.f32 %v12164_v24  ;;  %v12087_v23 = vsub.f32 %v24363_v47, %v11969_v19  ;;  %18168 = vmatprep.mubr.bf16.mxu0 %v12398_v30  ;;  %v12450_v19 = vld [vmem:[#allocation4 + $0xa0] sm:$0xff] }
 0x82f   : > { %18169 = vmatmul.mubr.bf16.vlgmr.msra.gmra.mrb[24].mxu0 %v12399_v60  ;;  %18909 = vpow2.f32 %v12158_v63  ;;  %v12154_v58 = vmul.f32 1.442695, %v12084_v17 }
 0x830   : > { %v12160_v54 = vmul.f32 1.442695, %v12087_v23  ;;  %18201 = vmatpush3.bf16.msra.mxu0 %v24417_v16  ;;  %v11983_v55 = vpop.xlane.xlu0 %11982 }
 0x831   : > { %v11961_v51 = vpop.xlane.xlu1 %11960  ;;  %18202 = vmatprep.subr.bf16.mxu0 %v12447_v39  ;;  %v12094_v60 = vsub.f32 %v24331_v49, %v11983_v55 }
 0x832   : > { %18911 = vpow2.f32 %v12160_v54  ;;  %v12083_v0 = vsub.f32 %v24345_v6, %v11961_v51 }
 0x833   : > { %18913 = vpow2.f32 %v12150_v41  ;;  %v24538_v24 = vpop.eup %18905  ;;  %v12174_v46 = vmul.f32 1.442695, %v12094_v60 }
 0x834   : > { %v12152_v12 = vmul.f32 1.442695, %v12083_v0  ;;  %18203 = vmatpush3.bf16.msra.mxu0 %v12447_v39  ;;  %v11987_v47 = vpop.xlane.xlu0 %11986 }
 0x835   : > { %v12096_v10 = vsub.f32 %v24329_v11, %v11987_v47  ;;  %v11965_v8 = vpop.xlane.xlu1 %11964  ;;  %18204 = vmatprep.subr.bf16.mxu0 %v12448_v15 }
 0x836   : > { %18915 = vpow2.f32 %v12152_v12  ;;  %v12085_v16 = vsub.f32 %v24343_v32, %v11965_v8 }
 0x837   : > { %v12178_v44 = vmul.f32 1.442695, %v12096_v10  ;;  %18917 = vpow2.f32 %v12154_v58  ;;  %v12455_v58 = vld [vmem:[#allocation4 + $0xc8] sm:$0xff] }
 0x838   : > { %v24540_v6 = vpop.eup %18907  ;;  %v12156_v30 = vmul.f32 1.442695, %v12085_v16  ;;  %18205 = vmatpush3.bf16.msra.mxu0 %v12448_v15  ;;  %v11979_v63 = vpop.xlane.xlu0 %11978 }
 0x839   : > { %18919 = vpow2.f32 %v12178_v44  ;;  %v11985_v49 = vpop.xlane.xlu1 %11984  ;;  %18206 = vmatprep.subr.bf16.mxu0 %v12449_v36  ;;  %v12403_v11 = vpack.c.bf16 %v24540_v6, %v24538_v24  ;;  %v24545_v23 = vpop.eup %18909  ;;  %v12092_v55 = vsub.f32 %v24375_v5, %v11979_v63  ;;  %v12452_v44 = vld [vmem:[#allocation4 + $0xb0] sm:$0xff] }
 0x83a   : > { %18921 = vpow2.f32 %v12156_v30  ;;  %v12095_v32 = vsub.f32 %v24336_v2, %v11985_v49  ;;  %v12451_v2 = vld [vmem:[#allocation4 + $0xa8] sm:$0xff]  ;;  %v12456_v63 = vld [vmem:[#allocation4 + $0xd0] sm:$0xff] }
 0x83b   : > { %18923 = vpow2.f32 %v12174_v46  ;;  %v12170_v5 = vmul.f32 1.442695, %v12092_v55  ;;  %v12457_v55 = vld [vmem:[#allocation4 + $0xd8] sm:$0xff] }
 0x83c   : > { %v24547_v39 = vpop.eup %18911  ;;  %v12176_v17 = vmul.f32 1.442695, %v12095_v32  ;;  %18207 = vmatpush3.bf16.msra.mxu0 %v12449_v36  ;;  %v11975_v54 = vpop.xlane.xlu0 %11974 }
 0x83d   : > { %v11989_v41 = vpop.xlane.xlu1 %11988  ;;  %v12402_v51 = vpack.c.bf16 %v24547_v39, %v24545_v23  ;;  %18208 = vmatprep.subr.bf16.mxu0 %v12450_v19  ;;  %v24553_v15 = vpop.eup %18913  ;;  %v12090_v10 = vsub.f32 %v24378_v57, %v11975_v54 }
 0x83e   : > { %18925 = vpow2.f32 %v12176_v17  ;;  %v12097_v0 = vsub.f32 %v24334_v4, %v11989_v41  ;;  %v12453_v17 = vld [vmem:[#allocation4 + $0xb8] sm:$0xff] }
 0x83f   : > { %18192 = vmatprep.mubr.bf16.mxu1 %v12402_v51  ;;  %v12166_v49 = vmul.f32 1.442695, %v12090_v10 }
 0x840   : > { %v24555_v12 = vpop.eup %18915  ;;  %v12180_v47 = vmul.f32 1.442695, %v12097_v0  ;;  %18193 = vmatmul.mubr.bf16.vlgmr.msra.gmra.mrb[40].mxu1 %v12403_v11  ;;  %18209 = vmatpush3.bf16.msra.mxu0 %v12450_v19  ;;  %v12003_v60 = vpop.xlane.xlu0 %12002 }
 0x841   : > { %18225 = vmatpush3.bf16.msra.mxu1 %v24452_v29  ;;  %v11981_v8 = vpop.xlane.xlu1 %11980  ;;  %v12400_v4 = vpack.c.bf16 %v24555_v12, %v24553_v15  ;;  %18210 = vmatprep.subr.bf16.mxu0 %v12451_v2  ;;  %v24561_v16 = vpop.eup %18917  ;;  %v12104_v11 = vsub.f32 %v24395_v3, %v12003_v60  ;;  %v12458_v60 = vld [vmem:[#allocation4 + $0xe0] sm:$0xff] }
 0x842   : > { %18927 = vpow2.f32 %v12180_v47  ;;  %v12093_v36 = vsub.f32 %v24381_v28, %v11981_v8  ;;  %18226 = vmatprep.subr.bf16.mxu1 %v12455_v58 }
 0x843   : > { %v18920_v30 = vpop.eup %18919  ;;  %18172 = vmatprep.mubr.bf16.mxu0 %v12400_v4  ;;  %18929 = vpow2.f32 %v12170_v5  ;;  %v12462_v5 = vld [vmem:[#allocation4 + $0x100] sm:$0xff] }
 0x844   : > { %v24564_v46 = vpop.eup %18921  ;;  %v12172_v57 = vmul.f32 1.442695, %v12093_v36  ;;  %18211 = vmatpush3.bf16.msra.mxu0 %v12451_v2  ;;  %v11999_v29 = vpop.xlane.xlu0 %11998  ;;  %12306 = vadd.xlane.f32.xlu0 %v18920_v30  ;;  %v12194_v2 = vmul.f32 1.442695, %v12104_v11  ;;  %v12463_v11 = vld [vmem:[#allocation4 + $0x108] sm:$0xff] }
 0x845   : > { %18227 = vmatpush3.bf16.msra.mxu1 %v12455_v58  ;;  %v11977_v32 = vpop.xlane.xlu1 %11976  ;;  %v12401_v28 = vpack.c.bf16 %v24564_v46, %v24561_v16  ;;  %18212 = vmatprep.subr.bf16.mxu0 %v12452_v44  ;;  %v18924_v54 = vpop.eup %18923  ;;  %v12102_v51 = vsub.f32 %v24398_v25, %v11999_v29 }
 0x846   : > { %18931 = vpow2.f32 %v12172_v57  ;;  %v12091_v19 = vsub.f32 %v24383_v33, %v11977_v32  ;;  %18228 = vmatprep.subr.bf16.mxu1 %v12456_v63 }
 0x847   : > { %18173 = vmatmul.mubr.bf16.gmra.mrb[28].mxu0 %v12401_v28  ;;  %18933 = vpow2.f32 %v12166_v49  ;;  %v12190_v10 = vmul.f32 1.442695, %v12102_v51  ;;  %v12459_v49 = vld [vmem:[#allocation4 + $0xe8] sm:$0xff] }
 0x848   : > { %v24570_v41 = vpop.eup %18925  ;;  %v12168_v0 = vmul.f32 1.442695, %v12091_v19  ;;  %18213 = vmatpush3.bf16.msra.mxu0 %v12452_v44  ;;  %v11991_v3 = vpop.xlane.xlu0 %11990  ;;  %12270 = vadd.xlane.f32.xlu0 %v24523_v48 }
 0x849   : > { %18229 = vmatpush3.bf16.msra.mxu1 %v12456_v63  ;;  %v12005_v58 = vpop.xlane.xlu1 %12004  ;;  %18214 = vmatprep.subr.bf16.mxu0 %v12453_v17  ;;  %v12406_v33 = vpack.c.bf16 %v24570_v41, %v18924_v54  ;;  %v12098_v48 = vsub.f32 %v24349_v20, %v11991_v3  ;;  %v26917_v3 = vld [vmem:[#allocation76_spill] sm:$0xff] }
 0x84a   : > { %18935 = vpow2.f32 %v12168_v0  ;;  %v12105_v47 = vsub.f32 %v24401_v34, %v12005_v58  ;;  %18230 = vmatprep.subr.bf16.mxu1 %v12457_v55 }
 0x84b   : > { %18216 = vmatprep.mubr.bf16.mxu0 %v12406_v33  ;;  %18937 = vpow2.f32 %v12194_v2 }
 0x84c   : > { %v18928_v25 = vpop.eup %18927  ;;  %v12196_v8 = vmul.f32 1.442695, %v12105_v47  ;;  %18215 = vmatpush3.bf16.msra.mxu0 %v12453_v17  ;;  %v11995_v4 = vpop.xlane.xlu0 %11994  ;;  %12302 = vadd.xlane.f32.xlu0 %v18924_v54  ;;  %v12460_v54 = vld [vmem:[#allocation4 + $0xf0] sm:$0xff]  ;;  %v12461_v47 = vld [vmem:[#allocation4 + $0xf8] sm:$0xff] }
 0x84d   : > { %18231 = vmatpush3.bf16.msra.mxu1 %v12457_v55  ;;  %v12100_v36 = vsub.f32 %v24347_v37, %v11995_v4  ;;  %v12001_v44 = vpop.xlane.xlu1 %12000  ;;  %12308 = vadd.xlane.f32.xlu1 %v18928_v25  ;;  %v12407_v63 = vpack.c.bf16 %v18928_v25, %v18920_v30  ;;  %v24579_v57 = vpop.eup %18929  ;;  %v12182_v30 = vmul.f32 1.442695, %v12098_v48  ;;  %v12464_v55 = vld [vmem:[#allocation4 + $0x110] sm:$0xff] }
 0x84e   : > { %18939 = vpow2.f32 %v12196_v8  ;;  %v12103_v34 = vsub.f32 %v24403_v21, %v12001_v44  ;;  %18232 = vmatprep.subr.bf16.mxu1 %v12458_v60  ;;  %18248 = vmatprep.subr.bf16.mxu0 %v12462_v5  ;;  %v26918_v8 = vld [vmem:[#allocation75_spill] sm:$0xff] }
 0x84f   : > { %v12186_v29 = vmul.f32 1.442695, %v12100_v36  ;;  %18217 = vmatmul.mubr.bf16.vlgmr.msra.gmra.mrb[32].mxu0 %v12407_v63  ;;  %18941 = vpow2.f32 %v12190_v10  ;;  %v12466_v63 = vld [vmem:[#allocation4 + $0x120] sm:$0xff] }
 0x850   : > { %v24581_v32 = vpop.eup %18931  ;;  %v12192_v20 = vmul.f32 1.442695, %v12103_v34  ;;  %18249 = vmatpush3.bf16.msra.mxu0 %v12462_v5  ;;  %v12015_v37 = vpop.xlane.xlu0 %12014  ;;  %12282 = vadd.xlane.f32.xlu0 %v24561_v16 }
 0x851   : > { %18943 = vpow2.f32 %v12186_v29  ;;  %18233 = vmatpush3.bf16.msra.mxu1 %v12458_v60  ;;  %v11993_v21 = vpop.xlane.xlu1 %11992  ;;  %12272 = vadd.xlane.f32.xlu1 %v24526_v56  ;;  %v12405_v28 = vpack.c.bf16 %v24581_v32, %v24579_v57  ;;  %v24588_v17 = vpop.eup %18933  ;;  %v12110_v56 = vsub.f32 %v26917_v3, %v12015_v37  ;;  %v12465_v60 = vld [vmem:[#allocation4 + $0x118] sm:$0xff]  ;;  %v12470_v29 = vld [vmem:[#allocation4 + $0x140] sm:$0xff] }
 0x852   : > { %18945 = vpow2.f32 %v12192_v20  ;;  %v12099_v19 = vsub.f32 %v24353_v43, %v11993_v21  ;;  %18234 = vmatprep.subr.bf16.mxu1 %v12459_v49  ;;  %18250 = vmatprep.subr.bf16.mxu0 %v12463_v11 }
 0x853   : > { %18947 = vpow2.f32 %v12182_v30 }
 0x854   : > { %v24590_v51 = vpop.eup %18935  ;;  %v12184_v16 = vmul.f32 1.442695, %v12099_v19  ;;  %18251 = vmatpush3.bf16.msra.mxu0 %v12463_v11  ;;  %v12019_v0 = vpop.xlane.xlu0 %12018  ;;  %v12467_v19 = vld [vmem:[#allocation4 + $0x128] sm:$0xff] }
 0x855   : > { %18235 = vmatpush3.bf16.msra.mxu1 %v12459_v49  ;;  %v11997_v2 = vpop.xlane.xlu1 %11996  ;;  %12304 = vadd.xlane.f32.xlu1 %v24570_v41  ;;  %v12404_v43 = vpack.c.bf16 %v24590_v51, %v24588_v17  ;;  %v24597_v33 = vpop.eup %18937  ;;  %v12206_v41 = vmul.f32 1.442695, %v12110_v56  ;;  %v12112_v4 = vsub.f32 %v26918_v8, %v12019_v0 }
 0x856   : > { %18949 = vpow2.f32 %v12184_v16  ;;  %v12101_v58 = vsub.f32 %v24351_v26, %v11997_v2  ;;  %18236 = vmatprep.subr.bf16.mxu1 %v12460_v54  ;;  %18252 = vmatprep.subr.bf16.mxu0 %v12464_v55 }
 0x857   : > { %18196 = vmatprep.mubr.bf16.mxu1 %v12404_v43  ;;  %v12468_v43 = vld [vmem:[#allocation4 + $0x130] sm:$0xff] }
 0x858   : > { %v24599_v5 = vpop.eup %18939  ;;  %v12188_v25 = vmul.f32 1.442695, %v12101_v58  ;;  %18197 = vmatmul.mubr.bf16.gmra.mrb[44].mxu1 %v12405_v28  ;;  %18253 = vmatpush3.bf16.msra.mxu0 %v12464_v55  ;;  %v12011_v10 = vpop.xlane.xlu0 %12010 }
 0x859   : > { %18237 = vmatpush3.bf16.msra.mxu1 %v12460_v54  ;;  %v12017_v48 = vpop.xlane.xlu1 %12016  ;;  %12284 = vadd.xlane.f32.xlu1 %v24564_v46  ;;  %v12411_v26 = vpack.c.bf16 %v24599_v5, %v24597_v33  ;;  %v24605_v36 = vpop.eup %18941  ;;  %v12210_v46 = vmul.f32 1.442695, %v12112_v4  ;;  %v12108_v37 = vsub.f32 %v24415_v45, %v12011_v10  ;;  %v12471_v54 = vld [vmem:[#allocation4 + $0x148] sm:$0xff]  ;;  %v12469_v4 = vld [vmem:[#allocation4 + $0x138] sm:$0xff] }
 0x85a   : > { %18951 = vpow2.f32 %v12188_v25  ;;  %v12111_v44 = vsub.f32 %v24373_v52, %v12017_v48  ;;  %18238 = vmatprep.subr.bf16.mxu1 %v12461_v47  ;;  %18254 = vmatprep.subr.bf16.mxu0 %v12465_v60  ;;  %v12472_v25 = vld [vmem:[#allocation4 + $0x150] sm:$0xff] }
 0x85b   : > { %v18944_v34 = vpop.eup %18943  ;;  %18953 = vpow2.f32 %v12206_v41  ;;  %v12202_v0 = vmul.f32 1.442695, %v12108_v37 }
 0x85c   : > { %v24608_v49 = vpop.eup %18945  ;;  %v12208_v11 = vmul.f32 1.442695, %v12111_v44  ;;  %18255 = vmatpush3.bf16.msra.mxu0 %v12465_v60  ;;  %v12007_v20 = vpop.xlane.xlu0 %12006  ;;  %12314 = vadd.xlane.f32.xlu0 %v18944_v34 }
 0x85d   : > { %18239 = vmatpush3.bf16.msra.mxu1 %v12461_v47  ;;  %v12021_v30 = vpop.xlane.xlu1 %12020  ;;  %v12410_v52 = vpack.c.bf16 %v24608_v49, %v24605_v36  ;;  %18256 = vmatprep.subr.bf16.mxu0 %v12466_v63  ;;  %v18948_v28 = vpop.eup %18947  ;;  %v12106_v3 = vsub.f32 %v24420_v61, %v12007_v20 }
 0x85e   : > { %18955 = vpow2.f32 %v12208_v11  ;;  %v12113_v21 = vsub.f32 %v24370_v50, %v12021_v30  ;;  %18272 = vmatprep.subr.bf16.mxu1 %v12470_v29 }
 0x85f   : > { %18240 = vmatprep.mubr.bf16.mxu1 %v12410_v52  ;;  %18957 = vpow2.f32 %v12210_v46  ;;  %v12198_v61 = vmul.f32 1.442695, %v12106_v3  ;;  %v12474_v46 = vld [vmem:[#allocation4 + $0x160] sm:$0xff] }
 0x860   : > { %v24614_v55 = vpop.eup %18949  ;;  %v12212_v16 = vmul.f32 1.442695, %v12113_v21  ;;  %18241 = vmatmul.mubr.bf16.vlgmr.msra.gmra.mrb[48].mxu1 %v12411_v26  ;;  %18257 = vmatpush3.bf16.msra.mxu0 %v12466_v63  ;;  %v12035_v45 = vpop.xlane.xlu0 %12034  ;;  %v12478_v52 = vld [vmem:[#allocation4 + $0x180] sm:$0xff] }
 0x861   : > { %18273 = vmatpush3.bf16.msra.mxu1 %v12470_v29  ;;  %12278 = vadd.xlane.f32.xlu0 %v24553_v15  ;;  %v12013_v56 = vpop.xlane.xlu1 %12012  ;;  %v12408_v50 = vpack.c.bf16 %v24614_v55, %v18948_v28  ;;  %v12120_v10 = vsub.f32 %v24438_v53, %v12035_v45  ;;  %v12473_v53 = vld [vmem:[#allocation4 + $0x158] sm:$0xff] }
 0x862   : > { %18959 = vpow2.f32 %v12212_v16  ;;  %v12109_v2 = vsub.f32 %v24423_v9, %v12013_v56  ;;  %18258 = vmatprep.subr.bf16.mxu0 %v12467_v19  ;;  %18274 = vmatprep.subr.bf16.mxu1 %v12471_v54 }
 0x863   : > { %18220 = vmatprep.mubr.bf16.mxu0 %v12408_v50  ;;  %18961 = vpow2.f32 %v12202_v0  ;;  %v12226_v63 = vmul.f32 1.442695, %v12120_v10 }
 0x864   : > { %v18952_v58 = vpop.eup %18951  ;;  %v12204_v47 = vmul.f32 1.442695, %v12109_v2  ;;  %18259 = vmatpush3.bf16.msra.mxu0 %v12467_v19  ;;  %v12031_v60 = vpop.xlane.xlu0 %12030 }
 0x865   : > { %18275 = vmatpush3.bf16.msra.mxu1 %v12471_v54  ;;  %12310 = vadd.xlane.f32.xlu0 %v18948_v28  ;;  %v12009_v15 = vpop.xlane.xlu1 %12008  ;;  %v12409_v41 = vpack.c.bf16 %v18952_v58, %v18944_v34  ;;  %v24622_v8 = vpop.eup %18953  ;;  %v12118_v34 = vsub.f32 %v24441_v27, %v12031_v60  ;;  %v12475_v54 = vld [vmem:[#allocation4 + $0x168] sm:$0xff] }
 0x866   : > { %18963 = vpow2.f32 %v12204_v47  ;;  %v12107_v9 = vsub.f32 %v24426_v22, %v12009_v15  ;;  %12316 = vadd.xlane.f32.xlu1 %v18952_v58  ;;  %18260 = vmatprep.subr.bf16.mxu0 %v12468_v43  ;;  %v12477_v15 = vld [vmem:[#allocation4 + $0x178] sm:$0xff] }
 0x867   : > { %18221 = vmatmul.mubr.bf16.gmra.mrb[36].mxu0 %v12409_v41  ;;  %18276 = vmatprep.subr.bf16.mxu1 %v12472_v25  ;;  %18965 = vpow2.f32 %v12198_v61 }
 0x868   : > { %v24624_v48 = vpop.eup %18955  ;;  %v12200_v26 = vmul.f32 1.442695, %v12107_v9  ;;  %18261 = vmatpush3.bf16.msra.mxu0 %v12468_v43  ;;  %v12023_v44 = vpop.xlane.xlu0 %12022  ;;  %v12476_v43 = vld [vmem:[#allocation4 + $0x170] sm:$0xff] }
 0x869   : > { %18277 = vmatpush3.bf16.msra.mxu1 %v12472_v25  ;;  %12290 = vadd.xlane.f32.xlu0 %v24538_v24  ;;  %v12037_v22 = vpop.xlane.xlu1 %12036  ;;  %v12414_v29 = vpack.c.bf16 %v24624_v48, %v24622_v8  ;;  %v18958_v20 = vpop.eup %18957  ;;  %v12222_v24 = vmul.f32 1.442695, %v12118_v34  ;;  %v12114_v21 = vsub.f32 %v24387_v18, %v12023_v44  ;;  %v12479_v18 = vld [vmem:[#allocation4 + $0x188] sm:$0xff] }
 0x86a   : > { %18967 = vpow2.f32 %v12200_v26  ;;  %v12121_v11 = vsub.f32 %v24444_v31, %v12037_v22  ;;  %12280 = vadd.xlane.f32.xlu1 %v24555_v12  ;;  %18262 = vmatprep.subr.bf16.mxu0 %v12469_v4 }
 0x86b   : > { %18264 = vmatprep.mubr.bf16.mxu0 %v12414_v29  ;;  %18278 = vmatprep.subr.bf16.mxu1 %v12473_v53  ;;  %18969 = vpow2.f32 %v12226_v63  ;;  %v12214_v3 = vmul.f32 1.442695, %v12114_v21  ;;  %v12486_v63 = vld [vmem:[#allocation4 + $0x1c0] sm:$0xff] }
 0x86c   : > { %v18960_v37 = vpop.eup %18959  ;;  %v12228_v30 = vmul.f32 1.442695, %v12121_v11  ;;  %18263 = vmatpush3.bf16.msra.mxu0 %v12469_v4  ;;  %v12027_v27 = vpop.xlane.xlu0 %12026  ;;  %v12481_v4 = vld [vmem:[#allocation4 + $0x198] sm:$0xff] }
 0x86d   : > { %18279 = vmatpush3.bf16.msra.mxu1 %v12473_v53  ;;  %12338 = vadd.xlane.f32.xlu0 %v18958_v20  ;;  %v12033_v28 = vpop.xlane.xlu1 %12032  ;;  %v12415_v31 = vpack.c.bf16 %v18960_v37, %v18958_v20  ;;  %v24635_v19 = vpop.eup %18961  ;;  %v12116_v56 = vsub.f32 %v24385_v14, %v12027_v27 }
 0x86e   : > { %18971 = vpow2.f32 %v12228_v30  ;;  %v12119_v12 = vsub.f32 %v24446_v35, %v12033_v28  ;;  %12312 = vadd.xlane.f32.xlu1 %v24614_v55  ;;  %18280 = vmatprep.subr.bf16.mxu1 %v12474_v46 }
 0x86f   : > { %18265 = vmatmul.mubr.bf16.vlgmr.msra.gmra.mrb[40].mxu0 %v12415_v31  ;;  %18296 = vmatprep.subr.bf16.mxu0 %v12478_v52  ;;  %18973 = vpow2.f32 %v12222_v24  ;;  %v12218_v60 = vmul.f32 1.442695, %v12116_v56  ;;  %v12483_v24 = vld [vmem:[#allocation4 + $0x1a8] sm:$0xff]  ;;  %v26920_v56 = vld [vmem:[#allocation84_spill] sm:$0xff] }
 0x870   : > { %v24637_v16 = vpop.eup %18963  ;;  %v12224_v45 = vmul.f32 1.442695, %v12119_v12  ;;  %v12047_v0 = vpop.xlane.xlu0 %12046  ;;  %18297 = vmatpush3.bf16.msra.mxu0 %v12478_v52  ;;  %v12487_v52 = vld [vmem:[#allocation4 + $0x1c8] sm:$0xff] }
 0x871   : > { %18281 = vmatpush3.bf16.msra.mxu1 %v12474_v46  ;;  %12286 = vadd.xlane.f32.xlu0 %v24545_v23  ;;  %v12025_v35 = vpop.xlane.xlu1 %12024  ;;  %v12413_v55 = vpack.c.bf16 %v24637_v16, %v24635_v19  ;;  %v24645_v2 = vpop.eup %18965  ;;  %v12480_v23 = vld [vmem:[#allocation4 + $0x190] sm:$0xff]  ;;  %v12126_v25 = vsub.f32 %v24407_v7, %v12047_v0 }
 0x872   : > { %18975 = vpow2.f32 %v12224_v45  ;;  %v12115_v50 = vsub.f32 %v24393_v59, %v12025_v35  ;;  %12292 = vadd.xlane.f32.xlu1 %v24540_v6  ;;  %18282 = vmatprep.subr.bf16.mxu1 %v12475_v54 }
 0x873   : > { %18298 = vmatprep.subr.bf16.mxu0 %v12479_v18  ;;  %18977 = vpow2.f32 %v12214_v3  ;;  %v12238_v26 = vmul.f32 1.442695, %v12126_v25  ;;  %v12484_v3 = vld [vmem:[#allocation4 + $0x1b0] sm:$0xff] }
 0x874   : > { %v24647_v58 = vpop.eup %18967  ;;  %v12216_v14 = vmul.f32 1.442695, %v12115_v50  ;;  %v12043_v47 = vpop.xlane.xlu0 %12042  ;;  %18299 = vmatpush3.bf16.msra.mxu0 %v12479_v18  ;;  %v26921_v50 = vld [vmem:[#allocation77_spill] sm:$0xff] }
 0x875   : > { %18283 = vmatpush3.bf16.msra.mxu1 %v12475_v54  ;;  %12334 = vadd.xlane.f32.xlu0 %v24622_v8  ;;  %v12029_v59 = vpop.xlane.xlu1 %12028  ;;  %v12412_v6 = vpack.c.bf16 %v24647_v58, %v24645_v2  ;;  %v24654_v10 = vpop.eup %18969  ;;  %v12124_v7 = vsub.f32 %v24450_v1, %v12043_v47  ;;  %v12488_v54 = vld [vmem:[#allocation4 + $0x1d0] sm:$0xff] }
 0x876   : > { %18979 = vpow2.f32 %v12216_v14  ;;  %v12117_v61 = vsub.f32 %v24390_v13, %v12029_v59  ;;  %12340 = vadd.xlane.f32.xlu1 %v18960_v37  ;;  %18284 = vmatprep.subr.bf16.mxu1 %v12476_v43  ;;  %v12485_v14 = vld [vmem:[#allocation4 + $0x1b8] sm:$0xff] }
 0x877   : > { %18244 = vmatprep.mubr.bf16.mxu1 %v12412_v6  ;;  %18300 = vmatprep.subr.bf16.mxu0 %v12480_v23  ;;  %18981 = vpow2.f32 %v12218_v60  ;;  %v12234_v22 = vmul.f32 1.442695, %v12124_v7  ;;  %v26922_v6 = vld [vmem:[#allocation83_spill] sm:$0xff] }
 0x878   : > { %v24656_v41 = vpop.eup %18971  ;;  %v12220_v9 = vmul.f32 1.442695, %v12117_v61  ;;  %18245 = vmatmul.mubr.bf16.gmra.mrb[52].mxu1 %v12413_v55  ;;  %v12039_v8 = vpop.xlane.xlu0 %12038  ;;  %18301 = vmatpush3.bf16.msra.mxu0 %v12480_v23  ;;  %v12489_v23 = vld [vmem:[#allocation4 + $0x1d8] sm:$0xff] }
 0x879   : > { %18285 = vmatpush3.bf16.msra.mxu1 %v12476_v43  ;;  %12298 = vadd.xlane.f32.xlu0 %v24579_v57  ;;  %v12049_v13 = vpop.xlane.xlu1 %12048  ;;  %v12419_v44 = vpack.c.bf16 %v24656_v41, %v24654_v10  ;;  %v24664_v1 = vpop.eup %18973  ;;  %v12482_v57 = vld [vmem:[#allocation4 + $0x1a0] sm:$0xff]  ;;  %v12122_v20 = vsub.f32 %v24455_v38, %v12039_v8 }
 0x87a   : > { %18983 = vpow2.f32 %v12220_v9  ;;  %v12127_v53 = vsub.f32 %v24413_v42, %v12049_v13  ;;  %12288 = vadd.xlane.f32.xlu1 %v24547_v39  ;;  %18286 = vmatprep.subr.bf16.mxu1 %v12477_v15  ;;  %v26923_v9 = vld [vmem:[#allocation86_spill] sm:$0xff] }
 0x87b   : > { %18302 = vmatprep.subr.bf16.mxu0 %v12481_v4  ;;  %18985 = vpow2.f32 %v12238_v26  ;;  %v12230_v21 = vmul.f32 1.442695, %v12122_v20  ;;  %v12490_v26 = vld [vmem:[#allocation4 + $0x1e0] sm:$0xff] }
 0x87c   : > { %v24666_v34 = vpop.eup %18975  ;;  %v12240_v29 = vmul.f32 1.442695, %v12127_v53  ;;  %v12051_v11 = vpop.xlane.xlu0 %12050  ;;  %18303 = vmatpush3.bf16.msra.mxu0 %v12481_v4  ;;  %v26925_v20 = vld [vmem:[#allocation85_spill] sm:$0xff] }
 0x87d   : > { %18287 = vmatpush3.bf16.msra.mxu1 %v12477_v15  ;;  %v12128_v42 = vsub.f32 %v24405_v62, %v12051_v11  ;;  %12294 = vadd.xlane.f32.xlu0 %v24588_v17  ;;  %v12045_v39 = vpop.xlane.xlu1 %12044  ;;  %v12418_v46 = vpack.c.bf16 %v24666_v34, %v24664_v1  ;;  %v18978_v30 = vpop.eup %18977 }
 0x87e   : > { %18987 = vpow2.f32 %v12240_v29  ;;  %v12125_v37 = vsub.f32 %v24459_v40, %v12045_v39  ;;  %12336 = vadd.xlane.f32.xlu1 %v24624_v48  ;;  %18320 = vmatprep.subr.bf16.mxu1 %v12486_v63  ;;  %v26919_v48 = vld [vmem:[#allocation82_spill] sm:$0xff] }
 0x87f   : > { %v12242_v27 = vmul.f32 1.442695, %v12128_v42  ;;  %18288 = vmatprep.mubr.bf16.mxu1 %v12418_v46  ;;  %18304 = vmatprep.subr.bf16.mxu0 %v12482_v57  ;;  %18989 = vpow2.f32 %v12234_v22  ;;  %v26924_v22 = vld [vmem:[#allocation79_spill] sm:$0xff]  ;;  %v12491_v46 = vld [vmem:[#allocation4 + $0x1e8] sm:$0xff] }
 0x880   : > { %v18980_v38 = vpop.eup %18979  ;;  %v12236_v62 = vmul.f32 1.442695, %v12125_v37  ;;  %18289 = vmatmul.mubr.bf16.vlgmr.msra.gmra.mrb[56].mxu1 %v12419_v44  ;;  %v12063_v17 = vpop.xlane.xlu0 %12062  ;;  %18305 = vmatpush3.bf16.msra.mxu0 %v12482_v57 }
 0x881   : > { %18991 = vpow2.f32 %v12242_v27  ;;  %18321 = vmatpush3.bf16.msra.mxu1 %v12486_v63  ;;  %12342 = vadd.xlane.f32.xlu0 %v18978_v30  ;;  %v12041_v40 = vpop.xlane.xlu1 %12040  ;;  %v12416_v28 = vpack.c.bf16 %v18980_v38, %v18978_v30  ;;  %v24677_v12 = vpop.eup %18981  ;;  %v12134_v35 = vsub.f32 %v26920_v56, %v12063_v17  ;;  %v26929_v56 = vld [vmem:[#allocation80_spill] sm:$0xff] }
 0x882   : > { %18993 = vpow2.f32 %v12236_v62  ;;  %v12123_v31 = vsub.f32 %v26919_v48, %v12041_v40  ;;  %12300 = vadd.xlane.f32.xlu1 %v24581_v32  ;;  %18322 = vmatprep.subr.bf16.mxu1 %v12487_v52  ;;  %v12492_v40 = vld [vmem:[#allocation4 + $0x1f0] sm:$0xff] }
 0x883   : > { %18268 = vmatprep.mubr.bf16.mxu0 %v12416_v28  ;;  %18306 = vmatprep.subr.bf16.mxu0 %v12483_v24  ;;  %18995 = vpow2.f32 %v12230_v21 }
 0x884   : > { %v24679_v45 = vpop.eup %18983  ;;  %v12232_v0 = vmul.f32 1.442695, %v12123_v31  ;;  %v12067_v18 = vpop.xlane.xlu0 %12066  ;;  %18307 = vmatpush3.bf16.msra.mxu0 %v12483_v24  ;;  %v26928_v31 = vld [vmem:[#allocation88_spill] sm:$0xff] }
 0x885   : > { %18323 = vmatpush3.bf16.msra.mxu1 %v12487_v52  ;;  %12322 = vadd.xlane.f32.xlu0 %v24597_v33  ;;  %v12053_v55 = vpop.xlane.xlu1 %12052  ;;  %v12417_v32 = vpack.c.bf16 %v24679_v45, %v24677_v12  ;;  %v18986_v47 = vpop.eup %18985  ;;  %v12254_v33 = vmul.f32 1.442695, %v12134_v35  ;;  %v12136_v61 = vsub.f32 %v26922_v6, %v12067_v18 }
 0x886   : > { %18997 = vpow2.f32 %v12232_v0  ;;  %v12129_v43 = vsub.f32 %v26921_v50, %v12053_v55  ;;  %12296 = vadd.xlane.f32.xlu1 %v24590_v51  ;;  %18324 = vmatprep.subr.bf16.mxu1 %v12488_v54 }
 0x887   : > { %18269 = vmatmul.mubr.bf16.gmra.mrb[44].mxu0 %v12417_v32  ;;  %18308 = vmatprep.subr.bf16.mxu0 %v12484_v3  ;;  %v12258_v63 = vmul.f32 1.442695, %v12136_v61  ;;  %v12493_v32 = vld [vmem:[#allocation4 + $0x1f8] sm:$0xff] }
 0x888   : > { %v24687_v60 = vpop.eup %18987  ;;  %v12244_v25 = vmul.f32 1.442695, %v12129_v43  ;;  %v12055_v59 = vpop.xlane.xlu0 %12054  ;;  %18309 = vmatpush3.bf16.msra.mxu0 %v12484_v3 }
 0x889   : > { %18325 = vmatpush3.bf16.msra.mxu1 %v12488_v54  ;;  %v12065_v15 = vpop.xlane.xlu1 %12064  ;;  %v12422_v7 = vpack.c.bf16 %v24687_v60, %v18986_v47  ;;  %18310 = vmatprep.subr.bf16.mxu0 %v12485_v14  ;;  %v24691_v51 = vpop.eup %18989  ;;  %v12130_v29 = vsub.f32 %v26924_v22, %v12055_v59 }
 0x88a   : > { %18999 = vpow2.f32 %v12244_v25  ;;  %v12135_v8 = vsub.f32 %v26923_v9, %v12065_v15  ;;  %12344 = vadd.xlane.f32.xlu1 %v18980_v38  ;;  %18326 = vmatprep.subr.bf16.mxu1 %v12489_v23  ;;  %v26926_v38 = vld [vmem:[#allocation78_spill] sm:$0xff] }
 0x88b   : > { %v18992_v4 = vpop.eup %18991  ;;  %18312 = vmatprep.mubr.bf16.mxu0 %v12422_v7  ;;  %19001 = vpow2.f32 %v12254_v33  ;;  %v12246_v52 = vmul.f32 1.442695, %v12130_v29  ;;  %v26931_v33 = vld [vmem:[#allocation90_spill] sm:$0xff] }
 0x88c   : > { %v24694_v13 = vpop.eup %18993  ;;  %v12256_v44 = vmul.f32 1.442695, %v12135_v8  ;;  %v12059_v53 = vpop.xlane.xlu0 %12058  ;;  %12370 = vadd.xlane.f32.xlu0 %v18992_v4  ;;  %18311 = vmatpush3.bf16.msra.mxu0 %v12485_v14 }
 0x88d   : > { %18327 = vmatpush3.bf16.msra.mxu1 %v12489_v23  ;;  %v12069_v11 = vpop.xlane.xlu1 %12068  ;;  %v12421_v57 = vpack.c.bf16 %v24694_v13, %v24691_v51  ;;  %v24701_v39 = vpop.eup %18995  ;;  %v12132_v62 = vsub.f32 %v26926_v38, %v12059_v53 }
 0x88e   : > { %19003 = vpow2.f32 %v12256_v44  ;;  %v12137_v42 = vsub.f32 %v26925_v20, %v12069_v11  ;;  %12324 = vadd.xlane.f32.xlu1 %v24599_v5  ;;  %18328 = vmatprep.subr.bf16.mxu1 %v12490_v26  ;;  %v26927_v5 = vld [vmem:[#allocation81_spill] sm:$0xff] }
 0x88f   : > { %19005 = vpow2.f32 %v12258_v63 }
 0x890   : > { %v24703_v37 = vpop.eup %18997  ;;  %v12260_v30 = vmul.f32 1.442695, %v12137_v42  ;;  %12318 = vadd.xlane.f32.xlu0 %v24605_v36  ;;  %v12071_v27 = vpop.xlane.xlu0 %12070  ;;  %v12250_v36 = vmul.f32 1.442695, %v12132_v62 }
 0x891   : > { %18329 = vmatpush3.bf16.msra.mxu1 %v12490_v26  ;;  %v12057_v17 = vpop.xlane.xlu1 %12056  ;;  %v12420_v24 = vpack.c.bf16 %v24703_v37, %v24701_v39  ;;  %v12138_v54 = vsub.f32 %v26928_v31, %v12071_v27 }
 0x892   : > { %19007 = vpow2.f32 %v12260_v30  ;;  %v12131_v21 = vsub.f32 %v26927_v5, %v12057_v17  ;;  %18330 = vmatprep.subr.bf16.mxu1 %v12491_v46 }
 0x893   : > { %18292 = vmatprep.mubr.bf16.mxu1 %v12420_v24  ;;  %19009 = vpow2.f32 %v12246_v52  ;;  %v12262_v14 = vmul.f32 1.442695, %v12138_v54 }
 0x894   : > { %v19000_v28 = vpop.eup %18999  ;;  %v12248_v48 = vmul.f32 1.442695, %v12131_v21  ;;  %18293 = vmatmul.mubr.bf16.gmra.mrb[60].mxu1 %v12421_v57  ;;  %12366 = vadd.xlane.f32.xlu0 %v18986_v47  ;;  %v12075_v3 = vpop.xlane.xlu0 %12074  ;;  %v26930_v47 = vld [vmem:[#allocation87_spill] sm:$0xff] }
 0x895   : > { %18331 = vmatpush3.bf16.msra.mxu1 %v12491_v46  ;;  %v12061_v0 = vpop.xlane.xlu1 %12060  ;;  %12372 = vadd.xlane.f32.xlu1 %v19000_v28  ;;  %v12423_v18 = vpack.c.bf16 %v19000_v28, %v18992_v4  ;;  %v19002_v55 = vpop.eup %19001  ;;  %v12140_v23 = vsub.f32 %v26930_v47, %v12075_v3 }
 0x896   : > { %19011 = vpow2.f32 %v12248_v48  ;;  %v12133_v35 = vsub.f32 %v26929_v56, %v12061_v0  ;;  %18332 = vmatprep.subr.bf16.mxu1 %v12492_v40 }
 0x897   : > { %18313 = vmatmul.mubr.bf16.vlgmr.msra.gmra.mrb[48].mxu0 %v12423_v18  ;;  %19013 = vpow2.f32 %v12250_v36 }
 0x898   : > { %v19004_v50 = vpop.eup %19003  ;;  %v12252_v43 = vmul.f32 1.442695, %v12133_v35  ;;  %12330 = vadd.xlane.f32.xlu0 %v24635_v19  ;;  %v12266_v19 = vmul.f32 1.442695, %v12140_v23 }
 0x899   : > { %18333 = vmatpush3.bf16.msra.mxu1 %v12492_v40  ;;  %12320 = vadd.xlane.f32.xlu1 %v24608_v49  ;;  %v12073_v25 = vpop.xlane.xlu1 %12072  ;;  %v12426_v59 = vpack.c.bf16 %v19004_v50, %v19002_v55  ;;  %v19006_v61 = vpop.eup %19005  ;;  %v26932_v49 = vld [vmem:[#allocation89_spill] sm:$0xff] }
 0x89a   : > { %19015 = vpow2.f32 %v12252_v43  ;;  %v12139_v6 = vsub.f32 %v26931_v33, %v12073_v25  ;;  %18334 = vmatprep.subr.bf16.mxu1 %v12493_v32 }
 0x89b   : > { %18336 = vmatprep.mubr.bf16.mxu1 %v12426_v59  ;;  %19017 = vpow2.f32 %v12262_v14 }
 0x89c   : > { %v19008_v15 = vpop.eup %19007  ;;  %v12264_v7 = vmul.f32 1.442695, %v12139_v6  ;;  %12326 = vadd.xlane.f32.xlu0 %v24645_v2 }
 0x89d   : > { %18335 = vmatpush3.bf16.msra.mxu1 %v12493_v32  ;;  %12368 = vadd.xlane.f32.xlu1 %v24687_v60  ;;  %v12077_v9 = vpop.xlane.xlu1 %12076  ;;  %v12427_v8 = vpack.c.bf16 %v19008_v15, %v19006_v61  ;;  %v19010_v26 = vpop.eup %19009 }
 0x89e   : > { %19019 = vpow2.f32 %v12264_v7  ;;  %v12141_v4 = vsub.f32 %v26932_v49, %v12077_v9 }
 0x89f   : > { %19021 = vpow2.f32 %v12266_v19 }
 0x8a0   : > { %v19012_v44 = vpop.eup %19011  ;;  %v12268_v53 = vmul.f32 1.442695, %v12141_v4  ;;  %18337 = vmatmul.mubr.bf16.vlgmr.msra.gmra.mrb[64].mxu1 %v12427_v8  ;;  %12374 = vadd.xlane.f32.xlu0 %v19010_v26 }
 0x8a1   : > { %12332 = vadd.xlane.f32.xlu1 %v24637_v16  ;;  %v12424_v63 = vpack.c.bf16 %v19012_v44, %v19010_v26  ;;  %v19014_v2 = vpop.eup %19013 }
 0x8a2   : > { %19023 = vpow2.f32 %v12268_v53 }
 0x8a3   : > { %18316 = vmatprep.mubr.bf16.mxu0 %v12424_v63 }
 0x8a4   : > { %v19016_v22 = vpop.eup %19015  ;;  %12354 = vadd.xlane.f32.xlu0 %v24654_v10 }
 0x8a5   : > { %12328 = vadd.xlane.f32.xlu1 %v24647_v58  ;;  %v12425_v60 = vpack.c.bf16 %v19016_v22, %v19014_v2  ;;  %v19018_v29 = vpop.eup %19017 }
 0x8a7   : > { %18317 = vmatmul.mubr.bf16.gmra.mrb[52].mxu0 %v12425_v60 }
 0x8a8   : > { %v19020_v11 = vpop.eup %19019  ;;  %12350 = vadd.xlane.f32.xlu0 %v24664_v1 }
 0x8a9   : > { %12376 = vadd.xlane.f32.xlu1 %v19012_v44  ;;  %v12428_v57 = vpack.c.bf16 %v19020_v11, %v19018_v29  ;;  %v19022_v20 = vpop.eup %19021 }
 0x8ab   : > { %18340 = vmatprep.mubr.bf16.mxu1 %v12428_v57 }
 0x8ac   : > { %v19024_v16 = vpop.eup %19023  ;;  %12358 = vadd.xlane.f32.xlu0 %v24701_v39 }
 0x8ad   : > { %12356 = vadd.xlane.f32.xlu1 %v24656_v41  ;;  %v12429_v42 = vpack.c.bf16 %v19024_v16, %v19022_v20 }
 0x8af   : > { %18341 = vmatmul.mubr.bf16.gmra.mrb[68].mxu1 %v12429_v42 }
 0x8b0   : > { %12386 = vadd.xlane.f32.xlu0 %v19006_v61 }
 0x8b1   : > { %12352 = vadd.xlane.f32.xlu1 %v24666_v34  ;;  %v12275_v58 = vpop.xlane.xlu0 %12274 }
 0x8b2   : > { %19025 = vrcp.f32 %v12275_v58 }
 0x8b3   : > { %v12277_v41 = vpop.xlane.xlu1 %12276 }
 0x8b4   : > { %12382 = vadd.xlane.f32.xlu0 %v19002_v55  ;;  %19027 = vrcp.f32 %v12277_v41 }
 0x8b5   : > { %12360 = vadd.xlane.f32.xlu1 %v24703_v37 }
 0x8b8   : > { %12346 = vadd.xlane.f32.xlu0 %v24677_v12 }
 0x8b9   : > { %12388 = vadd.xlane.f32.xlu1 %v19008_v15 }
 0x8bc   : > { %12362 = vadd.xlane.f32.xlu0 %v24691_v51 }
 0x8bd   : > { %12384 = vadd.xlane.f32.xlu1 %v19004_v50  ;;  %v19026_v50 = vpop.eup %19025 }
 0x8be   : > { %v19028_v14 = vpop.eup %19027 }
 0x8c0   : > { %12378 = vadd.xlane.f32.xlu0 %v19014_v2 }
 0x8c1   : > { %12348 = vadd.xlane.f32.xlu1 %v24679_v45 }
 0x8c4   : > { %12390 = vadd.xlane.f32.xlu0 %v19018_v29 }
 0x8c5   : > { %12364 = vadd.xlane.f32.xlu1 %v24694_v13 }
 0x8c8   : > { %12394 = vadd.xlane.f32.xlu0 %v19022_v20 }
 0x8c9   : > { %12380 = vadd.xlane.f32.xlu1 %v19016_v22 }
 0x8cd   : > { %12392 = vadd.xlane.f32.xlu1 %v19020_v11 }
 0x8d1   : > { %12396 = vadd.xlane.f32.xlu1 %v19024_v16  ;;  %v12307_v10 = vpop.xlane.xlu0 %12306 }
 0x8d2   : > { %19029 = vrcp.f32 %v12307_v10  ;;  %v19775_v10 = vmov 1983009808  }
 0x8d3   : > { %v13145_v41 = vunpack.c.l.s4 %v19775_v10 }
 0x8d5   : > { %v12271_v1 = vpop.xlane.xlu0 %12270 }
 0x8d6   : > { %19031 = vrcp.f32 %v12271_v1  ;;  %v13147_v1 = vlaneseq }
 0x8d9   : > { %v12303_v12 = vpop.xlane.xlu0 %12302 }
 0x8da   : > { %v12309_v34 = vpop.xlane.xlu1 %12308  ;;  %19033 = vrcp.f32 %v12303_v12 }
 0x8db   : > { %19035 = vrcp.f32 %v12309_v34 }
 0x8dc   : > { %v19030_v25 = vpop.eup %19029 }
 0x8dd   : > { %v12283_v46 = vpop.xlane.xlu0 %12282 }
 0x8de   : > { %v12273_v39 = vpop.xlane.xlu1 %12272  ;;  %19037 = vrcp.f32 %v12283_v46 }
 0x8e0   : > { %v19032_v33 = vpop.eup %19031 }
 0x8e2   : > { %v12305_v51 = vpop.xlane.xlu1 %12304 }
 0x8e4   : > { %v19034_v6 = vpop.eup %19033 }
 0x8e5   : > { %v19036_v15 = vpop.eup %19035 }
 0x8e6   : > { %v12285_v27 = vpop.xlane.xlu1 %12284 }
 0x8e8   : > { %v24761_v19 = vpop.eup %19037 }
 0x8e9   : > { %v12315_v37 = vpop.xlane.xlu0 %12314 }
 0x8ee   : > { %v12279_v30 = vpop.xlane.xlu0 %12278 }
 0x8ef   : > { %19039 = vrcp.f32 %v12279_v30 }
 0x8f0   : > { %19041 = vrcp.f32 %v12273_v39 }
 0x8f2   : > { %v12311_v45 = vpop.xlane.xlu0 %12310 }
 0x8f3   : > { %v12317_v52 = vpop.xlane.xlu1 %12316 }
 0x8f6   : > { %v12291_v38 = vpop.xlane.xlu0 %12290 }
 0x8f7   : > { %v12281_v13 = vpop.xlane.xlu1 %12280 }
 0x8f8   : > { %19043 = vrcp.f32 %v12281_v13 }
 0x8f9   : > { %19045 = vrcp.f32 %v12305_v51  ;;  %v19040_v8 = vpop.eup %19039 }
 0x8fa   : > { %v12339_v62 = vpop.xlane.xlu0 %12338  ;;  %19047 = vrcp.f32 %v12285_v27  ;;  %v19042_v4 = vpop.eup %19041 }
 0x8fb   : > { %v12313_v17 = vpop.xlane.xlu1 %12312  ;;  %19049 = vrcp.f32 %v12315_v37 }
 0x8fc   : > { %19051 = vrcp.f32 %v12311_v45 }
 0x8fd   : > { %19053 = vrcp.f32 %v12317_v52 }
 0x8fe   : > { %v12287_v24 = vpop.xlane.xlu0 %12286  ;;  %19055 = vrcp.f32 %v12291_v38 }
 0x8ff   : > { %v12293_v5 = vpop.xlane.xlu1 %12292  ;;  %19057 = vrcp.f32 %v12339_v62 }
 0x900   : > { %19059 = vrcp.f32 %v12313_v17 }
 0x901   : > { %19061 = vrcp.f32 %v12287_v24 }
 0x902   : > { %v12335_v21 = vpop.xlane.xlu0 %12334  ;;  %v24731_v40 = vpop.f32.mrb[24].mxu0  ;;  %19063 = vrcp.f32 %v12293_v5 }
 0x903   : > { %v12341_v28 = vpop.xlane.xlu1 %12340  ;;  %v24733_v48 = vpop.f32.mrb[25].mxu0  ;;  %19065 = vrcp.f32 %v12335_v21  ;;  %v24780_v39 = vmul.f32 %v19026_v50, %v24731_v40 }
 0x904   : > { %v24735_v36 = vpop.f32.mrb[26].mxu0  ;;  %v19044_v53 = vpop.eup %19043  ;;  %19067 = vrcp.f32 %v12341_v28  ;;  %v24783_v46 = vmul.f32 %v19032_v33, %v24733_v48 }
 0x905   : > { %v24737_v31 = vpop.f32.mrb[27].mxu0  ;;  %v19046_v22 = vpop.eup %19045  ;;  %v24791_v27 = vmul.f32 %v19028_v14, %v24735_v36 }
 0x906   : > { %v12299_v54 = vpop.xlane.xlu0 %12298  ;;  %v24771_v11 = vpop.eup %19047  ;;  %v24794_v45 = vmul.f32 %v19042_v4, %v24737_v31 }
 0x907   : > { %v12289_v0 = vpop.xlane.xlu1 %12288  ;;  %v24773_v57 = vpop.eup %19049  ;;  %19069 = vrcp.f32 %v12299_v54 }
 0x908   : > { %v24775_v20 = vpop.eup %19051  ;;  %19071 = vrcp.f32 %v12289_v0 }
 0x909   : > { %v24777_v42 = vpop.eup %19053 }
 0x90a   : > { %v12295_v18 = vpop.xlane.xlu0 %12294  ;;  %v19056_v12 = vpop.eup %19055 }
 0x90b   : > { %v24739_v3 = vpop.xlane.xlu1 %12336  ;;  %19073 = vrcp.f32 %v12295_v18  ;;  %v24788_v30 = vpop.eup %19057 }
 0x90c   : > { %19075 = vrcp.f32 %v24739_v3  ;;  %v24799_v13 = vpop.eup %19059  ;;  %v19776_v3 = vmov 1934713408  }
 0x90d   : > { %v19062_v40 = vpop.eup %19061 }
 0x90e   : > { %v24741_v56 = vpop.xlane.xlu0 %12342  ;;  %v19064_v54 = vpop.eup %19063 }
 0x90f   : > { %v24743_v35 = vpop.xlane.xlu1 %12300  ;;  %19077 = vrcp.f32 %v24741_v56  ;;  %v13209_v56 = vunpack.c.l.s4 %v19776_v3 }
 0x910   : > { %19079 = vrcp.f32 %v24743_v35  ;;  %v24818_v35 = vpop.eup %19065 }
 0x911   : > { %v13210_v4 = vunpack.c.0.s8 %v13209_v56 }
 0x912   : > { %v24751_v47 = vpop.xlane.xlu0 %12322 }
 0x913   : > { %v24745_v55 = vpop.xlane.xlu1 %12296  ;;  %v24747_v32 = vpop.f32.mrb[40].mxu1  ;;  %19081 = vrcp.f32 %v24751_v47 }
 0x914   : > { %v24749_v43 = vpop.f32.mrb[41].mxu1  ;;  %19083 = vrcp.f32 %v24745_v55  ;;  %v24823_v47 = vpop.eup %19067  ;;  %v13146_v55 = vunpack.c.0.s8 %v13145_v41 }
 0x915   : > { %v24753_v23 = vpop.f32.mrb[42].mxu1 }
 0x916   : > { %v24755_v59 = vpop.f32.mrb[43].mxu1 }
 0x917   : > { %v24757_v61 = vpop.xlane.xlu1 %12344 }
 0x918   : > { %19085 = vrcp.f32 %v24757_v61 }
 0x919   : > { %v24759_v7 = vpop.xlane.xlu0 %12370 }
 0x91a   : > { %v24763_v9 = vpop.f32.mrb[28].mxu0  ;;  %19087 = vrcp.f32 %v24759_v7 }
 0x91b   : > { %v12544_v49 = vpop.f32.mrb[29].mxu0  ;;  %v12325_v60 = vpop.xlane.xlu1 %12324 }
 0x91c   : > { %v24765_v26 = vmul.f32 %v19040_v8, %v12544_v49  ;;  %v24767_v44 = vpop.f32.mrb[30].mxu0 }
 0x91d   : > { %v12547_v63 = vpop.f32.mrb[31].mxu0  ;;  %v12319_v2 = vpop.xlane.xlu0 %12318 }
 0x91e   : > { %v24769_v29 = vmul.f32 %v19044_v53, %v12547_v63  ;;  %19089 = vrcp.f32 %v12319_v2 }
 0x91f   : > { %19091 = vrcp.f32 %v12325_v60  ;;  %v13088_v60 = vmul.f32 %v19056_v12, %v24747_v32  ;;  %v24852_v32 = vmul.f32 %v24771_v11, %v24767_v44 }
 0x921   : > { %v12367_v16 = vpop.xlane.xlu0 %12366 }
 0x922   : > { %v18218_v58 = vpop.f32.mrb[32].mxu0  ;;  %v12373_v34 = vpop.xlane.xlu1 %12372 }
 0x923   : > { %v24786_v51 = vmul.f32 %v19030_v25, %v18218_v58  ;;  %v12658_v37 = vpop.f32.mrb[33].mxu0  ;;  %v24826_v25 = vshrl.u32 %v13147_v1, 7 }
 0x924   : > { %v24797_v52 = vmul.f32 %v19034_v6, %v12658_v37  ;;  %v18219_v38 = vpop.f32.mrb[34].mxu0  ;;  %v19070_v6 = vpop.eup %19069 }
 0x925   : > { %v13414_v62 = vcombine.low %v24780_v39, %v24786_v51  ;;  %v13415_v17 = vcombine.high %v24780_v39, %v24786_v51  ;;  %v24806_v24 = vmul.f32 %v19036_v15, %v18219_v38  ;;  %v12661_v5 = vpop.f32.mrb[35].mxu0  ;;  %v12331_v21 = vpop.xlane.xlu0 %12330  ;;  %26933 = vst [vmem:[#allocation76_spill] sm:$0xff] %v24826_v25  ;;  %v13086_v39 = vmul.f32 %v19062_v40, %v24749_v43 }
 0x926   : > { %v13142_v28 = vcombine.low %v24783_v46, %v24797_v52  ;;  %v13143_v48 = vcombine.high %v24783_v46, %v24797_v52  ;;  %v13095_v36 = vmul.f32 %v19046_v22, %v12661_v5  ;;  %v12321_v31 = vpop.xlane.xlu1 %12320  ;;  %v19072_v8 = vpop.eup %19071  ;;  %v24831_v22 = vsub.s32 %v13146_v55, %v24826_v25 }
 0x927   : > { %v13550_v0 = vcombine.low %v24791_v27, %v24806_v24  ;;  %v13551_v18 = vcombine.high %v24791_v27, %v24806_v24  ;;  %v19074_v61 = vpop.eup %19073  ;;  %19093 = vrcp.f32 %v12321_v31  ;;  %v24838_v46 = vsub.s32 %v13210_v4, %v24826_v25 }
 0x928   : > { %v13278_v50 = vcombine.low %v24794_v45, %v13095_v36  ;;  %v13279_v14 = vcombine.high %v24794_v45, %v13095_v36  ;;  %v24828_v63 = vpop.eup %19075  ;;  %19095 = vrcp.f32 %v12367_v16  ;;  %v24841_v51 = vmul.f32 %v19064_v54, %v24753_v23 }
 0x929   : > { %v12327_v33 = vpop.xlane.xlu0 %12326  ;;  %v24833_v10 = vpop.eup %19077  ;;  %19097 = vrcp.f32 %v12373_v34  ;;  %v24844_v37 = vmul.f32 %v19072_v8, %v24755_v59  ;;  %v24848_v34 = vmul.f32 %v24761_v19, %v24763_v9  ;;  %v24855_v43 = vrot.slane %v13414_v62, %v24831_v22 }
 0x92a   : > { %v12369_v15 = vpop.xlane.xlu1 %12368  ;;  %26934 = vst [vmem:[#allocation75_spill] sm:$0xff] %v24833_v10  ;;  %v19080_v1 = vpop.eup %19079  ;;  %19099 = vrcp.f32 %v12331_v21  ;;  %v24858_v12 = vrot.slane %v13415_v17, %v24831_v22  ;;  %v24863_v45 = vrot.slane %v13142_v28, %v24831_v22  ;;  %v24866_v19 = vrot.slane %v13143_v48, %v24831_v22 }
 0x92b   : > { %v18198_v49 = vpop.f32.mrb[44].mxu1  ;;  %v19082_v16 = vpop.eup %19081  ;;  %19101 = vrcp.f32 %v12327_v33  ;;  %v24869_v9 = vrot.slane %v13550_v0, %v24831_v22  ;;  %v24874_v52 = vrot.slane %v13551_v18, %v24831_v22  ;;  %v24877_v38 = vrot.slane %v13278_v50, %v24831_v22 }
 0x92c   : > { %v12609_v53 = vpop.f32.mrb[45].mxu1  ;;  %v19084_v27 = vpop.eup %19083  ;;  %19103 = vrcp.f32 %v12369_v15  ;;  %v24880_v62 = vrot.slane %v13279_v14, %v24831_v22  ;;  %v24882_v5 = vmul.f32 %v19070_v6, %v18198_v49 }
 0x92d   : > { %v12375_v7 = vpop.xlane.xlu0 %12374  ;;  %v18199_v58 = vpop.f32.mrb[46].mxu1  ;;  %v24884_v21 = vmul.f32 %v19074_v61, %v12609_v53 }
 0x92e   : > { %v12333_v2 = vpop.xlane.xlu1 %12332  ;;  %v12612_v41 = vpop.f32.mrb[47].mxu1  ;;  %19105 = vrcp.f32 %v12375_v7  ;;  %v24886_v36 = vmul.f32 %v19080_v1, %v18199_v58 }
 0x92f   : > { %v24860_v59 = vpop.eup %19085  ;;  %19107 = vrcp.f32 %v12333_v2  ;;  %v24888_v31 = vmul.f32 %v19084_v27, %v12612_v41 }
 0x930   : > { %26935 = vst [vmem:[#allocation82_spill] sm:$0xff] %v24860_v59  ;;  %v24871_v11 = vpop.eup %19087 }
 0x931   : > { %v12355_v23 = vpop.xlane.xlu0 %12354  ;;  %26936 = vst [vmem:[#allocation84_spill] sm:$0xff] %v24871_v11  ;;  %v19090_v24 = vpop.eup %19089 }
 0x932   : > { %v12329_v44 = vpop.xlane.xlu1 %12328  ;;  %19109 = vrcp.f32 %v12355_v23  ;;  %v19092_v48 = vpop.eup %19091 }
 0x933   : > { %v18242_v17 = vpop.f32.mrb[48].mxu1  ;;  %19111 = vrcp.f32 %v12329_v44  ;;  %v19094_v3 = vpop.eup %19093 }
 0x934   : > { %v13104_v40 = vmul.f32 %v19082_v16, %v18242_v17  ;;  %v12723_v28 = vpop.f32.mrb[49].mxu1  ;;  %v24892_v6 = vpop.eup %19095 }
 0x935   : > { %v13102_v54 = vmul.f32 %v19090_v24, %v12723_v28  ;;  %v12351_v0 = vpop.xlane.xlu0 %12350  ;;  %v18243_v18 = vpop.f32.mrb[50].mxu1  ;;  %26937 = vst [vmem:[#allocation77_spill] sm:$0xff] %v24892_v6 }
 0x936   : > { %v13430_v56 = vcombine.low %v13088_v60, %v13104_v40  ;;  %v13431_v50 = vcombine.high %v13088_v60, %v13104_v40  ;;  %19113 = vrcp.f32 %v12351_v0  ;;  %v24890_v14 = vmul.f32 %v19092_v48, %v18243_v18  ;;  %v12377_v55 = vpop.xlane.xlu1 %12376  ;;  %v12726_v33 = vpop.f32.mrb[51].mxu1 }
 0x937   : > { %v13158_v15 = vcombine.low %v13086_v39, %v13102_v54  ;;  %v13159_v8 = vcombine.high %v13086_v39, %v13102_v54  ;;  %19115 = vrcp.f32 %v12377_v55  ;;  %v24894_v49 = vmul.f32 %v19094_v3, %v12726_v33  ;;  %v24896_v4 = vpop.eup %19097 }
 0x938   : > { %26938 = vst [vmem:[#allocation83_spill] sm:$0xff] %v24896_v4  ;;  %v13438_v61 = vrot.slane %v13430_v56, %v24831_v22  ;;  %v13445_v53 = vrot.slane %v13431_v50, %v24831_v22  ;;  %v13566_v7 = vcombine.low %v24841_v51, %v24890_v14  ;;  %v13567_v58 = vcombine.high %v24841_v51, %v24890_v14  ;;  %v24904_v2 = vpop.eup %19099 }
 0x939   : > { %v13166_v41 = vrot.slane %v13158_v15, %v24831_v22  ;;  %v13173_v1 = vrot.slane %v13159_v8, %v24831_v22  ;;  %v13294_v60 = vcombine.low %v24844_v37, %v24894_v49  ;;  %v13295_v39 = vcombine.high %v24844_v37, %v24894_v49  ;;  %v12359_v16 = vpop.xlane.xlu0 %12358  ;;  %v24912_v27 = vpop.eup %19101 }
 0x93a   : > { %v13478_v23 = vcombine.low %v24855_v43, %v13438_v61  ;;  %v13479_v44 = vcombine.high %v24855_v43, %v13438_v61  ;;  %v13494_v51 = vcombine.low %v24858_v12, %v13445_v53  ;;  %v13495_v17 = vcombine.high %v24858_v12, %v13445_v53  ;;  %v18222_v24 = vpop.f32.mrb[36].mxu0  ;;  %v24918_v40 = vpop.eup %19103 }
 0x93b   : > { %26939 = vst [vmem:[#allocation86_spill] sm:$0xff] %v24918_v40  ;;  %v13206_v28 = vcombine.low %v24863_v45, %v13166_v41  ;;  %v13207_v48 = vcombine.high %v24863_v45, %v13166_v41  ;;  %v13222_v37 = vcombine.low %v24866_v19, %v13173_v1  ;;  %v13223_v54 = vcombine.high %v24866_v19, %v13173_v1  ;;  %v24924_v0 = vpop.xlane.xlu1 %12356  ;;  %v12674_v18 = vpop.f32.mrb[37].mxu0 }
 0x93c   : > { %v24926_v3 = vpop.eup %19105  ;;  %v13486_v43 = vrot.slane %v13478_v23, %v24838_v46  ;;  %v13493_v12 = vrot.slane %v13479_v44, %v24838_v46  ;;  %v13502_v56 = vrot.slane %v13494_v51, %v24838_v46  ;;  %v13509_v50 = vrot.slane %v13495_v17, %v24838_v46  ;;  %v18223_v14 = vpop.f32.mrb[38].mxu0 }
 0x93d   : > { %26940 = vst [vmem:[#allocation79_spill] sm:$0xff] %v24926_v3  ;;  %v24932_v55 = vpop.eup %19107  ;;  %v13214_v45 = vrot.slane %v13206_v28, %v24838_v46  ;;  %v13221_v19 = vrot.slane %v13207_v48, %v24838_v46  ;;  %v13230_v33 = vrot.slane %v13222_v37, %v24838_v46  ;;  %v13237_v15 = vrot.slane %v13223_v54, %v24838_v46  ;;  %v24938_v8 = vpop.f32.mrb[39].mxu0 }
 0x93e   : > { %v24940_v49 = vpop.xlane.xlu0 %12386  ;;  %v24942_v61 = vpop.eup %19109  ;;  %v17536_v53 = vcombine.low %v13486_v43, %v13493_v12  ;;  %v17538_v41 = vcombine.high %v13486_v43, %v13493_v12  ;;  %v17540_v1 = vcombine.low %v13502_v56, %v13509_v50  ;;  %v17542_v23 = vcombine.high %v13502_v56, %v13509_v50 }
 0x93f   : > { %v24944_v44 = vpop.eup %19111  ;;  %v17520_v51 = vcombine.low %v13214_v45, %v13221_v19  ;;  %v17522_v17 = vcombine.high %v13214_v45, %v13221_v19  ;;  %v17524_v28 = vcombine.low %v13230_v33, %v13237_v15  ;;  %v17526_v48 = vcombine.high %v13230_v33, %v13237_v15  ;;  %v24974_v33 = vpop.xlane.xlu1 %12352 }
 0x940   : > { %v24946_v25 = vpop.eup %19113  ;;  %v24949_v37 = vrot.slane %v17536_v53, %v24831_v22  ;;  %v24952_v54 = vrot.slane %v17538_v41, %v24831_v22  ;;  %v24955_v3 = vrot.slane %v17540_v1, %v24831_v22  ;;  %v24958_v43 = vrot.slane %v17542_v23, %v24831_v22 }
 0x941   : > { %v24960_v12 = vpop.eup %19115  ;;  %v24963_v56 = vrot.slane %v17520_v51, %v24831_v22  ;;  %v24966_v50 = vrot.slane %v17522_v17, %v24831_v22  ;;  %v24969_v45 = vrot.slane %v17524_v28, %v24831_v22  ;;  %v24972_v19 = vrot.slane %v17526_v48, %v24831_v22 }
 0x942   : > { %26941 = vst [vmem:[#allocation85_spill] sm:$0xff] %v24960_v12  ;;  %v13574_v15 = vrot.slane %v13566_v7, %v24831_v22  ;;  %v13581_v53 = vrot.slane %v13567_v58, %v24831_v22  ;;  %v13302_v41 = vrot.slane %v13294_v60, %v24831_v22  ;;  %v13309_v1 = vrot.slane %v13295_v39, %v24831_v22  ;;  %v24980_v23 = vpop.xlane.xlu0 %12382  ;;  %v24982_v51 = vpop.f32.mrb[40].mxu0 }
 0x943   : > { %19117 = vrcp.f32 %v12359_v16  ;;  %v13100_v17 = vmul.f32 %v24773_v57, %v18222_v24  ;;  %v13098_v28 = vmul.f32 %v24775_v20, %v12674_v18  ;;  %v13101_v48 = vmul.f32 %v24777_v42, %v18223_v14  ;;  %v24987_v12 = vpop.f32.mrb[41].mxu0 }
 0x944   : > { %v13614_v7 = vcombine.low %v24869_v9, %v13574_v15  ;;  %v13615_v58 = vcombine.high %v24869_v9, %v13574_v15  ;;  %v13630_v60 = vcombine.low %v24874_v52, %v13581_v53  ;;  %v13631_v39 = vcombine.high %v24874_v52, %v13581_v53  ;;  %v18267_v40 = vpop.f32.mrb[42].mxu0 }
 0x945   : > { %v13342_v4 = vcombine.low %v24877_v38, %v13302_v41  ;;  %v13343_v16 = vcombine.high %v24877_v38, %v13302_v41  ;;  %v13358_v57 = vcombine.low %v24880_v62, %v13309_v1  ;;  %v13359_v20 = vcombine.high %v24880_v62, %v13309_v1  ;;  %v12791_v42 = vpop.f32.mrb[43].mxu0  ;;  %v12361_v41 = vpop.xlane.xlu1 %12360 }
 0x946   : > { %v13622_v24 = vrot.slane %v13614_v7, %v24838_v46  ;;  %v13629_v18 = vrot.slane %v13615_v58, %v24838_v46  ;;  %v13638_v9 = vrot.slane %v13630_v60, %v24838_v46  ;;  %v13645_v14 = vrot.slane %v13631_v39, %v24838_v46  ;;  %v12347_v7 = vpop.xlane.xlu0 %12346 }
 0x947   : > { %v13350_v52 = vrot.slane %v13342_v4, %v24838_v46  ;;  %v13357_v15 = vrot.slane %v13343_v16, %v24838_v46  ;;  %v13366_v53 = vrot.slane %v13358_v57, %v24838_v46  ;;  %v13373_v38 = vrot.slane %v13359_v20, %v24838_v46 }
 0x948   : > { %v17544_v6 = vcombine.low %v13622_v24, %v13629_v18  ;;  %v17546_v62 = vcombine.high %v13622_v24, %v13629_v18  ;;  %v17548_v1 = vcombine.low %v13638_v9, %v13645_v14  ;;  %v17550_v11 = vcombine.high %v13638_v9, %v13645_v14 }
 0x949   : > { %v17528_v59 = vcombine.low %v13350_v52, %v13357_v15  ;;  %v17530_v58 = vcombine.high %v13350_v52, %v13357_v15  ;;  %v17532_v10 = vcombine.low %v13366_v53, %v13373_v38  ;;  %v17534_v60 = vcombine.high %v13366_v53, %v13373_v38 }
 0x94a   : > { %v25006_v39 = vrot.slane %v17544_v6, %v24831_v22  ;;  %v25009_v4 = vrot.slane %v17546_v62, %v24831_v22  ;;  %v25012_v16 = vrot.slane %v17548_v1, %v24831_v22  ;;  %v25015_v57 = vrot.slane %v17550_v11, %v24831_v22  ;;  %v12389_v1 = vpop.xlane.xlu1 %12388 }
 0x94b   : > { %v25018_v20 = vrot.slane %v17528_v59, %v24831_v22  ;;  %v25021_v24 = vrot.slane %v17530_v58, %v24831_v22  ;;  %v25024_v18 = vrot.slane %v17532_v10, %v24831_v22  ;;  %v25027_v6 = vrot.slane %v17534_v60, %v24831_v22  ;;  %v18246_v9 = vpop.f32.mrb[52].mxu1 }
 0x94c   : > { %v13958_v14 = vcombine.low %v24848_v34, %v13100_v17  ;;  %v13959_v52 = vcombine.high %v24848_v34, %v13100_v17  ;;  %19119 = vrcp.f32 %v24924_v0  ;;  %v13686_v11 = vcombine.low %v24765_v26, %v13098_v28  ;;  %v12739_v59 = vpop.f32.mrb[53].mxu1 }
 0x94d   : > { %v25033_v15 = vpop.eup %19117  ;;  %v13687_v53 = vcombine.high %v24765_v26, %v13098_v28  ;;  %v14094_v10 = vcombine.low %v24852_v32, %v13101_v48  ;;  %v14095_v38 = vcombine.high %v24852_v32, %v13101_v48  ;;  %v13099_v62 = vmul.f32 %v24799_v13, %v24938_v8  ;;  %v25040_v58 = vpop.f32.mrb[54].mxu1 }
 0x94e   : > { %26942 = vst [vmem:[#allocation78_spill] sm:$0xff] %v25033_v15  ;;  %v13966_v34 = vrot.slane %v13958_v14, %v24831_v22  ;;  %v13973_v0 = vrot.slane %v13959_v52, %v24831_v22  ;;  %v25045_v17 = vrot.slane %v13686_v11, %v24831_v22  ;;  %19121 = vrcp.f32 %v24940_v49  ;;  %v12363_v26 = vpop.xlane.xlu0 %12362  ;;  %v25048_v28 = vpop.f32.mrb[55].mxu1 }
 0x94f   : > { %v25051_v32 = vrot.slane %v13687_v53, %v24831_v22  ;;  %v25054_v13 = vrot.slane %v14094_v10, %v24831_v22  ;;  %v25057_v8 = vrot.slane %v14095_v38, %v24831_v22  ;;  %v13822_v48 = vcombine.low %v24769_v29, %v13099_v62 }
 0x950   : > { %v13823_v60 = vcombine.high %v24769_v29, %v13099_v62  ;;  %19123 = vrcp.f32 %v24974_v33  ;;  %v25064_v49 = vmul.f32 %v24788_v30, %v24982_v51  ;;  %v25068_v14 = vmul.f32 %v24818_v35, %v24987_v12  ;;  %v12385_v12 = vpop.xlane.xlu1 %12384 }
 0x951   : > { %v25071_v52 = vrot.slane %v13822_v48, %v24831_v22  ;;  %19125 = vrcp.f32 %v24980_v23  ;;  %v25075_v11 = vmul.f32 %v24823_v47, %v18267_v40  ;;  %v25078_v29 = vmul.f32 %v24828_v63, %v12791_v42 }
 0x952   : > { %26943 = vst [vmem:[#allocation81_spill] sm:$0xff] %v25064_v49  ;;  %26944 = vst [vmem:[#allocation88_spill] sm:$0xff] %v25068_v14  ;;  %v25081_v33 = vrot.slane %v13823_v60, %v24831_v22  ;;  %19127 = vrcp.f32 %v12361_v41  ;;  %v13108_v30 = vmul.f32 %v24904_v2, %v18246_v9  ;;  %v14566_v35 = vcombine.low %v24949_v37, %v24952_v54  ;;  %v12379_v41 = vpop.xlane.xlu0 %12378 }
 0x953   : > { %26945 = vst [vmem:[#allocation80_spill] sm:$0xff] %v25075_v11  ;;  %26946 = vst [vmem:[#allocation87_spill] sm:$0xff] %v25078_v29  ;;  %19129 = vrcp.f32 %v12347_v7  ;;  %v14598_v23 = vcombine.low %v24955_v3, %v24958_v43  ;;  %v14702_v47 = vcombine.low %v25006_v39, %v25009_v4  ;;  %v14734_v63 = vcombine.low %v25012_v16, %v25015_v57  ;;  %v25092_v40 = vpop.f32.mrb[56].mxu1 }
 0x954   : > { %19131 = vrcp.f32 %v12389_v1  ;;  %v13974_v51 = vcombine.low %v24882_v5, %v13108_v30  ;;  %v13975_v2 = vcombine.high %v24882_v5, %v13108_v30  ;;  %v25097_v42 = vrot.slane %v14566_v35, %v24838_v46  ;;  %v25099_v7 = vpop.f32.mrb[57].mxu1  ;;  %v12349_v11 = vpop.xlane.xlu1 %12348 }
 0x955   : > { %19133 = vrcp.f32 %v12363_v26  ;;  %v25102_v9 = vrot.slane %v14598_v23, %v24838_v46  ;;  %v25105_v53 = vrot.slane %v14702_v47, %v24838_v46  ;;  %v25108_v10 = vrot.slane %v14734_v63, %v24838_v46  ;;  %v25110_v38 = vpop.f32.mrb[58].mxu1 }
 0x956   : > { %26947 = vst [vmem:[#allocation90_spill] sm:$0xff] %v25097_v42  ;;  %v25112_v62 = vpop.eup %19119  ;;  %19135 = vrcp.f32 %v12385_v12  ;;  %v13982_v5 = vrot.slane %v13974_v51, %v24831_v22  ;;  %v13989_v1 = vrot.slane %v13975_v2, %v24831_v22  ;;  %v13106_v26 = vmul.f32 %v24912_v27, %v12739_v59  ;;  %v25117_v48 = vpop.f32.mrb[59].mxu1 }
 0x957   : > { %26948 = vst [vmem:[#allocation89_spill] sm:$0xff] %v25102_v9  ;;  %26949 = vst [vmem:[#allocation91_spill] sm:$0xff] %v25105_v53  ;;  %v14631_v60 = vcombine.high %v25097_v42, %v25102_v9  ;;  %v14767_v30 = vcombine.high %v25105_v53, %v25108_v10  ;;  %19137 = vrcp.f32 %v12379_v41  ;;  %v14294_v35 = vcombine.low %v24963_v56, %v24966_v50 }
 0x958   : > { %26950 = vst [vmem:[#allocation92_spill] sm:$0xff] %v25108_v10  ;;  %v25125_v23 = vpop.eup %19121  ;;  %v14022_v12 = vcombine.low %v13966_v34, %v13982_v5  ;;  %v14023_v47 = vcombine.high %v13966_v34, %v13982_v5  ;;  %v14038_v63 = vcombine.low %v13973_v0, %v13989_v1  ;;  %v14039_v51 = vcombine.high %v13973_v0, %v13989_v1 }
 0x959   : > { %26951 = vst [vmem:[#allocation93_spill] sm:$0xff] %v25125_v23  ;;  %v18669_v2 = vpack.i.bf16 %v14767_v30, %v14631_v60  ;;  %v13702_v27 = vcombine.low %v24884_v21, %v13106_v26  ;;  %v13703_v59 = vcombine.high %v24884_v21, %v13106_v26  ;;  %v25130_v42 = vrot.slane %v14294_v35, %v24838_v46 }
 0x95a   : > { %v25132_v9 = vpop.eup %19123  ;;  %v14030_v41 = vrot.slane %v14022_v12, %v24838_v46  ;;  %v14037_v53 = vrot.slane %v14023_v47, %v24838_v46  ;;  %v14046_v10 = vrot.slane %v14038_v63, %v24838_v46  ;;  %v14053_v34 = vrot.slane %v14039_v51, %v24838_v46  ;;  %v25138_v5 = vpop.f32.mrb[44].mxu0 }
 0x95b   : > { %26952 = vst [vmem:[#allocation94_spill] sm:$0xff] %v25130_v42  ;;  %v25140_v0 = vpop.eup %19125  ;;  %18670 = vrot.lane.b32.xlu1 %v18669_v2, %s19777_s8  ;;  %v13710_v21 = vrot.slane %v13702_v27, %v24831_v22  ;;  %v13717_v1 = vrot.slane %v13703_v59, %v24831_v22  ;;  %v14326_v26 = vcombine.low %v24969_v45, %v24972_v19  ;;  %v25149_v30 = vpop.f32.mrb[45].mxu0  ;;  %19139 = vrcp.f32 %v12349_v11 }
 0x95c   : > { %26953 = vst [vmem:[#allocation95_spill] sm:$0xff] %v25140_v0  ;;  %v14430_v60 = vcombine.low %v25018_v20, %v25021_v24  ;;  %v25151_v35 = vpop.eup %19127  ;;  %v17568_v12 = vcombine.low %v14030_v41, %v14037_v53  ;;  %v17570_v47 = vcombine.high %v14030_v41, %v14037_v53  ;;  %v17572_v63 = vcombine.low %v14046_v10, %v14053_v34  ;;  %v25153_v29 = vpop.f32.mrb[46].mxu0 }
 0x95d   : > { %26954 = vst [vmem:[#allocation96_spill] sm:$0xff] %v25151_v35  ;;  %v17574_v51 = vcombine.high %v14046_v10, %v14053_v34  ;;  %v25155_v2 = vpop.eup %19129  ;;  %v13750_v27 = vcombine.low %v25045_v17, %v13710_v21  ;;  %v13751_v59 = vcombine.high %v25045_v17, %v13710_v21  ;;  %v13766_v0 = vcombine.low %v25051_v32, %v13717_v1  ;;  %v25161_v14 = vpop.f32.mrb[47].mxu0 }
 0x95e   : > { %v13767_v23 = vcombine.high %v25051_v32, %v13717_v1  ;;  %v25163_v49 = vpop.eup %19131  ;;  %v25166_v53 = vrot.slane %v17568_v12, %v24831_v22  ;;  %v25169_v10 = vrot.slane %v17570_v47, %v24831_v22  ;;  %v25172_v41 = vrot.slane %v17572_v63, %v24831_v22 }
 0x95f   : > { %26955 = vst [vmem:[#allocation97_spill] sm:$0xff] %v25163_v49  ;;  %v25175_v17 = vrot.slane %v17574_v51, %v24831_v22  ;;  %v25177_v34 = vpop.eup %19133  ;;  %v13758_v32 = vrot.slane %v13750_v27, %v24838_v46  ;;  %v13765_v21 = vrot.slane %v13751_v59, %v24838_v46  ;;  %v13774_v1 = vrot.slane %v13766_v0, %v24838_v46 }
 0x960   : > { %26956 = vst [vmem:[#allocation98_spill] sm:$0xff] %v25172_v41  ;;  %26957 = vst [vmem:[#allocation99_spill] sm:$0xff] %v25177_v34  ;;  %v13781_v12 = vrot.slane %v13767_v23, %v24838_v46  ;;  %v25183_v49 = vpop.eup %19135  ;;  %v25186_v47 = vrot.slane %v14326_v26, %v24838_v46  ;;  %v25189_v63 = vrot.slane %v14430_v60, %v24838_v46 }
 0x961   : > { %26958 = vst [vmem:[#allocation100_spill] sm:$0xff] %v25183_v49  ;;  %v14462_v51 = vcombine.low %v25024_v18, %v25027_v6  ;;  %v13109_v27 = vmul.f32 %v24932_v55, %v25040_v58  ;;  %v25195_v35 = vpop.eup %19137  ;;  %v17552_v59 = vcombine.low %v13758_v32, %v13765_v21  ;;  %v17554_v0 = vcombine.high %v13758_v32, %v13765_v21  ;;  %v25216_v21 = vpop.xlane.xlu1 %12364 }
 0x962   : > { %26959 = vst [vmem:[#allocation101_spill] sm:$0xff] %v25186_v47  ;;  %26960 = vst [vmem:[#allocation102_spill] sm:$0xff] %v25189_v63  ;;  %v17556_v15 = vcombine.low %v13774_v1, %v13781_v12  ;;  %v17558_v23 = vcombine.high %v13774_v1, %v13781_v12  ;;  %v14359_v49 = vcombine.high %v25130_v42, %v25186_v47 }
 0x963   : > { %26961 = vst [vmem:[#allocation103_spill] sm:$0xff] %v25195_v35  ;;  %v25200_v26 = vrot.slane %v14462_v51, %v24838_v46  ;;  %v14110_v60 = vcombine.low %v24886_v36, %v13109_v27  ;;  %v14111_v34 = vcombine.high %v24886_v36, %v13109_v27  ;;  %v25205_v41 = vrot.slane %v17552_v59, %v24831_v22 }
 0x964   : > { %v25208_v55 = vrot.slane %v17554_v0, %v24831_v22  ;;  %v25211_v58 = vrot.slane %v17556_v15, %v24831_v22  ;;  %v25214_v32 = vrot.slane %v17558_v23, %v24831_v22  ;;  %v13107_v51 = vmul.f32 %v24944_v44, %v25048_v28 }
 0x965   : > { %26962 = vst [vmem:[#allocation104_spill] sm:$0xff] %v25200_v26  ;;  %v14495_v1 = vcombine.high %v25189_v63, %v25200_v26  ;;  %v14118_v12 = vrot.slane %v14110_v60, %v24831_v22  ;;  %v14125_v36 = vrot.slane %v14111_v34, %v24831_v22  ;;  %v14567_v15 = vcombine.high %v24949_v37, %v24952_v54 }
 0x966   : > { %v14599_v27 = vcombine.high %v24955_v3, %v24958_v43  ;;  %v14703_v59 = vcombine.high %v25006_v39, %v25009_v4  ;;  %v13838_v44 = vcombine.low %v24888_v31, %v13107_v51  ;;  %v13839_v28 = vcombine.high %v24888_v31, %v13107_v51 }
 0x967   : > { %v18684_v0 = vpack.i.bf16 %v14495_v1, %v14359_v49  ;;  %v14158_v23 = vcombine.low %v25054_v13, %v14118_v12  ;;  %v14159_v60 = vcombine.high %v25054_v13, %v14118_v12  ;;  %v14174_v34 = vcombine.low %v25057_v8, %v14125_v36  ;;  %v25239_v3 = vpop.f32.mrb[60].mxu1  ;;  %v12381_v12 = vpop.xlane.xlu1 %12380 }
 0x968   : > { %v14175_v11 = vcombine.high %v25057_v8, %v14125_v36  ;;  %v25237_v37 = vrot.slane %v14567_v15, %v24838_v46  ;;  %v25246_v4 = vrot.slane %v14599_v27, %v24838_v46  ;;  %v25248_v13 = vpop.f32.mrb[61].mxu1  ;;  %v13846_v8 = vrot.slane %v13838_v44, %v24831_v22 }
 0x969   : > { %18685 = vrot.lane.b32.xlu0 %v18684_v0, %s19777_s8  ;;  %v14166_v54 = vrot.slane %v14158_v23, %v24838_v46  ;;  %v14173_v43 = vrot.slane %v14159_v60, %v24838_v46  ;;  %v14182_v39 = vrot.slane %v14174_v34, %v24838_v46  ;;  %v13853_v49 = vrot.slane %v13839_v28, %v24831_v22  ;;  %v25256_v36 = vpop.f32.mrb[62].mxu1  ;;  %v12391_v28 = vpop.xlane.xlu0 %12390 }
 0x96a   : > { %v14189_v31 = vrot.slane %v14175_v11, %v24838_v46  ;;  %v25254_v1 = vrot.slane %v14703_v59, %v24838_v46  ;;  %v14632_v27 = vcombine.low %v25237_v37, %v25246_v4  ;;  %v14735_v0 = vcombine.high %v25012_v16, %v25015_v57  ;;  %v25262_v23 = vpop.f32.mrb[63].mxu1  ;;  %v25264_v60 = vpop.f32.mrb[48].mxu0 }
 0x96b   : > { %v17576_v51 = vcombine.low %v14166_v54, %v14173_v43  ;;  %v17578_v15 = vcombine.high %v14166_v54, %v14173_v43  ;;  %v13886_v59 = vcombine.low %v25071_v52, %v13846_v8  ;;  %v13887_v44 = vcombine.high %v25071_v52, %v13846_v8  ;;  %v25268_v63 = vpop.f32.mrb[49].mxu0  ;;  %v12393_v35 = vpop.xlane.xlu1 %12392 }
 0x96c   : > { %v17580_v34 = vcombine.low %v14182_v39, %v14189_v31  ;;  %v17582_v11 = vcombine.high %v14182_v39, %v14189_v31  ;;  %v13902_v16 = vcombine.low %v25081_v33, %v13853_v49  ;;  %v13903_v57 = vcombine.high %v25081_v33, %v13853_v49  ;;  %v25278_v26 = vpop.f32.mrb[50].mxu0 }
 0x96d   : > { %v25271_v54 = vrot.slane %v17576_v51, %v24831_v22  ;;  %v25274_v43 = vrot.slane %v17578_v15, %v24831_v22  ;;  %26963 = vst [vmem:[#allocation105_spill] sm:$0xff] %v25278_v26  ;;  %v13894_v31 = vrot.slane %v13886_v59, %v24838_v46  ;;  %v13901_v8 = vrot.slane %v13887_v44, %v24838_v46  ;;  %v25288_v51 = vpop.f32.mrb[51].mxu0  ;;  %v19140_v15 = vpop.eup %19139 }
 0x96e   : > { %v25281_v39 = vrot.slane %v17580_v34, %v24831_v22  ;;  %v25284_v52 = vrot.slane %v17582_v11, %v24831_v22  ;;  %26964 = vst [vmem:[#allocation106_spill] sm:$0xff] %v25288_v51  ;;  %v13910_v42 = vrot.slane %v13902_v16, %v24838_v46  ;;  %v13917_v47 = vrot.slane %v13903_v57, %v24838_v46 }
 0x96f   : > { %v14749_v33 = vrot.slane %v14735_v0, %v24838_v46  ;;  %19141 = vrcp.f32 %v12391_v28  ;;  %v17560_v49 = vcombine.low %v13894_v31, %v13901_v8  ;;  %v17562_v34 = vcombine.high %v13894_v31, %v13901_v8 }
 0x970   : > { %v14295_v11 = vcombine.high %v24963_v56, %v24966_v50  ;;  %v14327_v59 = vcombine.high %v24969_v45, %v24972_v19  ;;  %v17564_v44 = vcombine.low %v13910_v42, %v13917_v47  ;;  %v17566_v26 = vcombine.high %v13910_v42, %v13917_v47  ;;  %v12395_v50 = vpop.xlane.xlu0 %12394 }
 0x971   : > { %v14768_v51 = vcombine.low %v25254_v1, %v14749_v33  ;;  %v14431_v16 = vcombine.high %v25018_v20, %v25021_v24  ;;  %v25301_v57 = vrot.slane %v17560_v49, %v24831_v22  ;;  %v25304_v0 = vrot.slane %v17562_v34, %v24831_v22  ;;  %v26967_v49 = vld [vmem:[#allocation98_spill] sm:$0xff] }
 0x972   : > { %v14309_v28 = vrot.slane %v14295_v11, %v24838_v46  ;;  %v14341_v56 = vrot.slane %v14327_v59, %v24838_v46  ;;  %v25309_v45 = vrot.slane %v17564_v44, %v24831_v22  ;;  %v25312_v19 = vrot.slane %v17566_v26, %v24831_v22 }
 0x973   : > { %v18674_v42 = vpack.i.bf16 %v14768_v51, %v14632_v27  ;;  %v14445_v20 = vrot.slane %v14431_v16, %v24838_v46  ;;  %v14463_v47 = vcombine.high %v25024_v18, %v25027_v6  ;;  %19143 = vrcp.f32 %v25216_v21  ;;  %v25322_v8 = vpop.f32.mrb[64].mxu1  ;;  %v12397_v21 = vpop.xlane.xlu1 %12396 }
 0x974   : > { %v14361_v24 = vcombine.high %v14309_v28, %v14341_v56  ;;  %v25320_v31 = vmul.f32 %v24942_v61, %v25092_v40  ;;  %v14633_v26 = vcombine.high %v25237_v37, %v25246_v4  ;;  %v14769_v27 = vcombine.high %v25254_v1, %v14749_v33  ;;  %v25332_v18 = vpop.f32.mrb[65].mxu1 }
 0x975   : > { %18675 = vrot.lane.b32.xlu1 %v18674_v42, %s19778_s18  ;;  %v25330_v51 = vmul.f32 %v24946_v25, %v25099_v7  ;;  %19145 = vrcp.f32 %v12395_v50  ;;  %v14477_v61 = vrot.slane %v14463_v47, %v24838_v46  ;;  %v25337_v6 = vmul.f32 %v25112_v62, %v25110_v38  ;;  %v25343_v37 = vpop.f32.mrb[66].mxu1  ;;  %v26965_v62 = vld [vmem:[#allocation75_spill] sm:$0xff] }
 0x976   : > { %19147 = vrcp.f32 %v12381_v12  ;;  %v25341_v40 = vmul.f32 %v25132_v9, %v25117_v48  ;;  %v18679_v4 = vpack.i.bf16 %v14769_v27, %v14633_v26  ;;  %v14360_v25 = vcombine.low %v14309_v28, %v14341_v56  ;;  %v25349_v1 = vpop.f32.mrb[67].mxu1 }
 0x977   : > { %v25347_v7 = vmul.f32 %v25155_v2, %v25138_v5  ;;  %19149 = vrcp.f32 %v12393_v35  ;;  %v14497_v33 = vcombine.high %v14445_v20, %v14477_v61  ;;  %v14496_v38 = vcombine.low %v14445_v20, %v14477_v61  ;;  %v26966_v5 = vld [vmem:[#allocation82_spill] sm:$0xff]  ;;  %v26969_v61 = vld [vmem:[#allocation99_spill] sm:$0xff] }
 0x978   : > { %v25353_v12 = vmul.f32 %v26965_v62, %v25149_v30  ;;  %v25356_v9 = vmul.f32 %v19140_v15, %v25153_v29  ;;  %v25363_v2 = vmul.f32 %v26966_v5, %v25161_v14  ;;  %19151 = vrcp.f32 %v12397_v21 }
 0x979   : > { %v25358_v48 = vpop.eup %19141  ;;  %18680 = vrot.lane.b32.xlu1 %v18679_v4, %s19779_s17  ;;  %v15110_v35 = vcombine.low %v25166_v53, %v25169_v10  ;;  %v15142_v30 = vcombine.low %v26967_v49, %v25175_v17  ;;  %v18694_v34 = vpack.i.bf16 %v14497_v33, %v14361_v24  ;;  %v18689_v11 = vpack.i.bf16 %v14496_v38, %v14360_v25 }
 0x97a   : > { %v15246_v29 = vcombine.low %v25271_v54, %v25274_v43  ;;  %v15278_v15 = vcombine.low %v25281_v39, %v25284_v52  ;;  %v14838_v44 = vcombine.low %v25205_v41, %v25208_v55  ;;  %v14870_v16 = vcombine.low %v25211_v58, %v25214_v32  ;;  %v25383_v28 = vpop.f32.mrb[52].mxu0 }
 0x97b   : > { %v25374_v59 = vrot.slane %v15110_v35, %v24838_v46  ;;  %v25377_v14 = vrot.slane %v15142_v30, %v24838_v46  ;;  %18695 = vrot.lane.b32.xlu0 %v18694_v34, %s19779_s17  ;;  %v14974_v42 = vcombine.low %v25301_v57, %v25304_v0  ;;  %v15006_v20 = vcombine.low %v25309_v45, %v25312_v19  ;;  %v25396_v24 = vpop.f32.mrb[53].mxu0 }
 0x97c   : > { %v25387_v56 = vrot.slane %v15246_v29, %v24838_v46  ;;  %v25390_v50 = vrot.slane %v15278_v15, %v24838_v46  ;;  %v25402_v26 = vrot.slane %v14838_v44, %v24838_v46  ;;  %v25405_v27 = vrot.slane %v14870_v16, %v24838_v46  ;;  %v25411_v4 = vpop.f32.mrb[54].mxu0  ;;  %v26972_v16 = vld [vmem:[#allocation78_spill] sm:$0xff] }
 0x97d   : > { %18690 = vrot.lane.b32.xlu1 %v18689_v11, %s19778_s18  ;;  %v15175_v47 = vcombine.high %v25374_v59, %v25377_v14  ;;  %v25409_v21 = vmul.f32 %v26969_v61, %v25239_v3  ;;  %v19144_v25 = vpop.eup %19143  ;;  %v25416_v38 = vrot.slane %v14974_v42, %v24838_v46  ;;  %v25419_v62 = vrot.slane %v15006_v20, %v24838_v46  ;;  %v25423_v35 = vpop.f32.mrb[55].mxu0 }
 0x97e   : > { %26968 = vst [vmem:[#allocation75_spill] sm:$0xff] %v25402_v26  ;;  %v15311_v33 = vcombine.high %v25387_v56, %v25390_v50  ;;  %v15111_v5 = vcombine.high %v25166_v53, %v25169_v10  ;;  %v14903_v3 = vcombine.high %v25402_v26, %v25405_v27  ;;  %v15143_v34 = vcombine.high %v26967_v49, %v25175_v17 }
 0x97f   : > { %26970 = vst [vmem:[#allocation82_spill] sm:$0xff] %v25416_v38  ;;  %26971 = vst [vmem:[#allocation98_spill] sm:$0xff] %v25419_v62  ;;  %v25425_v30 = vpop.eup %19145  ;;  %v15247_v11 = vcombine.high %v25271_v54, %v25274_v43  ;;  %v15279_v29 = vcombine.high %v25281_v39, %v25284_v52  ;;  %v15039_v53 = vcombine.high %v25416_v38, %v25419_v62  ;;  %v26981_v38 = vld [vmem:[#allocation80_spill] sm:$0xff] }
 0x980   : > { %v25435_v15 = vpop.eup %19147  ;;  %v18699_v44 = vpack.i.bf16 %v15311_v33, %v15175_v47  ;;  %v15125_v10 = vrot.slane %v15111_v5, %v24838_v46  ;;  %v25442_v42 = vmul.f32 %v26972_v16, %v25248_v13  ;;  %v15157_v17 = vrot.slane %v15143_v34, %v24838_v46  ;;  %v26978_v16 = vld [vmem:[#allocation83_spill] sm:$0xff] }
 0x981   : > { %v25444_v20 = vpop.eup %19149  ;;  %v15261_v54 = vrot.slane %v15247_v11, %v24838_v46  ;;  %v15293_v43 = vrot.slane %v15279_v29, %v24838_v46  ;;  %v14839_v39 = vcombine.high %v25205_v41, %v25208_v55  ;;  %v18714_v52 = vpack.i.bf16 %v15039_v53, %v14903_v3  ;;  %v26975_v3 = vld [vmem:[#allocation84_spill] sm:$0xff]  ;;  %v26976_v29 = vld [vmem:[#allocation77_spill] sm:$0xff] }
 0x982   : > { %18700 = vrot.lane.b32.xlu1 %v18699_v44, %s19777_s8  ;;  %v14871_v49 = vcombine.high %v25211_v58, %v25214_v32  ;;  %v14975_v13 = vcombine.high %v25301_v57, %v25304_v0  ;;  %v15007_v47 = vcombine.high %v25309_v45, %v25312_v19  ;;  %v25458_v61 = vpop.eup %19151  ;;  %v15176_v33 = vcombine.low %v15125_v10, %v15157_v17  ;;  %v25464_v55 = vpop.f32.mrb[68].mxu1  ;;  %v26973_v0 = vld [vmem:[#allocation96_spill] sm:$0xff]  ;;  %v26977_v53 = vld [vmem:[#allocation105_spill] sm:$0xff] }
 0x983   : > { %v15312_v5 = vcombine.low %v15261_v54, %v15293_v43  ;;  %v14853_v34 = vrot.slane %v14839_v39, %v24838_v46  ;;  %v25462_v41 = vmul.f32 %v19144_v25, %v25256_v36  ;;  %18715 = vrot.lane.b32.xlu0 %v18714_v52, %s19777_s8  ;;  %v25472_v45 = vmul.f32 %v26973_v0, %v25262_v23  ;;  %v25474_v19 = vpop.f32.mrb[69].mxu1  ;;  %v18809_v36 = vld [vmem:[%s26974_s6] sm:$0xff]   ;;  %v18810_v23 = vld [vmem:[%s26974_s6 + $0x8] sm:$0xff]   ;;  %s19781_s8 = smov 80  }
 0x984   : > { %v14885_v58 = vrot.slane %v14871_v49, %v24838_v46  ;;  %v14989_v32 = vrot.slane %v14975_v13, %v24838_v46  ;;  %v15021_v57 = vrot.slane %v15007_v47, %v24838_v46  ;;  %v13128_v11 = vmul.f32 %v26975_v3, %v25264_v60  ;;  %v25485_v52 = vpop.f32.mrb[70].mxu1  ;;  %18344 = vmatprep.subr.bf16.mxu0 %v18809_v36  ;;  %v26979_v60 = vld [vmem:[#allocation81_spill] sm:$0xff]  ;;  %v26980_v3 = vld [vmem:[#allocation88_spill] sm:$0xff] }
 0x985   : > { %v18704_v25 = vpack.i.bf16 %v15312_v5, %v15176_v33  ;;  %v13126_v44 = vmul.f32 %v26976_v29, %v25268_v63  ;;  %v13129_v39 = vmul.f32 %v26978_v16, %v26977_v53  ;;  %v15177_v47 = vcombine.high %v15125_v10, %v15157_v17  ;;  %v25490_v33 = vpop.f32.mrb[71].mxu1  ;;  %18345 = vmatpush3.bf16.msra.mxu0 %v18809_v36  ;;  %v26982_v36 = vld [vmem:[#allocation106_spill] sm:$0xff] }
 0x986   : > { %v14904_v49 = vcombine.low %v14853_v34, %v14885_v58  ;;  %v15040_v13 = vcombine.low %v14989_v32, %v15021_v57  ;;  %v15313_v0 = vcombine.high %v15261_v54, %v15293_v43  ;;  %v13446_v63 = vcombine.low %v26979_v60, %v13128_v11  ;;  %18346 = vmatprep.subr.bf16.mxu0 %v18810_v23 }
 0x987   : > { %18705 = vrot.lane.b32.xlu1 %v18704_v25, %s19778_s18  ;;  %v13447_v5 = vcombine.high %v26979_v60, %v13128_v11  ;;  %v13174_v29 = vcombine.low %v26980_v3, %v13126_v44  ;;  %v13175_v53 = vcombine.high %v26980_v3, %v13126_v44  ;;  %v13582_v62 = vcombine.low %v26981_v38, %v13129_v39  ;;  %v18811_v11 = vld [vmem:[%s26974_s6 + $0x10] sm:$0xff]   ;;  %v26986_v3 = vld [vmem:[#allocation97_spill] sm:$0xff] }
 0x988   : > { %v18719_v16 = vpack.i.bf16 %v15040_v13, %v14904_v49  ;;  %v13583_v26 = vcombine.high %v26981_v38, %v13129_v39  ;;  %v18709_v10 = vpack.i.bf16 %v15313_v0, %v15177_v47  ;;  %v13454_v17 = vrot.slane %v13446_v63, %v24831_v22  ;;  %v26983_v39 = vld [vmem:[#allocation86_spill] sm:$0xff]  ;;  %v26984_v0 = vld [vmem:[#allocation93_spill] sm:$0xff]  ;;  %v26985_v63 = vld [vmem:[#allocation95_spill] sm:$0xff] }
 0x989   : > { %v13461_v54 = vrot.slane %v13447_v5, %v24831_v22  ;;  %v13182_v43 = vrot.slane %v13174_v29, %v24831_v22  ;;  %v13189_v25 = vrot.slane %v13175_v53, %v24831_v22  ;;  %v25508_v44 = vrot.slane %v13582_v62, %v24831_v22  ;;  %v26987_v29 = vld [vmem:[#allocation87_spill] sm:$0xff]  ;;  %18347 = vmatpush3.bf16.msra.mxu0 %v18810_v23 }
 0x98a   : > { %18720 = vrot.lane.b32.xlu0 %v18719_v16, %s19778_s18  ;;  %v25511_v38 = vrot.slane %v13583_v26, %v24831_v22  ;;  %v13127_v49 = vmul.f32 %v26983_v39, %v26982_v36  ;;  %v14905_v13 = vcombine.high %v14853_v34, %v14885_v58  ;;  %v15041_v47 = vcombine.high %v14989_v32, %v15021_v57  ;;  %v26988_v16 = vld [vmem:[#allocation100_spill] sm:$0xff]  ;;  %v26989_v34 = vld [vmem:[#allocation103_spill] sm:$0xff] }
 0x98b   : > { %18710 = vrot.lane.b32.xlu1 %v18709_v10, %s19779_s17  ;;  %v13136_v60 = vmul.f32 %v26984_v0, %v25322_v8  ;;  %v13134_v5 = vmul.f32 %v26985_v63, %v25332_v18  ;;  %v13137_v62 = vmul.f32 %v26986_v3, %v25343_v37  ;;  %v13135_v36 = vmul.f32 %v26988_v16, %v25349_v1  ;;  %v18812_v37 = vld [vmem:[%s26974_s6 + $0x18] sm:$0xff]  }
 0x98c   : > { %v13310_v53 = vcombine.low %v26987_v29, %v13127_v49  ;;  %v13311_v26 = vcombine.high %v26987_v29, %v13127_v49  ;;  %v25528_v58 = vmul.f32 %v26989_v34, %v25383_v28  ;;  %v18724_v32 = vpack.i.bf16 %v15041_v47, %v14905_v13  ;;  %18348 = vmatprep.subr.bf16.mxu0 %v18811_v11 }
 0x98d   : > { %v13462_v8 = vcombine.low %v25320_v31, %v13136_v60  ;;  %v13463_v18 = vcombine.high %v25320_v31, %v13136_v60  ;;  %v13190_v57 = vcombine.low %v25330_v51, %v13134_v5  ;;  %v13191_v28 = vcombine.high %v25330_v51, %v13134_v5  ;;  %18349 = vmatpush3.bf16.msra.mxu0 %v18811_v11 }
 0x98e   : > { %v25537_v10 = vrot.slane %v13310_v53, %v24831_v22  ;;  %v25540_v1 = vrot.slane %v13311_v26, %v24831_v22  ;;  %v13598_v23 = vcombine.low %v25337_v6, %v13137_v62  ;;  %18725 = vrot.lane.b32.xlu0 %v18724_v32, %s19779_s17  ;;  %v13599_v13 = vcombine.high %v25337_v6, %v13137_v62 }
 0x98f   : > { %v13470_v31 = vrot.slane %v13462_v8, %v24831_v22  ;;  %v13477_v39 = vrot.slane %v13463_v18, %v24831_v22  ;;  %v13198_v49 = vrot.slane %v13190_v57, %v24831_v22  ;;  %v13205_v47 = vrot.slane %v13191_v28, %v24831_v22  ;;  %18350 = vmatprep.subr.bf16.mxu0 %v18812_v37 }
 0x990   : > { %v13606_v0 = vrot.slane %v13598_v23, %v24831_v22  ;;  %v13326_v60 = vcombine.low %v25341_v40, %v13135_v36  ;;  %v13327_v51 = vcombine.high %v25341_v40, %v13135_v36 }
 0x991   : > { %v13510_v63 = vcombine.low %v13454_v17, %v13470_v31  ;;  %v13511_v5 = vcombine.high %v13454_v17, %v13470_v31  ;;  %v13526_v3 = vcombine.low %v13461_v54, %v13477_v39  ;;  %v13527_v29 = vcombine.high %v13461_v54, %v13477_v39  ;;  %18351 = vmatpush3.bf16.msra.mxu0 %v18812_v37 }
 0x992   : > { %v13238_v53 = vcombine.low %v13182_v43, %v13198_v49  ;;  %v13239_v26 = vcombine.high %v13182_v43, %v13198_v49  ;;  %v13254_v16 = vcombine.low %v13189_v25, %v13205_v47  ;;  %v13255_v34 = vcombine.high %v13189_v25, %v13205_v47 }
 0x993   : > { %v13518_v6 = vrot.slane %v13510_v63, %v24838_v46  ;;  %v13525_v62 = vrot.slane %v13511_v5, %v24838_v46  ;;  %v13534_v32 = vrot.slane %v13526_v3, %v24838_v46  ;;  %v13541_v8 = vrot.slane %v13527_v29, %v24838_v46 }
 0x994   : > { %v13246_v40 = vrot.slane %v13238_v53, %v24838_v46  ;;  %v13253_v11 = vrot.slane %v13239_v26, %v24838_v46  ;;  %v13262_v17 = vrot.slane %v13254_v16, %v24838_v46  ;;  %v13269_v54 = vrot.slane %v13255_v34, %v24838_v46 }
 0x995   : > { %v17537_v43 = vcombine.low %v13518_v6, %v13525_v62  ;;  %v17539_v36 = vcombine.high %v13518_v6, %v13525_v62  ;;  %v17541_v25 = vcombine.low %v13534_v32, %v13541_v8  ;;  %v17543_v18 = vcombine.high %v13534_v32, %v13541_v8  ;;  %v26990_v8 = vld [vmem:[#allocation79_spill] sm:$0xff] }
 0x996   : > { %v17521_v57 = vcombine.low %v13246_v40, %v13253_v11  ;;  %v17523_v28 = vcombine.high %v13246_v40, %v13253_v11  ;;  %v17525_v23 = vcombine.low %v13262_v17, %v13269_v54  ;;  %v17527_v31 = vcombine.high %v13262_v17, %v13269_v54 }
 0x997   : > { %v25562_v39 = vrot.slane %v17537_v43, %v24831_v22  ;;  %v25565_v49 = vrot.slane %v17539_v36, %v24831_v22  ;;  %v25568_v47 = vrot.slane %v17541_v25, %v24831_v22  ;;  %v25571_v63 = vrot.slane %v17543_v18, %v24831_v22 }
 0x998   : > { %v25574_v37 = vrot.slane %v17521_v57, %v24831_v22  ;;  %v25577_v5 = vrot.slane %v17523_v28, %v24831_v22  ;;  %v25580_v3 = vrot.slane %v17525_v23, %v24831_v22  ;;  %v25583_v29 = vrot.slane %v17527_v31, %v24831_v22 }
 0x999   : > { %v13613_v53 = vrot.slane %v13599_v13, %v24831_v22  ;;  %v13646_v26 = vcombine.low %v25508_v44, %v13606_v0  ;;  %v13647_v16 = vcombine.high %v25508_v44, %v13606_v0  ;;  %v13334_v34 = vrot.slane %v13326_v60, %v24831_v22 }
 0x99a   : > { %v13341_v6 = vrot.slane %v13327_v51, %v24831_v22  ;;  %v13990_v62 = vcombine.low %v25347_v7, %v25528_v58  ;;  %v13991_v32 = vcombine.high %v25347_v7, %v25528_v58  ;;  %v13130_v40 = vmul.f32 %v26990_v8, %v25396_v24 }
 0x99b   : > { %v13654_v11 = vrot.slane %v13646_v26, %v24838_v46  ;;  %v13661_v13 = vrot.slane %v13647_v16, %v24838_v46  ;;  %v13662_v17 = vcombine.low %v25511_v38, %v13613_v53  ;;  %v13663_v44 = vcombine.high %v25511_v38, %v13613_v53 }
 0x99c   : > { %v13374_v0 = vcombine.low %v25537_v10, %v13334_v34  ;;  %v13375_v60 = vcombine.high %v25537_v10, %v13334_v34  ;;  %v13390_v51 = vcombine.low %v25540_v1, %v13341_v6  ;;  %v13391_v54 = vcombine.high %v25540_v1, %v13341_v6 }
 0x99d   : > { %v13670_v7 = vrot.slane %v13662_v17, %v24838_v46  ;;  %v13677_v24 = vrot.slane %v13663_v44, %v24838_v46  ;;  %v17545_v58 = vcombine.low %v13654_v11, %v13661_v13  ;;  %v17547_v43 = vcombine.high %v13654_v11, %v13661_v13 }
 0x99e   : > { %v13382_v36 = vrot.slane %v13374_v0, %v24838_v46  ;;  %v13389_v25 = vrot.slane %v13375_v60, %v24838_v46  ;;  %v13398_v38 = vrot.slane %v13390_v51, %v24838_v46  ;;  %v13405_v18 = vrot.slane %v13391_v54, %v24838_v46 }
 0x99f   : > { %v25611_v10 = vrot.slane %v17545_v58, %v24831_v22  ;;  %v25614_v57 = vrot.slane %v17547_v43, %v24831_v22  ;;  %v17549_v1 = vcombine.low %v13670_v7, %v13677_v24  ;;  %v17551_v28 = vcombine.high %v13670_v7, %v13677_v24 }
 0x9a0   : > { %v17529_v23 = vcombine.low %v13382_v36, %v13389_v25  ;;  %v17531_v31 = vcombine.high %v13382_v36, %v13389_v25  ;;  %v17533_v53 = vcombine.low %v13398_v38, %v13405_v18  ;;  %v17535_v26 = vcombine.high %v13398_v38, %v13405_v18 }
 0x9a1   : > { %v25617_v16 = vrot.slane %v17549_v1, %v24831_v22  ;;  %v25620_v34 = vrot.slane %v17551_v28, %v24831_v22  ;;  %v13998_v6 = vrot.slane %v13990_v62, %v24831_v22  ;;  %v14005_v8 = vrot.slane %v13991_v32, %v24831_v22  ;;  %v26991_v32 = vld [vmem:[#allocation85_spill] sm:$0xff] }
 0x9a2   : > { %v25625_v11 = vrot.slane %v17529_v23, %v24831_v22  ;;  %v25628_v13 = vrot.slane %v17531_v31, %v24831_v22  ;;  %v25631_v17 = vrot.slane %v17533_v53, %v24831_v22  ;;  %v25634_v44 = vrot.slane %v17535_v26, %v24831_v22 }
 0x9a3   : > { %v13718_v0 = vcombine.low %v25353_v12, %v13130_v40  ;;  %v13719_v60 = vcombine.high %v25353_v12, %v13130_v40  ;;  %v13133_v62 = vmul.f32 %v25435_v15, %v25411_v4  ;;  %v13131_v51 = vmul.f32 %v26991_v32, %v25423_v35 }
 0x9a4   : > { %v13140_v54 = vmul.f32 %v25425_v30, %v25464_v55  ;;  %v13138_v7 = vmul.f32 %v25358_v48, %v25474_v19  ;;  %v13141_v24 = vmul.f32 %v25458_v61, %v25485_v52  ;;  %v25650_v58 = vmul.f32 %v25444_v20, %v25490_v33 }
 0x9a5   : > { %v13726_v12 = vrot.slane %v13718_v0, %v24831_v22  ;;  %v13733_v4 = vrot.slane %v13719_v60, %v24831_v22  ;;  %v14126_v15 = vcombine.low %v25356_v9, %v13133_v62  ;;  %v14127_v35 = vcombine.high %v25356_v9, %v13133_v62 }
 0x9a6   : > { %v13854_v30 = vcombine.low %v25363_v2, %v13131_v51  ;;  %v13855_v55 = vcombine.high %v25363_v2, %v13131_v51  ;;  %v14006_v48 = vcombine.low %v25409_v21, %v13140_v54  ;;  %v14007_v61 = vcombine.high %v25409_v21, %v13140_v54 }
 0x9a7   : > { %v14134_v19 = vrot.slane %v14126_v15, %v24831_v22  ;;  %v25662_v20 = vrot.slane %v14127_v35, %v24831_v22  ;;  %v13734_v52 = vcombine.low %v25442_v42, %v13138_v7  ;;  %v13735_v33 = vcombine.high %v25442_v42, %v13138_v7 }
 0x9a8   : > { %v25667_v40 = vrot.slane %v13854_v30, %v24831_v22  ;;  %v25670_v9 = vrot.slane %v13855_v55, %v24831_v22  ;;  %v14014_v2 = vrot.slane %v14006_v48, %v24831_v22  ;;  %v14021_v43 = vrot.slane %v14007_v61, %v24831_v22 }
 0x9a9   : > { %v13742_v21 = vrot.slane %v13734_v52, %v24831_v22  ;;  %v13749_v36 = vrot.slane %v13735_v33, %v24831_v22  ;;  %v14142_v25 = vcombine.low %v25462_v41, %v13141_v24  ;;  %v14143_v38 = vcombine.high %v25462_v41, %v13141_v24 }
 0x9aa   : > { %v14054_v18 = vcombine.low %v13998_v6, %v14014_v2  ;;  %v14055_v42 = vcombine.high %v13998_v6, %v14014_v2  ;;  %v14070_v1 = vcombine.low %v14005_v8, %v14021_v43  ;;  %v14071_v28 = vcombine.high %v14005_v8, %v14021_v43 }
 0x9ab   : > { %v13782_v23 = vcombine.low %v13726_v12, %v13742_v21  ;;  %v13783_v31 = vcombine.high %v13726_v12, %v13742_v21  ;;  %v13798_v53 = vcombine.low %v13733_v4, %v13749_v36  ;;  %v13799_v26 = vcombine.high %v13733_v4, %v13749_v36 }
 0x9ac   : > { %v14062_v0 = vrot.slane %v14054_v18, %v24838_v46  ;;  %v14069_v60 = vrot.slane %v14055_v42, %v24838_v46  ;;  %v14078_v62 = vrot.slane %v14070_v1, %v24838_v46  ;;  %v14085_v32 = vrot.slane %v14071_v28, %v24838_v46 }
 0x9ad   : > { %v13790_v51 = vrot.slane %v13782_v23, %v24838_v46  ;;  %v13797_v41 = vrot.slane %v13783_v31, %v24838_v46  ;;  %v13806_v6 = vrot.slane %v13798_v53, %v24838_v46  ;;  %v13813_v8 = vrot.slane %v13799_v26, %v24838_v46 }
 0x9ae   : > { %v17569_v54 = vcombine.low %v14062_v0, %v14069_v60  ;;  %v17571_v7 = vcombine.high %v14062_v0, %v14069_v60  ;;  %v17573_v24 = vcombine.low %v14078_v62, %v14085_v32  ;;  %v17575_v12 = vcombine.high %v14078_v62, %v14085_v32 }
 0x9af   : > { %v17553_v4 = vcombine.low %v13790_v51, %v13797_v41  ;;  %v17555_v15 = vcombine.high %v13790_v51, %v13797_v41  ;;  %v17557_v35 = vcombine.low %v13806_v6, %v13813_v8  ;;  %v17559_v30 = vcombine.high %v13806_v6, %v13813_v8 }
 0x9b0   : > { %v25687_v55 = vrot.slane %v17569_v54, %v24831_v22  ;;  %v25690_v48 = vrot.slane %v17571_v7, %v24831_v22  ;;  %v25693_v61 = vrot.slane %v17573_v24, %v24831_v22  ;;  %v25696_v52 = vrot.slane %v17575_v12, %v24831_v22 }
 0x9b1   : > { %v25699_v33 = vrot.slane %v17553_v4, %v24831_v22  ;;  %v25702_v2 = vrot.slane %v17555_v15, %v24831_v22  ;;  %v25705_v43 = vrot.slane %v17557_v35, %v24831_v22  ;;  %v25708_v21 = vrot.slane %v17559_v30, %v24831_v22 }
 0x9b2   : > { %v14150_v36 = vrot.slane %v14142_v25, %v24831_v22  ;;  %v14157_v18 = vrot.slane %v14143_v38, %v24831_v22  ;;  %v13870_v42 = vcombine.low %v25472_v45, %v25650_v58  ;;  %v13871_v1 = vcombine.high %v25472_v45, %v25650_v58 }
 0x9b3   : > { %v14582_v28 = vcombine.low %v25562_v39, %v25565_v49  ;;  %v14614_v23 = vcombine.low %v25568_v47, %v25571_v63  ;;  %v14718_v31 = vcombine.low %v25611_v10, %v25614_v57  ;;  %v14750_v25 = vcombine.low %v25617_v16, %v25620_v34 }
 0x9b4   : > { %v14190_v53 = vcombine.low %v14134_v19, %v14150_v36  ;;  %v14191_v38 = vcombine.high %v14134_v19, %v14150_v36  ;;  %v14206_v26 = vcombine.low %v25662_v20, %v14157_v18  ;;  %v14207_v0 = vcombine.high %v25662_v20, %v14157_v18 }
 0x9b5   : > { %v13878_v45 = vrot.slane %v13870_v42, %v24831_v22  ;;  %v13885_v58 = vrot.slane %v13871_v1, %v24831_v22  ;;  %v14590_v60 = vrot.slane %v14582_v28, %v24838_v46  ;;  %v14622_v62 = vrot.slane %v14614_v23, %v24838_v46 }
 0x9b6   : > { %v14198_v32 = vrot.slane %v14190_v53, %v24838_v46  ;;  %v14205_v51 = vrot.slane %v14191_v38, %v24838_v46  ;;  %v14214_v41 = vrot.slane %v14206_v26, %v24838_v46  ;;  %v14221_v19 = vrot.slane %v14207_v0, %v24838_v46 }
 0x9b7   : > { %v13918_v6 = vcombine.low %v25667_v40, %v13878_v45  ;;  %v13919_v20 = vcombine.high %v25667_v40, %v13878_v45  ;;  %v13934_v8 = vcombine.low %v25670_v9, %v13885_v58  ;;  %v13935_v54 = vcombine.high %v25670_v9, %v13885_v58  ;;  %v18813_v58 = vld [vmem:[%s26974_s6 + $0x20] sm:$0xff]  }
 0x9b8   : > { %v17577_v7 = vcombine.low %v14198_v32, %v14205_v51  ;;  %v17579_v24 = vcombine.high %v14198_v32, %v14205_v51  ;;  %v17581_v12 = vcombine.low %v14214_v41, %v14221_v19  ;;  %v17583_v4 = vcombine.high %v14214_v41, %v14221_v19  ;;  %18352 = vmatprep.subr.bf16.mxu0 %v18813_v58 }
 0x9b9   : > { %v13926_v15 = vrot.slane %v13918_v6, %v24838_v46  ;;  %v13933_v35 = vrot.slane %v13919_v20, %v24838_v46  ;;  %v13942_v30 = vrot.slane %v13934_v8, %v24838_v46  ;;  %v13949_v36 = vrot.slane %v13935_v54, %v24838_v46  ;;  %18353 = vmatpush3.bf16.msra.mxu0 %v18813_v58 }
 0x9ba   : > { %v25743_v18 = vrot.slane %v17577_v7, %v24831_v22  ;;  %v25746_v40 = vrot.slane %v17579_v24, %v24831_v22  ;;  %v25749_v9 = vrot.slane %v17581_v12, %v24831_v22  ;;  %v25752_v42 = vrot.slane %v17583_v4, %v24831_v22 }
 0x9bb   : > { %v17561_v1 = vcombine.low %v13926_v15, %v13933_v35  ;;  %v17563_v28 = vcombine.high %v13926_v15, %v13933_v35  ;;  %v17565_v23 = vcombine.low %v13942_v30, %v13949_v36  ;;  %v17567_v53 = vcombine.high %v13942_v30, %v13949_v36  ;;  %v18814_v35 = vld [vmem:[%s26974_s6 + $0x28] sm:$0xff]  }
 0x9bc   : > { %v14634_v38 = vcombine.low %v14590_v60, %v14622_v62  ;;  %v14726_v26 = vrot.slane %v14718_v31, %v24838_v46  ;;  %v14758_v0 = vrot.slane %v14750_v25, %v24838_v46  ;;  %v14310_v45 = vcombine.low %v25574_v37, %v25577_v5  ;;  %18354 = vmatprep.subr.bf16.mxu0 %v18814_v35 }
 0x9bd   : > { %v25762_v32 = vrot.slane %v17561_v1, %v24831_v22  ;;  %v25765_v51 = vrot.slane %v17563_v28, %v24831_v22  ;;  %v25768_v41 = vrot.slane %v17565_v23, %v24831_v22  ;;  %v25771_v31 = vrot.slane %v17567_v53, %v24831_v22  ;;  %18355 = vmatpush3.bf16.msra.mxu0 %v18814_v35 }
 0x9be   : > { %v14770_v25 = vcombine.low %v14726_v26, %v14758_v0  ;;  %v14318_v19 = vrot.slane %v14310_v45, %v24838_v46  ;;  %v14342_v6 = vcombine.low %v25580_v3, %v25583_v29  ;;  %v14446_v20 = vcombine.low %v25625_v11, %v25628_v13 }
 0x9bf   : > { %v14478_v8 = vcombine.low %v25631_v17, %v25634_v44  ;;  %v14635_v54 = vcombine.high %v14590_v60, %v14622_v62  ;;  %v14771_v7 = vcombine.high %v14726_v26, %v14758_v0  ;;  %v14583_v24 = vcombine.high %v25562_v39, %v25565_v49 }
 0x9c0   : > { %v18729_v22 = vpack.i.bf16 %v14770_v25, %v14634_v38  ;;  %v14350_v12 = vrot.slane %v14342_v6, %v24838_v46  ;;  %v14454_v4 = vrot.slane %v14446_v20, %v24838_v46  ;;  %v14615_v15 = vcombine.high %v25568_v47, %v25571_v63 }
 0x9c1   : > { %v14486_v30 = vrot.slane %v14478_v8, %v24838_v46  ;;  %v18734_v60 = vpack.i.bf16 %v14771_v7, %v14635_v54  ;;  %v14597_v62 = vrot.slane %v14583_v24, %v24838_v46  ;;  %v14719_v39 = vcombine.high %v25611_v10, %v25614_v57  ;;  %v18816_v8 = vld [vmem:[%s26974_s6 + $0x38] sm:$0xff]  }
 0x9c2   : > { %18730 = vrot.lane.b32.xlu1 %v18729_v22, %s19780_s26  ;;  %v14362_v49 = vcombine.low %v14318_v19, %v14350_v12  ;;  %v14363_v36 = vcombine.high %v14318_v19, %v14350_v12  ;;  %v14629_v1 = vrot.slane %v14615_v15, %v24838_v46  ;;  %v14751_v47 = vcombine.high %v25617_v16, %v25620_v34  ;;  %v18815_v16 = vld [vmem:[%s26974_s6 + $0x30] sm:$0xff]  }
 0x9c3   : > { %v14498_v63 = vcombine.low %v14454_v4, %v14486_v30  ;;  %v14499_v28 = vcombine.high %v14454_v4, %v14486_v30  ;;  %v14733_v23 = vrot.slane %v14719_v39, %v24838_v46  ;;  %v14311_v53 = vcombine.high %v25574_v37, %v25577_v5  ;;  %18356 = vmatprep.subr.bf16.mxu0 %v18815_v16 }
 0x9c4   : > { %v14636_v38 = vcombine.low %v14597_v62, %v14629_v1  ;;  %v14765_v10 = vrot.slane %v14751_v47, %v24838_v46  ;;  %v14343_v57 = vcombine.high %v25580_v3, %v25583_v29  ;;  %v14447_v26 = vcombine.high %v25625_v11, %v25628_v13  ;;  %18357 = vmatpush3.bf16.msra.mxu0 %v18815_v16 }
 0x9c5   : > { %v18749_v34 = vpack.i.bf16 %v14498_v63, %v14362_v49  ;;  %v18754_v0 = vpack.i.bf16 %v14499_v28, %v14363_v36  ;;  %v14325_v45 = vrot.slane %v14311_v53, %v24838_v46  ;;  %v14479_v37 = vcombine.high %v25631_v17, %v25634_v44  ;;  %18358 = vmatprep.subr.bf16.mxu0 %v18816_v8 }
 0x9c6   : > { %18735 = vrot.lane.b32.xlu1 %v18734_v60, %s19781_s8  ;;  %v14772_v5 = vcombine.low %v14733_v23, %v14765_v10  ;;  %v14357_v3 = vrot.slane %v14343_v57, %v24838_v46  ;;  %v14461_v29 = vrot.slane %v14447_v26, %v24838_v46  ;;  %v14637_v11 = vcombine.high %v14597_v62, %v14629_v1 }
 0x9c7   : > { %18750 = vrot.lane.b32.xlu0 %v18749_v34, %s19780_s26  ;;  %v14493_v13 = vrot.slane %v14479_v37, %v24838_v46  ;;  %v14773_v58 = vcombine.high %v14733_v23, %v14765_v10  ;;  %v15126_v25 = vcombine.low %v25687_v55, %v25690_v48  ;;  %v15158_v17 = vcombine.low %v25693_v61, %v25696_v52 }
 0x9c8   : > { %v18739_v44 = vpack.i.bf16 %v14772_v5, %v14636_v38  ;;  %v14364_v19 = vcombine.low %v14325_v45, %v14357_v3  ;;  %v14365_v6 = vcombine.high %v14325_v45, %v14357_v3  ;;  %v15262_v20 = vcombine.low %v25743_v18, %v25746_v40  ;;  %18359 = vmatpush3.bf16.msra.mxu0 %v18816_v8 }
 0x9c9   : > { %v14500_v54 = vcombine.low %v14461_v29, %v14493_v13  ;;  %v18744_v7 = vpack.i.bf16 %v14773_v58, %v14637_v11  ;;  %v14501_v24 = vcombine.high %v14461_v29, %v14493_v13  ;;  %v15134_v22 = vrot.slane %v15126_v25, %v24838_v46 }
 0x9ca   : > { %18740 = vrot.lane.b32.xlu1 %v18739_v44, %s19782_s25  ;;  %v15166_v12 = vrot.slane %v15158_v17, %v24838_v46  ;;  %v15270_v4 = vrot.slane %v15262_v20, %v24838_v46  ;;  %v15294_v15 = vcombine.low %v25749_v9, %v25752_v42  ;;  %v14854_v35 = vcombine.low %v25699_v33, %v25702_v2 }
 0x9cb   : > { %18755 = vrot.lane.b32.xlu0 %v18754_v0, %s19781_s8  ;;  %v18759_v30 = vpack.i.bf16 %v14500_v54, %v14364_v19  ;;  %v18764_v60 = vpack.i.bf16 %v14501_v24, %v14365_v6  ;;  %v14886_v62 = vcombine.low %v25705_v43, %v25708_v21  ;;  %v14990_v39 = vcombine.low %v25762_v32, %v25765_v51 }
 0x9cc   : > { %v15178_v49 = vcombine.low %v15134_v22, %v15166_v12  ;;  %v15302_v36 = vrot.slane %v15294_v15, %v24838_v46  ;;  %v14862_v1 = vrot.slane %v14854_v35, %v24838_v46  ;;  %v15022_v47 = vcombine.low %v25768_v41, %v25771_v31 }
 0x9cd   : > { %v14894_v63 = vrot.slane %v14886_v62, %v24838_v46  ;;  %v14998_v28 = vrot.slane %v14990_v39, %v24838_v46  ;;  %v15179_v23 = vcombine.high %v15134_v22, %v15166_v12  ;;  %v15127_v53 = vcombine.high %v25687_v55, %v25690_v48 }
 0x9ce   : > { %18745 = vrot.lane.b32.xlu1 %v18744_v7, %s19783_s10  ;;  %v15314_v38 = vcombine.low %v15270_v4, %v15302_v36  ;;  %v15030_v10 = vrot.slane %v15022_v47, %v24838_v46  ;;  %v15315_v57 = vcombine.high %v15270_v4, %v15302_v36  ;;  %v15159_v26 = vcombine.high %v25693_v61, %v25696_v52  ;;  %v26993_v47 = vld [vmem:[#allocation90_spill] sm:$0xff] }
 0x9cf   : > { %18760 = vrot.lane.b32.xlu0 %v18759_v30, %s19782_s25  ;;  %v14906_v16 = vcombine.low %v14862_v1, %v14894_v63  ;;  %v14907_v34 = vcombine.high %v14862_v1, %v14894_v63  ;;  %v15141_v0 = vrot.slane %v15127_v53, %v24838_v46  ;;  %v15263_v55 = vcombine.high %v25743_v18, %v25746_v40  ;;  %v26992_v1 = vld [vmem:[#allocation89_spill] sm:$0xff] }
 0x9d0   : > { %v18769_v48 = vpack.i.bf16 %v15314_v38, %v15178_v49  ;;  %v15042_v45 = vcombine.low %v14998_v28, %v15030_v10  ;;  %v18774_v37 = vpack.i.bf16 %v15315_v57, %v15179_v23  ;;  %v15043_v5 = vcombine.high %v14998_v28, %v15030_v10  ;;  %v26994_v28 = vld [vmem:[#allocation92_spill] sm:$0xff]  ;;  %v26995_v23 = vld [vmem:[#allocation91_spill] sm:$0xff] }
 0x9d1   : > { %v15173_v3 = vrot.slane %v15159_v26, %v24838_v46  ;;  %v15277_v29 = vrot.slane %v15263_v55, %v24838_v46  ;;  %v15295_v61 = vcombine.high %v25749_v9, %v25752_v42  ;;  %v14855_v52 = vcombine.high %v25699_v33, %v25702_v2  ;;  %v26996_v26 = vld [vmem:[#allocation101_spill] sm:$0xff] }
 0x9d2   : > { %18770 = vrot.lane.b32.xlu1 %v18769_v48, %s19780_s26  ;;  %v18784_v11 = vpack.i.bf16 %v15042_v45, %v14906_v16  ;;  %v18789_v13 = vpack.i.bf16 %v15043_v5, %v14907_v34  ;;  %v14887_v18 = vcombine.high %v25705_v43, %v25708_v21  ;;  %v14991_v40 = vcombine.high %v25762_v32, %v25765_v51  ;;  %v26997_v16 = vld [vmem:[#allocation94_spill] sm:$0xff]  ;;  %v26998_v48 = vld [vmem:[#allocation104_spill] sm:$0xff] }
 0x9d3   : > { %18765 = vrot.lane.b32.xlu0 %v18764_v60, %s19783_s10  ;;  %v15180_v58 = vcombine.low %v15141_v0, %v15173_v3  ;;  %v15309_v25 = vrot.slane %v15295_v61, %v24838_v46  ;;  %v14869_v9 = vrot.slane %v14855_v52, %v24838_v46  ;;  %v15023_v33 = vcombine.high %v25768_v41, %v25771_v31  ;;  %v26999_v45 = vld [vmem:[#allocation102_spill] sm:$0xff] }
 0x9d4   : > { %v14901_v2 = vrot.slane %v14887_v18, %v24838_v46  ;;  %v15005_v42 = vrot.slane %v14991_v40, %v24838_v46  ;;  %v15181_v17 = vcombine.high %v15141_v0, %v15173_v3  ;;  %v14630_v63 = vcombine.low %v26993_v47, %v26992_v1 }
 0x9d5   : > { %v15316_v44 = vcombine.low %v15277_v29, %v15309_v25  ;;  %v15037_v43 = vrot.slane %v15023_v33, %v24838_v46  ;;  %v15317_v21 = vcombine.high %v15277_v29, %v15309_v25  ;;  %v18671_v46 = vpop.permute.xlu1 %18670  ;;  %v14766_v53 = vcombine.low %v26995_v23, %v26994_v28 }
 0x9d6   : > { %18775 = vrot.lane.b32.xlu1 %v18774_v37, %s19781_s8  ;;  %v14908_v32 = vcombine.low %v14869_v9, %v14901_v2  ;;  %v14909_v51 = vcombine.high %v14869_v9, %v14901_v2  ;;  %v18673_v62 = vunpack.i.h.bf16 %v18671_v46  ;;  %v18672_v39 = vunpack.i.l.bf16 %v18671_v46 }
 0x9d7   : > { %18785 = vrot.lane.b32.xlu0 %v18784_v11, %s19780_s26  ;;  %v18779_v19 = vpack.i.bf16 %v15316_v44, %v15180_v58  ;;  %v15044_v6 = vcombine.low %v15005_v42, %v15037_v43  ;;  %v18804_v20 = vpack.i.bf16 %v15317_v21, %v15181_v17  ;;  %v15045_v8 = vcombine.high %v15005_v42, %v15037_v43  ;;  %s27011_s26 = sld [smem:[#allocation117_spill]] }
 0x9d8   : > { %v15544_v38 = vsel %vm11333_vm1, %v14630_v63, %v18672_v39  ;;  %v15545_v10 = vsel %vm11333_vm1, %v14766_v53, %v18673_v62  ;;  %v14358_v34 = vcombine.low %v26997_v16, %v26996_v26  ;;  %v14494_v37 = vcombine.low %v26999_v45, %v26998_v48 }
 0x9d9   : > { %v18794_v41 = vpack.i.bf16 %v15044_v6, %v14908_v32  ;;  %v18799_v31 = vpack.i.bf16 %v15045_v8, %v14909_v51  ;;  %v15174_v11 = vcombine.low %v25374_v59, %v25377_v14 }
 0x9da   : > { %18780 = vrot.lane.b32.xlu1 %v18779_v19, %s19782_s25 }
 0x9db   : > { %18790 = vrot.lane.b32.xlu0 %v18789_v13, %s19781_s8  ;;  %v18686_v24 = vpop.permute.xlu0 %18685  ;;  %v15310_v13 = vcombine.low %v25387_v56, %v25390_v50  ;;  %s27012_s8 = sld [smem:[#allocation118_spill]] }
 0x9dc   : > { %v18688_v0 = vunpack.i.h.bf16 %v18686_v24  ;;  %v18687_v55 = vunpack.i.l.bf16 %v18686_v24 }
 0x9de   : > { %18805 = vrot.lane.b32.xlu1 %v18804_v20, %s19783_s10  ;;  %v15542_v25 = vsel %vm11333_vm1, %v14358_v34, %v18687_v55  ;;  %v15543_v9 = vsel %vm11333_vm1, %v14494_v37, %v18688_v0 }
 0x9df   : > { %18795 = vrot.lane.b32.xlu0 %v18794_v41, %s19782_s25  ;;  %s27013_s25 = sld [smem:[#allocation119_spill]] }
 0x9e3   : > { %18800 = vrot.lane.b32.xlu0 %v18799_v31, %s19783_s10  ;;  %s16971_s10 = sshll.u32 %s20325_s28, 4  ;;  %s26374_s10 = int_to_ptr.vmem [resolvable:$true] %s16971_s10 }
 0x9e7   : > { %v18676_v54 = vpop.permute.xlu1 %18675 }
 0x9e8   : > { %v18678_v3 = vunpack.i.h.bf16 %v18676_v54  ;;  %v18677_v29 = vunpack.i.l.bf16 %v18676_v54 }
 0x9ea   : > { %v15553_v2 = vsel %vm15550_vm2, %v15544_v38, %v18677_v29  ;;  %v15554_v42 = vsel %vm15550_vm2, %v15545_v10, %v18678_v3 }
 0x9eb   : > { %v18681_v7 = vpop.permute.xlu1 %18680 }
 0x9ec   : > { %v18683_v61 = vunpack.i.h.bf16 %v18681_v7  ;;  %v18682_v52 = vunpack.i.l.bf16 %v18681_v7 }
 0x9ed   : > { %v25882_v4 = vpop.permute.xlu0 %18695 }
 0x9ee   : > { %v18698_v43 = vunpack.i.h.bf16 %v25882_v4  ;;  %v18697_v21 = vunpack.i.l.bf16 %v25882_v4  ;;  %v15562_v32 = vsel %vm15559_vm3, %v15553_v2, %v18682_v52  ;;  %v15563_v51 = vsel %vm15559_vm3, %v15554_v42, %v18683_v61 }
 0x9ef   : > { %v18691_v22 = vpop.permute.xlu1 %18690 }
 0x9f0   : > { %v18693_v18 = vunpack.i.h.bf16 %v18691_v22  ;;  %v18692_v40 = vunpack.i.l.bf16 %v18691_v22 }
 0x9f2   : > { %v15551_v19 = vsel %vm15550_vm2, %v15542_v25, %v18692_v40  ;;  %v15552_v6 = vsel %vm15550_vm2, %v15543_v9, %v18693_v18  ;;  %v27000_v18 = vld [vmem:[#allocation75_spill] sm:$0xff] }
 0x9f3   : > { %v15560_v28 = vsel %vm15559_vm3, %v15551_v19, %v18697_v21  ;;  %v15561_v23 = vsel %vm15559_vm3, %v15552_v6, %v18698_v43  ;;  %v14902_v40 = vcombine.low %v27000_v18, %v25405_v27  ;;  %v27001_v43 = vld [vmem:[#allocation98_spill] sm:$0xff] }
 0x9f4   : > { %v25880_v12 = vpop.permute.xlu1 %18700  ;;  %v27002_v21 = vld [vmem:[#allocation82_spill] sm:$0xff] }
 0x9f5   : > { %v25884_v15 = vpop.permute.xlu0 %18715  ;;  %v18703_v52 = vunpack.i.h.bf16 %v25880_v12 }
 0x9f6   : > { %v18718_v2 = vunpack.i.h.bf16 %v25884_v15  ;;  %v18717_v42 = vunpack.i.l.bf16 %v25884_v15 }
 0x9f9   : > { %v25886_v35 = vpop.permute.xlu1 %18705 }
 0x9fa   : > { %v18707_v27 = vunpack.i.l.bf16 %v25886_v35 }
 0x9fc   : > { %v25888_v30 = vpop.permute.xlu0 %18720 }
 0x9fd   : > { %v25890_v60 = vpop.permute.xlu1 %18710  ;;  %v18723_v6 = vunpack.i.h.bf16 %v25888_v30 }
 0xa00   : > { %v25892_v36 = vpop.permute.xlu0 %18725 }
 0xa01   : > { %v18728_v50 = vunpack.i.h.bf16 %v25892_v36 }
 0xa34   : > { %v18731_v49 = vpop.permute.xlu1 %18730 }
 0xa35   : > { %v18733_v17 = vunpack.i.h.bf16 %v18731_v49  ;;  %v18732_v44 = vunpack.i.l.bf16 %v18731_v49 }
 0xa37   : > { %v15572_v22 = vsel %vm15568_vm4, %v15563_v51, %v18733_v17  ;;  %v15571_v4 = vsel %vm15568_vm4, %v15562_v32, %v18732_v44  ;;  %v15038_v32 = vcombine.low %v27002_v21, %v27001_v43  ;;  %v18708_v51 = vunpack.i.h.bf16 %v25886_v35  ;;  %v17584_v21 = vld [vmem:[#allocation19] ss:$0 sm:$0xff] }
 0xa38   : > { %v18736_v57 = vpop.permute.xlu1 %18735  ;;  %v15549_v35 = vsel %vm11333_vm1, %v15310_v13, %v18703_v52  ;;  %v18727_v13 = vunpack.i.l.bf16 %v25892_v36 }
 0xa39   : > { %v18751_v5 = vpop.permute.xlu0 %18750  ;;  %v18738_v20 = vunpack.i.h.bf16 %v18736_v57  ;;  %v18737_v8 = vunpack.i.l.bf16 %v18736_v57 }
 0xa3a   : > { %v18753_v31 = vunpack.i.h.bf16 %v18751_v5  ;;  %v18752_v46 = vunpack.i.l.bf16 %v18751_v5 }
 0xa3b   : > { %v15580_v53 = vsel %vm15577_vm5, %v15571_v4, %v18737_v8  ;;  %v15581_v38 = vsel %vm15577_vm5, %v15572_v22, %v18738_v20  ;;  %v18722_v20 = vunpack.i.l.bf16 %v25888_v30  ;;  %v18712_v8 = vunpack.i.l.bf16 %v25890_v60 }
 0xa3c   : > { %v18741_v58 = vpop.permute.xlu1 %18740  ;;  %v15570_v57 = vsel %vm15568_vm4, %v15561_v23, %v18753_v31  ;;  %v15569_v26 = vsel %vm15568_vm4, %v15560_v28, %v18752_v46  ;;  %v15546_v31 = vsel %vm11333_vm1, %v14902_v40, %v18717_v42  ;;  %v15547_v30 = vsel %vm11333_vm1, %v15038_v32, %v18718_v2 }
 0xa3d   : > { %v18756_v33 = vpop.permute.xlu0 %18755  ;;  %v18743_v54 = vunpack.i.h.bf16 %v18741_v58  ;;  %v18742_v7 = vunpack.i.l.bf16 %v18741_v58  ;;  %v15555_v59 = vsel %vm15550_vm2, %v15546_v31, %v18722_v20  ;;  %v15556_v14 = vsel %vm15550_vm2, %v15547_v30, %v18723_v6  ;;  %v15746_v31 = vld [vmem:[%s25991_s3 + $0x8] sm:$0xff] }
 0xa3e   : > { %v18758_v62 = vunpack.i.h.bf16 %v18756_v33  ;;  %v18757_v39 = vunpack.i.l.bf16 %v18756_v33  ;;  %v18702_v33 = vunpack.i.l.bf16 %v25880_v12  ;;  %v18713_v12 = vunpack.i.h.bf16 %v25890_v60 }
 0xa3f   : > { %v15589_v16 = vsel %vm15586_vm6, %v15580_v53, %v18742_v7  ;;  %v15590_v34 = vsel %vm15586_vm6, %v15581_v38, %v18743_v54  ;;  %v15558_v54 = vsel %vm15550_vm2, %v15549_v35, %v18708_v51  ;;  %v15564_v36 = vsel %vm15559_vm3, %v15555_v59, %v18727_v13  ;;  %v27004_v51 = vld [vmem:[#allocation37_spill] sm:$0xff] }
 0xa40   : > { %v18746_v41 = vpop.permute.xlu1 %18745  ;;  %v15578_v55 = vsel %vm15577_vm5, %v15569_v26, %v18757_v39  ;;  %v15579_v48 = vsel %vm15577_vm5, %v15570_v57, %v18758_v62  ;;  %v15567_v56 = vsel %vm15559_vm3, %v15558_v54, %v18713_v12 }
 0xa41   : > { %v18761_v24 = vpop.permute.xlu0 %18760  ;;  %v18748_v47 = vunpack.i.h.bf16 %v18746_v41  ;;  %v18747_v63 = vunpack.i.l.bf16 %v18746_v41  ;;  %v15548_v41 = vsel %vm11333_vm1, %v15174_v11, %v18702_v33 }
 0xa42   : > { %v18763_v49 = vunpack.i.h.bf16 %v18761_v24  ;;  %v18762_v1 = vunpack.i.l.bf16 %v18761_v24  ;;  %v15557_v60 = vsel %vm15550_vm2, %v15548_v41, %v18707_v27 }
 0xa43   : > { %v15598_v29 = vsel %vm15595_vm7, %v15589_v16, %v18747_v63  ;;  %v15599_v61 = vsel %vm15595_vm7, %v15590_v34, %v18748_v47  ;;  %v15566_v11 = vsel %vm15559_vm3, %v15557_v60, %v18712_v8  ;;  %v15565_v34 = vsel %vm15559_vm3, %v15556_v14, %v18728_v50 }
 0xa44   : > { %v18771_v10 = vpop.permute.xlu1 %18770  ;;  %v15587_v5 = vsel %vm15586_vm6, %v15578_v55, %v18762_v1  ;;  %v15588_v3 = vsel %vm15586_vm6, %v15579_v48, %v18763_v49  ;;  %v15605_v19 = vpack.c.bf16 %v15599_v61, %v15598_v29 }
 0xa45   : > { %v18766_v0 = vpop.permute.xlu0 %18765  ;;  %v18773_v7 = vunpack.i.h.bf16 %v18771_v10  ;;  %v18772_v24 = vunpack.i.l.bf16 %v18771_v10 }
 0xa46   : > { %v18768_v45 = vunpack.i.h.bf16 %v18766_v0  ;;  %v18767_v37 = vunpack.i.l.bf16 %v18766_v0 }
 0xa47   : > { %v15576_v28 = vsel %vm15568_vm4, %v15567_v56, %v18773_v7  ;;  %v15575_v23 = vsel %vm15568_vm4, %v15566_v11, %v18772_v24  ;;  %v15747_v7 = vld [vmem:[%s25991_s3 + $0x10] sm:$0xff]  ;;  %v15748_v11 = vld [vmem:[%s25991_s3 + $0x18] sm:$0xff] }
 0xa48   : > { %v15596_v58 = vsel %vm15595_vm7, %v15587_v5, %v18767_v37  ;;  %v15597_v25 = vsel %vm15595_vm7, %v15588_v3, %v18768_v45  ;;  %v18776_v9 = vpop.permute.xlu1 %18775 }
 0xa49   : > { %v18786_v17 = vpop.permute.xlu0 %18785  ;;  %v15604_v44 = vpack.c.bf16 %v15597_v25, %v15596_v58  ;;  %v18778_v22 = vunpack.i.h.bf16 %v18776_v9  ;;  %v18777_v4 = vunpack.i.l.bf16 %v18776_v9 }
 0xa4a   : > { %v18788_v39 = vunpack.i.h.bf16 %v18786_v17  ;;  %v18787_v49 = vunpack.i.l.bf16 %v18786_v17 }
 0xa4b   : > { %18360 = vmatprep.mubr.bf16.mxu0 %v15604_v44  ;;  %v15584_v0 = vsel %vm15577_vm5, %v15575_v23, %v18777_v4  ;;  %v15585_v55 = vsel %vm15577_vm5, %v15576_v28, %v18778_v22  ;;  %v27003_v44 = vld [vmem:[#allocation76_spill] sm:$0xff]  ;;  %v15750_v28 = vld [vmem:[%s25991_s3 + $0x28] sm:$0xff] }
 0xa4c   : > { %18361 = vmatmul.mubr.bf16.vlgmr.msra.gmra.mrb[56].mxu0 %v15605_v19  ;;  %v18781_v15 = vpop.permute.xlu1 %18780  ;;  %v15574_v48 = vsel %vm15568_vm4, %v15565_v34, %v18788_v39  ;;  %v15573_v45 = vsel %vm15568_vm4, %v15564_v36, %v18787_v49  ;;  %v15755_v43 = vsub.s32 2, %v27003_v44  ;;  %v15749_v49 = vld [vmem:[%s25991_s3 + $0x20] sm:$0xff] }
 0xa4d   : > { %v18791_v46 = vpop.permute.xlu0 %18790  ;;  %v18783_v1 = vunpack.i.h.bf16 %v18781_v15  ;;  %v18782_v47 = vunpack.i.l.bf16 %v18781_v15  ;;  %v15745_v15 = vld [vmem:[%s25991_s3] sm:$0xff] }
 0xa4e   : > { %v18793_v53 = vunpack.i.h.bf16 %v18791_v46  ;;  %v18792_v38 = vunpack.i.l.bf16 %v18791_v46  ;;  %v15756_v27 = vrot.slane %v27004_v51, %v15755_v43 }
 0xa4f   : > { %v15593_v37 = vsel %vm15586_vm6, %v15584_v0, %v18782_v47  ;;  %v15594_v5 = vsel %vm15586_vm6, %v15585_v55, %v18783_v1  ;;  %v18817_v0 = vld [vmem:[#allocation20] ss:$8 sps:$4 sm:$0xff]   ;;  %v18819_v55 = vld [vmem:[#allocation20 + $0x4] ss:$8 sps:$4 sm:$0xff]  }
 0xa50   : > { %v18806_v62 = vpop.permute.xlu1 %18805  ;;  %v15582_v29 = vsel %vm15577_vm5, %v15573_v45, %v18792_v38  ;;  %v15583_v61 = vsel %vm15577_vm5, %v15574_v48, %v18793_v53  ;;  %v18820_v48 = vld [vmem:[#allocation20 + $0x80] ss:$8 sps:$4 sm:$0xff]   ;;  %v18822_v45 = vld [vmem:[#allocation20 + $0x84] ss:$8 sps:$4 sm:$0xff]   ;;  %16029 = vmatprep.subr.bf16.mxu1 %v18819_v55  ;;  %v18850_v55 = vld [vmem:[#allocation20 + $0xd0] ss:$8 sps:$4 sm:$0xff]  }
 0xa51   : > { %v18796_v63 = vpop.permute.xlu0 %18795  ;;  %v18808_v26 = vunpack.i.h.bf16 %v18806_v62  ;;  %v18807_v16 = vunpack.i.l.bf16 %v18806_v62  ;;  %16364 = vmatprep.subr.bf16.mxu0 %v18822_v45  ;;  %16030 = vmatpush1.bf16.msra.mxu1 %v18817_v0  ;;  %v18847_v0 = vld [vmem:[#allocation20 + $0x50] ss:$8 sps:$4 sm:$0xff]   ;;  %v18858_v45 = vld [vmem:[#allocation20 + $0xe4] ss:$8 sps:$4 sm:$0xff]  }
 0xa52   : > { %v18798_v10 = vunpack.i.h.bf16 %v18796_v63  ;;  %v18797_v57 = vunpack.i.l.bf16 %v18796_v63  ;;  %16365 = vmatpush1.bf16.msra.mxu0 %v18820_v48  ;;  %v18855_v48 = vld [vmem:[#allocation20 + $0x64] ss:$8 sps:$4 sm:$0xff]  }
 0xa53   : > { %v15602_v25 = vsel %vm15595_vm7, %v15593_v37, %v18807_v16  ;;  %v15603_v9 = vsel %vm15595_vm7, %v15594_v5, %v18808_v26  ;;  %v15752_v16 = vld [vmem:[%s25991_s3 + $0x38] sm:$0xff] }
 0xa54   : > { %v15591_v40 = vsel %vm15586_vm6, %v15582_v29, %v18797_v57  ;;  %v15592_v58 = vsel %vm15586_vm6, %v15583_v61, %v18798_v10  ;;  %v15607_v17 = vpack.c.bf16 %v15603_v9, %v15602_v25  ;;  %v15751_v10 = vld [vmem:[%s25991_s3 + $0x30] sm:$0xff] }
 0xa55   : > { %v18801_v3 = vpop.permute.xlu0 %18800 }
 0xa56   : > { %v18803_v52 = vunpack.i.h.bf16 %v18801_v3  ;;  %v18802_v18 = vunpack.i.l.bf16 %v18801_v3 }
 0xa58   : > { %v15600_v33 = vsel %vm15595_vm7, %v15591_v40, %v18802_v18  ;;  %v15601_v2 = vsel %vm15595_vm7, %v15592_v58, %v18803_v52 }
 0xa59   : > { %v15606_v42 = vpack.c.bf16 %v15601_v2, %v15600_v33 }
 0xa5b   : > { %18364 = vmatprep.mubr.bf16.mxu0 %v15606_v42 }
 0xa5c   : > { %18365 = vmatmul.mubr.bf16.gmra.mrb[60].mxu0 %v15607_v17 }
 0xb1f   : > { %v18362_v32 = vpop.f32.mrb[56].mxu0 }
 0xb20   : > { %v15713_v19 = vpop.f32.mrb[57].mxu0  ;;  %v15722_v6 = vadd.f32 %v18362_v32, %v17584_v21 }
 0xb21   : > { %v15714_v20 = vadd.f32 %v17584_v21, %v15713_v19  ;;  %v18363_v12 = vpop.f32.mrb[58].mxu0 }
 0xb22   : > { %v15716_v8 = vpop.f32.mrb[59].mxu0  ;;  %v15759_v30 = vmul.f32 %v15756_v27, %v15722_v6  ;;  %v15725_v46 = vadd.f32 %v18363_v12, %v17584_v21 }
 0xb23   : > { %v15757_v41 = vmul.f32 %v15756_v27, %v15714_v20  ;;  %v15717_v35 = vadd.f32 %v17584_v21, %v15716_v8 }
 0xb24   : > { %v15760_v59 = vmul.f32 %v15756_v27, %v15725_v46  ;;  %v26002_v14 = vadd.f32 %v15759_v30, %v15747_v7 }
 0xb25   : > { %v15758_v60 = vmul.f32 %v15756_v27, %v15717_v35  ;;  %v25995_v54 = vadd.f32 %v15757_v41, %v15745_v15 }
 0xb26   : > { %27005 = vst [vmem:[#allocation99_spill] sm:$0xff] %v26002_v14  ;;  %v26006_v56 = vadd.f32 %v15760_v59, %v15748_v11  ;;  %v18823_v59 = vld [vmem:[#allocation20 + $0x10] ss:$8 sps:$4 sm:$0xff]   ;;  %v18825_v11 = vld [vmem:[#allocation20 + $0x14] ss:$8 sps:$4 sm:$0xff]  }
 0xb27   : > { %15775 = vadd.xlane.f32.xlu0 %v25995_v54  ;;  %v25999_v24 = vadd.f32 %v15758_v60, %v15746_v31  ;;  %16031 = vmatprep.subr.bf16.mxu1 %v18825_v11 }
 0xb28   : > { %27006 = vst [vmem:[#allocation78_spill] sm:$0xff] %v26006_v56  ;;  %16032 = vmatpush1.bf16.msra.mxu1 %v18823_v59 }
 0xb29   : > { %15777 = vadd.xlane.f32.xlu1 %v25999_v24 }
 0xb2b   : > { %15779 = vadd.xlane.f32.xlu0 %v26002_v14 }
 0xb2f   : > { %15781 = vadd.xlane.f32.xlu0 %v26006_v56  ;;  %v18366_v50 = vpop.f32.mrb[60].mxu0 }
 0xb30   : > { %v15729_v13 = vpop.f32.mrb[61].mxu0  ;;  %v15738_v22 = vadd.f32 %v18366_v50, %v17584_v21  ;;  %v18826_v50 = vld [vmem:[#allocation20 + $0x90] ss:$8 sps:$4 sm:$0xff]  }
 0xb31   : > { %v15730_v4 = vadd.f32 %v17584_v21, %v15729_v13  ;;  %v18367_v62 = vpop.f32.mrb[62].mxu0  ;;  %v18828_v13 = vld [vmem:[#allocation20 + $0x94] ss:$8 sps:$4 sm:$0xff]  }
 0xb32   : > { %v15732_v39 = vpop.f32.mrb[63].mxu0  ;;  %v15741_v47 = vadd.f32 %v18367_v62, %v17584_v21  ;;  %v15763_v23 = vmul.f32 %v15756_v27, %v15738_v22  ;;  %v18831_v22 = vld [vmem:[#allocation20 + $0x24] ss:$8 sps:$4 sm:$0xff]   ;;  %16366 = vmatprep.subr.bf16.mxu0 %v18828_v13 }
 0xb33   : > { %v15761_v1 = vmul.f32 %v15756_v27, %v15730_v4  ;;  %v15733_v63 = vadd.f32 %v17584_v21, %v15732_v39  ;;  %v18829_v4 = vld [vmem:[#allocation20 + $0x20] ss:$8 sps:$4 sm:$0xff]   ;;  %v18834_v62 = vld [vmem:[#allocation20 + $0xa4] ss:$8 sps:$4 sm:$0xff]   ;;  %16367 = vmatpush1.bf16.msra.mxu0 %v18826_v50  ;;  %16033 = vmatprep.subr.bf16.mxu1 %v18831_v22  ;;  %v26078_v50 = vld [vmem:[%s27012_s8] ss:$0 sm:$0xff] }
 0xb34   : > { %v15764_v57 = vmul.f32 %v15756_v27, %v15741_v47  ;;  %v26019_v36 = vadd.f32 %v15763_v23, %v15751_v10  ;;  %v18832_v39 = vld [vmem:[#allocation20 + $0xa0] ss:$8 sps:$4 sm:$0xff]   ;;  %16368 = vmatprep.subr.bf16.mxu0 %v18834_v62  ;;  %16034 = vmatpush1.bf16.msra.mxu1 %v18829_v4  ;;  %v18835_v47 = vld [vmem:[#allocation20 + $0x30] ss:$8 sps:$4 sm:$0xff]   ;;  %v18846_v23 = vld [vmem:[#allocation20 + $0xc4] ss:$8 sps:$4 sm:$0xff]  }
 0xb35   : > { %v15762_v53 = vmul.f32 %v15756_v27, %v15733_v63  ;;  %v26011_v38 = vadd.f32 %v15761_v1, %v15749_v49  ;;  %v18837_v49 = vld [vmem:[#allocation20 + $0x34] ss:$8 sps:$4 sm:$0xff]   ;;  %v18838_v63 = vld [vmem:[#allocation20 + $0xb0] ss:$8 sps:$4 sm:$0xff]   ;;  %v18844_v10 = vld [vmem:[#allocation20 + $0xc0] ss:$8 sps:$4 sm:$0xff]  }
 0xb36   : > { %27009 = vst [vmem:[#allocation77_spill] sm:$0xff] %v26019_v36  ;;  %v26022_v34 = vadd.f32 %v15764_v57, %v15752_v16  ;;  %v18840_v1 = vld [vmem:[#allocation20 + $0xb4] ss:$8 sps:$4 sm:$0xff]   ;;  %16035 = vmatprep.subr.bf16.mxu1 %v18837_v49  ;;  %v15907_v49 = vsub.s32 3, %v27003_v44  ;;  %s17695_s8 = sshll.u32 %s27018_s30, 4  ;;  %s26386_s30 = scalar_lea.sflag [#allocation7], %s753_s12 }
 0xb37   : > { %27007 = vst [vmem:[#allocation96_spill] sm:$0xff] %v26011_v38  ;;  %15783 = vadd.xlane.f32.xlu0 %v26011_v38  ;;  %v26015_v26 = vadd.f32 %v15762_v53, %v15750_v28  ;;  %16369 = vmatpush1.bf16.msra.mxu0 %v18832_v39  ;;  %v18843_v28 = vld [vmem:[#allocation20 + $0x44] ss:$8 sps:$4 sm:$0xff]   ;;  %v18841_v53 = vld [vmem:[#allocation20 + $0x40] ss:$8 sps:$4 sm:$0xff]   ;;  %s16968_s17 = sadd.s32 %s17695_s8, %s17694_s15  ;;  %s19607_s15 = scalar_lea.vmem %s26374_s10, 1024 }
 0xb38   : > { %27010 = vst [vmem:[#allocation105_spill] sm:$0xff] %v26022_v34  ;;  %16370 = vmatprep.subr.bf16.mxu0 %v18840_v1  ;;  %16036 = vmatpush1.bf16.msra.mxu1 %v18835_v47  ;;  %v18849_v57 = vld [vmem:[#allocation20 + $0x54] ss:$8 sps:$4 sm:$0xff]   ;;  %s17696_s3 = sshll.u32 %s16968_s17, 7  ;;  %p19608_p9 = scmp.ne.s32.totalorder %s26374_s10, %s19607_s15 }
 0xb39   : > { %27008 = vst [vmem:[#allocation84_spill] sm:$0xff] %v26015_v26  ;;  %15785 = vadd.xlane.f32.xlu1 %v26015_v26  ;;  %16037 = vmatprep.subr.bf16.mxu1 %v18843_v28  ;;  %v18852_v16 = vld [vmem:[#allocation20 + $0xd4] ss:$8 sps:$4 sm:$0xff]   ;;  %s19785_s8 = smov [#allocation23]  }
 0xb3a   : > { %p19609_p4 = pnand %p19608_p9, %p27024_p12  ;;  %s19611_s17 = sshll.u32 %s19785_s8, 4  ;;  %s19612_s17 = int_to_ptr.vmem [resolvable:$false] %s19611_s17 }
 0xb3b   : > { %15787 = vadd.xlane.f32.xlu0 %v26019_v36  ;;  %16371 = vmatpush1.bf16.msra.mxu0 %v18838_v63  ;;  %s19613_s6 = scalar_lea.vmem %s19612_s17, 2048  ;;  %p19614_p6 = scmp.lt.s32.totalorder %s26374_s10, %s19612_s17 }
 0xb3c   : > { %16372 = vmatprep.subr.bf16.mxu0 %v18846_v23  ;;  %16038 = vmatpush1.bf16.msra.mxu1 %v18841_v53  ;;  %p19610_p7 = pneg %p19609_p4  ;;  %p19615_p5 = scmp.lt.s32.totalorder %s19613_s6, %s19607_s15 }
 0xb3d   : > { %15789 = vadd.xlane.f32.xlu1 %v26022_v34  ;;  %16039 = vmatprep.subr.bf16.mxu1 %v18849_v57 }
 0xb3e   : > { %p19616_p11 = por %p19615_p5, %p19614_p6 }
 0xb3f   : > { %16373 = vmatpush1.bf16.msra.mxu0 %v18844_v10 }
 0xb40   : > { %16374 = vmatprep.subr.bf16.mxu0 %v18852_v16  ;;  %16040 = vmatpush1.bf16.msra.mxu1 %v18847_v0  ;;  %p19617_p1 = pnand %p19616_p11, %p19610_p7 }
 0xb41   : > { %16041 = vmatprep.subr.bf16.mxu1 %v18855_v48 }
 0xb43   : > { %16375 = vmatpush1.bf16.msra.mxu0 %v18850_v55  ;;  %v15908_v55 = vrot.slane %v27004_v51, %v15907_v49 }
 0xb44   : > { %16376 = vmatprep.subr.bf16.mxu0 %v18858_v45 }
 0xbb4   : > { %v15776_v37 = vpop.xlane.xlu0 %15775 }
 0xbb5   : > { %v15792_v5 = vmul.f32 0.0078125, %v15776_v37  ;;  %v18853_v37 = vld [vmem:[#allocation20 + $0x60] ss:$8 sps:$4 sm:$0xff]  }
 0xbb6   : > { %v15778_v3 = vpop.xlane.xlu1 %15777  ;;  %16042 = vmatpush1.bf16.msra.mxu1 %v18853_v37 }
 0xbb7   : > { %v26026_v29 = vsub.f32 %v25995_v54, %v15792_v5  ;;  %v15793_v61 = vmul.f32 0.0078125, %v15778_v3  ;;  %v18856_v5 = vld [vmem:[#allocation20 + $0xe0] ss:$8 sps:$4 sm:$0xff]   ;;  %v18861_v3 = vld [vmem:[#allocation20 + $0x74] ss:$8 sps:$4 sm:$0xff]  }
 0xbb8   : > { %v15780_v52 = vpop.xlane.xlu0 %15779  ;;  %16377 = vmatpush1.bf16.msra.mxu0 %v18856_v5  ;;  %16043 = vmatprep.subr.bf16.mxu1 %v18861_v3 }
 0xbb9   : > { %v26029_v18 = vsub.f32 %v25999_v24, %v15793_v61  ;;  %v15794_v40 = vmul.f32 0.0078125, %v15780_v52  ;;  %v15808_v58 = vmul.f32 %v26026_v29, %v26026_v29  ;;  %v18864_v61 = vld [vmem:[#allocation20 + $0xf4] ss:$8 sps:$4 sm:$0xff]   ;;  %v19784_v52 = vmov 0  }
 0xbba   : > { %16061 = vmatprep.mubr.bf16.mxu1 %v19784_v52  ;;  %16396 = vmatprep.mubr.bf16.mxu0 %v19784_v52 }
 0xbbb   : > { %v26034_v25 = vsub.f32 %v26002_v14, %v15794_v40  ;;  %15816 = vadd.xlane.f32.xlu0 %v15808_v58  ;;  %v15809_v9 = vmul.f32 %v26029_v18, %v26029_v18  ;;  %v18859_v40 = vld [vmem:[#allocation20 + $0x70] ss:$8 sps:$4 sm:$0xff]   ;;  %16378 = vmatprep.subr.bf16.mxu0 %v18864_v61 }
 0xbbc   : > { %v15782_v33 = vpop.xlane.xlu0 %15781  ;;  %v18862_v58 = vld [vmem:[#allocation20 + $0xf0] ss:$8 sps:$4 sm:$0xff]   ;;  %16044 = vmatpush1.bf16.msra.mxu1 %v18859_v40 }
 0xbbd   : > { %v15795_v2 = vmul.f32 0.0078125, %v15782_v33  ;;  %15818 = vadd.xlane.f32.xlu1 %v15809_v9  ;;  %v15810_v42 = vmul.f32 %v26034_v25, %v26034_v25  ;;  %16379 = vmatpush1.bf16.msra.mxu0 %v18862_v58 }
 0xbbf   : > { %v26041_v17 = vsub.f32 %v26006_v56, %v15795_v2  ;;  %15820 = vadd.xlane.f32.xlu0 %v15810_v42 }
 0xbc1   : > { %v15811_v43 = vmul.f32 %v26041_v17, %v26041_v17 }
 0xbc3   : > { %15822 = vadd.xlane.f32.xlu1 %v15811_v43 }
 0xbc4   : > { %v15784_v21 = vpop.xlane.xlu0 %15783 }
 0xbc5   : > { %v15796_v32 = vmul.f32 0.0078125, %v15784_v21 }
 0xbc6   : > { %v15786_v27 = vpop.xlane.xlu1 %15785 }
 0xbc7   : > { %v26046_v19 = vsub.f32 %v26011_v38, %v15796_v32  ;;  %v15797_v6 = vmul.f32 0.0078125, %v15786_v27 }
 0xbc8   : > { %v15788_v20 = vpop.xlane.xlu0 %15787 }
 0xbc9   : > { %v26049_v12 = vsub.f32 %v26015_v26, %v15797_v6  ;;  %v15798_v8 = vmul.f32 0.0078125, %v15788_v20  ;;  %v15812_v15 = vmul.f32 %v26046_v19, %v26046_v19 }
 0xbca   : > { %v15790_v41 = vpop.xlane.xlu1 %15789 }
 0xbcb   : > { %v26054_v35 = vsub.f32 %v26019_v36, %v15798_v8  ;;  %v15799_v31 = vmul.f32 0.0078125, %v15790_v41  ;;  %15824 = vadd.xlane.f32.xlu0 %v15812_v15  ;;  %v15813_v30 = vmul.f32 %v26049_v12, %v26049_v12  ;;  %v15892_v41 = vadd.f32 1.0, %v27004_v51 }
 0xbcd   : > { %v26059_v46 = vsub.f32 %v26022_v34, %v15799_v31  ;;  %15826 = vadd.xlane.f32.xlu1 %v15813_v30  ;;  %v15814_v60 = vmul.f32 %v26054_v35, %v26054_v35  ;;  %v15895_v31 = vsub.s32 4, %v27003_v44 }
 0xbcf   : > { %15828 = vadd.xlane.f32.xlu0 %v15814_v60  ;;  %v15815_v7 = vmul.f32 %v26059_v46, %v26059_v46  ;;  %v26072_v60 = vld [vmem:[%s27011_s26] ss:$0 sm:$0xff]  ;;  %v26082_v39 = vrot.slane %v15892_v41, %v15895_v31  ;;  %s27014_s26 = sld [smem:[#allocation120_spill]] }
 0xbd1   : > { %15830 = vadd.xlane.f32.xlu1 %v15815_v7 }
 0xc48   : > { %v15817_v9 = vpop.xlane.xlu0 %15816 }
 0xc49   : > { %v15832_v33 = vmul.f32 0.0078125, %v15817_v9 }
 0xc4a   : > { %v15819_v2 = vpop.xlane.xlu1 %15818 }
 0xc4b   : > { %v15840_v42 = vadd.f32 1e-05, %v15832_v33  ;;  %v15833_v43 = vmul.f32 0.0078125, %v15819_v2 }
 0xc4c   : > { %v15821_v21 = vpop.xlane.xlu0 %15820 }
 0xc4d   : > { %19153 = vrsqrt.f32 %v15840_v42  ;;  %v15841_v32 = vadd.f32 1e-05, %v15833_v43  ;;  %v15834_v27 = vmul.f32 0.0078125, %v15821_v21 }
 0xc4f   : > { %19155 = vrsqrt.f32 %v15841_v32  ;;  %v15842_v6 = vadd.f32 1e-05, %v15834_v27 }
 0xc50   : > { %v15823_v20 = vpop.xlane.xlu1 %15822 }
 0xc51   : > { %19157 = vrsqrt.f32 %v15842_v6  ;;  %v15835_v8 = vmul.f32 0.0078125, %v15823_v20 }
 0xc53   : > { %v15843_v15 = vadd.f32 1e-05, %v15835_v8 }
 0xc55   : > { %19159 = vrsqrt.f32 %v15843_v15 }
 0xc57   : > { %v19154_v30 = vpop.eup %19153 }
 0xc58   : > { %v15856_v7 = vmul.f32 %v19154_v30, %v26026_v29  ;;  %v15825_v59 = vpop.xlane.xlu0 %15824 }
 0xc59   : > { %v19156_v11 = vpop.eup %19155  ;;  %v15836_v13 = vmul.f32 0.0078125, %v15825_v59 }
 0xc5a   : > { %v15870_v22 = vmul.f32 %v26072_v60, %v15856_v7  ;;  %v15857_v4 = vmul.f32 %v19156_v11, %v26029_v18  ;;  %v15827_v62 = vpop.xlane.xlu1 %15826 }
 0xc5b   : > { %v19158_v1 = vpop.eup %19157  ;;  %v15844_v47 = vadd.f32 1e-05, %v15836_v13  ;;  %v15837_v29 = vmul.f32 0.0078125, %v15827_v62 }
 0xc5c   : > { %v15884_v63 = vadd.f32 %v26078_v50, %v15870_v22  ;;  %v15871_v28 = vmul.f32 %v26072_v60, %v15857_v4  ;;  %v15858_v23 = vmul.f32 %v19158_v1, %v26034_v25  ;;  %v15829_v53 = vpop.xlane.xlu0 %15828 }
 0xc5d   : > { %19161 = vrsqrt.f32 %v15844_v47  ;;  %v15845_v10 = vadd.f32 1e-05, %v15837_v29  ;;  %v15838_v57 = vmul.f32 0.0078125, %v15829_v53  ;;  %v18865_v53 = vld [vmem:[#allocation22 + $0xc0] sm:$0xff]  }
 0xc5e   : > { %v15885_v18 = vadd.f32 %v26078_v50, %v15871_v28  ;;  %v15831_v16 = vpop.xlane.xlu1 %15830  ;;  %v15897_v0 = vmul.f32 %v26082_v39, %v15884_v63  ;;  %v15872_v48 = vmul.f32 %v26072_v60, %v15858_v23  ;;  %17896 = vmatprep.subr.bf16.mxu1 %v18865_v53 }
 0xc5f   : > { %v19160_v45 = vpop.eup %19159  ;;  %19163 = vrsqrt.f32 %v15845_v10  ;;  %v15846_v37 = vadd.f32 1e-05, %v15838_v57  ;;  %v15839_v5 = vmul.f32 0.0078125, %v15831_v16  ;;  %v18866_v10 = vld [vmem:[#allocation22 + $0x40] sm:$0xff]   ;;  %v18870_v16 = vld [vmem:[#allocation22 + $0x48] sm:$0xff]  }
 0xc60   : > { %v15859_v3 = vmul.f32 %v19160_v45, %v26041_v17  ;;  %v15898_v25 = vmul.f32 %v26082_v39, %v15885_v18  ;;  %v15909_v40 = vadd.f32 %v15908_v55, %v15897_v0  ;;  %v15886_v33 = vadd.f32 %v26078_v50, %v15872_v48  ;;  %v18867_v57 = vld [vmem:[#allocation22 + $0x80] sm:$0xff]   ;;  %17936 = vmatprep.subr.bf16.mxu0 %v18866_v10  ;;  %v18869_v18 = vld [vmem:[#allocation22 + $0xc8] sm:$0xff]   ;;  %v18875_v48 = vld [vmem:[#allocation22 + $0x90] sm:$0xff]  }
 0xc61   : > { %19165 = vrsqrt.f32 %v15846_v37  ;;  %v15847_v61 = vadd.f32 1e-05, %v15839_v5  ;;  %v18872_v0 = vld [vmem:[#allocation22 + $0x8] sm:$0xff]   ;;  %v18876_v45 = vld [vmem:[#allocation22 + $0x10] sm:$0xff]   ;;  %v18877_v37 = vld [vmem:[#allocation22 + $0xd8] sm:$0xff]  }
 0xc62   : > { %v15910_v58 = vadd.f32 %v15908_v55, %v15898_v25  ;;  %v15873_v9 = vmul.f32 %v26072_v60, %v15859_v3  ;;  %v15899_v43 = vmul.f32 %v26082_v39, %v15886_v33  ;;  %v18878_v5 = vld [vmem:[#allocation22 + $0x58] sm:$0xff]   ;;  %v18885_v33 = vld [vmem:[#allocation22 + $0xe8] sm:$0xff]  }
 0xc63   : > { %19167 = vrsqrt.f32 %v15847_v61  ;;  %v18879_v3 = vld [vmem:[#allocation22 + $0x98] sm:$0xff]   ;;  %v18881_v61 = vld [vmem:[#allocation22 + $0xe0] sm:$0xff]  }
 0xc64   : > { %v15917_v2 = vpack.c.bf16 %v15910_v58, %v15909_v40  ;;  %v15887_v42 = vadd.f32 %v26078_v50, %v15873_v9  ;;  %v15911_v8 = vadd.f32 %v15908_v55, %v15899_v43  ;;  %v18880_v25 = vld [vmem:[#allocation22 + $0x18] sm:$0xff]   ;;  %v18882_v40 = vld [vmem:[#allocation22 + $0x60] sm:$0xff]   ;;  %v18888_v43 = vld [vmem:[#allocation22 + $0x28] sm:$0xff]  }
 0xc65   : > { %v18883_v58 = vld [vmem:[#allocation22 + $0xa0] sm:$0xff]  }
 0xc66   : > { %16062 = vmatmul.mubr.bf16.vlgmr.msra.gmra.mrb[72].mxu1 %v15917_v2  ;;  %16397 = vmatmul.mubr.bf16.vlgmr.msra.gmra.mrb[64].mxu0 %v15917_v2  ;;  %v15900_v17 = vmul.f32 %v26082_v39, %v15887_v42  ;;  %v18884_v9 = vld [vmem:[#allocation22 + $0x20] sm:$0xff]   ;;  %v18886_v2 = vld [vmem:[#allocation22 + $0x68] sm:$0xff]  }
 0xc67   : > { %v19162_v21 = vpop.eup %19161  ;;  %16071 = vmatprep.mubr.bf16.mxu1 %v19784_v52  ;;  %16406 = vmatprep.mubr.bf16.mxu0 %v19784_v52  ;;  %v18887_v42 = vld [vmem:[#allocation22 + $0xa8] sm:$0xff]  }
 0xc68   : > { %v15860_v32 = vmul.f32 %v19162_v21, %v26046_v19  ;;  %v15912_v27 = vadd.f32 %v15908_v55, %v15900_v17  ;;  %17897 = vmatpush3.bf16.msra.mxu1 %v18867_v57  ;;  %v18889_v17 = vld [vmem:[#allocation22 + $0xf0] sm:$0xff]  }
 0xc69   : > { %v19164_v6 = vpop.eup %19163  ;;  %17898 = vmatprep.subr.bf16.mxu1 %v18869_v18  ;;  %v18890_v21 = vld [vmem:[#allocation22 + $0x70] sm:$0xff]  }
 0xc6a   : > { %v15861_v20 = vmul.f32 %v19164_v6, %v26049_v12  ;;  %v15874_v15 = vmul.f32 %v26072_v60, %v15860_v32  ;;  %v15918_v30 = vpack.c.bf16 %v15912_v27, %v15911_v8  ;;  %v18891_v32 = vld [vmem:[#allocation22 + $0xb0] sm:$0xff]   ;;  %v18893_v6 = vld [vmem:[#allocation22 + $0xf8] sm:$0xff]  }
 0xc6b   : > { %v19166_v41 = vpop.eup %19165  ;;  %v18892_v27 = vld [vmem:[#allocation22 + $0x30] sm:$0xff]   ;;  %v18895_v8 = vld [vmem:[#allocation22 + $0xb8] sm:$0xff]  }
 0xc6c   : > { %v15862_v31 = vmul.f32 %v19166_v41, %v26054_v35  ;;  %v15875_v7 = vmul.f32 %v26072_v60, %v15861_v20  ;;  %v15888_v59 = vadd.f32 %v26078_v50, %v15874_v15  ;;  %v18894_v20 = vld [vmem:[#allocation22 + $0x78] sm:$0xff]   ;;  %v15941_v41 = vsub.s32 0, %v27003_v44 }
 0xc6d   : > { %v19168_v11 = vpop.eup %19167  ;;  %v18896_v15 = vld [vmem:[#allocation22 + $0x38] sm:$0xff]  }
 0xc6e   : > { %v15863_v13 = vmul.f32 %v19168_v11, %v26059_v46  ;;  %16072 = vmatmul.mubr.bf16.gmra.mrb[76].mxu1 %v15918_v30  ;;  %16407 = vmatmul.mubr.bf16.gmra.mrb[68].mxu0 %v15918_v30  ;;  %v15889_v19 = vadd.f32 %v26078_v50, %v15875_v7  ;;  %v15901_v12 = vmul.f32 %v26082_v39, %v15888_v59  ;;  %v17627_v30 = vld [vmem:[%s27013_s25 + $0x2] sm:$0x3]  ;;  %v15945_v7 = vsub.s32 1, %v27003_v44 }
 0xc6f   : > { %16081 = vmatprep.mubr.bf16.mxu1 %v19784_v52  ;;  %16416 = vmatprep.mubr.bf16.mxu0 %v19784_v52  ;;  %v15876_v35 = vmul.f32 %v26072_v60, %v15862_v31  ;;  %v15937_v31 = vld [vmem:[%s27013_s25] sm:$0x3]  ;;  %v26131_v11 = vrot.slane %v17627_v30, %v15941_v41 }
 0xc70   : > { %v15902_v22 = vmul.f32 %v26082_v39, %v15889_v19  ;;  %v15877_v4 = vmul.f32 %v26072_v60, %v15863_v13  ;;  %v15913_v62 = vadd.f32 %v15908_v55, %v15901_v12  ;;  %v26129_v59 = vrot.slane %v15937_v31, %v15941_v41 }
 0xc71   : > { %v15890_v46 = vadd.f32 %v26078_v50, %v15876_v35  ;;  %v26133_v13 = vrot.slane %v15937_v31, %v15945_v7  ;;  %v26135_v19 = vrot.slane %v17627_v30, %v15945_v7 }
 0xc72   : > { %v15914_v49 = vadd.f32 %v15908_v55, %v15902_v22  ;;  %v15891_v1 = vadd.f32 %v26078_v50, %v15877_v4  ;;  %v18868_v50 = vld [vmem:[#allocation22] sm:$0xff]  }
 0xc73   : > { %v15903_v63 = vmul.f32 %v26082_v39, %v15890_v46  ;;  %17937 = vmatpush3.bf16.msra.mxu0 %v18868_v50 }
 0xc74   : > { %v15919_v47 = vpack.c.bf16 %v15914_v49, %v15913_v62  ;;  %v15904_v29 = vmul.f32 %v26082_v39, %v15891_v1  ;;  %17938 = vmatprep.subr.bf16.mxu0 %v18870_v16  ;;  %v18871_v39 = vld [vmem:[#allocation22 + $0x88] sm:$0xff]  }
 0xc75   : > { %v15915_v23 = vadd.f32 %v15908_v55, %v15903_v63  ;;  %17899 = vmatpush3.bf16.msra.mxu1 %v18871_v39 }
 0xc76   : > { %16082 = vmatmul.mubr.bf16.gmra.mrb[80].mxu1 %v15919_v47  ;;  %16417 = vmatmul.mubr.bf16.gmra.mrb[72].mxu0 %v15919_v47  ;;  %v15916_v28 = vadd.f32 %v15908_v55, %v15904_v29  ;;  %v18874_v55 = vld [vmem:[#allocation22 + $0x50] sm:$0xff]  }
 0xc77   : > { %16091 = vmatprep.mubr.bf16.mxu1 %v19784_v52  ;;  %16426 = vmatprep.mubr.bf16.mxu0 %v19784_v52  ;;  %v18873_v52 = vld [vmem:[#allocation22 + $0xd0] sm:$0xff]  }
 0xc78   : > { %v15920_v60 = vpack.c.bf16 %v15916_v28, %v15915_v23  ;;  %17939 = vmatpush3.bf16.msra.mxu0 %v18872_v0  ;;  %17900 = vmatprep.subr.bf16.mxu1 %v18873_v52 }
 0xc79   : > { %17940 = vmatprep.subr.bf16.mxu0 %v18874_v55  ;;  %17901 = vmatpush3.bf16.msra.mxu1 %v18875_v48 }
 0xc7a   : > { %17902 = vmatprep.subr.bf16.mxu1 %v18877_v37 }
 0xc7c   : > { %17941 = vmatpush3.bf16.msra.mxu0 %v18876_v45 }
 0xc7d   : > { %17942 = vmatprep.subr.bf16.mxu0 %v18878_v5  ;;  %17903 = vmatpush3.bf16.msra.mxu1 %v18879_v3 }
 0xc7e   : > { %16092 = vmatmul.mubr.bf16.gmra.mrb[84].mxu1 %v15920_v60  ;;  %16427 = vmatmul.mubr.bf16.gmra.mrb[76].mxu0 %v15920_v60 }
 0xc7f   : > { %17904 = vmatprep.subr.bf16.mxu1 %v18881_v61 }
 0xc80   : > { %17943 = vmatpush3.bf16.msra.mxu0 %v18880_v25 }
 0xc81   : > { %17944 = vmatprep.subr.bf16.mxu0 %v18882_v40  ;;  %17905 = vmatpush3.bf16.msra.mxu1 %v18883_v58 }
 0xc82   : > { %17906 = vmatprep.subr.bf16.mxu1 %v18885_v33 }
 0xc84   : > { %17945 = vmatpush3.bf16.msra.mxu0 %v18884_v9 }
 0xc85   : > { %17946 = vmatprep.subr.bf16.mxu0 %v18886_v2  ;;  %17907 = vmatpush3.bf16.msra.mxu1 %v18887_v42 }
 0xc86   : > { %17908 = vmatprep.subr.bf16.mxu1 %v18889_v17 }
 0xc88   : > { %17947 = vmatpush3.bf16.msra.mxu0 %v18888_v43 }
 0xc89   : > { %17948 = vmatprep.subr.bf16.mxu0 %v18890_v21  ;;  %17909 = vmatpush3.bf16.msra.mxu1 %v18891_v32 }
 0xc8a   : > { %17910 = vmatprep.subr.bf16.mxu1 %v18893_v6 }
 0xc8c   : > { %17949 = vmatpush3.bf16.msra.mxu0 %v18892_v27 }
 0xc8d   : > { %17950 = vmatprep.subr.bf16.mxu0 %v18894_v20  ;;  %17911 = vmatpush3.bf16.msra.mxu1 %v18895_v8 }
 0xc90   : > { %17951 = vmatpush3.bf16.msra.mxu0 %v18896_v15 }
 0xd39   : > { %v16063_v12 = vpop.f32.mrb[72].mxu1  ;;  %v16398_v35 = vpop.f32.mrb[64].mxu0 }
 0xd3a   : > { %v26138_v22 = vadd.f32 %v16063_v12, %v26129_v59  ;;  %v26141_v4 = vadd.f32 %v16398_v35, %v26131_v11  ;;  %v16065_v62 = vpop.f32.mrb[73].mxu1  ;;  %v16400_v49 = vpop.f32.mrb[65].mxu0 }
 0xd3b   : > { %v26144_v46 = vadd.f32 %v16065_v62, %v26133_v13  ;;  %v26147_v1 = vadd.f32 %v16400_v49, %v26135_v19  ;;  %v16067_v47 = vpop.f32.mrb[74].mxu1  ;;  %v16402_v29 = vpop.f32.mrb[66].mxu0 }
 0xd3c   : > { %v17611_v63 = vmul.f32 -1.442695, %v26138_v22  ;;  %v17644_v28 = vmul.f32 -1.442695, %v26141_v4  ;;  %v26152_v23 = vadd.f32 %v16067_v47, %v26129_v59  ;;  %v26155_v60 = vadd.f32 %v16402_v29, %v26131_v11  ;;  %v16069_v53 = vpop.f32.mrb[75].mxu1  ;;  %v16404_v10 = vpop.f32.mrb[67].mxu0 }
 0xd3d   : > { %v17612_v57 = vmul.f32 -1.442695, %v26144_v46  ;;  %v17645_v50 = vmul.f32 -1.442695, %v26147_v1  ;;  %v26160_v18 = vadd.f32 %v16069_v53, %v26133_v13  ;;  %v26163_v16 = vadd.f32 %v16404_v10, %v26135_v19 }
 0xd3e   : > { %19169 = vpow2.f32 %v17611_v63  ;;  %v17613_v39 = vmul.f32 -1.442695, %v26152_v23  ;;  %v17646_v0 = vmul.f32 -1.442695, %v26155_v60 }
 0xd3f   : > { %19171 = vpow2.f32 %v17644_v28  ;;  %v17614_v52 = vmul.f32 -1.442695, %v26160_v18  ;;  %v17647_v55 = vmul.f32 -1.442695, %v26163_v16 }
 0xd40   : > { %19173 = vpow2.f32 %v17612_v57 }
 0xd41   : > { %19175 = vpow2.f32 %v17645_v50  ;;  %v16073_v48 = vpop.f32.mrb[76].mxu1  ;;  %v16408_v45 = vpop.f32.mrb[68].mxu0 }
 0xd42   : > { %19177 = vpow2.f32 %v17613_v39  ;;  %v26170_v37 = vadd.f32 %v16073_v48, %v26129_v59  ;;  %v26173_v5 = vadd.f32 %v16408_v45, %v26131_v11  ;;  %v16075_v3 = vpop.f32.mrb[77].mxu1  ;;  %v16410_v25 = vpop.f32.mrb[69].mxu0 }
 0xd43   : > { %19179 = vpow2.f32 %v17646_v0  ;;  %v26176_v61 = vadd.f32 %v16075_v3, %v26133_v13  ;;  %v26179_v40 = vadd.f32 %v16410_v25, %v26135_v19  ;;  %v16077_v58 = vpop.f32.mrb[78].mxu1  ;;  %v16412_v9 = vpop.f32.mrb[70].mxu0 }
 0xd44   : > { %19181 = vpow2.f32 %v17614_v52  ;;  %v17615_v33 = vmul.f32 -1.442695, %v26170_v37  ;;  %v17648_v2 = vmul.f32 -1.442695, %v26173_v5  ;;  %v26184_v42 = vadd.f32 %v16077_v58, %v26129_v59  ;;  %v16079_v43 = vpop.f32.mrb[79].mxu1  ;;  %v16414_v17 = vpop.f32.mrb[71].mxu0 }
 0xd45   : > { %19183 = vpow2.f32 %v17647_v55  ;;  %v17616_v21 = vmul.f32 -1.442695, %v26176_v61  ;;  %v17649_v32 = vmul.f32 -1.442695, %v26179_v40  ;;  %v26190_v57 = vadd.f32 %v16412_v9, %v26131_v11 }
 0xd46   : > { %19185 = vpow2.f32 %v17615_v33  ;;  %v17617_v27 = vmul.f32 -1.442695, %v26184_v42  ;;  %v26193_v52 = vadd.f32 %v16079_v43, %v26133_v13  ;;  %v26197_v9 = vadd.f32 %v16414_v17, %v26135_v19 }
 0xd47   : > { %19187 = vpow2.f32 %v17648_v2  ;;  %v17650_v33 = vmul.f32 -1.442695, %v26190_v57 }
 0xd48   : > { %v19170_v6 = vpop.eup %19169  ;;  %19189 = vpow2.f32 %v17616_v21  ;;  %v17618_v43 = vmul.f32 -1.442695, %v26193_v52 }
 0xd49   : > { %v19172_v20 = vpop.eup %19171  ;;  %v16150_v8 = vadd.f32 1.0, %v19170_v6  ;;  %19191 = vpow2.f32 %v17649_v32  ;;  %v16083_v15 = vpop.f32.mrb[80].mxu1 }
 0xd4a   : > { %v16418_v41 = vpop.f32.mrb[72].mxu0  ;;  %v19174_v31 = vpop.eup %19173  ;;  %v16485_v30 = vadd.f32 1.0, %v19172_v20  ;;  %19193 = vpow2.f32 %v17617_v27  ;;  %v26201_v27 = vadd.f32 %v16083_v15, %v26129_v59 }
 0xd4b   : > { %v16085_v7 = vpop.f32.mrb[81].mxu1  ;;  %v16420_v12 = vpop.f32.mrb[73].mxu0  ;;  %19195 = vrcp.f32 %v16150_v8  ;;  %v16151_v62 = vadd.f32 1.0, %v19174_v31 }
 0xd4c   : > { %v19176_v35 = vpop.eup %19175  ;;  %v16087_v49 = vpop.f32.mrb[82].mxu1  ;;  %19197 = vrcp.f32 %v16485_v30  ;;  %v26206_v30 = vadd.f32 %v16418_v41, %v26131_v11  ;;  %v26209_v17 = vadd.f32 %v16085_v7, %v26133_v13 }
 0xd4d   : > { %v16422_v47 = vpop.f32.mrb[74].mxu0  ;;  %v19178_v29 = vpop.eup %19177  ;;  %v16486_v63 = vadd.f32 1.0, %v19176_v35  ;;  %19199 = vrcp.f32 %v16151_v62 }
 0xd4e   : > { %v16089_v28 = vpop.f32.mrb[83].mxu1  ;;  %v19180_v53 = vpop.eup %19179  ;;  %v16152_v10 = vadd.f32 1.0, %v19178_v29 }
 0xd4f   : > { %v16424_v50 = vpop.f32.mrb[75].mxu0  ;;  %v19182_v39 = vpop.eup %19181  ;;  %19201 = vrcp.f32 %v16486_v63  ;;  %v16487_v0 = vadd.f32 1.0, %v19180_v53  ;;  %v26216_v63 = vadd.f32 %v16420_v12, %v26135_v19  ;;  %v26219_v53 = vadd.f32 %v16087_v49, %v26129_v59 }
 0xd50   : > { %v19184_v55 = vpop.eup %19183  ;;  %19203 = vrcp.f32 %v16152_v10  ;;  %v16153_v48 = vadd.f32 1.0, %v19182_v39  ;;  %v17651_v49 = vmul.f32 -1.442695, %v26197_v9 }
 0xd51   : > { %v19186_v45 = vpop.eup %19185  ;;  %19205 = vrcp.f32 %v16487_v0  ;;  %v16488_v3 = vadd.f32 1.0, %v19184_v55  ;;  %v16093_v2 = vpop.f32.mrb[84].mxu1  ;;  %v26226_v0 = vadd.f32 %v16422_v47, %v26131_v11  ;;  %v26229_v55 = vadd.f32 %v16089_v28, %v26133_v13 }
 0xd52   : > { %v19188_v25 = vpop.eup %19187  ;;  %19207 = vrcp.f32 %v16153_v48  ;;  %v16154_v58 = vadd.f32 1.0, %v19186_v45  ;;  %v16428_v6 = vpop.f32.mrb[76].mxu0  ;;  %v17620_v47 = vmul.f32 -1.442695, %v26209_v17  ;;  %v26239_v28 = vadd.f32 %v16424_v50, %v26135_v19 }
 0xd53   : > { %v19190_v21 = vpop.eup %19189  ;;  %19209 = vrcp.f32 %v16488_v3  ;;  %v16489_v32 = vadd.f32 1.0, %v19188_v25  ;;  %v26203_v20 = vpop.f32.mrb[85].mxu1  ;;  %v17619_v3 = vmul.f32 -1.442695, %v26201_v27  ;;  %v17652_v25 = vmul.f32 -1.442695, %v26206_v30 }
 0xd54   : > { %v19192_v8 = vpop.eup %19191  ;;  %19211 = vrcp.f32 %v16154_v58  ;;  %v16155_v31 = vadd.f32 1.0, %v19190_v21  ;;  %v26211_v35 = vpop.f32.mrb[77].mxu0  ;;  %v17653_v21 = vmul.f32 -1.442695, %v26216_v63  ;;  %v26247_v34 = vadd.f32 %v16093_v2, %v26129_v59 }
 0xd55   : > { %v26213_v62 = vpop.f32.mrb[86].mxu1  ;;  %v19194_v29 = vpop.eup %19193  ;;  %19213 = vrcp.f32 %v16489_v32  ;;  %v16490_v15 = vadd.f32 1.0, %v19192_v8  ;;  %v17621_v8 = vmul.f32 -1.442695, %v26219_v53  ;;  %v26252_v26 = vadd.f32 %v16428_v6, %v26131_v11 }
 0xd56   : > { %v26221_v10 = vpop.f32.mrb[78].mxu0  ;;  %v26223_v41 = vpop.f32.mrb[87].mxu1  ;;  %19215 = vrcp.f32 %v16155_v31  ;;  %v16156_v7 = vadd.f32 1.0, %v19194_v29  ;;  %v17654_v31 = vmul.f32 -1.442695, %v26226_v0 }
 0xd57   : > { %v19196_v39 = vpop.eup %19195  ;;  %v26231_v48 = vpop.f32.mrb[79].mxu0  ;;  %19217 = vrcp.f32 %v16490_v15  ;;  %v17622_v29 = vmul.f32 -1.442695, %v26229_v55 }
 0xd58   : > { %v19198_v12 = vpop.eup %19197  ;;  %19219 = vrcp.f32 %v16156_v7  ;;  %v16198_v7 = vmul.f32 %v19196_v39, %v26138_v22 }
 0xd59   : > { %v19200_v45 = vpop.eup %19199  ;;  %19221 = vpow2.f32 %v17650_v33  ;;  %v16533_v50 = vmul.f32 %v19198_v12, %v26141_v4 }
 0xd5a   : > { %v19202_v58 = vpop.eup %19201  ;;  %19223 = vpow2.f32 %v17618_v43  ;;  %v16199_v56 = vmul.f32 %v19200_v45, %v26144_v46  ;;  %v17623_v46 = vmul.f32 -1.442695, %v26247_v34 }
 0xd5b   : > { %v19204_v32 = vpop.eup %19203  ;;  %19225 = vpow2.f32 %v17651_v49  ;;  %v16534_v2 = vmul.f32 %v19202_v58, %v26147_v1  ;;  %v17656_v1 = vmul.f32 -1.442695, %v26252_v26 }
 0xd5c   : > { %v19206_v15 = vpop.eup %19205  ;;  %v16200_v33 = vmul.f32 %v19204_v32, %v26152_v23  ;;  %19227 = vpow2.f32 %v17619_v3 }
 0xd5d   : > { %v19208_v36 = vpop.eup %19207  ;;  %v16535_v43 = vmul.f32 %v19206_v15, %v26155_v60  ;;  %19229 = vpow2.f32 %v17652_v25  ;;  %v17655_v60 = vmul.f32 -1.442695, %v26239_v28 }
 0xd5e   : > { %v19210_v38 = vpop.eup %19209  ;;  %v16214_v14 = vpack.c.bf16 %v16200_v33, %v16198_v7  ;;  %v16201_v22 = vmul.f32 %v19208_v36, %v26160_v18  ;;  %19231 = vpow2.f32 %v17620_v47 }
 0xd5f   : > { %v19212_v23 = vpop.eup %19211  ;;  %v16549_v39 = vpack.c.bf16 %v16535_v43, %v16533_v50  ;;  %v16536_v49 = vmul.f32 %v19210_v38, %v26163_v16  ;;  %19233 = vpow2.f32 %v17653_v21 }
 0xd60   : > { %v26258_v4 = vpop.eup %19213  ;;  %v16215_v6 = vpack.c.bf16 %v16201_v22, %v16199_v56  ;;  %19235 = vpow2.f32 %v17621_v8  ;;  %v26268_v45 = vmul.f32 %v19212_v23, %v26170_v37  ;;  %v26277_v22 = vadd.f32 %v26203_v20, %v26133_v13 }
 0xd61   : > { %v26261_v12 = vpop.eup %19215  ;;  %v16550_v36 = vpack.c.bf16 %v16536_v49, %v16534_v2  ;;  %19237 = vpow2.f32 %v17654_v31  ;;  %v26289_v20 = vadd.f32 %v26221_v10, %v26131_v11  ;;  %v16537_v11 = vmul.f32 %v26258_v4, %v26173_v5 }
 0xd62   : > { %v26264_v18 = vpop.eup %19217  ;;  %16879 = vmatprep.mubr.bf16.mxu0 %v16215_v6  ;;  %19239 = vpow2.f32 %v17622_v29  ;;  %v26285_v6 = vadd.f32 %v26213_v62, %v26129_v59  ;;  %v26299_v62 = vadd.f32 %v26231_v48, %v26135_v19 }
 0xd63   : > { %v19220_v38 = vpop.eup %19219  ;;  %16718 = vmatprep.mubr.bf16.mxu1 %v16550_v36  ;;  %16880 = vmatmul.mubr.bf16.vlgmr.msra.gmra.mrb[80].mxu0 %v16214_v14  ;;  %19241 = vpow2.f32 %v17655_v60  ;;  %v16538_v48 = vmul.f32 %v26264_v18, %v26179_v40 }
 0xd64   : > { %v19222_v16 = vpop.eup %19221  ;;  %v26271_v56 = vmul.f32 %v19220_v38, %v26184_v42  ;;  %16719 = vmatmul.mubr.bf16.vlgmr.msra.gmra.mrb[88].mxu1 %v16549_v39  ;;  %19243 = vpow2.f32 %v17623_v46  ;;  %v26281_v39 = vadd.f32 %v26211_v35, %v26135_v19  ;;  %v17624_v38 = vmul.f32 -1.442695, %v26277_v22 }
 0xd65   : > { %v19224_v3 = vpop.eup %19223  ;;  %v16491_v25 = vadd.f32 1.0, %v19222_v16  ;;  %19245 = vpow2.f32 %v17656_v1  ;;  %v26293_v1 = vadd.f32 %v26223_v41, %v26133_v13  ;;  %v17625_v13 = vmul.f32 -1.442695, %v26285_v6 }
 0xd66   : > { %v19226_v58 = vpop.eup %19225  ;;  %v16157_v47 = vadd.f32 1.0, %v19224_v3  ;;  %v16216_v21 = vpack.c.bf16 %v26271_v56, %v26268_v45  ;;  %v17657_v59 = vmul.f32 -1.442695, %v26281_v39 }
 0xd67   : > { %v19228_v32 = vpop.eup %19227  ;;  %19247 = vrcp.f32 %v16491_v25  ;;  %v16492_v14 = vadd.f32 1.0, %v19226_v58  ;;  %v16203_v25 = vmul.f32 %v26261_v12, %v26176_v61 }
 0xd68   : > { %v19230_v8 = vpop.eup %19229  ;;  %19249 = vrcp.f32 %v16157_v47  ;;  %v16158_v37 = vadd.f32 1.0, %v19228_v32  ;;  %v17658_v47 = vmul.f32 -1.442695, %v26289_v20  ;;  %v17626_v32 = vmul.f32 -1.442695, %v26293_v1 }
 0xd69   : > { %v19232_v31 = vpop.eup %19231  ;;  %19251 = vrcp.f32 %v16492_v14  ;;  %v16493_v42 = vadd.f32 1.0, %v19230_v8  ;;  %v17659_v14 = vmul.f32 -1.442695, %v26299_v62 }
 0xd6a   : > { %v19234_v29 = vpop.eup %19233  ;;  %19253 = vrcp.f32 %v16158_v37  ;;  %v16159_v15 = vadd.f32 1.0, %v19232_v31 }
 0xd6b   : > { %v19236_v7 = vpop.eup %19235  ;;  %19255 = vrcp.f32 %v16493_v42  ;;  %v16494_v33 = vadd.f32 1.0, %v19234_v29 }
 0xd6c   : > { %v19238_v50 = vpop.eup %19237  ;;  %19257 = vrcp.f32 %v16159_v15  ;;  %v16160_v43 = vadd.f32 1.0, %v19236_v7 }
 0xd6d   : > { %v19240_v23 = vpop.eup %19239  ;;  %19259 = vrcp.f32 %v16494_v33  ;;  %v16495_v2 = vadd.f32 1.0, %v19238_v50 }
 0xd6e   : > { %v19242_v49 = vpop.eup %19241  ;;  %19261 = vrcp.f32 %v16160_v43  ;;  %v16161_v60 = vadd.f32 1.0, %v19240_v23 }
 0xd6f   : > { %v19244_v46 = vpop.eup %19243  ;;  %19263 = vrcp.f32 %v16495_v2  ;;  %v16496_v36 = vadd.f32 1.0, %v19242_v49 }
 0xd70   : > { %v19246_v35 = vpop.eup %19245  ;;  %19265 = vrcp.f32 %v16161_v60  ;;  %v16162_v50 = vadd.f32 1.0, %v19244_v46 }
 0xd71   : > { %v19248_v16 = vpop.eup %19247  ;;  %19267 = vrcp.f32 %v16496_v36 }
 0xd72   : > { %v19250_v3 = vpop.eup %19249  ;;  %v16539_v10 = vmul.f32 %v19248_v16, %v26190_v57  ;;  %19269 = vpow2.f32 %v17624_v38 }
 0xd73   : > { %v19252_v41 = vpop.eup %19251  ;;  %v16205_v58 = vmul.f32 %v19250_v3, %v26193_v52  ;;  %19271 = vpow2.f32 %v17657_v59 }
 0xd74   : > { %v19254_v19 = vpop.eup %19253  ;;  %v16540_v5 = vmul.f32 %v19252_v41, %v26197_v9  ;;  %v16551_v57 = vpack.c.bf16 %v16539_v10, %v16537_v11  ;;  %19273 = vpow2.f32 %v17625_v13 }
 0xd75   : > { %v19256_v4 = vpop.eup %19255  ;;  %v16217_v8 = vpack.c.bf16 %v16205_v58, %v16203_v25  ;;  %19275 = vpow2.f32 %v17658_v47  ;;  %v16206_v9 = vmul.f32 %v19254_v19, %v26201_v27 }
 0xd76   : > { %v19258_v61 = vpop.eup %19257  ;;  %v16552_v52 = vpack.c.bf16 %v16540_v5, %v16538_v48  ;;  %19277 = vpow2.f32 %v17626_v32  ;;  %v16541_v42 = vmul.f32 %v19256_v4, %v26206_v30 }
 0xd77   : > { %v19260_v12 = vpop.eup %19259  ;;  %16887 = vmatprep.mubr.bf16.mxu0 %v16217_v8  ;;  %19279 = vpow2.f32 %v17659_v14  ;;  %v16207_v7 = vmul.f32 %v19258_v61, %v26209_v17  ;;  %v16929_v61 = vsub.s32 5, %v27003_v44 }
 0xd78   : > { %v19262_v37 = vpop.eup %19261  ;;  %16726 = vmatprep.mubr.bf16.mxu1 %v16552_v52  ;;  %16888 = vmatmul.mubr.bf16.gmra.mrb[84].mxu0 %v16216_v21  ;;  %v16542_v56 = vmul.f32 %v19260_v12, %v26216_v63  ;;  %v16497_v21 = vadd.f32 1.0, %v19246_v35  ;;  %19281 = vrcp.f32 %v16162_v50 }
 0xd79   : > { %v19264_v40 = vpop.eup %19263  ;;  %v16208_v18 = vmul.f32 %v19262_v37, %v26219_v53  ;;  %16727 = vmatmul.mubr.bf16.gmra.mrb[92].mxu1 %v16551_v57  ;;  %v26337_v37 = vld [vmem:[%s27014_s26] ss:$0 sm:$0xff]  ;;  %s26381_s26 = scalar_lea.hbm %s27023_s24, %s17696_s3 }
 0xd7a   : > { %v19266_v31 = vpop.eup %19265  ;;  %v16543_v29 = vmul.f32 %v19264_v40, %v26226_v0  ;;  %19283 = vrcp.f32 %v16497_v21 }
 0xd7b   : > { %v19268_v15 = vpop.eup %19267  ;;  %v16209_v33 = vmul.f32 %v19266_v31, %v26229_v55  ;;  %v16218_v45 = vpack.c.bf16 %v16208_v18, %v16206_v9  ;;  %v26340_v31 = vrot.slane %v27004_v51, %v16929_v61 }
 0xd7c   : > { %v16544_v27 = vmul.f32 %v19268_v15, %v26239_v28  ;;  %v16553_v53 = vpack.c.bf16 %v16543_v29, %v16541_v42  ;;  %v19270_v23 = vpop.eup %19269 }
 0xd7d   : > { %v16219_v43 = vpack.c.bf16 %v16209_v33, %v16207_v7  ;;  %v19272_v49 = vpop.eup %19271  ;;  %v16163_v30 = vadd.f32 1.0, %v19270_v23 }
 0xd7e   : > { %v16554_v2 = vpack.c.bf16 %v16544_v27, %v16542_v56  ;;  %v19274_v0 = vpop.eup %19273  ;;  %v16498_v17 = vadd.f32 1.0, %v19272_v49 }
 0xd7f   : > { %16895 = vmatprep.mubr.bf16.mxu0 %v16219_v43  ;;  %v19276_v55 = vpop.eup %19275  ;;  %19285 = vrcp.f32 %v16163_v30  ;;  %v16164_v60 = vadd.f32 1.0, %v19274_v0 }
 0xd80   : > { %16734 = vmatprep.mubr.bf16.mxu1 %v16554_v2  ;;  %16896 = vmatmul.mubr.bf16.gmra.mrb[88].mxu0 %v16218_v45  ;;  %v19278_v63 = vpop.eup %19277  ;;  %19287 = vrcp.f32 %v16498_v17  ;;  %v16499_v28 = vadd.f32 1.0, %v19276_v55 }
 0xd81   : > { %16735 = vmatmul.mubr.bf16.gmra.mrb[96].mxu1 %v16553_v53  ;;  %v19280_v46 = vpop.eup %19279  ;;  %19289 = vrcp.f32 %v16164_v60  ;;  %v16165_v36 = vadd.f32 1.0, %v19278_v63 }
 0xd82   : > { %19291 = vrcp.f32 %v16499_v28  ;;  %v16500_v35 = vadd.f32 1.0, %v19280_v46  ;;  %v19282_v38 = vpop.eup %19281 }
 0xd83   : > { %19293 = vrcp.f32 %v16165_v36  ;;  %v16210_v13 = vmul.f32 %v19282_v38, %v26247_v34 }
 0xd84   : > { %19295 = vrcp.f32 %v16500_v35  ;;  %v19284_v16 = vpop.eup %19283 }
 0xd85   : > { %v16545_v58 = vmul.f32 %v19284_v16, %v26252_v26 }
 0xd89   : > { %v19286_v59 = vpop.eup %19285 }
 0xd8a   : > { %v19288_v3 = vpop.eup %19287  ;;  %v16211_v19 = vmul.f32 %v19286_v59, %v26277_v22  ;;  %v27015_v59 = vld [vmem:[#allocation99_spill] sm:$0xff] }
 0xd8b   : > { %v19290_v11 = vpop.eup %19289  ;;  %v16546_v57 = vmul.f32 %v19288_v3, %v26281_v39 }
 0xd8c   : > { %v19292_v10 = vpop.eup %19291  ;;  %v16212_v41 = vmul.f32 %v19290_v11, %v26285_v6 }
 0xd8d   : > { %v19294_v25 = vpop.eup %19293  ;;  %v16547_v47 = vmul.f32 %v19292_v10, %v26289_v20 }
 0xd8e   : > { %v19296_v32 = vpop.eup %19295  ;;  %v16213_v48 = vmul.f32 %v19294_v25, %v26293_v1  ;;  %v16220_v5 = vpack.c.bf16 %v16212_v41, %v16210_v13 }
 0xd8f   : > { %v16548_v4 = vmul.f32 %v19296_v32, %v26299_v62  ;;  %v16555_v14 = vpack.c.bf16 %v16547_v47, %v16545_v58  ;;  %v27016_v47 = vld [vmem:[#allocation78_spill] sm:$0xff] }
 0xd90   : > { %v16221_v8 = vpack.c.bf16 %v16213_v48, %v16211_v19 }
 0xd91   : > { %v16556_v34 = vpack.c.bf16 %v16548_v4, %v16546_v57 }
 0xd92   : > { %16903 = vmatprep.mubr.bf16.mxu0 %v16221_v8  ;;  %v27017_v8 = vld [vmem:[#allocation96_spill] sm:$0xff] }
 0xd93   : > { %16742 = vmatprep.mubr.bf16.mxu1 %v16556_v34  ;;  %16904 = vmatmul.mubr.bf16.gmra.mrb[92].mxu0 %v16220_v5 }
 0xd94   : > { %16743 = vmatmul.mubr.bf16.gmra.mrb[100].mxu1 %v16555_v14 }
 0xe36   : > { %v17952_v26 = vpop.f32.mrb[80].mxu0 }
 0xe37   : > { %v17912_v6 = vpop.f32.mrb[88].mxu1  ;;  %v17953_v20 = vpop.f32.mrb[81].mxu0 }
 0xe38   : > { %v17913_v22 = vpop.f32.mrb[89].mxu1  ;;  %v17954_v52 = vadd.f32 %v17953_v20, %v17952_v26  ;;  %v17955_v1 = vpop.f32.mrb[82].mxu0 }
 0xe39   : > { %v17914_v12 = vadd.f32 %v17913_v22, %v17912_v6  ;;  %v17915_v39 = vpop.f32.mrb[90].mxu1  ;;  %v17956_v62 = vpop.f32.mrb[83].mxu0  ;;  %v27019_v6 = vld [vmem:[#allocation84_spill] sm:$0xff] }
 0xe3a   : > { %v17916_v40 = vpop.f32.mrb[91].mxu1  ;;  %v17957_v9 = vadd.f32 %v17956_v62, %v17955_v1 }
 0xe3b   : > { %v16882_v18 = vadd.f32 %v17954_v52, %v17914_v12  ;;  %v17917_v44 = vadd.f32 %v17916_v40, %v17915_v39 }
 0xe3d   : > { %v16919_v42 = vadd.f32 %v26337_v37, %v16882_v18  ;;  %v16885_v29 = vadd.f32 %v17957_v9, %v17917_v44 }
 0xe3f   : > { %v16931_v15 = vmul.f32 %v26340_v31, %v16919_v42  ;;  %v16920_v7 = vadd.f32 %v26337_v37, %v16885_v29 }
 0xe41   : > { %v16939_v33 = vadd.f32 %v16931_v15, %v25995_v54  ;;  %v16932_v50 = vmul.f32 %v26340_v31, %v16920_v7 }
 0xe43   : > { %16947 = vst [vmem:[%s20325_s28] sm:$0xff] %v16939_v33  ;;  %v16940_v45 = vadd.f32 %v16932_v50, %v25999_v24 }
 0xe45   : > { %16948 = vst [vmem:[%s20325_s28 + $0x8] sm:$0xff] %v16940_v45  ;;  %v27021_v45 = vld [vmem:[#allocation77_spill] sm:$0xff] }
 0xe4b   : > { %v17958_v56 = vpop.f32.mrb[84].mxu0 }
 0xe4c   : > { %v17918_v27 = vpop.f32.mrb[92].mxu1  ;;  %v17959_v51 = vpop.f32.mrb[85].mxu0 }
 0xe4d   : > { %v17919_v21 = vpop.f32.mrb[93].mxu1  ;;  %v17960_v53 = vadd.f32 %v17959_v51, %v17958_v56  ;;  %v17961_v43 = vpop.f32.mrb[86].mxu0  ;;  %v27022_v51 = vld [vmem:[#allocation105_spill] sm:$0xff] }
 0xe4e   : > { %v17920_v23 = vadd.f32 %v17919_v21, %v17918_v27  ;;  %v17921_v2 = vpop.f32.mrb[94].mxu1  ;;  %v17962_v49 = vpop.f32.mrb[87].mxu0 }
 0xe4f   : > { %v17922_v30 = vpop.f32.mrb[95].mxu1  ;;  %v17963_v0 = vadd.f32 %v17962_v49, %v17961_v43 }
 0xe50   : > { %v16890_v17 = vadd.f32 %v17960_v53, %v17920_v23  ;;  %v17923_v55 = vadd.f32 %v17922_v30, %v17921_v2 }
 0xe52   : > { %v16921_v54 = vadd.f32 %v26337_v37, %v16890_v17  ;;  %v16893_v60 = vadd.f32 %v17963_v0, %v17923_v55 }
 0xe53   : > { %v17964_v63 = vpop.f32.mrb[88].mxu0 }
 0xe54   : > { %v16933_v24 = vmul.f32 %v26340_v31, %v16921_v54  ;;  %v16922_v28 = vadd.f32 %v26337_v37, %v16893_v60  ;;  %v17924_v46 = vpop.f32.mrb[96].mxu1  ;;  %v17965_v36 = vpop.f32.mrb[89].mxu0 }
 0xe55   : > { %v17925_v35 = vpop.f32.mrb[97].mxu1  ;;  %v17966_v38 = vadd.f32 %v17965_v36, %v17964_v63  ;;  %v17967_v16 = vpop.f32.mrb[90].mxu0 }
 0xe56   : > { %v16941_v3 = vadd.f32 %v16933_v24, %v27015_v59  ;;  %v16934_v11 = vmul.f32 %v26340_v31, %v16922_v28  ;;  %v17926_v10 = vadd.f32 %v17925_v35, %v17924_v46  ;;  %v17927_v13 = vpop.f32.mrb[98].mxu1  ;;  %v17968_v41 = vpop.f32.mrb[91].mxu0 }
 0xe57   : > { %v17928_v25 = vpop.f32.mrb[99].mxu1  ;;  %v17969_v58 = vadd.f32 %v17968_v41, %v17967_v16 }
 0xe58   : > { %16949 = vst [vmem:[%s20325_s28 + $0x10] sm:$0xff] %v16941_v3  ;;  %v16942_v32 = vadd.f32 %v16934_v11, %v27016_v47  ;;  %v16898_v19 = vadd.f32 %v17966_v38, %v17926_v10  ;;  %v17929_v48 = vadd.f32 %v17928_v25, %v17927_v13 }
 0xe5a   : > { %16950 = vst [vmem:[%s20325_s28 + $0x18] sm:$0xff] %v16942_v32  ;;  %v16923_v5 = vadd.f32 %v26337_v37, %v16898_v19  ;;  %v16901_v57 = vadd.f32 %v17969_v58, %v17929_v48 }
 0xe5c   : > { %v16935_v4 = vmul.f32 %v26340_v31, %v16923_v5  ;;  %v16924_v14 = vadd.f32 %v26337_v37, %v16901_v57 }
 0xe5e   : > { %v16943_v34 = vadd.f32 %v16935_v4, %v27017_v8  ;;  %v16936_v26 = vmul.f32 %v26340_v31, %v16924_v14 }
 0xe60   : > { %16951 = vst [vmem:[%s20325_s28 + $0x20] sm:$0xff] %v16943_v34  ;;  %v16944_v20 = vadd.f32 %v16936_v26, %v27019_v6 }
 0xe62   : > { %16952 = vst [vmem:[%s20325_s28 + $0x28] sm:$0xff] %v16944_v20 }
 0xe66   : > { %v17970_v61 = vpop.f32.mrb[92].mxu0 }
 0xe67   : > { %v17930_v22 = vpop.f32.mrb[100].mxu1  ;;  %v17971_v52 = vpop.f32.mrb[93].mxu0 }
 0xe68   : > { %v17931_v1 = vpop.f32.mrb[101].mxu1  ;;  %v17972_v12 = vadd.f32 %v17971_v52, %v17970_v61  ;;  %v17973_v39 = vpop.f32.mrb[94].mxu0 }
 0xe69   : > { %v17932_v62 = vadd.f32 %v17931_v1, %v17930_v22  ;;  %v17933_v40 = vpop.f32.mrb[102].mxu1  ;;  %v17974_v9 = vpop.f32.mrb[95].mxu0 }
 0xe6a   : > { %v17934_v18 = vpop.f32.mrb[103].mxu1  ;;  %v17975_v44 = vadd.f32 %v17974_v9, %v17973_v39 }
 0xe6b   : > { %v16906_v42 = vadd.f32 %v17972_v12, %v17932_v62  ;;  %v17935_v29 = vadd.f32 %v17934_v18, %v17933_v40 }
 0xe6d   : > { %v16925_v15 = vadd.f32 %v26337_v37, %v16906_v42  ;;  %v16909_v7 = vadd.f32 %v17975_v44, %v17935_v29 }
 0xe6f   : > { %v16937_v33 = vmul.f32 %v26340_v31, %v16925_v15  ;;  %v16926_v50 = vadd.f32 %v26337_v37, %v16909_v7 }
 0xe71   : > { %v16945_v56 = vadd.f32 %v16937_v33, %v27021_v45  ;;  %v16938_v27 = vmul.f32 %v26340_v31, %v16926_v50 }
 0xe73   : > { %16953 = vst [vmem:[%s20325_s28 + $0x30] sm:$0xff] %v16945_v56  ;;  %v16946_v21 = vadd.f32 %v16938_v27, %v27022_v51 }
 0xe75   : > { %16954 = vst [vmem:[%s20325_s28 + $0x38] sm:$0xff] %v16946_v21 }
 0xe76   : > { %19620 = shalt.err (!%p19617_p1)
}
 0xe77   : > { %s19621_s12 = scalar_lea.hbm %s26381_s26, 1024  ;;  %s19625_s3 = scalar_lea.hbm %s27023_s24, 4096 }
 0xe78   : > { %p19622_p13 = scmp.ne.s32.totalorder %s26381_s26, %s19621_s12  ;;  %p19626_p2 = scmp.lt.u32.totalorder %s26381_s26, %s27023_s24 }
 0xe79   : > { %p19627_p10 = scmp.lt.u32.totalorder %s19625_s3, %s19621_s12  ;;  %p19629_p9 = scmp.lt.u32.totalorder %s19621_s12, %s26381_s26 }
 0xe7a   : > { %p19623_p0 = pnand %p19622_p13, %p27024_p12 }
 0xe7b   : > { %p19628_p8 = por %p19627_p10, %p19626_p2 }
 0xe7c   : > { %p19624_p3 = pneg %p19623_p0 }
 0xe7d   : > { %p19630_p4 = por %p19629_p9, %p19628_p8 }
 0xe7f   : > { %p19631_p7 = pnand %p19630_p4, %p19624_p3 }
 0xe81   : > { %19634 = shalt.err (!%p19631_p7)
}
 0xe82   : > { %s19786_s6 = smov 128   ;;  %s19787_s15 = smov 8  }
 0xe83   : > { %18426 = dma.vmem_to_hbm [thread:$0]  (%p27024_p12), %s26374_s10, 1024, %s26381_s26, %s26386_s30, %s19786_s6, %s19786_s6, %s19787_s15  }
 0xe84 PF: > { %s27025_s8 = sld [smem:[#allocation31_spill]]  ;;  %p18488_p6 = scmp.ge.s32.totalorder %s19749_s2, 2 }
 0xe85   : > { %p27026_p5 = scmp.ne.s32.totalorder %s26647_s4, 0 }
 0xe87   : > { %p18464_p11 = pnand %p18488_p6, %p27026_p5 }
 0xe8a   : > { %s16986_s17 = sand.u32 1, %s27025_s8  }
 0xe8b   : > { %s16987_s12 = scalar_lea.sflag [#allocation7], %s16986_s17 }
 0xe8c   : > { %19704 = dma.done.wait (!%p18464_p11), %s16987_s12, 1024  }
 0xe8d   : > { %19706 = vsyncadd (!%p18464_p11), %s16987_s12, 4294966272  ;;  %s39_s2 = sadd.s32 1, %s19749_s2   ;;  %s27027_s27 = sld [smem:[#allocation32_spill]] }
 0xe8e   : > { %p36_p1 = scmp.ge.s32.totalorder %s39_s2, 6   ;;  %s27028_s28 = sld [smem:[#allocation33_spill]] }
 0xe8f   : > { %s27029_s29 = smov %s27044_s23  ;;  %s27030_s30 = smov %s19725_s0 }
 0xe90   : > { %s27031_s0 = smov %s19729_s19  ;;  %s27032_s19 = smov %s20228_s20 }
 0xe91   : > { %s27033_s1 = smov %s19741_s21  ;;  %s27034_s20 = smov %s19745_s22 }
 0xe92   : > { %s27035_s21 = smov %s27038_s13  ;;  %s27036_s22 = smov %s27042_s5 }
 0xe93   :  { %38 = sbr.rel (!%p36_p1) target bundleno = 30 (0x1e), region = 189 }
 0xe9a   :  { %16992 = vsyncpa [#allocation6], 1 }
 0xe9b   :  { %16994 = vsyncpa [#allocation6 + $0x1], 1 }
 0xe9c   :  { %16995 = vsyncpa [#allocation9], 1 }
 0xe9d   :  { %16996 = vsyncpa [#allocation12], 1 }
 0xe9e   :  { %16997 = vsyncpa [#allocation15], 1 }
 0xe9f   :  { %16998 = vsyncpa [#allocation18], 1 }
 0xea0   :  { %16999 = vsyncpa [#allocation21], 1 }
 0xea1   :  { %17000 = vsyncpa [#allocation7], 1 }
 0xea2   :  { %17002 = vsyncpa [#allocation7 + $0x1], 1 }

</bundles_post_ra>
